<compile_context>
chip_gen: v5e
topology: v5e:2x2
jax: 0.10.0
libtpu: 0.0.40
codegen_flags: <defaults>
</compile_context>

<pallas_src>
import functools

import jax
import jax.numpy as jnp
from jax.experimental import pallas as pl
from jax.experimental.pallas import tpu as pltpu


# ---------------------------------------------------------------------------
# Kernels
# ---------------------------------------------------------------------------

def _conv_s2_block_kernel(xs_ref, wg_ref, b_ref, mask_ref, o_ref, *,
                          rows, ws, wo, use_norm, eps=1e-5, slope=0.2):
    """Fused stride-2 4x4 conv + bias (+InstanceNorm) + LeakyReLU, one sample.

    xs_ref:   (1, rows_in, 4*C_in) bf16  2x2 space-to-depth input, flat (Hs*Ws)
    wg_ref:   (4, 4*C_in, C_out)   bf16  weights grouped by (ah, aw)
    b_ref:    (1, C_out)           f32   bias
    mask_ref: (rows, 1)            f32   1.0 on valid rows, 0.0 on junk column
    o_ref:    (1, rows, C_out)           rows = Ho*Ws (junk column j == Wo)
    """
    c_out = o_ref.shape[-1]
    acc = jnp.zeros((rows, c_out), jnp.float32)
    # Conv as 4 accumulated bf16 MXU matmuls over contiguous row-slabs.
    for ah in range(2):
        for aw in range(2):
            start = ah * ws + aw
            slab = xs_ref[0, pl.ds(start, rows), :]            # (rows, 4*C_in)
            acc = acc + jnp.dot(slab, wg_ref[2 * ah + aw],
                                preferred_element_type=jnp.float32)
    y = acc + b_ref[...]                                       # bias
    if use_norm:
        # InstanceNorm2d(affine=False): per-sample per-channel stats over the
        # valid spatial positions only (mask removes the junk column).
        # One pass: mean = E[x], var = E[x^2] - mean^2 (biased), eps = 1e-5.
        m = mask_ref[...]                                      # (rows, 1)
        inv_n = 1.0 / float((rows // ws) * wo)                 # 1 / (Ho * Wo)
        ym = y * m
        mean = jnp.sum(ym, axis=0, keepdims=True) * inv_n
        var = jnp.sum(ym * ym, axis=0, keepdims=True) * inv_n - mean * mean
        y = (y - mean) * jax.lax.rsqrt(var + eps)
    y = jnp.where(y > 0, y, slope * y)                         # LeakyReLU(0.2)
    o_ref[0] = y.astype(o_ref.dtype)


def _conv_final_kernel(xp_ref, w_ref, b_ref, o_ref, *, rows, wp):
    """Final 4x4 stride-1 conv, C_out = 1, one sample.

    Computed as VPU multiply-accumulate + cross-lane sum (no N=1 MXU matmul).
    xp_ref: (1, rows_in, C) bf16  zero-padded input, flattened over (Hp, Wp)
    w_ref : (16, C)         f32   rows ordered (kh, kw)
    b_ref : (1, 1)          f32
    o_ref : (1, rows, 1)    f32   rows = Ho*Wp (junk columns j >= Wo)
    """
    c_in = xp_ref.shape[-1]
    acc = jnp.zeros((rows, c_in), jnp.float32)
    for kh in range(4):
        for kw in range(4):
            start = kh * wp + kw
            slab = xp_ref[0, pl.ds(start, rows), :].astype(jnp.float32)
            acc = acc + slab * w_ref[pl.ds(kh * 4 + kw, 1), :]
    y = jnp.sum(acc, axis=1, keepdims=True) + b_ref[...]       # (rows, 1)
    o_ref[0] = y.astype(o_ref.dtype)


# ---------------------------------------------------------------------------
# XLA-side layout prep (1x-sized, no im2col inflation) and layer wrappers
# ---------------------------------------------------------------------------

def _space_to_depth_pad(x_nhwc):
    """pad=1 then 2x2 space-to-depth, flattened: (N, Hs*Ws + Ws, 4*C) bf16."""
    n, h, w, c = x_nhwc.shape
    ho, wo = h // 2, w // 2
    hs, ws = ho + 1, wo + 1
    xp = jnp.pad(x_nhwc, ((0, 0), (1, 1), (1, 1), (0, 0)))
    xs = xp.reshape(n, hs, 2, ws, 2, c).transpose(0, 1, 3, 2, 4, 5)
    xs = xs.reshape(n, hs * ws, 4 * c)               # channel order (ph, pw, c)
    xs = jnp.pad(xs, ((0, 0), (0, ws), (0, 0)))      # slack rows for (1,1) slab
    return xs.astype(jnp.bfloat16), ho, wo, hs, ws


def _regroup_weight_s2(w_oihw):
    """(C_out,C_in,4,4) -> (4, 4*C_in, C_out); group g=2*ah+aw, rows (ph,pw,c)."""
    c_out, c_in = w_oihw.shape[:2]
    wt = w_oihw.reshape(c_out, c_in, 2, 2, 2, 2)     # (o, c, ah, ph, aw, pw)
    wt = wt.transpose(2, 4, 3, 5, 1, 0)              # (ah, aw, ph, pw, c, o)
    return wt.reshape(4, 4 * c_in, c_out).astype(jnp.bfloat16)


def conv_s2_block(x_nhwc, w_oihw, b, *, use_norm, out_dtype=jnp.bfloat16):
    """Conv2d(k=4, s=2, p=1) (+InstanceNorm) + LeakyReLU(0.2); NHWC in/out."""
    n, h, w, c = x_nhwc.shape
    c_out = w_oihw.shape[0]
    xs, ho, wo, hs, ws = _space_to_depth_pad(x_nhwc)
    rows_in = xs.shape[1]
    rows = ho * ws                                   # Ho x Ws slab
    wg = _regroup_weight_s2(w_oihw)
    b2 = b.reshape(1, c_out).astype(jnp.float32)
    mask = ((jnp.arange(rows) % ws) < wo).astype(jnp.float32).reshape(rows, 1)

    kern = functools.partial(_conv_s2_block_kernel, rows=rows, ws=ws, wo=wo,
                             use_norm=use_norm)
    out = pl.pallas_call(
        kern,
        out_shape=jax.ShapeDtypeStruct((n, rows, c_out), out_dtype),
        grid=(n,),
        in_specs=[
            pl.BlockSpec((1, rows_in, 4 * c), lambda i: (i, 0, 0)),
            pl.BlockSpec((4, 4 * c, c_out), lambda i: (0, 0, 0)),
            pl.BlockSpec((1, c_out), lambda i: (0, 0)),
            pl.BlockSpec((rows, 1), lambda i: (0, 0)),
        ],
        out_specs=pl.BlockSpec((1, rows, c_out), lambda i: (i, 0, 0)),
        compiler_params=pltpu.CompilerParams(
            dimension_semantics=("parallel",)),       # batch -> 2 TCs on v7x
    )(xs, wg, b2, mask)
    # Drop the junk column and restore NHWC.
    return out.reshape(n, ho, ws, c_out)[:, :, :wo, :]


def conv_final(x_nhwc, w_oihw, b):
    """Conv2d(C_in -> 1, k=4, s=1, p=1); returns NCHW (N, 1, H-1, W-1)."""
    n, h, w, c = x_nhwc.shape
    hp, wp = h + 2, w + 2
    ho, wo = h - 1, w - 1
    xp = jnp.pad(x_nhwc, ((0, 0), (1, 1), (1, 1), (0, 0))).reshape(n, hp * wp, c)
    xp = jnp.pad(xp, ((0, 0), (0, wp), (0, 0))).astype(jnp.bfloat16)
    rows_in = xp.shape[1]
    rows = ho * wp
    w16 = jnp.transpose(w_oihw, (2, 3, 1, 0)).reshape(16, c).astype(jnp.float32)
    b2 = b.reshape(1, 1).astype(jnp.float32)

    kern = functools.partial(_conv_final_kernel, rows=rows, wp=wp)
    out = pl.pallas_call(
        kern,
        out_shape=jax.ShapeDtypeStruct((n, rows, 1), jnp.float32),
        grid=(n,),
        in_specs=[
            pl.BlockSpec((1, rows_in, c), lambda i: (i, 0, 0)),
            pl.BlockSpec((16, c), lambda i: (0, 0)),
            pl.BlockSpec((1, 1), lambda i: (0, 0)),
        ],
        out_specs=pl.BlockSpec((1, rows, 1), lambda i: (i, 0, 0)),
        compiler_params=pltpu.CompilerParams(
            dimension_semantics=("parallel",)),
    )(xp, w16, b2)
    out = out.reshape(n, ho, wp, 1)[:, :, :wo, :]     # (N, Ho, Wo, 1)
    return jnp.transpose(out, (0, 3, 1, 2))           # NCHW


# ---------------------------------------------------------------------------
# Model
# ---------------------------------------------------------------------------

def init_discriminator_params(key, in_channels=3):
    """Deterministic synthetic weights matching nn.Conv2d shapes."""
    shapes = [
        (64, in_channels, 4, 4),
        (128, 64, 4, 4),
        (256, 128, 4, 4),
        (1, 256, 4, 4),
    ]
    params = {}
    for i, shp in enumerate(shapes, start=1):
        key, kw, kb = jax.random.split(key, 3)
        fan_in = shp[1] * shp[2] * shp[3]
        scale = (1.0 / fan_in) ** 0.5
        params[f"w{i}"] = scale * jax.random.normal(kw, shp, jnp.float32)
        params[f"b{i}"] = scale * jax.random.normal(kb, (shp[0],), jnp.float32)
    return params


def discriminator_forward(x_nchw, params):
    # NCHW -> NHWC for the kernels; back to NCHW at the end (PyTorch layout).
    x = jnp.transpose(x_nchw, (0, 2, 3, 1)).astype(jnp.float32)
    x = conv_s2_block(x, params["w1"], params["b1"], use_norm=False)
    x = conv_s2_block(x, params["w2"], params["b2"], use_norm=True)
    x = conv_s2_block(x, params["w3"], params["b3"], use_norm=True)
    return conv_final(x, params["w4"], params["b4"])


if __name__ == "__main__":
    key = jax.random.PRNGKey(0)
    k_params, k_x = jax.random.split(key)
    params = init_discriminator_params(k_params, in_channels=3)

    # Small input consistent with the module: batch=2, channels=3, 32x32.
    x = jax.random.normal(k_x, (2, 3, 32, 32), jnp.float32)

    out = jax.jit(discriminator_forward)(x, params)
    out = jax.block_until_ready(out)

    # Expected PatchGAN output shape: (2, 1, 3, 3) for 32x32 input.
    assert out.shape == (2, 1, 3, 3), out.shape
    assert bool(jnp.all(jnp.isfinite(out)))
    print("KERNEL_OK")
</pallas_src>

<mosaic_0001>
module attributes {stable_mosaic.version = 11 : i64} {
  func.func @_conv_s2_block_kernel(%arg0: i32, %arg1: memref<1x306x12xbf16, #tpu.memory_space<vmem>>, %arg2: memref<4x12x64xbf16, #tpu.memory_space<vmem>>, %arg3: memref<1x64xf32, #tpu.memory_space<vmem>>, %arg4: memref<272x1xf32, #tpu.memory_space<vmem>>, %arg5: memref<1x272x64xbf16, #tpu.memory_space<vmem>>) attributes {dimension_semantics = [#tpu.dimension_semantics<parallel>], iteration_bounds = array<i64: 2>, scalar_prefetch = 0 : i64, scratch_operands = 0 : i64, tpu.core_type = #tpu.core_type<tc>, window_params = [{transform_indices = @transform_0, window_bounds = array<i64: 1, 306, 12>}, {pipeline_mode = #tpu.pipeline_mode<synchronous>, transform_indices = @transform_1, window_bounds = array<i64: 4, 12, 64>}, {pipeline_mode = #tpu.pipeline_mode<synchronous>, transform_indices = @transform_2, window_bounds = array<i64: 1, 64>}, {pipeline_mode = #tpu.pipeline_mode<synchronous>, transform_indices = @transform_3, window_bounds = array<i64: 272, 1>}, {transform_indices = @transform_4, window_bounds = array<i64: 1, 272, 64>}]} {
    %cst = arith.constant 0.000000e+00 : f32
    %0 = vector.broadcast %cst : f32 to vector<272x64xf32>
    %c0 = arith.constant 0 : index
    %c0_0 = arith.constant 0 : index
    %c0_1 = arith.constant 0 : index
    %1 = vector.load %arg1[%c0, %c0_0, %c0_1] : memref<1x306x12xbf16, #tpu.memory_space<vmem>>, vector<1x272x12xbf16>
    %2 = vector.shape_cast %1 : vector<1x272x12xbf16> to vector<272x12xbf16>
    %c0_2 = arith.constant 0 : index
    %c0_3 = arith.constant 0 : index
    %c0_4 = arith.constant 0 : index
    %3 = vector.load %arg2[%c0_2, %c0_3, %c0_4] : memref<4x12x64xbf16, #tpu.memory_space<vmem>>, vector<1x12x64xbf16>
    %4 = vector.shape_cast %3 : vector<1x12x64xbf16> to vector<12x64xbf16>
    %cst_5 = arith.constant dense<0.000000e+00> : vector<272x64xf32>
    %5 = tpu.matmul %2, %4, %cst_5 {dimension_numbers = #tpu.dot_dimension_numbers<[1], [0], [0], [1], [0, 0, 1, 1], [], []>} : vector<272x12xbf16>, vector<12x64xbf16>, vector<272x64xf32> -> vector<272x64xf32>
    %6 = arith.addf %0, %5 : vector<272x64xf32>
    %c0_6 = arith.constant 0 : index
    %c1 = arith.constant 1 : index
    %c0_7 = arith.constant 0 : index
    %7 = vector.load %arg1[%c0_6, %c1, %c0_7] : memref<1x306x12xbf16, #tpu.memory_space<vmem>>, vector<1x272x12xbf16>
    %8 = vector.shape_cast %7 : vector<1x272x12xbf16> to vector<272x12xbf16>
    %c1_8 = arith.constant 1 : index
    %c0_9 = arith.constant 0 : index
    %c0_10 = arith.constant 0 : index
    %9 = vector.load %arg2[%c1_8, %c0_9, %c0_10] : memref<4x12x64xbf16, #tpu.memory_space<vmem>>, vector<1x12x64xbf16>
    %10 = vector.shape_cast %9 : vector<1x12x64xbf16> to vector<12x64xbf16>
    %cst_11 = arith.constant dense<0.000000e+00> : vector<272x64xf32>
    %11 = tpu.matmul %8, %10, %cst_11 {dimension_numbers = #tpu.dot_dimension_numbers<[1], [0], [0], [1], [0, 0, 1, 1], [], []>} : vector<272x12xbf16>, vector<12x64xbf16>, vector<272x64xf32> -> vector<272x64xf32>
    %12 = arith.addf %6, %11 : vector<272x64xf32>
    %c0_12 = arith.constant 0 : index
    %c17 = arith.constant 17 : index
    %c0_13 = arith.constant 0 : index
    %13 = vector.load %arg1[%c0_12, %c17, %c0_13] : memref<1x306x12xbf16, #tpu.memory_space<vmem>>, vector<1x272x12xbf16>
    %14 = vector.shape_cast %13 : vector<1x272x12xbf16> to vector<272x12xbf16>
    %c2 = arith.constant 2 : index
    %c0_14 = arith.constant 0 : index
    %c0_15 = arith.constant 0 : index
    %15 = vector.load %arg2[%c2, %c0_14, %c0_15] : memref<4x12x64xbf16, #tpu.memory_space<vmem>>, vector<1x12x64xbf16>
    %16 = vector.shape_cast %15 : vector<1x12x64xbf16> to vector<12x64xbf16>
    %cst_16 = arith.constant dense<0.000000e+00> : vector<272x64xf32>
    %17 = tpu.matmul %14, %16, %cst_16 {dimension_numbers = #tpu.dot_dimension_numbers<[1], [0], [0], [1], [0, 0, 1, 1], [], []>} : vector<272x12xbf16>, vector<12x64xbf16>, vector<272x64xf32> -> vector<272x64xf32>
    %18 = arith.addf %12, %17 : vector<272x64xf32>
    %c0_17 = arith.constant 0 : index
    %c18 = arith.constant 18 : index
    %c0_18 = arith.constant 0 : index
    %19 = vector.load %arg1[%c0_17, %c18, %c0_18] : memref<1x306x12xbf16, #tpu.memory_space<vmem>>, vector<1x272x12xbf16>
    %20 = vector.shape_cast %19 : vector<1x272x12xbf16> to vector<272x12xbf16>
    %c3 = arith.constant 3 : index
    %c0_19 = arith.constant 0 : index
    %c0_20 = arith.constant 0 : index
    %21 = vector.load %arg2[%c3, %c0_19, %c0_20] : memref<4x12x64xbf16, #tpu.memory_space<vmem>>, vector<1x12x64xbf16>
    %22 = vector.shape_cast %21 : vector<1x12x64xbf16> to vector<12x64xbf16>
    %cst_21 = arith.constant dense<0.000000e+00> : vector<272x64xf32>
    %23 = tpu.matmul %20, %22, %cst_21 {dimension_numbers = #tpu.dot_dimension_numbers<[1], [0], [0], [1], [0, 0, 1, 1], [], []>} : vector<272x12xbf16>, vector<12x64xbf16>, vector<272x64xf32> -> vector<272x64xf32>
    %24 = arith.addf %18, %23 : vector<272x64xf32>
    %c0_22 = arith.constant 0 : index
    %c0_23 = arith.constant 0 : index
    %25 = vector.load %arg3[%c0_22, %c0_23] : memref<1x64xf32, #tpu.memory_space<vmem>>, vector<1x64xf32>
    %26 = vector.broadcast %25 : vector<1x64xf32> to vector<272x64xf32>
    %27 = arith.addf %24, %26 : vector<272x64xf32>
    %cst_24 = arith.constant 0.000000e+00 : f32
    %28 = vector.broadcast %cst_24 : f32 to vector<272x64xf32>
    %29 = arith.cmpf ogt, %27, %28 : vector<272x64xf32>
    %cst_25 = arith.constant 2.000000e-01 : f32
    %30 = vector.broadcast %cst_25 : f32 to vector<272x64xf32>
    %31 = arith.mulf %30, %27 : vector<272x64xf32>
    %32 = arith.select %29, %27, %31 : vector<272x64xi1>, vector<272x64xf32>
    %33 = arith.truncf %32 : vector<272x64xf32> to vector<272x64xbf16>
    %c0_26 = arith.constant 0 : index
    %c0_27 = arith.constant 0 : index
    %c0_28 = arith.constant 0 : index
    %34 = vector.load %arg5[%c0_26, %c0_27, %c0_28] : memref<1x272x64xbf16, #tpu.memory_space<vmem>>, vector<1x272x64xbf16>
    %35 = vector.shape_cast %34 : vector<1x272x64xbf16> to vector<272x64xbf16>
    %36 = vector.shape_cast %33 : vector<272x64xbf16> to vector<1x272x64xbf16>
    tpu.vector_store %arg5[%c0_26, %c0_27, %c0_28], %36 {strides = array<i32>} : memref<1x272x64xbf16, #tpu.memory_space<vmem>>, vector<1x272x64xbf16>,
    return
  }
  func.func @transform_0(%arg0: i32) -> (i32, i32, i32) {
    %c0_i32 = arith.constant 0 : i32
    %c0_i32_0 = arith.constant 0 : i32
    %c0_i32_1 = arith.constant 0 : i32
    return %arg0, %c0_i32, %c0_i32_0 : i32, i32, i32
  }
  func.func @transform_1(%arg0: i32) -> (i32, i32, i32) {
    %c0_i32 = arith.constant 0 : i32
    %c0_i32_0 = arith.constant 0 : i32
    %c0_i32_1 = arith.constant 0 : i32
    %c0_i32_2 = arith.constant 0 : i32
    return %c0_i32, %c0_i32_0, %c0_i32_1 : i32, i32, i32
  }
  func.func @transform_2(%arg0: i32) -> (i32, i32) {
    %c0_i32 = arith.constant 0 : i32
    %c0_i32_0 = arith.constant 0 : i32
    %c0_i32_1 = arith.constant 0 : i32
    return %c0_i32, %c0_i32_0 : i32, i32
  }
  func.func @transform_3(%arg0: i32) -> (i32, i32) {
    %c0_i32 = arith.constant 0 : i32
    %c0_i32_0 = arith.constant 0 : i32
    %c0_i32_1 = arith.constant 0 : i32
    return %c0_i32, %c0_i32_0 : i32, i32
  }
  func.func @transform_4(%arg0: i32) -> (i32, i32, i32) {
    %c0_i32 = arith.constant 0 : i32
    %c0_i32_0 = arith.constant 0 : i32
    %c0_i32_1 = arith.constant 0 : i32
    return %arg0, %c0_i32, %c0_i32_0 : i32, i32, i32
  }
}

module attributes {stable_mosaic.version = 11 : i64} {
  func.func @_conv_s2_block_kernel(%arg0: i32, %arg1: memref<1x90x256xbf16, #tpu.memory_space<vmem>>, %arg2: memref<4x256x128xbf16, #tpu.memory_space<vmem>>, %arg3: memref<1x128xf32, #tpu.memory_space<vmem>>, %arg4: memref<72x1xf32, #tpu.memory_space<vmem>>, %arg5: memref<1x72x128xbf16, #tpu.memory_space<vmem>>) attributes {dimension_semantics = [#tpu.dimension_semantics<parallel>], iteration_bounds = array<i64: 2>, scalar_prefetch = 0 : i64, scratch_operands = 0 : i64, tpu.core_type = #tpu.core_type<tc>, window_params = [{transform_indices = @transform_0, window_bounds = array<i64: 1, 90, 256>}, {pipeline_mode = #tpu.pipeline_mode<synchronous>, transform_indices = @transform_1, window_bounds = array<i64: 4, 256, 128>}, {pipeline_mode = #tpu.pipeline_mode<synchronous>, transform_indices = @transform_2, window_bounds = array<i64: 1, 128>}, {pipeline_mode = #tpu.pipeline_mode<synchronous>, transform_indices = @transform_3, window_bounds = array<i64: 72, 1>}, {transform_indices = @transform_4, window_bounds = array<i64: 1, 72, 128>}]} {
    %cst = arith.constant 0.000000e+00 : f32
    %0 = vector.broadcast %cst : f32 to vector<72x128xf32>
    %c0 = arith.constant 0 : index
    %c0_0 = arith.constant 0 : index
    %c0_1 = arith.constant 0 : index
    %1 = vector.load %arg1[%c0, %c0_0, %c0_1] : memref<1x90x256xbf16, #tpu.memory_space<vmem>>, vector<1x72x256xbf16>
    %2 = vector.shape_cast %1 : vector<1x72x256xbf16> to vector<72x256xbf16>
    %c0_2 = arith.constant 0 : index
    %c0_3 = arith.constant 0 : index
    %c0_4 = arith.constant 0 : index
    %3 = vector.load %arg2[%c0_2, %c0_3, %c0_4] : memref<4x256x128xbf16, #tpu.memory_space<vmem>>, vector<1x256x128xbf16>
    %4 = vector.shape_cast %3 : vector<1x256x128xbf16> to vector<256x128xbf16>
    %cst_5 = arith.constant dense<0.000000e+00> : vector<72x128xf32>
    %5 = tpu.matmul %2, %4, %cst_5 {dimension_numbers = #tpu.dot_dimension_numbers<[1], [0], [0], [1], [0, 0, 1, 1], [], []>} : vector<72x256xbf16>, vector<256x128xbf16>, vector<72x128xf32> -> vector<72x128xf32>
    %6 = arith.addf %0, %5 : vector<72x128xf32>
    %c0_6 = arith.constant 0 : index
    %c1 = arith.constant 1 : index
    %c0_7 = arith.constant 0 : index
    %7 = vector.load %arg1[%c0_6, %c1, %c0_7] : memref<1x90x256xbf16, #tpu.memory_space<vmem>>, vector<1x72x256xbf16>
    %8 = vector.shape_cast %7 : vector<1x72x256xbf16> to vector<72x256xbf16>
    %c1_8 = arith.constant 1 : index
    %c0_9 = arith.constant 0 : index
    %c0_10 = arith.constant 0 : index
    %9 = vector.load %arg2[%c1_8, %c0_9, %c0_10] : memref<4x256x128xbf16, #tpu.memory_space<vmem>>, vector<1x256x128xbf16>
    %10 = vector.shape_cast %9 : vector<1x256x128xbf16> to vector<256x128xbf16>
    %cst_11 = arith.constant dense<0.000000e+00> : vector<72x128xf32>
    %11 = tpu.matmul %8, %10, %cst_11 {dimension_numbers = #tpu.dot_dimension_numbers<[1], [0], [0], [1], [0, 0, 1, 1], [], []>} : vector<72x256xbf16>, vector<256x128xbf16>, vector<72x128xf32> -> vector<72x128xf32>
    %12 = arith.addf %6, %11 : vector<72x128xf32>
    %c0_12 = arith.constant 0 : index
    %c9 = arith.constant 9 : index
    %c0_13 = arith.constant 0 : index
    %13 = vector.load %arg1[%c0_12, %c9, %c0_13] : memref<1x90x256xbf16, #tpu.memory_space<vmem>>, vector<1x72x256xbf16>
    %14 = vector.shape_cast %13 : vector<1x72x256xbf16> to vector<72x256xbf16>
    %c2 = arith.constant 2 : index
    %c0_14 = arith.constant 0 : index
    %c0_15 = arith.constant 0 : index
    %15 = vector.load %arg2[%c2, %c0_14, %c0_15] : memref<4x256x128xbf16, #tpu.memory_space<vmem>>, vector<1x256x128xbf16>
    %16 = vector.shape_cast %15 : vector<1x256x128xbf16> to vector<256x128xbf16>
    %cst_16 = arith.constant dense<0.000000e+00> : vector<72x128xf32>
    %17 = tpu.matmul %14, %16, %cst_16 {dimension_numbers = #tpu.dot_dimension_numbers<[1], [0], [0], [1], [0, 0, 1, 1], [], []>} : vector<72x256xbf16>, vector<256x128xbf16>, vector<72x128xf32> -> vector<72x128xf32>
    %18 = arith.addf %12, %17 : vector<72x128xf32>
    %c0_17 = arith.constant 0 : index
    %c10 = arith.constant 10 : index
    %c0_18 = arith.constant 0 : index
    %19 = vector.load %arg1[%c0_17, %c10, %c0_18] : memref<1x90x256xbf16, #tpu.memory_space<vmem>>, vector<1x72x256xbf16>
    %20 = vector.shape_cast %19 : vector<1x72x256xbf16> to vector<72x256xbf16>
    %c3 = arith.constant 3 : index
    %c0_19 = arith.constant 0 : index
    %c0_20 = arith.constant 0 : index
    %21 = vector.load %arg2[%c3, %c0_19, %c0_20] : memref<4x256x128xbf16, #tpu.memory_space<vmem>>, vector<1x256x128xbf16>
    %22 = vector.shape_cast %21 : vector<1x256x128xbf16> to vector<256x128xbf16>
    %cst_21 = arith.constant dense<0.000000e+00> : vector<72x128xf32>
    %23 = tpu.matmul %20, %22, %cst_21 {dimension_numbers = #tpu.dot_dimension_numbers<[1], [0], [0], [1], [0, 0, 1, 1], [], []>} : vector<72x256xbf16>, vector<256x128xbf16>, vector<72x128xf32> -> vector<72x128xf32>
    %24 = arith.addf %18, %23 : vector<72x128xf32>
    %c0_22 = arith.constant 0 : index
    %c0_23 = arith.constant 0 : index
    %25 = vector.load %arg3[%c0_22, %c0_23] : memref<1x128xf32, #tpu.memory_space<vmem>>, vector<1x128xf32>
    %26 = vector.broadcast %25 : vector<1x128xf32> to vector<72x128xf32>
    %27 = arith.addf %24, %26 : vector<72x128xf32>
    %c0_24 = arith.constant 0 : index
    %c0_25 = arith.constant 0 : index
    %28 = vector.load %arg4[%c0_24, %c0_25] : memref<72x1xf32, #tpu.memory_space<vmem>>, vector<72x1xf32>
    %29 = vector.broadcast %28 : vector<72x1xf32> to vector<72x128xf32>
    %30 = arith.mulf %27, %29 : vector<72x128xf32>
    %cst_26 = arith.constant dense<0.000000e+00> : vector<128xf32>
    %31 = vector.multi_reduction <add>, %30, %cst_26 [0] : vector<72x128xf32> to vector<128xf32>
    %32 = vector.shape_cast %31 : vector<128xf32> to vector<1x128xf32>
    %cst_27 = arith.constant 1.562500e-02 : f32
    %33 = vector.broadcast %cst_27 : f32 to vector<1x128xf32>
    %34 = arith.mulf %32, %33 : vector<1x128xf32>
    %35 = arith.mulf %30, %30 : vector<72x128xf32>
    %cst_28 = arith.constant dense<0.000000e+00> : vector<128xf32>
    %36 = vector.multi_reduction <add>, %35, %cst_28 [0] : vector<72x128xf32> to vector<128xf32>
    %37 = vector.shape_cast %36 : vector<128xf32> to vector<1x128xf32>
    %cst_29 = arith.constant 1.562500e-02 : f32
    %38 = vector.broadcast %cst_29 : f32 to vector<1x128xf32>
    %39 = arith.mulf %37, %38 : vector<1x128xf32>
    %40 = arith.mulf %34, %34 : vector<1x128xf32>
    %41 = arith.subf %39, %40 : vector<1x128xf32>
    %42 = vector.broadcast %34 : vector<1x128xf32> to vector<72x128xf32>
    %43 = arith.subf %27, %42 : vector<72x128xf32>
    %cst_30 = arith.constant 9.99999974E-6 : f32
    %44 = vector.broadcast %cst_30 : f32 to vector<1x128xf32>
    %45 = arith.addf %41, %44 : vector<1x128xf32>
    %46 = math.rsqrt %45 : vector<1x128xf32>
    %47 = vector.broadcast %46 : vector<1x128xf32> to vector<72x128xf32>
    %48 = arith.mulf %43, %47 : vector<72x128xf32>
    %cst_31 = arith.constant 0.000000e+00 : f32
    %49 = vector.broadcast %cst_31 : f32 to vector<72x128xf32>
    %50 = arith.cmpf ogt, %48, %49 : vector<72x128xf32>
    %cst_32 = arith.constant 2.000000e-01 : f32
    %51 = vector.broadcast %cst_32 : f32 to vector<72x128xf32>
    %52 = arith.mulf %51, %48 : vector<72x128xf32>
    %53 = arith.select %50, %48, %52 : vector<72x128xi1>, vector<72x128xf32>
    %54 = arith.truncf %53 : vector<72x128xf32> to vector<72x128xbf16>
    %c0_33 = arith.constant 0 : index
    %c0_34 = arith.constant 0 : index
    %c0_35 = arith.constant 0 : index
    %55 = vector.load %arg5[%c0_33, %c0_34, %c0_35] : memref<1x72x128xbf16, #tpu.memory_space<vmem>>, vector<1x72x128xbf16>
    %56 = vector.shape_cast %55 : vector<1x72x128xbf16> to vector<72x128xbf16>
    %57 = vector.shape_cast %54 : vector<72x128xbf16> to vector<1x72x128xbf16>
    tpu.vector_store %arg5[%c0_33, %c0_34, %c0_35], %57 {strides = array<i32>} : memref<1x72x128xbf16, #tpu.memory_space<vmem>>, vector<1x72x128xbf16>,
    return
  }
  func.func @transform_0(%arg0: i32) -> (i32, i32, i32) {
    %c0_i32 = arith.constant 0 : i32
    %c0_i32_0 = arith.constant 0 : i32
    %c0_i32_1 = arith.constant 0 : i32
    return %arg0, %c0_i32, %c0_i32_0 : i32, i32, i32
  }
  func.func @transform_1(%arg0: i32) -> (i32, i32, i32) {
    %c0_i32 = arith.constant 0 : i32
    %c0_i32_0 = arith.constant 0 : i32
    %c0_i32_1 = arith.constant 0 : i32
    %c0_i32_2 = arith.constant 0 : i32
    return %c0_i32, %c0_i32_0, %c0_i32_1 : i32, i32, i32
  }
  func.func @transform_2(%arg0: i32) -> (i32, i32) {
    %c0_i32 = arith.constant 0 : i32
    %c0_i32_0 = arith.constant 0 : i32
    %c0_i32_1 = arith.constant 0 : i32
    return %c0_i32, %c0_i32_0 : i32, i32
  }
  func.func @transform_3(%arg0: i32) -> (i32, i32) {
    %c0_i32 = arith.constant 0 : i32
    %c0_i32_0 = arith.constant 0 : i32
    %c0_i32_1 = arith.constant 0 : i32
    return %c0_i32, %c0_i32_0 : i32, i32
  }
  func.func @transform_4(%arg0: i32) -> (i32, i32, i32) {
    %c0_i32 = arith.constant 0 : i32
    %c0_i32_0 = arith.constant 0 : i32
    %c0_i32_1 = arith.constant 0 : i32
    return %arg0, %c0_i32, %c0_i32_0 : i32, i32, i32
  }
}

module attributes {stable_mosaic.version = 11 : i64} {
  func.func @_conv_s2_block_kernel(%arg0: i32, %arg1: memref<1x30x512xbf16, #tpu.memory_space<vmem>>, %arg2: memref<4x512x256xbf16, #tpu.memory_space<vmem>>, %arg3: memref<1x256xf32, #tpu.memory_space<vmem>>, %arg4: memref<20x1xf32, #tpu.memory_space<vmem>>, %arg5: memref<1x20x256xbf16, #tpu.memory_space<vmem>>) attributes {dimension_semantics = [#tpu.dimension_semantics<parallel>], iteration_bounds = array<i64: 2>, scalar_prefetch = 0 : i64, scratch_operands = 0 : i64, tpu.core_type = #tpu.core_type<tc>, window_params = [{transform_indices = @transform_0, window_bounds = array<i64: 1, 30, 512>}, {pipeline_mode = #tpu.pipeline_mode<synchronous>, transform_indices = @transform_1, window_bounds = array<i64: 4, 512, 256>}, {pipeline_mode = #tpu.pipeline_mode<synchronous>, transform_indices = @transform_2, window_bounds = array<i64: 1, 256>}, {pipeline_mode = #tpu.pipeline_mode<synchronous>, transform_indices = @transform_3, window_bounds = array<i64: 20, 1>}, {transform_indices = @transform_4, window_bounds = array<i64: 1, 20, 256>}]} {
    %cst = arith.constant 0.000000e+00 : f32
    %0 = vector.broadcast %cst : f32 to vector<20x256xf32>
    %c0 = arith.constant 0 : index
    %c0_0 = arith.constant 0 : index
    %c0_1 = arith.constant 0 : index
    %1 = vector.load %arg1[%c0, %c0_0, %c0_1] : memref<1x30x512xbf16, #tpu.memory_space<vmem>>, vector<1x20x512xbf16>
    %2 = vector.shape_cast %1 : vector<1x20x512xbf16> to vector<20x512xbf16>
    %c0_2 = arith.constant 0 : index
    %c0_3 = arith.constant 0 : index
    %c0_4 = arith.constant 0 : index
    %3 = vector.load %arg2[%c0_2, %c0_3, %c0_4] : memref<4x512x256xbf16, #tpu.memory_space<vmem>>, vector<1x512x256xbf16>
    %4 = vector.shape_cast %3 : vector<1x512x256xbf16> to vector<512x256xbf16>
    %cst_5 = arith.constant dense<0.000000e+00> : vector<20x256xf32>
    %5 = tpu.matmul %2, %4, %cst_5 {dimension_numbers = #tpu.dot_dimension_numbers<[1], [0], [0], [1], [0, 0, 1, 1], [], []>} : vector<20x512xbf16>, vector<512x256xbf16>, vector<20x256xf32> -> vector<20x256xf32>
    %6 = arith.addf %0, %5 : vector<20x256xf32>
    %c0_6 = arith.constant 0 : index
    %c1 = arith.constant 1 : index
    %c0_7 = arith.constant 0 : index
    %7 = vector.load %arg1[%c0_6, %c1, %c0_7] : memref<1x30x512xbf16, #tpu.memory_space<vmem>>, vector<1x20x512xbf16>
    %8 = vector.shape_cast %7 : vector<1x20x512xbf16> to vector<20x512xbf16>
    %c1_8 = arith.constant 1 : index
    %c0_9 = arith.constant 0 : index
    %c0_10 = arith.constant 0 : index
    %9 = vector.load %arg2[%c1_8, %c0_9, %c0_10] : memref<4x512x256xbf16, #tpu.memory_space<vmem>>, vector<1x512x256xbf16>
    %10 = vector.shape_cast %9 : vector<1x512x256xbf16> to vector<512x256xbf16>
    %cst_11 = arith.constant dense<0.000000e+00> : vector<20x256xf32>
    %11 = tpu.matmul %8, %10, %cst_11 {dimension_numbers = #tpu.dot_dimension_numbers<[1], [0], [0], [1], [0, 0, 1, 1], [], []>} : vector<20x512xbf16>, vector<512x256xbf16>, vector<20x256xf32> -> vector<20x256xf32>
    %12 = arith.addf %6, %11 : vector<20x256xf32>
    %c0_12 = arith.constant 0 : index
    %c5 = arith.constant 5 : index
    %c0_13 = arith.constant 0 : index
    %13 = vector.load %arg1[%c0_12, %c5, %c0_13] : memref<1x30x512xbf16, #tpu.memory_space<vmem>>, vector<1x20x512xbf16>
    %14 = vector.shape_cast %13 : vector<1x20x512xbf16> to vector<20x512xbf16>
    %c2 = arith.constant 2 : index
    %c0_14 = arith.constant 0 : index
    %c0_15 = arith.constant 0 : index
    %15 = vector.load %arg2[%c2, %c0_14, %c0_15] : memref<4x512x256xbf16, #tpu.memory_space<vmem>>, vector<1x512x256xbf16>
    %16 = vector.shape_cast %15 : vector<1x512x256xbf16> to vector<512x256xbf16>
    %cst_16 = arith.constant dense<0.000000e+00> : vector<20x256xf32>
    %17 = tpu.matmul %14, %16, %cst_16 {dimension_numbers = #tpu.dot_dimension_numbers<[1], [0], [0], [1], [0, 0, 1, 1], [], []>} : vector<20x512xbf16>, vector<512x256xbf16>, vector<20x256xf32> -> vector<20x256xf32>
    %18 = arith.addf %12, %17 : vector<20x256xf32>
    %c0_17 = arith.constant 0 : index
    %c6 = arith.constant 6 : index
    %c0_18 = arith.constant 0 : index
    %19 = vector.load %arg1[%c0_17, %c6, %c0_18] : memref<1x30x512xbf16, #tpu.memory_space<vmem>>, vector<1x20x512xbf16>
    %20 = vector.shape_cast %19 : vector<1x20x512xbf16> to vector<20x512xbf16>
    %c3 = arith.constant 3 : index
    %c0_19 = arith.constant 0 : index
    %c0_20 = arith.constant 0 : index
    %21 = vector.load %arg2[%c3, %c0_19, %c0_20] : memref<4x512x256xbf16, #tpu.memory_space<vmem>>, vector<1x512x256xbf16>
    %22 = vector.shape_cast %21 : vector<1x512x256xbf16> to vector<512x256xbf16>
    %cst_21 = arith.constant dense<0.000000e+00> : vector<20x256xf32>
    %23 = tpu.matmul %20, %22, %cst_21 {dimension_numbers = #tpu.dot_dimension_numbers<[1], [0], [0], [1], [0, 0, 1, 1], [], []>} : vector<20x512xbf16>, vector<512x256xbf16>, vector<20x256xf32> -> vector<20x256xf32>
    %24 = arith.addf %18, %23 : vector<20x256xf32>
    %c0_22 = arith.constant 0 : index
    %c0_23 = arith.constant 0 : index
    %25 = vector.load %arg3[%c0_22, %c0_23] : memref<1x256xf32, #tpu.memory_space<vmem>>, vector<1x256xf32>
    %26 = vector.broadcast %25 : vector<1x256xf32> to vector<20x256xf32>
    %27 = arith.addf %24, %26 : vector<20x256xf32>
    %c0_24 = arith.constant 0 : index
    %c0_25 = arith.constant 0 : index
    %28 = vector.load %arg4[%c0_24, %c0_25] : memref<20x1xf32, #tpu.memory_space<vmem>>, vector<20x1xf32>
    %29 = vector.broadcast %28 : vector<20x1xf32> to vector<20x256xf32>
    %30 = arith.mulf %27, %29 : vector<20x256xf32>
    %cst_26 = arith.constant dense<0.000000e+00> : vector<256xf32>
    %31 = vector.multi_reduction <add>, %30, %cst_26 [0] : vector<20x256xf32> to vector<256xf32>
    %32 = vector.shape_cast %31 : vector<256xf32> to vector<1x256xf32>
    %cst_27 = arith.constant 6.250000e-02 : f32
    %33 = vector.broadcast %cst_27 : f32 to vector<1x256xf32>
    %34 = arith.mulf %32, %33 : vector<1x256xf32>
    %35 = arith.mulf %30, %30 : vector<20x256xf32>
    %cst_28 = arith.constant dense<0.000000e+00> : vector<256xf32>
    %36 = vector.multi_reduction <add>, %35, %cst_28 [0] : vector<20x256xf32> to vector<256xf32>
    %37 = vector.shape_cast %36 : vector<256xf32> to vector<1x256xf32>
    %cst_29 = arith.constant 6.250000e-02 : f32
    %38 = vector.broadcast %cst_29 : f32 to vector<1x256xf32>
    %39 = arith.mulf %37, %38 : vector<1x256xf32>
    %40 = arith.mulf %34, %34 : vector<1x256xf32>
    %41 = arith.subf %39, %40 : vector<1x256xf32>
    %42 = vector.broadcast %34 : vector<1x256xf32> to vector<20x256xf32>
    %43 = arith.subf %27, %42 : vector<20x256xf32>
    %cst_30 = arith.constant 9.99999974E-6 : f32
    %44 = vector.broadcast %cst_30 : f32 to vector<1x256xf32>
    %45 = arith.addf %41, %44 : vector<1x256xf32>
    %46 = math.rsqrt %45 : vector<1x256xf32>
    %47 = vector.broadcast %46 : vector<1x256xf32> to vector<20x256xf32>
    %48 = arith.mulf %43, %47 : vector<20x256xf32>
    %cst_31 = arith.constant 0.000000e+00 : f32
    %49 = vector.broadcast %cst_31 : f32 to vector<20x256xf32>
    %50 = arith.cmpf ogt, %48, %49 : vector<20x256xf32>
    %cst_32 = arith.constant 2.000000e-01 : f32
    %51 = vector.broadcast %cst_32 : f32 to vector<20x256xf32>
    %52 = arith.mulf %51, %48 : vector<20x256xf32>
    %53 = arith.select %50, %48, %52 : vector<20x256xi1>, vector<20x256xf32>
    %54 = arith.truncf %53 : vector<20x256xf32> to vector<20x256xbf16>
    %c0_33 = arith.constant 0 : index
    %c0_34 = arith.constant 0 : index
    %c0_35 = arith.constant 0 : index
    %55 = vector.load %arg5[%c0_33, %c0_34, %c0_35] : memref<1x20x256xbf16, #tpu.memory_space<vmem>>, vector<1x20x256xbf16>
    %56 = vector.shape_cast %55 : vector<1x20x256xbf16> to vector<20x256xbf16>
    %57 = vector.shape_cast %54 : vector<20x256xbf16> to vector<1x20x256xbf16>
    tpu.vector_store %arg5[%c0_33, %c0_34, %c0_35], %57 {strides = array<i32>} : memref<1x20x256xbf16, #tpu.memory_space<vmem>>, vector<1x20x256xbf16>,
    return
  }
  func.func @transform_0(%arg0: i32) -> (i32, i32, i32) {
    %c0_i32 = arith.constant 0 : i32
    %c0_i32_0 = arith.constant 0 : i32
    %c0_i32_1 = arith.constant 0 : i32
    return %arg0, %c0_i32, %c0_i32_0 : i32, i32, i32
  }
  func.func @transform_1(%arg0: i32) -> (i32, i32, i32) {
    %c0_i32 = arith.constant 0 : i32
    %c0_i32_0 = arith.constant 0 : i32
    %c0_i32_1 = arith.constant 0 : i32
    %c0_i32_2 = arith.constant 0 : i32
    return %c0_i32, %c0_i32_0, %c0_i32_1 : i32, i32, i32
  }
  func.func @transform_2(%arg0: i32) -> (i32, i32) {
    %c0_i32 = arith.constant 0 : i32
    %c0_i32_0 = arith.constant 0 : i32
    %c0_i32_1 = arith.constant 0 : i32
    return %c0_i32, %c0_i32_0 : i32, i32
  }
  func.func @transform_3(%arg0: i32) -> (i32, i32) {
    %c0_i32 = arith.constant 0 : i32
    %c0_i32_0 = arith.constant 0 : i32
    %c0_i32_1 = arith.constant 0 : i32
    return %c0_i32, %c0_i32_0 : i32, i32
  }
  func.func @transform_4(%arg0: i32) -> (i32, i32, i32) {
    %c0_i32 = arith.constant 0 : i32
    %c0_i32_0 = arith.constant 0 : i32
    %c0_i32_1 = arith.constant 0 : i32
    return %arg0, %c0_i32, %c0_i32_0 : i32, i32, i32
  }
}

module attributes {stable_mosaic.version = 11 : i64} {
  func.func @_conv_final_kernel(%arg0: i32, %arg1: memref<1x42x256xbf16, #tpu.memory_space<vmem>>, %arg2: memref<16x256xf32, #tpu.memory_space<vmem>>, %arg3: memref<1x1xf32, #tpu.memory_space<vmem>>, %arg4: memref<1x18x1xf32, #tpu.memory_space<vmem>>) attributes {dimension_semantics = [#tpu.dimension_semantics<parallel>], iteration_bounds = array<i64: 2>, scalar_prefetch = 0 : i64, scratch_operands = 0 : i64, tpu.core_type = #tpu.core_type<tc>, window_params = [{transform_indices = @transform_0, window_bounds = array<i64: 1, 42, 256>}, {pipeline_mode = #tpu.pipeline_mode<synchronous>, transform_indices = @transform_1, window_bounds = array<i64: 16, 256>}, {pipeline_mode = #tpu.pipeline_mode<synchronous>, transform_indices = @transform_2, window_bounds = array<i64: 1, 1>}, {transform_indices = @transform_3, window_bounds = array<i64: 1, 18, 1>}]} {
    %cst = arith.constant 0.000000e+00 : f32
    %0 = vector.broadcast %cst : f32 to vector<18x256xf32>
    %c0 = arith.constant 0 : index
    %c0_0 = arith.constant 0 : index
    %c0_1 = arith.constant 0 : index
    %1 = vector.load %arg1[%c0, %c0_0, %c0_1] : memref<1x42x256xbf16, #tpu.memory_space<vmem>>, vector<1x18x256xbf16>
    %2 = vector.shape_cast %1 : vector<1x18x256xbf16> to vector<18x256xbf16>
    %3 = arith.extf %2 : vector<18x256xbf16> to vector<18x256xf32>
    %c0_2 = arith.constant 0 : index
    %c0_3 = arith.constant 0 : index
    %4 = vector.load %arg2[%c0_2, %c0_3] : memref<16x256xf32, #tpu.memory_space<vmem>>, vector<1x256xf32>
    %5 = vector.broadcast %4 : vector<1x256xf32> to vector<18x256xf32>
    %6 = arith.mulf %3, %5 : vector<18x256xf32>
    %7 = arith.addf %0, %6 : vector<18x256xf32>
    %c0_4 = arith.constant 0 : index
    %c1 = arith.constant 1 : index
    %c0_5 = arith.constant 0 : index
    %8 = vector.load %arg1[%c0_4, %c1, %c0_5] : memref<1x42x256xbf16, #tpu.memory_space<vmem>>, vector<1x18x256xbf16>
    %9 = vector.shape_cast %8 : vector<1x18x256xbf16> to vector<18x256xbf16>
    %10 = arith.extf %9 : vector<18x256xbf16> to vector<18x256xf32>
    %c1_6 = arith.constant 1 : index
    %c0_7 = arith.constant 0 : index
    %11 = vector.load %arg2[%c1_6, %c0_7] : memref<16x256xf32, #tpu.memory_space<vmem>>, vector<1x256xf32>
    %12 = vector.broadcast %11 : vector<1x256xf32> to vector<18x256xf32>
    %13 = arith.mulf %10, %12 : vector<18x256xf32>
    %14 = arith.addf %7, %13 : vector<18x256xf32>
    %c0_8 = arith.constant 0 : index
    %c2 = arith.constant 2 : index
    %c0_9 = arith.constant 0 : index
    %15 = vector.load %arg1[%c0_8, %c2, %c0_9] : memref<1x42x256xbf16, #tpu.memory_space<vmem>>, vector<1x18x256xbf16>
    %16 = vector.shape_cast %15 : vector<1x18x256xbf16> to vector<18x256xbf16>
    %17 = arith.extf %16 : vector<18x256xbf16> to vector<18x256xf32>
    %c2_10 = arith.constant 2 : index
    %c0_11 = arith.constant 0 : index
    %18 = vector.load %arg2[%c2_10, %c0_11] : memref<16x256xf32, #tpu.memory_space<vmem>>, vector<1x256xf32>
    %19 = vector.broadcast %18 : vector<1x256xf32> to vector<18x256xf32>
    %20 = arith.mulf %17, %19 : vector<18x256xf32>
    %21 = arith.addf %14, %20 : vector<18x256xf32>
    %c0_12 = arith.constant 0 : index
    %c3 = arith.constant 3 : index
    %c0_13 = arith.constant 0 : index
    %22 = vector.load %arg1[%c0_12, %c3, %c0_13] : memref<1x42x256xbf16, #tpu.memory_space<vmem>>, vector<1x18x256xbf16>
    %23 = vector.shape_cast %22 : vector<1x18x256xbf16> to vector<18x256xbf16>
    %24 = arith.extf %23 : vector<18x256xbf16> to vector<18x256xf32>
    %c3_14 = arith.constant 3 : index
    %c0_15 = arith.constant 0 : index
    %25 = vector.load %arg2[%c3_14, %c0_15] : memref<16x256xf32, #tpu.memory_space<vmem>>, vector<1x256xf32>
    %26 = vector.broadcast %25 : vector<1x256xf32> to vector<18x256xf32>
    %27 = arith.mulf %24, %26 : vector<18x256xf32>
    %28 = arith.addf %21, %27 : vector<18x256xf32>
    %c0_16 = arith.constant 0 : index
    %c6 = arith.constant 6 : index
    %c0_17 = arith.constant 0 : index
    %29 = vector.load %arg1[%c0_16, %c6, %c0_17] : memref<1x42x256xbf16, #tpu.memory_space<vmem>>, vector<1x18x256xbf16>
    %30 = vector.shape_cast %29 : vector<1x18x256xbf16> to vector<18x256xbf16>
    %31 = arith.extf %30 : vector<18x256xbf16> to vector<18x256xf32>
    %c4 = arith.constant 4 : index
    %c0_18 = arith.constant 0 : index
    %32 = vector.load %arg2[%c4, %c0_18] : memref<16x256xf32, #tpu.memory_space<vmem>>, vector<1x256xf32>
    %33 = vector.broadcast %32 : vector<1x256xf32> to vector<18x256xf32>
    %34 = arith.mulf %31, %33 : vector<18x256xf32>
    %35 = arith.addf %28, %34 : vector<18x256xf32>
    %c0_19 = arith.constant 0 : index
    %c7 = arith.constant 7 : index
    %c0_20 = arith.constant 0 : index
    %36 = vector.load %arg1[%c0_19, %c7, %c0_20] : memref<1x42x256xbf16, #tpu.memory_space<vmem>>, vector<1x18x256xbf16>
    %37 = vector.shape_cast %36 : vector<1x18x256xbf16> to vector<18x256xbf16>
    %38 = arith.extf %37 : vector<18x256xbf16> to vector<18x256xf32>
    %c5 = arith.constant 5 : index
    %c0_21 = arith.constant 0 : index
    %39 = vector.load %arg2[%c5, %c0_21] : memref<16x256xf32, #tpu.memory_space<vmem>>, vector<1x256xf32>
    %40 = vector.broadcast %39 : vector<1x256xf32> to vector<18x256xf32>
    %41 = arith.mulf %38, %40 : vector<18x256xf32>
    %42 = arith.addf %35, %41 : vector<18x256xf32>
    %c0_22 = arith.constant 0 : index
    %c8 = arith.constant 8 : index
    %c0_23 = arith.constant 0 : index
    %43 = vector.load %arg1[%c0_22, %c8, %c0_23] : memref<1x42x256xbf16, #tpu.memory_space<vmem>>, vector<1x18x256xbf16>
    %44 = vector.shape_cast %43 : vector<1x18x256xbf16> to vector<18x256xbf16>
    %45 = arith.extf %44 : vector<18x256xbf16> to vector<18x256xf32>
    %c6_24 = arith.constant 6 : index
    %c0_25 = arith.constant 0 : index
    %46 = vector.load %arg2[%c6_24, %c0_25] : memref<16x256xf32, #tpu.memory_space<vmem>>, vector<1x256xf32>
    %47 = vector.broadcast %46 : vector<1x256xf32> to vector<18x256xf32>
    %48 = arith.mulf %45, %47 : vector<18x256xf32>
    %49 = arith.addf %42, %48 : vector<18x256xf32>
    %c0_26 = arith.constant 0 : index
    %c9 = arith.constant 9 : index
    %c0_27 = arith.constant 0 : index
    %50 = vector.load %arg1[%c0_26, %c9, %c0_27] : memref<1x42x256xbf16, #tpu.memory_space<vmem>>, vector<1x18x256xbf16>
    %51 = vector.shape_cast %50 : vector<1x18x256xbf16> to vector<18x256xbf16>
    %52 = arith.extf %51 : vector<18x256xbf16> to vector<18x256xf32>
    %c7_28 = arith.constant 7 : index
    %c0_29 = arith.constant 0 : index
    %53 = vector.load %arg2[%c7_28, %c0_29] : memref<16x256xf32, #tpu.memory_space<vmem>>, vector<1x256xf32>
    %54 = vector.broadcast %53 : vector<1x256xf32> to vector<18x256xf32>
    %55 = arith.mulf %52, %54 : vector<18x256xf32>
    %56 = arith.addf %49, %55 : vector<18x256xf32>
    %c0_30 = arith.constant 0 : index
    %c12 = arith.constant 12 : index
    %c0_31 = arith.constant 0 : index
    %57 = vector.load %arg1[%c0_30, %c12, %c0_31] : memref<1x42x256xbf16, #tpu.memory_space<vmem>>, vector<1x18x256xbf16>
    %58 = vector.shape_cast %57 : vector<1x18x256xbf16> to vector<18x256xbf16>
    %59 = arith.extf %58 : vector<18x256xbf16> to vector<18x256xf32>
    %c8_32 = arith.constant 8 : index
    %c0_33 = arith.constant 0 : index
    %60 = vector.load %arg2[%c8_32, %c0_33] : memref<16x256xf32, #tpu.memory_space<vmem>>, vector<1x256xf32>
    %61 = vector.broadcast %60 : vector<1x256xf32> to vector<18x256xf32>
    %62 = arith.mulf %59, %61 : vector<18x256xf32>
    %63 = arith.addf %56, %62 : vector<18x256xf32>
    %c0_34 = arith.constant 0 : index
    %c13 = arith.constant 13 : index
    %c0_35 = arith.constant 0 : index
    %64 = vector.load %arg1[%c0_34, %c13, %c0_35] : memref<1x42x256xbf16, #tpu.memory_space<vmem>>, vector<1x18x256xbf16>
    %65 = vector.shape_cast %64 : vector<1x18x256xbf16> to vector<18x256xbf16>
    %66 = arith.extf %65 : vector<18x256xbf16> to vector<18x256xf32>
    %c9_36 = arith.constant 9 : index
    %c0_37 = arith.constant 0 : index
    %67 = vector.load %arg2[%c9_36, %c0_37] : memref<16x256xf32, #tpu.memory_space<vmem>>, vector<1x256xf32>
    %68 = vector.broadcast %67 : vector<1x256xf32> to vector<18x256xf32>
    %69 = arith.mulf %66, %68 : vector<18x256xf32>
    %70 = arith.addf %63, %69 : vector<18x256xf32>
    %c0_38 = arith.constant 0 : index
    %c14 = arith.constant 14 : index
    %c0_39 = arith.constant 0 : index
    %71 = vector.load %arg1[%c0_38, %c14, %c0_39] : memref<1x42x256xbf16, #tpu.memory_space<vmem>>, vector<1x18x256xbf16>
    %72 = vector.shape_cast %71 : vector<1x18x256xbf16> to vector<18x256xbf16>
    %73 = arith.extf %72 : vector<18x256xbf16> to vector<18x256xf32>
    %c10 = arith.constant 10 : index
    %c0_40 = arith.constant 0 : index
    %74 = vector.load %arg2[%c10, %c0_40] : memref<16x256xf32, #tpu.memory_space<vmem>>, vector<1x256xf32>
    %75 = vector.broadcast %74 : vector<1x256xf32> to vector<18x256xf32>
    %76 = arith.mulf %73, %75 : vector<18x256xf32>
    %77 = arith.addf %70, %76 : vector<18x256xf32>
    %c0_41 = arith.constant 0 : index
    %c15 = arith.constant 15 : index
    %c0_42 = arith.constant 0 : index
    %78 = vector.load %arg1[%c0_41, %c15, %c0_42] : memref<1x42x256xbf16, #tpu.memory_space<vmem>>, vector<1x18x256xbf16>
    %79 = vector.shape_cast %78 : vector<1x18x256xbf16> to vector<18x256xbf16>
    %80 = arith.extf %79 : vector<18x256xbf16> to vector<18x256xf32>
    %c11 = arith.constant 11 : index
    %c0_43 = arith.constant 0 : index
    %81 = vector.load %arg2[%c11, %c0_43] : memref<16x256xf32, #tpu.memory_space<vmem>>, vector<1x256xf32>
    %82 = vector.broadcast %81 : vector<1x256xf32> to vector<18x256xf32>
    %83 = arith.mulf %80, %82 : vector<18x256xf32>
    %84 = arith.addf %77, %83 : vector<18x256xf32>
    %c0_44 = arith.constant 0 : index
    %c18 = arith.constant 18 : index
    %c0_45 = arith.constant 0 : index
    %85 = vector.load %arg1[%c0_44, %c18, %c0_45] : memref<1x42x256xbf16, #tpu.memory_space<vmem>>, vector<1x18x256xbf16>
    %86 = vector.shape_cast %85 : vector<1x18x256xbf16> to vector<18x256xbf16>
    %87 = arith.extf %86 : vector<18x256xbf16> to vector<18x256xf32>
    %c12_46 = arith.constant 12 : index
    %c0_47 = arith.constant 0 : index
    %88 = vector.load %arg2[%c12_46, %c0_47] : memref<16x256xf32, #tpu.memory_space<vmem>>, vector<1x256xf32>
    %89 = vector.broadcast %88 : vector<1x256xf32> to vector<18x256xf32>
    %90 = arith.mulf %87, %89 : vector<18x256xf32>
    %91 = arith.addf %84, %90 : vector<18x256xf32>
    %c0_48 = arith.constant 0 : index
    %c19 = arith.constant 19 : index
    %c0_49 = arith.constant 0 : index
    %92 = vector.load %arg1[%c0_48, %c19, %c0_49] : memref<1x42x256xbf16, #tpu.memory_space<vmem>>, vector<1x18x256xbf16>
    %93 = vector.shape_cast %92 : vector<1x18x256xbf16> to vector<18x256xbf16>
    %94 = arith.extf %93 : vector<18x256xbf16> to vector<18x256xf32>
    %c13_50 = arith.constant 13 : index
    %c0_51 = arith.constant 0 : index
    %95 = vector.load %arg2[%c13_50, %c0_51] : memref<16x256xf32, #tpu.memory_space<vmem>>, vector<1x256xf32>
    %96 = vector.broadcast %95 : vector<1x256xf32> to vector<18x256xf32>
    %97 = arith.mulf %94, %96 : vector<18x256xf32>
    %98 = arith.addf %91, %97 : vector<18x256xf32>
    %c0_52 = arith.constant 0 : index
    %c20 = arith.constant 20 : index
    %c0_53 = arith.constant 0 : index
    %99 = vector.load %arg1[%c0_52, %c20, %c0_53] : memref<1x42x256xbf16, #tpu.memory_space<vmem>>, vector<1x18x256xbf16>
    %100 = vector.shape_cast %99 : vector<1x18x256xbf16> to vector<18x256xbf16>
    %101 = arith.extf %100 : vector<18x256xbf16> to vector<18x256xf32>
    %c14_54 = arith.constant 14 : index
    %c0_55 = arith.constant 0 : index
    %102 = vector.load %arg2[%c14_54, %c0_55] : memref<16x256xf32, #tpu.memory_space<vmem>>, vector<1x256xf32>
    %103 = vector.broadcast %102 : vector<1x256xf32> to vector<18x256xf32>
    %104 = arith.mulf %101, %103 : vector<18x256xf32>
    %105 = arith.addf %98, %104 : vector<18x256xf32>
    %c0_56 = arith.constant 0 : index
    %c21 = arith.constant 21 : index
    %c0_57 = arith.constant 0 : index
    %106 = vector.load %arg1[%c0_56, %c21, %c0_57] : memref<1x42x256xbf16, #tpu.memory_space<vmem>>, vector<1x18x256xbf16>
    %107 = vector.shape_cast %106 : vector<1x18x256xbf16> to vector<18x256xbf16>
    %108 = arith.extf %107 : vector<18x256xbf16> to vector<18x256xf32>
    %c15_58 = arith.constant 15 : index
    %c0_59 = arith.constant 0 : index
    %109 = vector.load %arg2[%c15_58, %c0_59] : memref<16x256xf32, #tpu.memory_space<vmem>>, vector<1x256xf32>
    %110 = vector.broadcast %109 : vector<1x256xf32> to vector<18x256xf32>
    %111 = arith.mulf %108, %110 : vector<18x256xf32>
    %112 = arith.addf %105, %111 : vector<18x256xf32>
    %cst_60 = arith.constant dense<0.000000e+00> : vector<18xf32>
    %113 = vector.multi_reduction <add>, %112, %cst_60 [1] : vector<18x256xf32> to vector<18xf32>
    %114 = vector.shape_cast %113 : vector<18xf32> to vector<18x1xf32>
    %c0_61 = arith.constant 0 : index
    %c0_62 = arith.constant 0 : index
    %115 = vector.load %arg3[%c0_61, %c0_62] : memref<1x1xf32, #tpu.memory_space<vmem>>, vector<1x1xf32>
    %116 = vector.broadcast %115 : vector<1x1xf32> to vector<18x1xf32>
    %117 = arith.addf %114, %116 : vector<18x1xf32>
    %c0_63 = arith.constant 0 : index
    %c0_64 = arith.constant 0 : index
    %c0_65 = arith.constant 0 : index
    %118 = vector.load %arg4[%c0_63, %c0_64, %c0_65] : memref<1x18x1xf32, #tpu.memory_space<vmem>>, vector<1x18x1xf32>
    %119 = vector.shape_cast %118 : vector<1x18x1xf32> to vector<18x1xf32>
    %120 = vector.shape_cast %117 : vector<18x1xf32> to vector<1x18x1xf32>
    tpu.vector_store %arg4[%c0_63, %c0_64, %c0_65], %120 {strides = array<i32>} : memref<1x18x1xf32, #tpu.memory_space<vmem>>, vector<1x18x1xf32>,
    return
  }
  func.func @transform_0(%arg0: i32) -> (i32, i32, i32) {
    %c0_i32 = arith.constant 0 : i32
    %c0_i32_0 = arith.constant 0 : i32
    %c0_i32_1 = arith.constant 0 : i32
    return %arg0, %c0_i32, %c0_i32_0 : i32, i32, i32
  }
  func.func @transform_1(%arg0: i32) -> (i32, i32) {
    %c0_i32 = arith.constant 0 : i32
    %c0_i32_0 = arith.constant 0 : i32
    %c0_i32_1 = arith.constant 0 : i32
    return %c0_i32, %c0_i32_0 : i32, i32
  }
  func.func @transform_2(%arg0: i32) -> (i32, i32) {
    %c0_i32 = arith.constant 0 : i32
    %c0_i32_0 = arith.constant 0 : i32
    %c0_i32_1 = arith.constant 0 : i32
    return %c0_i32, %c0_i32_0 : i32, i32
  }
  func.func @transform_3(%arg0: i32) -> (i32, i32, i32) {
    %c0_i32 = arith.constant 0 : i32
    %c0_i32_0 = arith.constant 0 : i32
    %c0_i32_1 = arith.constant 0 : i32
    return %arg0, %c0_i32, %c0_i32_0 : i32, i32, i32
  }
}

</mosaic_0001>

<bundles_post_ra>
// kernel: discriminator_forward.4
= control target key start
LH: loop header
LB: loop body
LE: loop exit
PB: predicated region body
PF: predicated region fallthrough
CT: control target
= control target key end

     0   :  { %s2027_s15 = smov 0   ;;  %s2419_s0 = inlined_call_operand.vmem [shape: bf16[2,306,12], index: 0, kind: input, shape index: {}]   ;;  %s2420_s1 = inlined_call_operand.vmem [shape: bf16[4,12,64], index: 1, kind: input, shape index: {}]   ;;  %s2421_s2 = inlined_call_operand.vmem [shape: f32[1,64], index: 2, kind: input, shape index: {}]   ;;  %s2422_s3 = inlined_call_operand.vmem [shape: f32[272,1], index: 3, kind: input, shape index: {}]   ;;  %s2423_s4 = inlined_call_operand.vmem [shape: bf16[2,272,64], index: 4, kind: output, shape index: {}]  }
   0x1 LB: > { %s1706_s16 = sadd.s32 4294967295, %s2000_s15   ;;  %p1710_p0 = scmp.ge.s32.totalorder %s2000_s15, 1  ;;  %s2000_s15 = sphi %s2027_s15, %s14_s15  }
   0x2   : > { %p162_p1 = scmp.lt.s32.totalorder %s2000_s15, 3 }
   0x4   : > { %p163_p2 = pnand %p1710_p0, %p162_p1 }
   0x5   : > { %p188_p3 = scmp.lt.s32.totalorder (!%p163_p2), %s1706_s16, 1 }
   0x6   : > { %166 = sbr.rel (%p163_p2) target bundleno = 435 (0x1b3), region = 36 }
   0xb   : > { %v1806_v0 = vld [vmem:[%s2420_s1] sm:$0xf]  ;;  %v1954_v1 = vld [vmem:[%s2420_s1] sm:$0x30]  ;;  %vm525_vm0 = vcmask 1045504   ;;  %s2425_s16 = smov (!%p188_p3, %s1706_s16), 1 }
   0xc   : > { %v1807_v2 = vor.u32 %v1954_v1, %v1806_v0  ;;  %v1916_v3 = vld [vmem:[%s2420_s1 + $0x18] sm:$0xf]  ;;  %v1973_v4 = vld [vmem:[%s2420_s1 + $0x18] sm:$0x30]  ;;  %v1893_v6 = vld [vmem:[%s2420_s1 + $0x10] sm:$0xf] }
   0xd   : > { %v1917_v5 = vor.u32 %v1973_v4, %v1916_v3  ;;  %v1972_v7 = vld [vmem:[%s2420_s1 + $0x10] sm:$0x30]  ;;  %v1785_v10 = vld [vmem:[%s2420_s1 + $0x8] sm:$0xf]  ;;  %v1955_v11 = vld [vmem:[%s2420_s1 + $0x8] sm:$0x30] }
   0xe   : > { %v663_v8 = vsel %vm525_vm0, %v1807_v2, 0  ;;  %v1894_v9 = vor.u32 %v1972_v7, %v1893_v6  ;;  %s1982_s6 = smul.u32 156, %s2425_s16  ;;  %v1786_v13 = vor.u32 %v1955_v11, %v1785_v10  ;;  %vm473_vm1 = vcmask 97280  }
   0xf   : > { %672 = vmatpush.bf16.msra.mxu1 %v663_v8  ;;  %v1312_v12 = vsel %vm525_vm0, %v1917_v5, 0  ;;  %vm1219_vm2 = vcmask 1046528   ;;  %vm327_vm3 = vsmask.f32 7424  ;;  %s1983_s12 = smul.u32 136, %s2425_s16  ;;  %vm1616_vm5 = vcmask 519168  }
  0x10   : > { %1321 = vmatpush.bf16.msra.mxu3 %v1312_v12  ;;  %v1082_v14 = vsel %vm525_vm0, %v1894_v9, 0  ;;  %s2068_s9 = scalar_lea.vmem %s2419_s0, %s1982_s6  ;;  %v527_v15 = vsel %vm525_vm0, %v1786_v13, 0 }
  0x11   : > { %1091 = vmatpush.bf16.msra.mxu2 %v1082_v14  ;;  %v1937_v16 = vld [vmem:[%s2068_s9] sm:$0xff]  ;;  %v1979_v17 = vld [vmem:[%s2068_s9 + $0x8] sm:$0xf0]  ;;  %v1956_v18 = vld [vmem:[%s2068_s9 + $0x10] sm:$0xff]  ;;  %536 = vmatpush.bf16.msra.mxu0 %v527_v15  ;;  %s2177_s17 = scalar_lea.vmem %s2423_s4, %s1983_s12 }
  0x12   : > { %v1980_v19 = vld [vmem:[%s2068_s9 + $0x8] sm:$0xe]  ;;  %v331_v22 = vshll.u32 %v1937_v16, 16  ;;  %1808 = vmatmul.msk.bf16.vlgmr.msra.gmra.mxu1 %vm473_vm1, %v1937_v16  ;;  %v1221_v24 = vrot.slane %v1956_v18, 1  ;;  %v893_v27 = vshll.u32 %v1956_v18, 16  ;;  %v329_v28 = vshrl.u32 %v1937_v16, 16 }
  0x13   : > { %v1978_v20 = vld [vmem:[%s2068_s9 + $0x8] sm:$0xff]   ;;  %v1981_v23 = vor.u32 %v1980_v19, %v1979_v17  ;;  %v1939_v40 = vld [vmem:[%s2068_s9 + $0x10] sm:$0xff]  ;;  %v1957_v41 = vld [vmem:[%s2068_s9 + $0x18] sm:$0xff]  ;;  %v897_v44 = vshrl.u32 %v1956_v18, 16 }
  0x14   : > { %v1938_v21 = vld [vmem:[%s2068_s9 + $0x8] sm:$0xff]  ;;  %v886_v25 = vshrl.u32 %v1978_v20, 16  ;;  %v888_v26 = vshll.u32 %v1978_v20, 16  ;;  %v333_v31 = vrot.slane %v331_v22, 1  ;;  %v895_v33 = vrot.slane %v893_v27, 1  ;;  %v1940_v54 = vld [vmem:[%s2068_s9 + $0x18] sm:$0xff] }
  0x15   : > { %v336_v29 = vshll.u32 %v1938_v21, 16  ;;  %v1220_v30 = vrot.slane %v1981_v23, 1  ;;  %v340_v42 = vshrl.u32 %v1938_v21, 16  ;;  %v344_v43 = vshll.u32 %v1939_v40, 16  ;;  %v1958_v55 = vld [vmem:[%s2068_s9 + $0x20] sm:$0xff]  ;;  %v1959_v5 = vld [vmem:[%s2068_s9 + $0x28] sm:$0xff] }
  0x16   : > { %v890_v32 = vrot.slane %v888_v26, 1  ;;  %v334_v36 = vor.u32 %v333_v31, %v329_v28  ;;  %v901_v45 = vshll.u32 %v1957_v41, 16  ;;  %v1223_v46 = vrot.slane %v1957_v41, 1  ;;  %v1941_v4 = vld [vmem:[%s2068_s9 + $0x20] sm:$0xff]  ;;  %v1942_v18 = vld [vmem:[%s2068_s9 + $0x28] sm:$0xff]  ;;  %v1960_v19 = vld [vmem:[%s2068_s9 + $0x30] sm:$0xff] }
  0x17   : > { %v338_v34 = vrot.slane %v336_v29, 1  ;;  %v1222_v35 = vsel %vm1219_vm2, %v1220_v30, %v1221_v24  ;;  %v346_v48 = vrot.slane %v344_v43, 1  ;;  %v899_v49 = vor.u32 %v897_v44, %v895_v33 }
  0x18   : > { %1918 = vmatmul.msk.bf16.vlgmr.msra.gmra.mxu3 %vm473_vm1, %v1222_v35  ;;  %v891_v37 = vor.u32 %v890_v32, %v886_v25  ;;  %v903_v50 = vrot.slane %v901_v45, 1  ;;  %v1224_v51 = vsel %vm1219_vm2, %v1221_v24, %v1223_v46  ;;  %v348_v56 = vshrl.u32 %v1939_v40, 16  ;;  %v1943_v32 = vld [vmem:[%s2068_s9 + $0x30] sm:$0xff] }
  0x19   : > { %v339_v38 = vsel %vm327_vm3, %v334_v36, %v338_v34  ;;  %v342_v47 = vor.u32 %v340_v42, %v338_v34  ;;  %v352_v57 = vshll.u32 %v1940_v54, 16  ;;  %v905_v58 = vshrl.u32 %v1957_v41, 16 }
  0x1a   : > { %v896_v39 = vsel %vm327_vm3, %v891_v37, %v895_v33  ;;  %1787 = vmatmul.msk.bf16.vlgmr.msra.gmra.mxu0 %vm473_vm1, %v339_v38  ;;  %v904_v53 = vsel %vm327_vm3, %v899_v49, %v903_v50  ;;  %v909_v59 = vshll.u32 %v1958_v55, 16  ;;  %v1225_v60 = vrot.slane %v1958_v55, 1  ;;  %v1961_v33 = vld [vmem:[%s2068_s9 + $0x38] sm:$0xff] }
  0x1b   : > { %1895 = vmatmul.msk.bf16.vlgmr.msra.gmra.mxu2 %vm473_vm1, %v896_v39  ;;  %v347_v52 = vsel %vm327_vm3, %v342_v47, %v346_v48  ;;  %v350_v61 = vor.u32 %v348_v56, %v346_v48  ;;  %v354_v62 = vrot.slane %v352_v57, 1  ;;  %v907_v63 = vor.u32 %v905_v58, %v903_v50  ;;  %v1962_v47 = vld [vmem:[%s2068_s9 + $0x40] sm:$0xff] }
  0x1c   : > { %v911_v0 = vrot.slane %v909_v59, 1  ;;  %v1226_v1 = vsel %vm1219_vm2, %v1223_v46, %v1225_v60  ;;  %v356_v6 = vshrl.u32 %v1940_v54, 16  ;;  %v360_v7 = vshll.u32 %v1941_v4, 16  ;;  %v1944_v46 = vld [vmem:[%s2068_s9 + $0x38] sm:$0xff] }
  0x1d   : > { %v355_v2 = vsel %vm327_vm3, %v350_v61, %v354_v62  ;;  %v913_v8 = vshrl.u32 %v1958_v55, 16  ;;  %v917_v9 = vshll.u32 %v1959_v5, 16  ;;  %v1227_v10 = vrot.slane %v1959_v5, 1  ;;  %v1963_v61 = vld [vmem:[%s2068_s9 + $0x48] sm:$0xff] }
  0x1e   : > { %v912_v3 = vsel %vm327_vm3, %v907_v63, %v911_v0  ;;  %v358_v11 = vor.u32 %v356_v6, %v354_v62  ;;  %v362_v12 = vrot.slane %v360_v7, 1  ;;  %v364_v20 = vshrl.u32 %v1941_v4, 16 }
  0x1f   : > { %v915_v13 = vor.u32 %v913_v8, %v911_v0  ;;  %v919_v14 = vrot.slane %v917_v9, 1  ;;  %v1228_v15 = vsel %vm1219_vm2, %v1225_v60, %v1227_v10  ;;  %v921_v22 = vshrl.u32 %v1959_v5, 16  ;;  %v1945_v60 = vld [vmem:[%s2068_s9 + $0x40] sm:$0xff] }
  0x20   : > { %v363_v16 = vsel %vm327_vm3, %v358_v11, %v362_v12  ;;  %v925_v23 = vshll.u32 %v1960_v19, 16  ;;  %v1229_v24 = vrot.slane %v1960_v19, 1  ;;  %v366_v25 = vor.u32 %v364_v20, %v362_v12  ;;  %v1964_v11 = vld [vmem:[%s2068_s9 + $0x50] sm:$0xff] }
  0x21   : > { %v920_v17 = vsel %vm327_vm3, %v915_v13, %v919_v14  ;;  %v923_v27 = vor.u32 %v921_v22, %v919_v14  ;;  %v372_v34 = vshrl.u32 %v1942_v18, 16  ;;  %v376_v35 = vshll.u32 %v1943_v32, 16 }
  0x22   : > { %1809 = vmatmul.msk.bf16.gmra.mxu1 %vm473_vm1, %v1938_v21  ;;  %v368_v21 = vshll.u32 %v1942_v18, 16  ;;  %v927_v28 = vrot.slane %v925_v23, 1  ;;  %v1230_v29 = vsel %vm1219_vm2, %v1227_v10, %v1229_v24  ;;  %v929_v36 = vshrl.u32 %v1960_v19, 16  ;;  %v1946_v10 = vld [vmem:[%s2068_s9 + $0x48] sm:$0xff] }
  0x23   : > { %v933_v37 = vshll.u32 %v1961_v33, 16  ;;  %v1231_v38 = vrot.slane %v1961_v33, 1  ;;  %v380_v48 = vshrl.u32 %v1943_v32, 16  ;;  %v384_v49 = vshll.u32 %v1944_v46, 16 }
  0x24   : > { %v370_v26 = vrot.slane %v368_v21, 1  ;;  %v928_v31 = vsel %vm327_vm3, %v923_v27, %v927_v28  ;;  %v931_v41 = vor.u32 %v929_v36, %v927_v28  ;;  %v937_v50 = vshrl.u32 %v1961_v33, 16  ;;  %v2165_v33 = vld [vmem:[%s2421_s2] ss:$0 sm:$0xff] }
  0x25   : > { %v935_v42 = vrot.slane %v933_v37, 1  ;;  %v1232_v43 = vsel %vm1219_vm2, %v1229_v24, %v1231_v38  ;;  %v388_v62 = vshrl.u32 %v1944_v46, 16  ;;  %v392_v63 = vshll.u32 %v1945_v60, 16 }
  0x26   : > { %v371_v30 = vsel %vm327_vm3, %v366_v25, %v370_v26  ;;  %v374_v39 = vor.u32 %v372_v34, %v370_v26  ;;  %v945_v0 = vshrl.u32 %v1962_v47, 16  ;;  %v396_v12 = vshrl.u32 %v1945_v60, 16 }
  0x27   : > { %v936_v45 = vsel %vm327_vm3, %v931_v41, %v935_v42  ;;  %v939_v55 = vor.u32 %v937_v50, %v935_v42  ;;  %v400_v13 = vshll.u32 %v1946_v10, 16 }
  0x28   : > { %1919 = vmatmul.msk.bf16.gmra.mxu3 %vm473_vm1, %v1224_v51  ;;  %v941_v51 = vshll.u32 %v1962_v47, 16 }
  0x29   : > { %v402_v19 = vrot.slane %v400_v13, 1 }
  0x2a   : > { %1788 = vmatmul.msk.bf16.gmra.mxu0 %vm473_vm1, %v347_v52  ;;  %v1233_v52 = vrot.slane %v1962_v47, 1  ;;  %v943_v56 = vrot.slane %v941_v51, 1 }
  0x2b   : > { %1896 = vmatmul.msk.bf16.gmra.mxu2 %vm473_vm1, %v904_v53 }
  0x2c   : > { %v1234_v57 = vsel %vm1219_vm2, %v1231_v38, %v1233_v52  ;;  %v944_v59 = vsel %vm327_vm3, %v939_v55, %v943_v56  ;;  %v947_v5 = vor.u32 %v945_v0, %v943_v56  ;;  %v961_v38 = vshrl.u32 %v1964_v11, 16  ;;  %v2191_v0 = vld [vmem:[%s2068_s9 + $0x60] sm:$0xff] }
  0x2d   : > { %v1241_v13 = vrot.slane %v2191_v0, 1 }
  0x32   : > { %1810 = vmatmul.msk.bf16.gmra.mxu1 %vm473_vm1, %v1939_v40  ;;  %v378_v40 = vrot.slane %v376_v35, 1  ;;  %v404_v35 = vshrl.u32 %v1946_v10, 16 }
  0x34   : > { %v379_v44 = vsel %vm327_vm3, %v374_v39, %v378_v40  ;;  %v382_v53 = vor.u32 %v380_v48, %v378_v40 }
  0x38   : > { %1920 = vmatmul.msk.bf16.gmra.mxu3 %vm473_vm1, %v1226_v1  ;;  %v949_v1 = vshll.u32 %v1963_v61, 16 }
  0x3a   : > { %1789 = vmatmul.msk.bf16.gmra.mxu0 %vm473_vm1, %v355_v2  ;;  %v1235_v2 = vrot.slane %v1963_v61, 1  ;;  %v951_v6 = vrot.slane %v949_v1, 1 }
  0x3b   : > { %1897 = vmatmul.msk.bf16.gmra.mxu2 %vm473_vm1, %v912_v3 }
  0x3c   : > { %v1236_v7 = vsel %vm1219_vm2, %v1233_v52, %v1235_v2  ;;  %v952_v9 = vsel %vm327_vm3, %v947_v5, %v951_v6 }
  0x42   : > { %1811 = vmatmul.msk.bf16.gmra.mxu1 %vm473_vm1, %v1940_v54  ;;  %v386_v54 = vrot.slane %v384_v49, 1 }
  0x44   : > { %v387_v58 = vsel %vm327_vm3, %v382_v53, %v386_v54  ;;  %v390_v3 = vor.u32 %v388_v62, %v386_v54 }
  0x48   : > { %1921 = vmatmul.msk.bf16.gmra.mxu3 %vm473_vm1, %v1228_v15  ;;  %v953_v15 = vshrl.u32 %v1963_v61, 16 }
  0x4a   : > { %1790 = vmatmul.msk.bf16.gmra.mxu0 %vm473_vm1, %v363_v16  ;;  %v957_v16 = vshll.u32 %v1964_v11, 16  ;;  %v955_v20 = vor.u32 %v953_v15, %v951_v6 }
  0x4b   : > { %1898 = vmatmul.msk.bf16.gmra.mxu2 %vm473_vm1, %v920_v17  ;;  %v1237_v17 = vrot.slane %v1964_v11, 1  ;;  %v973_v11 = vshll.u32 %v2191_v0, 16 }
  0x4c   : > { %v959_v21 = vrot.slane %v957_v16, 1 }
  0x4d   : > { %v1238_v22 = vsel %vm1219_vm2, %v1235_v2, %v1237_v17 }
  0x4e   : > { %v960_v25 = vsel %vm327_vm3, %v955_v20, %v959_v21 }
  0x52   : > { %1812 = vmatmul.msk.bf16.gmra.mxu1 %vm473_vm1, %v1941_v4  ;;  %v394_v4 = vrot.slane %v392_v63, 1  ;;  %v2188_v63 = vld [vmem:[%s2068_s9 + $0x58] sm:$0xff] }
  0x54   : > { %v395_v8 = vsel %vm327_vm3, %v390_v3, %v394_v4 }
  0x58   : > { %1922 = vmatmul.msk.bf16.gmra.mxu3 %vm473_vm1, %v1230_v29  ;;  %v2157_v29 = vld [vmem:[%s2068_s9 + $0x50] sm:$0xff] }
  0x59   : > { %v408_v36 = vshll.u32 %v2157_v29, 16  ;;  %v412_v6 = vshrl.u32 %v2157_v29, 16 }
  0x5a   : > { %1791 = vmatmul.msk.bf16.gmra.mxu0 %vm473_vm1, %v371_v30  ;;  %v2160_v30 = vld [vmem:[%s2068_s9 + $0x58] sm:$0xff] }
  0x5b   : > { %1899 = vmatmul.msk.bf16.gmra.mxu2 %vm473_vm1, %v928_v31  ;;  %v965_v39 = vshll.u32 %v2160_v30, 16  ;;  %v1239_v41 = vrot.slane %v2160_v30, 1 }
  0x5d   : > { %v967_v47 = vrot.slane %v965_v39, 1  ;;  %v1240_v50 = vsel %vm1219_vm2, %v1237_v17, %v1239_v41 }
  0x62   : > { %1813 = vmatmul.msk.bf16.gmra.mxu1 %vm473_vm1, %v1942_v18  ;;  %v398_v18 = vor.u32 %v396_v12, %v394_v4 }
  0x64   : > { %v403_v24 = vsel %vm327_vm3, %v398_v18, %v402_v19 }
  0x68   : > { %1923 = vmatmul.msk.bf16.gmra.mxu3 %vm473_vm1, %v1232_v43 }
  0x6a   : > { %1792 = vmatmul.msk.bf16.gmra.mxu0 %vm473_vm1, %v379_v44  ;;  %v406_v44 = vor.u32 %v404_v35, %v402_v19  ;;  %v975_v19 = vrot.slane %v973_v11, 1 }
  0x6b   : > { %1900 = vmatmul.msk.bf16.gmra.mxu2 %vm473_vm1, %v936_v45  ;;  %v410_v45 = vrot.slane %v408_v36, 1  ;;  %v2213_v36 = vld [vmem:[%s2068_s9 + $0x60] sm:$0xff] }
  0x6d   : > { %v411_v55 = vsel %vm327_vm3, %v406_v44, %v410_v45  ;;  %v414_v16 = vor.u32 %v412_v6, %v410_v45  ;;  %v424_v44 = vshll.u32 %v2213_v36, 16 }
  0x72   : > { %1814 = vmatmul.msk.bf16.gmra.mxu1 %vm473_vm1, %v1943_v32 }
  0x78   : > { %1924 = vmatmul.msk.bf16.gmra.mxu3 %vm473_vm1, %v1234_v57 }
  0x7a   : > { %1793 = vmatmul.msk.bf16.gmra.mxu0 %vm473_vm1, %v387_v58 }
  0x7b   : > { %1901 = vmatmul.msk.bf16.gmra.mxu2 %vm473_vm1, %v944_v59 }
  0x82   : > { %1815 = vmatmul.msk.bf16.gmra.mxu1 %vm473_vm1, %v1944_v46  ;;  %v963_v46 = vor.u32 %v961_v38, %v959_v21 }
  0x84   : > { %v968_v57 = vsel %vm327_vm3, %v963_v46, %v967_v47 }
  0x88   : > { %1925 = vmatmul.msk.bf16.gmra.mxu3 %vm473_vm1, %v1236_v7  ;;  %v416_v7 = vshll.u32 %v2188_v63, 16 }
  0x8a   : > { %1794 = vmatmul.msk.bf16.gmra.mxu0 %vm473_vm1, %v395_v8  ;;  %v418_v17 = vrot.slane %v416_v7, 1 }
  0x8b   : > { %1902 = vmatmul.msk.bf16.gmra.mxu2 %vm473_vm1, %v952_v9 }
  0x8f   : > { %v674_v14 = vpop.f32.mrf.mxu1 }
  0x92   : > { %1816 = vmatmul.msk.bf16.gmra.mxu1 %vm473_vm1, %v1945_v60 }
  0x97   : > { %v538_v23 = vpop.f32.mrf.mxu0  ;;  %v676_v26 = vpop.f32.mrf.mxu1 }
  0x98   : > { %1926 = vmatmul.msk.bf16.gmra.mxu3 %vm473_vm1, %v1238_v22  ;;  %v675_v27 = vadd.f32 %v674_v14, %v538_v23  ;;  %v1242_v22 = vsel %vm1219_vm2, %v1239_v41, %v1241_v13 }
  0x9a   : > { %1795 = vmatmul.msk.bf16.gmra.mxu0 %vm473_vm1, %v403_v24 }
  0x9b   : > { %1903 = vmatmul.msk.bf16.gmra.mxu2 %vm473_vm1, %v960_v25  ;;  %v1323_v28 = vpop.f32.mrf.mxu3 }
  0x9e   : > { %v1093_v31 = vpop.f32.mrf.mxu2 }
  0x9f   : > { %v1178_v32 = vadd.f32 %v1093_v31, %v675_v27  ;;  %v540_v34 = vpop.f32.mrf.mxu0  ;;  %v679_v37 = vpop.f32.mrf.mxu1  ;;  %v419_v27 = vsel %vm327_vm3, %v414_v16, %v418_v17 }
  0xa0   : > { %v677_v49 = vadd.f32 %v676_v26, %v540_v34 }
  0xa1   : > { %v1408_v40 = vadd.f32 %v1323_v28, %v1178_v32 }
  0xa2   : > { %1817 = vmatmul.msk.bf16.gmra.mxu1 %vm473_vm1, %v1946_v10  ;;  %v969_v10 = vshrl.u32 %v2160_v30, 16 }
  0xa3   : > { %v1446_v42 = vadd.f32 %v2165_v33, %v1408_v40  ;;  %v1325_v43 = vpop.f32.mrf.mxu3 }
  0xa4   : > { %v971_v18 = vor.u32 %v969_v10, %v967_v47  ;;  %v977_v47 = vshrl.u32 %v2191_v0, 16 }
  0xa5   : > { %vm1480_vm4 = vcmp.gt.f32.partialorder %v1446_v42, 0.0  ;;  %v1514_v48 = vmul.f32 0.2, %v1446_v42 }
  0xa6   : > { %v1095_v51 = vpop.f32.mrf.mxu2 }
  0xa7   : > { %v1548_v52 = vsel %vm1480_vm4, %v1446_v42, %v1514_v48  ;;  %v1179_v53 = vadd.f32 %v1095_v51, %v677_v49  ;;  %v543_v54 = vpop.f32.mrf.mxu0  ;;  %v681_v58 = vpop.f32.mrf.mxu1 }
  0xa8   : > { %v1582_v56 = vpack.c.bf16 %v1548_v52, %v1548_v52  ;;  %1927 = vmatmul.msk.bf16.gmra.mxu3 %vm473_vm1, %v1240_v50  ;;  %v680_v61 = vadd.f32 %v679_v37, %v543_v54  ;;  %v2216_v37 = vld [vmem:[%s2068_s9 + $0x68] sm:$0xff]  ;;  %v426_v54 = vrot.slane %v424_v44, 1 }
  0xa9   : > { %v1409_v59 = vadd.f32 %v1325_v43, %v1179_v53  ;;  %v420_v43 = vshrl.u32 %v2188_v63, 16  ;;  %v981_v48 = vshll.u32 %v2216_v37, 16  ;;  %v1243_v50 = vrot.slane %v2216_v37, 1 }
  0xaa   : > { %1617 = vst.msk [vmem:[%s2177_s17] sm:$0xf] %vm1616_vm5, %v1582_v56  ;;  %1796 = vmatmul.msk.bf16.gmra.mxu0 %vm473_vm1, %v411_v55  ;;  %v979_v55 = vor.u32 %v977_v47, %v975_v19 }
  0xab   : > { %v1447_v60 = vadd.f32 %v2165_v33, %v1409_v59  ;;  %1904 = vmatmul.msk.bf16.gmra.mxu2 %vm473_vm1, %v968_v57  ;;  %v1328_v62 = vpop.f32.mrf.mxu3  ;;  %v422_v53 = vor.u32 %v420_v43, %v418_v17  ;;  %v983_v56 = vrot.slane %v981_v48, 1  ;;  %v1244_v59 = vsel %vm1219_vm2, %v1241_v13, %v1243_v50 }
  0xad   : > { %vm1481_vm6 = vcmp.gt.f32.partialorder %v1447_v60, 0.0  ;;  %v1515_v1 = vmul.f32 0.2, %v1447_v60 }
  0xae   : > { %v1098_v2 = vpop.f32.mrf.mxu2 }
  0xaf   : > { %v1549_v3 = vsel %vm1481_vm6, %v1447_v60, %v1515_v1  ;;  %v1180_v4 = vadd.f32 %v1098_v2, %v680_v61  ;;  %v545_v5 = vpop.f32.mrf.mxu0  ;;  %v684_v9 = vpop.f32.mrf.mxu1  ;;  %v427_v1 = vsel %vm327_vm3, %v422_v53, %v426_v54 }
  0xb0   : > { %v1583_v8 = vpack.c.bf16 %v1549_v3, %v1549_v3  ;;  %v682_v21 = vadd.f32 %v681_v58, %v545_v5 }
  0xb1   : > { %v1410_v12 = vadd.f32 %v1328_v62, %v1180_v4 }
  0xb2   : > { %1618 = vst.msk [vmem:[%s2177_s17 + $0x4] sm:$0xf] %vm1616_vm5, %v1583_v8  ;;  %1818 = vmatmul.msk.bf16.gmra.mxu1 %vm473_vm1, %v2157_v29  ;;  %v976_v29 = vsel %vm327_vm3, %v971_v18, %v975_v19  ;;  %v2238_v8 = vld [vmem:[%s2068_s9 + $0x68] sm:$0xff]  ;;  %v985_v19 = vshrl.u32 %v2216_v37, 16 }
  0xb3   : > { %v1448_v14 = vadd.f32 %v2165_v33, %v1410_v12  ;;  %v1330_v15 = vpop.f32.mrf.mxu3  ;;  %v432_v16 = vshll.u32 %v2238_v8, 16 }
  0xb5   : > { %vm1482_vm7 = vcmp.gt.f32.partialorder %v1448_v14, 0.0  ;;  %v1516_v20 = vmul.f32 0.2, %v1448_v14 }
  0xb6   : > { %v1100_v23 = vpop.f32.mrf.mxu2 }
  0xb7   : > { %v1550_v24 = vsel %vm1482_vm7, %v1448_v14, %v1516_v20  ;;  %v1181_v25 = vadd.f32 %v1100_v23, %v682_v21  ;;  %v548_v26 = vpop.f32.mrf.mxu0  ;;  %v686_v30 = vpop.f32.mrf.mxu1 }
  0xb8   : > { %v1584_v28 = vpack.c.bf16 %v1550_v24, %v1550_v24  ;;  %1928 = vmatmul.msk.bf16.gmra.mxu3 %vm473_vm1, %v1242_v22  ;;  %v685_v34 = vadd.f32 %v684_v9, %v548_v26  ;;  %v2241_v9 = vld [vmem:[%s2068_s9 + $0x70] sm:$0xff]  ;;  %v434_v26 = vrot.slane %v432_v16, 1 }
  0xb9   : > { %v1411_v31 = vadd.f32 %v1330_v15, %v1181_v25  ;;  %v428_v15 = vshrl.u32 %v2213_v36, 16  ;;  %v989_v20 = vshll.u32 %v2241_v9, 16  ;;  %v1245_v22 = vrot.slane %v2241_v9, 1 }
  0xba   : > { %1619 = vst.msk [vmem:[%s2177_s17 + $0x8] sm:$0xf] %vm1616_vm5, %v1584_v28  ;;  %1797 = vmatmul.msk.bf16.gmra.mxu0 %vm473_vm1, %v419_v27  ;;  %v987_v27 = vor.u32 %v985_v19, %v983_v56 }
  0xbb   : > { %v1449_v32 = vadd.f32 %v2165_v33, %v1411_v31  ;;  %1905 = vmatmul.msk.bf16.gmra.mxu2 %vm473_vm1, %v976_v29  ;;  %v1333_v35 = vpop.f32.mrf.mxu3  ;;  %v430_v25 = vor.u32 %v428_v15, %v426_v54  ;;  %v991_v28 = vrot.slane %v989_v20, 1  ;;  %v1246_v31 = vsel %vm1219_vm2, %v1243_v50, %v1245_v22 }
  0xbd   : > { %vm1483_vm8 = vcmp.gt.f32.partialorder %v1449_v32, 0.0  ;;  %v1517_v38 = vmul.f32 0.2, %v1449_v32 }
  0xbe   : > { %v1103_v39 = vpop.f32.mrf.mxu2 }
  0xbf   : > { %v1551_v40 = vsel %vm1483_vm8, %v1449_v32, %v1517_v38  ;;  %v1182_v41 = vadd.f32 %v1103_v39, %v685_v34  ;;  %v550_v42 = vpop.f32.mrf.mxu0  ;;  %v689_v46 = vpop.f32.mrf.mxu1  ;;  %v435_v38 = vsel %vm327_vm3, %v430_v25, %v434_v26 }
  0xc0   : > { %v1585_v45 = vpack.c.bf16 %v1551_v40, %v1551_v40  ;;  %v687_v58 = vadd.f32 %v686_v30, %v550_v42 }
  0xc1   : > { %v1412_v49 = vadd.f32 %v1333_v35, %v1182_v41 }
  0xc2   : > { %1620 = vst.msk [vmem:[%s2177_s17 + $0xc] sm:$0xf] %vm1616_vm5, %v1585_v45  ;;  %1819 = vmatmul.msk.bf16.gmra.mxu1 %vm473_vm1, %v2188_v63  ;;  %v984_v63 = vsel %vm327_vm3, %v979_v55, %v983_v56  ;;  %v2263_v45 = vld [vmem:[%s2068_s9 + $0x70] sm:$0xff]  ;;  %v993_v56 = vshrl.u32 %v2241_v9, 16 }
  0xc3   : > { %v1450_v51 = vadd.f32 %v2165_v33, %v1412_v49  ;;  %v1335_v52 = vpop.f32.mrf.mxu3  ;;  %v440_v53 = vshll.u32 %v2263_v45, 16 }
  0xc5   : > { %vm1484_vm9 = vcmp.gt.f32.partialorder %v1450_v51, 0.0  ;;  %v1518_v57 = vmul.f32 0.2, %v1450_v51 }
  0xc6   : > { %v1105_v60 = vpop.f32.mrf.mxu2 }
  0xc7   : > { %v1552_v61 = vsel %vm1484_vm9, %v1450_v51, %v1518_v57  ;;  %v1183_v62 = vadd.f32 %v1105_v60, %v687_v58  ;;  %v553_v0 = vpop.f32.mrf.mxu0  ;;  %v691_v3 = vpop.f32.mrf.mxu1 }
  0xc8   : > { %v1586_v2 = vpack.c.bf16 %v1552_v61, %v1552_v61  ;;  %1929 = vmatmul.msk.bf16.gmra.mxu3 %vm473_vm1, %v1244_v59  ;;  %v690_v6 = vadd.f32 %v689_v46, %v553_v0  ;;  %v2266_v46 = vld [vmem:[%s2068_s9 + $0x78] sm:$0xff]  ;;  %v442_v0 = vrot.slane %v440_v53, 1 }
  0xc9   : > { %v1413_v4 = vadd.f32 %v1335_v52, %v1183_v62  ;;  %v436_v52 = vshrl.u32 %v2238_v8, 16  ;;  %v997_v57 = vshll.u32 %v2266_v46, 16  ;;  %v1247_v59 = vrot.slane %v2266_v46, 1 }
  0xca   : > { %1621 = vst.msk [vmem:[%s2177_s17 + $0x10] sm:$0xf] %vm1616_vm5, %v1586_v2  ;;  %1798 = vmatmul.msk.bf16.gmra.mxu0 %vm473_vm1, %v427_v1  ;;  %v995_v1 = vor.u32 %v993_v56, %v991_v28 }
  0xcb   : > { %v1451_v5 = vadd.f32 %v2165_v33, %v1413_v4  ;;  %1906 = vmatmul.msk.bf16.gmra.mxu2 %vm473_vm1, %v984_v63  ;;  %v1338_v7 = vpop.f32.mrf.mxu3  ;;  %v438_v62 = vor.u32 %v436_v52, %v434_v26  ;;  %v999_v2 = vrot.slane %v997_v57, 1  ;;  %v1248_v4 = vsel %vm1219_vm2, %v1245_v22, %v1247_v59 }
  0xcd   : > { %vm1485_vm10 = vcmp.gt.f32.partialorder %v1451_v5, 0.0  ;;  %v1519_v10 = vmul.f32 0.2, %v1451_v5 }
  0xce   : > { %v1108_v11 = vpop.f32.mrf.mxu2 }
  0xcf   : > { %v1553_v12 = vsel %vm1485_vm10, %v1451_v5, %v1519_v10  ;;  %v1184_v13 = vadd.f32 %v1108_v11, %v690_v6  ;;  %v555_v14 = vpop.f32.mrf.mxu0  ;;  %v694_v18 = vpop.f32.mrf.mxu1  ;;  %v443_v10 = vsel %vm327_vm3, %v438_v62, %v442_v0 }
  0xd0   : > { %v1587_v17 = vpack.c.bf16 %v1553_v12, %v1553_v12  ;;  %v692_v30 = vadd.f32 %v691_v3, %v555_v14 }
  0xd1   : > { %v1414_v21 = vadd.f32 %v1338_v7, %v1184_v13 }
  0xd2   : > { %1622 = vst.msk [vmem:[%s2177_s17 + $0x14] sm:$0xf] %vm1616_vm5, %v1587_v17  ;;  %1820 = vmatmul.msk.bf16.gmra.mxu1 %vm473_vm1, %v2213_v36  ;;  %v992_v36 = vsel %vm327_vm3, %v987_v27, %v991_v28  ;;  %v2288_v17 = vld [vmem:[%s2068_s9 + $0x78] sm:$0xff]  ;;  %v1001_v28 = vshrl.u32 %v2266_v46, 16 }
  0xd3   : > { %v1452_v23 = vadd.f32 %v2165_v33, %v1414_v21  ;;  %v1340_v24 = vpop.f32.mrf.mxu3  ;;  %v448_v25 = vshll.u32 %v2288_v17, 16 }
  0xd5   : > { %vm1486_vm11 = vcmp.gt.f32.partialorder %v1452_v23, 0.0  ;;  %v1520_v29 = vmul.f32 0.2, %v1452_v23 }
  0xd6   : > { %v1110_v32 = vpop.f32.mrf.mxu2 }
  0xd7   : > { %v1554_v34 = vsel %vm1486_vm11, %v1452_v23, %v1520_v29  ;;  %v1185_v35 = vadd.f32 %v1110_v32, %v692_v30  ;;  %v558_v37 = vpop.f32.mrf.mxu0  ;;  %v696_v40 = vpop.f32.mrf.mxu1 }
  0xd8   : > { %v1588_v39 = vpack.c.bf16 %v1554_v34, %v1554_v34  ;;  %1930 = vmatmul.msk.bf16.gmra.mxu3 %vm473_vm1, %v1246_v31  ;;  %v695_v43 = vadd.f32 %v694_v18, %v558_v37  ;;  %v2291_v18 = vld [vmem:[%s2068_s9 + $0x80] sm:$0xff]  ;;  %v450_v37 = vrot.slane %v448_v25, 1 }
  0xd9   : > { %v1415_v41 = vadd.f32 %v1340_v24, %v1185_v35  ;;  %v444_v24 = vshrl.u32 %v2263_v45, 16  ;;  %v1005_v29 = vshll.u32 %v2291_v18, 16  ;;  %v1249_v31 = vrot.slane %v2291_v18, 1 }
  0xda   : > { %1623 = vst.msk [vmem:[%s2177_s17 + $0x18] sm:$0xf] %vm1616_vm5, %v1588_v39  ;;  %1799 = vmatmul.msk.bf16.gmra.mxu0 %vm473_vm1, %v435_v38  ;;  %v1003_v38 = vor.u32 %v1001_v28, %v999_v2 }
  0xdb   : > { %v1453_v42 = vadd.f32 %v2165_v33, %v1415_v41  ;;  %1907 = vmatmul.msk.bf16.gmra.mxu2 %vm473_vm1, %v992_v36  ;;  %v1343_v44 = vpop.f32.mrf.mxu3  ;;  %v446_v35 = vor.u32 %v444_v24, %v442_v0  ;;  %v1007_v39 = vrot.slane %v1005_v29, 1  ;;  %v1250_v41 = vsel %vm1219_vm2, %v1247_v59, %v1249_v31 }
  0xdd   : > { %vm1487_vm12 = vcmp.gt.f32.partialorder %v1453_v42, 0.0  ;;  %v1521_v47 = vmul.f32 0.2, %v1453_v42 }
  0xde   : > { %v1113_v48 = vpop.f32.mrf.mxu2 }
  0xdf   : > { %v1555_v49 = vsel %vm1487_vm12, %v1453_v42, %v1521_v47  ;;  %v1186_v50 = vadd.f32 %v1113_v48, %v695_v43  ;;  %v560_v51 = vpop.f32.mrf.mxu0  ;;  %v699_v55 = vpop.f32.mrf.mxu1  ;;  %v451_v47 = vsel %vm327_vm3, %v446_v35, %v450_v37 }
  0xe0   : > { %v1589_v54 = vpack.c.bf16 %v1555_v49, %v1555_v49  ;;  %v697_v3 = vadd.f32 %v696_v40, %v560_v51 }
  0xe1   : > { %v1416_v58 = vadd.f32 %v1343_v44, %v1186_v50 }
  0xe2   : > { %1624 = vst.msk [vmem:[%s2177_s17 + $0x1c] sm:$0xf] %vm1616_vm5, %v1589_v54  ;;  %1821 = vmatmul.msk.bf16.gmra.mxu1 %vm473_vm1, %v2238_v8  ;;  %v1000_v8 = vsel %vm327_vm3, %v995_v1, %v999_v2  ;;  %v2313_v54 = vld [vmem:[%s2068_s9 + $0x80] sm:$0xff]  ;;  %v1009_v2 = vshrl.u32 %v2291_v18, 16 }
  0xe3   : > { %v1454_v60 = vadd.f32 %v2165_v33, %v1416_v58  ;;  %v1345_v61 = vpop.f32.mrf.mxu3  ;;  %v456_v62 = vshll.u32 %v2313_v54, 16 }
  0xe5   : > { %vm1488_vm13 = vcmp.gt.f32.partialorder %v1454_v60, 0.0  ;;  %v1522_v63 = vmul.f32 0.2, %v1454_v60 }
  0xe6   : > { %v1115_v5 = vpop.f32.mrf.mxu2 }
  0xe7   : > { %v1556_v6 = vsel %vm1488_vm13, %v1454_v60, %v1522_v63  ;;  %v1187_v7 = vadd.f32 %v1115_v5, %v697_v3  ;;  %v563_v9 = vpop.f32.mrf.mxu0  ;;  %v701_v12 = vpop.f32.mrf.mxu1 }
  0xe8   : > { %v1590_v11 = vpack.c.bf16 %v1556_v6, %v1556_v6  ;;  %1931 = vmatmul.msk.bf16.gmra.mxu3 %vm473_vm1, %v1248_v4  ;;  %v700_v15 = vadd.f32 %v699_v55, %v563_v9  ;;  %v2316_v55 = vld [vmem:[%s2068_s9 + $0x88] sm:$0xff]  ;;  %v458_v9 = vrot.slane %v456_v62, 1 }
  0xe9   : > { %v1417_v13 = vadd.f32 %v1345_v61, %v1187_v7  ;;  %v452_v61 = vshrl.u32 %v2288_v17, 16  ;;  %v1013_v63 = vshll.u32 %v2316_v55, 16  ;;  %v1251_v4 = vrot.slane %v2316_v55, 1 }
  0xea   : > { %1625 = vst.msk [vmem:[%s2177_s17 + $0x20] sm:$0xf] %vm1616_vm5, %v1590_v11  ;;  %1800 = vmatmul.msk.bf16.gmra.mxu0 %vm473_vm1, %v443_v10  ;;  %v1011_v10 = vor.u32 %v1009_v2, %v1007_v39 }
  0xeb   : > { %v1455_v14 = vadd.f32 %v2165_v33, %v1417_v13  ;;  %1908 = vmatmul.msk.bf16.gmra.mxu2 %vm473_vm1, %v1000_v8  ;;  %v1348_v16 = vpop.f32.mrf.mxu3  ;;  %v454_v7 = vor.u32 %v452_v61, %v450_v37  ;;  %v1015_v11 = vrot.slane %v1013_v63, 1  ;;  %v235_v8 = vld [vmem:[%s2068_s9 + $0x88] sm:$0x1] }
  0xed   : > { %vm1489_vm14 = vcmp.gt.f32.partialorder %v1455_v14, 0.0  ;;  %v1523_v19 = vmul.f32 0.2, %v1455_v14 }
  0xee   : > { %v1118_v20 = vpop.f32.mrf.mxu2 }
  0xef   : > { %v1557_v21 = vsel %vm1489_vm14, %v1455_v14, %v1523_v19  ;;  %v1188_v22 = vadd.f32 %v1118_v20, %v700_v15  ;;  %v565_v23 = vpop.f32.mrf.mxu0  ;;  %v704_v27 = vpop.f32.mrf.mxu1  ;;  %v1252_v14 = vsel %vm1219_vm2, %v1249_v31, %v1251_v4  ;;  %v793_v15 = vld [vmem:[%s2068_s9 + $0x90] sm:$0x1] }
  0xf0   : > { %v1591_v26 = vpack.c.bf16 %v1557_v21, %v1557_v21  ;;  %v702_v40 = vadd.f32 %v701_v12, %v565_v23  ;;  %v459_v21 = vsel %vm327_vm3, %v454_v7, %v458_v9  ;;  %v1016_v23 = vsel %vm327_vm3, %v1011_v10, %v1015_v11 }
  0xf1   : > { %v1418_v30 = vadd.f32 %v1348_v16, %v1188_v22  ;;  %v308_v22 = vunpack.c.l.b16 %v235_v8  ;;  %v866_v25 = vunpack.c.l.b16 %v793_v15 }
  0xf2   : > { %1626 = vst.msk [vmem:[%s2177_s17 + $0x24] sm:$0xf] %vm1616_vm5, %v1591_v26  ;;  %1822 = vmatmul.msk.bf16.gmra.mxu1 %vm473_vm1, %v2263_v45  ;;  %v1008_v45 = vsel %vm327_vm3, %v1003_v38, %v1007_v39  ;;  %v460_v39 = vshrl.u32 %v2313_v54, 16 }
  0xf3   : > { %v1456_v32 = vadd.f32 %v2165_v33, %v1418_v30  ;;  %v1350_v34 = vpop.f32.mrf.mxu3  ;;  %v326_v30 = vpack.c.b16 %v308_v22, %v308_v22  ;;  %v884_v31 = vpack.c.b16 %v866_v25, %v866_v25 }
  0xf5   : > { %vm1490_vm15 = vcmp.gt.f32.partialorder %v1456_v32, 0.0  ;;  %v1524_v36 = vmul.f32 0.2, %v1456_v32 }
  0xf6   : > { %v1120_v42 = vpop.f32.mrf.mxu2 }
  0xf7   : > { %v1558_v43 = vsel %vm1490_vm15, %v1456_v32, %v1524_v36  ;;  %v1189_v44 = vadd.f32 %v1120_v42, %v702_v40  ;;  %v568_v46 = vpop.f32.mrf.mxu0  ;;  %v706_v49 = vpop.f32.mrf.mxu1  ;;  %v464_v36 = vshll.u32 %v326_v30, 16  ;;  %v1017_v42 = vshrl.u32 %v2316_v55, 16 }
  0xf8   : > { %v1592_v48 = vpack.c.bf16 %v1558_v43, %v1558_v43  ;;  %1932 = vmatmul.msk.bf16.gmra.mxu3 %vm473_vm1, %v1250_v41  ;;  %v705_v52 = vadd.f32 %v704_v27, %v568_v46  ;;  %v1021_v43 = vshll.u32 %v884_v31, 16  ;;  %v1253_v46 = vrot.slane %v884_v31, 1 }
  0xf9   : > { %v1419_v50 = vadd.f32 %v1350_v34, %v1189_v44 }
  0xfa   : > { %1627 = vst.msk [vmem:[%s2177_s17 + $0x28] sm:$0xf] %vm1616_vm5, %v1592_v48  ;;  %1801 = vmatmul.msk.bf16.gmra.mxu0 %vm473_vm1, %v451_v47  ;;  %v1254_v55 = vsel %vm1219_vm2, %v1251_v4, %v1253_v46 }
  0xfb   : > { %v1457_v51 = vadd.f32 %v2165_v33, %v1419_v50  ;;  %1909 = vmatmul.msk.bf16.gmra.mxu2 %vm473_vm1, %v1008_v45  ;;  %v1353_v53 = vpop.f32.mrf.mxu3  ;;  %v462_v45 = vor.u32 %v460_v39, %v458_v9  ;;  %v1019_v50 = vor.u32 %v1017_v42, %v1015_v11 }
  0xfd   : > { %vm1491_vm0 = vcmp.gt.f32.partialorder %v1457_v51, 0.0  ;;  %v1525_v56 = vmul.f32 0.2, %v1457_v51 }
  0xfe   : > { %v1123_v57 = vpop.f32.mrf.mxu2 }
  0xff   : > { %v1559_v58 = vsel %vm1491_vm0, %v1457_v51, %v1525_v56  ;;  %v1190_v59 = vadd.f32 %v1123_v57, %v705_v52  ;;  %v570_v60 = vpop.f32.mrf.mxu0  ;;  %v709_v1 = vpop.f32.mrf.mxu1  ;;  %v1023_v51 = vrot.slane %v1021_v43, 1 }
 0x100   : > { %v1593_v0 = vpack.c.bf16 %v1559_v58, %v1559_v58  ;;  %v707_v13 = vadd.f32 %v706_v49, %v570_v60  ;;  %v466_v49 = vrot.slane %v464_v36, 1 }
 0x101   : > { %v1420_v3 = vadd.f32 %v1353_v53, %v1190_v59 }
 0x102   : > { %1628 = vst.msk [vmem:[%s2177_s17 + $0x2c] sm:$0xf] %vm1616_vm5, %v1593_v0  ;;  %1823 = vmatmul.msk.bf16.gmra.mxu1 %vm473_vm1, %v2288_v17  ;;  %v467_v60 = vsel %vm327_vm3, %v462_v45, %v466_v49 }
 0x103   : > { %v1458_v5 = vadd.f32 %v2165_v33, %v1420_v3  ;;  %v1355_v6 = vpop.f32.mrf.mxu3 }
 0x105   : > { %vm1492_vm4 = vcmp.gt.f32.partialorder %v1458_v5, 0.0  ;;  %v1526_v12 = vmul.f32 0.2, %v1458_v5 }
 0x106   : > { %v1125_v16 = vpop.f32.mrf.mxu2 }
 0x107   : > { %v1560_v18 = vsel %vm1492_vm4, %v1458_v5, %v1526_v12  ;;  %v1191_v19 = vadd.f32 %v1125_v16, %v707_v13  ;;  %v573_v20 = vpop.f32.mrf.mxu0  ;;  %v711_v24 = vpop.f32.mrf.mxu1 }
 0x108   : > { %v1594_v17 = vpack.c.bf16 %v1560_v18, %v1560_v18  ;;  %1933 = vmatmul.msk.bf16.gmra.mxu3 %vm473_vm1, %v1252_v14  ;;  %v710_v28 = vadd.f32 %v709_v1, %v573_v20 }
 0x109   : > { %v1421_v26 = vadd.f32 %v1355_v6, %v1191_v19 }
 0x10a   : > { %1629 = vst.msk [vmem:[%s2177_s17 + $0x30] sm:$0xf] %vm1616_vm5, %v1594_v17  ;;  %1802 = vmatmul.msk.bf16.gmra.mxu0 %vm473_vm1, %v459_v21 }
 0x10b   : > { %v1459_v27 = vadd.f32 %v2165_v33, %v1421_v26  ;;  %1910 = vmatmul.msk.bf16.gmra.mxu2 %vm473_vm1, %v1016_v23  ;;  %v1358_v29 = vpop.f32.mrf.mxu3 }
 0x10d   : > { %vm1493_vm6 = vcmp.gt.f32.partialorder %v1459_v27, 0.0  ;;  %v1527_v32 = vmul.f32 0.2, %v1459_v27 }
 0x10e   : > { %v1128_v34 = vpop.f32.mrf.mxu2 }
 0x10f   : > { %v1561_v35 = vsel %vm1493_vm6, %v1459_v27, %v1527_v32  ;;  %v1192_v37 = vadd.f32 %v1128_v34, %v710_v28  ;;  %v575_v38 = vpop.f32.mrf.mxu0  ;;  %v714_v41 = vpop.f32.mrf.mxu1 }
 0x110   : > { %v1595_v40 = vpack.c.bf16 %v1561_v35, %v1561_v35  ;;  %v712_v53 = vadd.f32 %v711_v24, %v575_v38 }
 0x111   : > { %v1422_v44 = vadd.f32 %v1358_v29, %v1192_v37 }
 0x112   : > { %1630 = vst.msk [vmem:[%s2177_s17 + $0x34] sm:$0xf] %vm1616_vm5, %v1595_v40  ;;  %1824 = vmatmul.msk.bf16.gmra.mxu1 %vm473_vm1, %v2313_v54  ;;  %v1024_v54 = vsel %vm327_vm3, %v1019_v50, %v1023_v51 }
 0x113   : > { %v1460_v47 = vadd.f32 %v2165_v33, %v1422_v44  ;;  %v1360_v48 = vpop.f32.mrf.mxu3 }
 0x115   : > { %vm1494_vm7 = vcmp.gt.f32.partialorder %v1460_v47, 0.0  ;;  %v1528_v52 = vmul.f32 0.2, %v1460_v47 }
 0x116   : > { %v1130_v56 = vpop.f32.mrf.mxu2 }
 0x117   : > { %v1562_v57 = vsel %vm1494_vm7, %v1460_v47, %v1528_v52  ;;  %v1193_v58 = vadd.f32 %v1130_v56, %v712_v53  ;;  %v578_v59 = vpop.f32.mrf.mxu0  ;;  %v716_v62 = vpop.f32.mrf.mxu1 }
 0x118   : > { %v1596_v61 = vpack.c.bf16 %v1562_v57, %v1562_v57  ;;  %1934 = vmatmul.msk.bf16.gmra.mxu3 %vm473_vm1, %v1254_v55  ;;  %v715_v2 = vadd.f32 %v714_v41, %v578_v59 }
 0x119   : > { %v1423_v0 = vadd.f32 %v1360_v48, %v1193_v58 }
 0x11a   : > { %1631 = vst.msk [vmem:[%s2177_s17 + $0x38] sm:$0xf] %vm1616_vm5, %v1596_v61  ;;  %1803 = vmatmul.msk.bf16.gmra.mxu0 %vm473_vm1, %v467_v60 }
 0x11b   : > { %v1461_v1 = vadd.f32 %v2165_v33, %v1423_v0  ;;  %1911 = vmatmul.msk.bf16.gmra.mxu2 %vm473_vm1, %v1024_v54  ;;  %v1363_v63 = vpop.f32.mrf.mxu3 }
 0x11d   : > { %vm1495_vm2 = vcmp.gt.f32.partialorder %v1461_v1, 0.0  ;;  %v1529_v3 = vmul.f32 0.2, %v1461_v1 }
 0x11e   : > { %v1133_v4 = vpop.f32.mrf.mxu2 }
 0x11f   : > { %v1563_v5 = vsel %vm1495_vm2, %v1461_v1, %v1529_v3  ;;  %v1194_v6 = vadd.f32 %v1133_v4, %v715_v2  ;;  %v580_v7 = vpop.f32.mrf.mxu0  ;;  %v719_v10 = vpop.f32.mrf.mxu1 }
 0x120   : > { %v1597_v9 = vpack.c.bf16 %v1563_v5, %v1563_v5  ;;  %v717_v14 = vadd.f32 %v716_v62, %v580_v7 }
 0x121   : > { %v1424_v11 = vadd.f32 %v1363_v63, %v1194_v6 }
 0x122   : > { %1632 = vst.msk [vmem:[%s2177_s17 + $0x3c] sm:$0xf] %vm1616_vm5, %v1597_v9 }
 0x123   : > { %v1462_v8 = vadd.f32 %v2165_v33, %v1424_v11  ;;  %v1365_v12 = vpop.f32.mrf.mxu3 }
 0x125   : > { %vm1496_vm3 = vcmp.gt.f32.partialorder %v1462_v8, 0.0  ;;  %v1530_v13 = vmul.f32 0.2, %v1462_v8 }
 0x126   : > { %v1135_v15 = vpop.f32.mrf.mxu2 }
 0x127   : > { %v1564_v16 = vsel %vm1496_vm3, %v1462_v8, %v1530_v13  ;;  %v1195_v18 = vadd.f32 %v1135_v15, %v717_v14  ;;  %v583_v19 = vpop.f32.mrf.mxu0  ;;  %v721_v21 = vpop.f32.mrf.mxu1 }
 0x128   : > { %v1598_v20 = vpack.c.bf16 %v1564_v16, %v1564_v16  ;;  %v720_v23 = vadd.f32 %v719_v10, %v583_v19 }
 0x129   : > { %v1425_v22 = vadd.f32 %v1365_v12, %v1195_v18 }
 0x12a   : > { %1633 = vst.msk [vmem:[%s2177_s17 + $0x40] sm:$0xf] %vm1616_vm5, %v1598_v20 }
 0x12b   : > { %v1463_v17 = vadd.f32 %v2165_v33, %v1425_v22  ;;  %v1368_v24 = vpop.f32.mrf.mxu3 }
 0x12d   : > { %vm1497_vm1 = vcmp.gt.f32.partialorder %v1463_v17, 0.0  ;;  %v1531_v25 = vmul.f32 0.2, %v1463_v17 }
 0x12e   : > { %v1138_v26 = vpop.f32.mrf.mxu2 }
 0x12f   : > { %v1565_v27 = vsel %vm1497_vm1, %v1463_v17, %v1531_v25  ;;  %v1196_v28 = vadd.f32 %v1138_v26, %v720_v23  ;;  %v585_v29 = vpop.f32.mrf.mxu0  ;;  %v724_v31 = vpop.f32.mrf.mxu1 }
 0x130   : > { %v1599_v30 = vpack.c.bf16 %v1565_v27, %v1565_v27  ;;  %v722_v38 = vadd.f32 %v721_v21, %v585_v29 }
 0x131   : > { %v1426_v32 = vadd.f32 %v1368_v24, %v1196_v28 }
 0x132   : > { %1634 = vst.msk [vmem:[%s2177_s17 + $0x44] sm:$0xf] %vm1616_vm5, %v1599_v30 }
 0x133   : > { %v1464_v34 = vadd.f32 %v2165_v33, %v1426_v32  ;;  %v1370_v35 = vpop.f32.mrf.mxu3 }
 0x135   : > { %vm1498_vm8 = vcmp.gt.f32.partialorder %v1464_v34, 0.0  ;;  %v1532_v37 = vmul.f32 0.2, %v1464_v34 }
 0x136   : > { %v1140_v39 = vpop.f32.mrf.mxu2 }
 0x137   : > { %v1566_v36 = vsel %vm1498_vm8, %v1464_v34, %v1532_v37  ;;  %v1197_v40 = vadd.f32 %v1140_v39, %v722_v38  ;;  %v588_v41 = vpop.f32.mrf.mxu0  ;;  %v726_v43 = vpop.f32.mrf.mxu1 }
 0x138   : > { %v1600_v42 = vpack.c.bf16 %v1566_v36, %v1566_v36  ;;  %v725_v47 = vadd.f32 %v724_v31, %v588_v41 }
 0x139   : > { %v1427_v44 = vadd.f32 %v1370_v35, %v1197_v40 }
 0x13a   : > { %1635 = vst.msk [vmem:[%s2177_s17 + $0x48] sm:$0xf] %vm1616_vm5, %v1600_v42 }
 0x13b   : > { %v1465_v46 = vadd.f32 %v2165_v33, %v1427_v44  ;;  %v1373_v48 = vpop.f32.mrf.mxu3 }
 0x13d   : > { %vm1499_vm9 = vcmp.gt.f32.partialorder %v1465_v46, 0.0  ;;  %v1533_v45 = vmul.f32 0.2, %v1465_v46 }
 0x13e   : > { %v1143_v49 = vpop.f32.mrf.mxu2 }
 0x13f   : > { %v1567_v50 = vsel %vm1499_vm9, %v1465_v46, %v1533_v45  ;;  %v1198_v51 = vadd.f32 %v1143_v49, %v725_v47  ;;  %v590_v52 = vpop.f32.mrf.mxu0  ;;  %v729_v55 = vpop.f32.mrf.mxu1 }
 0x140   : > { %v1601_v53 = vpack.c.bf16 %v1567_v50, %v1567_v50  ;;  %v727_v60 = vadd.f32 %v726_v43, %v590_v52 }
 0x141   : > { %v1428_v56 = vadd.f32 %v1373_v48, %v1198_v51 }
 0x142   : > { %1636 = vst.msk [vmem:[%s2177_s17 + $0x4c] sm:$0xf] %vm1616_vm5, %v1601_v53 }
 0x143   : > { %v1466_v57 = vadd.f32 %v2165_v33, %v1428_v56  ;;  %v1375_v58 = vpop.f32.mrf.mxu3 }
 0x145   : > { %vm1500_vm10 = vcmp.gt.f32.partialorder %v1466_v57, 0.0  ;;  %v1534_v59 = vmul.f32 0.2, %v1466_v57 }
 0x146   : > { %v1145_v61 = vpop.f32.mrf.mxu2 }
 0x147   : > { %v1568_v54 = vsel %vm1500_vm10, %v1466_v57, %v1534_v59  ;;  %v1199_v62 = vadd.f32 %v1145_v61, %v727_v60  ;;  %v593_v0 = vpop.f32.mrf.mxu0  ;;  %v731_v2 = vpop.f32.mrf.mxu1 }
 0x148   : > { %v1602_v1 = vpack.c.bf16 %v1568_v54, %v1568_v54  ;;  %v730_v4 = vadd.f32 %v729_v55, %v593_v0 }
 0x149   : > { %v1429_v63 = vadd.f32 %v1375_v58, %v1199_v62 }
 0x14a   : > { %1637 = vst.msk [vmem:[%s2177_s17 + $0x50] sm:$0xf] %vm1616_vm5, %v1602_v1 }
 0x14b   : > { %v1467_v3 = vadd.f32 %v2165_v33, %v1429_v63  ;;  %v1378_v5 = vpop.f32.mrf.mxu3 }
 0x14d   : > { %vm1501_vm11 = vcmp.gt.f32.partialorder %v1467_v3, 0.0  ;;  %v1535_v6 = vmul.f32 0.2, %v1467_v3 }
 0x14e   : > { %v1148_v7 = vpop.f32.mrf.mxu2 }
 0x14f   : > { %v1569_v9 = vsel %vm1501_vm11, %v1467_v3, %v1535_v6  ;;  %v1200_v10 = vadd.f32 %v1148_v7, %v730_v4  ;;  %v595_v11 = vpop.f32.mrf.mxu0  ;;  %v734_v12 = vpop.f32.mrf.mxu1 }
 0x150   : > { %v1603_v8 = vpack.c.bf16 %v1569_v9, %v1569_v9  ;;  %v732_v18 = vadd.f32 %v731_v2, %v595_v11 }
 0x151   : > { %v1430_v13 = vadd.f32 %v1378_v5, %v1200_v10 }
 0x152   : > { %1638 = vst.msk [vmem:[%s2177_s17 + $0x54] sm:$0xf] %vm1616_vm5, %v1603_v8 }
 0x153   : > { %v1468_v14 = vadd.f32 %v2165_v33, %v1430_v13  ;;  %v1380_v15 = vpop.f32.mrf.mxu3 }
 0x155   : > { %vm1502_vm12 = vcmp.gt.f32.partialorder %v1468_v14, 0.0  ;;  %v1536_v16 = vmul.f32 0.2, %v1468_v14 }
 0x156   : > { %v1150_v19 = vpop.f32.mrf.mxu2 }
 0x157   : > { %v1570_v20 = vsel %vm1502_vm12, %v1468_v14, %v1536_v16  ;;  %v1201_v21 = vadd.f32 %v1150_v19, %v732_v18  ;;  %v598_v22 = vpop.f32.mrf.mxu0  ;;  %v736_v23 = vpop.f32.mrf.mxu1  ;;  %v2396_v16 = vld [vmem:[%s2421_s2] ss:$0 sm:$0xff] }
 0x158   : > { %v1604_v17 = vpack.c.bf16 %v1570_v20, %v1570_v20  ;;  %v735_v26 = vadd.f32 %v734_v12, %v598_v22 }
 0x159   : > { %v1431_v24 = vadd.f32 %v1380_v15, %v1201_v21 }
 0x15a   : > { %1639 = vst.msk [vmem:[%s2177_s17 + $0x58] sm:$0xf] %vm1616_vm5, %v1604_v17 }
 0x15b   : > { %v1469_v25 = vadd.f32 %v2165_v33, %v1431_v24  ;;  %v1383_v27 = vpop.f32.mrf.mxu3 }
 0x15d   : > { %vm1503_vm13 = vcmp.gt.f32.partialorder %v1469_v25, 0.0  ;;  %v1537_v28 = vmul.f32 0.2, %v1469_v25 }
 0x15e   : > { %v1153_v29 = vpop.f32.mrf.mxu2 }
 0x15f   : > { %v1571_v30 = vsel %vm1503_vm13, %v1469_v25, %v1537_v28  ;;  %v1202_v31 = vadd.f32 %v1153_v29, %v735_v26  ;;  %v600_v32 = vpop.f32.mrf.mxu0  ;;  %v739_v35 = vpop.f32.mrf.mxu1 }
 0x160   : > { %v1605_v34 = vpack.c.bf16 %v1571_v30, %v1571_v30  ;;  %v737_v40 = vadd.f32 %v736_v23, %v600_v32 }
 0x161   : > { %v1432_v37 = vadd.f32 %v1383_v27, %v1202_v31 }
 0x162   : > { %1640 = vst.msk [vmem:[%s2177_s17 + $0x5c] sm:$0xf] %vm1616_vm5, %v1605_v34 }
 0x163   : > { %v1470_v38 = vadd.f32 %v2165_v33, %v1432_v37  ;;  %v1385_v39 = vpop.f32.mrf.mxu3 }
 0x165   : > { %vm1504_vm14 = vcmp.gt.f32.partialorder %v1470_v38, 0.0  ;;  %v1538_v36 = vmul.f32 0.2, %v1470_v38 }
 0x166   : > { %v1155_v41 = vpop.f32.mrf.mxu2 }
 0x167   : > { %v1572_v42 = vsel %vm1504_vm14, %v1470_v38, %v1538_v36  ;;  %v1203_v43 = vadd.f32 %v1155_v41, %v737_v40  ;;  %v603_v44 = vpop.f32.mrf.mxu0  ;;  %v741_v47 = vpop.f32.mrf.mxu1 }
 0x168   : > { %v1606_v46 = vpack.c.bf16 %v1572_v42, %v1572_v42  ;;  %v740_v49 = vadd.f32 %v739_v35, %v603_v44 }
 0x169   : > { %v1433_v48 = vadd.f32 %v1385_v39, %v1203_v43 }
 0x16a   : > { %1641 = vst.msk [vmem:[%s2177_s17 + $0x60] sm:$0xf] %vm1616_vm5, %v1606_v46 }
 0x16b   : > { %v1471_v45 = vadd.f32 %v2165_v33, %v1433_v48  ;;  %v1388_v50 = vpop.f32.mrf.mxu3 }
 0x16d   : > { %vm1505_vm15 = vcmp.gt.f32.partialorder %v1471_v45, 0.0  ;;  %v1539_v51 = vmul.f32 0.2, %v1471_v45 }
 0x16e   : > { %v1158_v52 = vpop.f32.mrf.mxu2 }
 0x16f   : > { %v1573_v53 = vsel %vm1505_vm15, %v1471_v45, %v1539_v51  ;;  %v1204_v55 = vadd.f32 %v1158_v52, %v740_v49  ;;  %v605_v56 = vpop.f32.mrf.mxu0  ;;  %v744_v59 = vpop.f32.mrf.mxu1 }
 0x170   : > { %v1607_v57 = vpack.c.bf16 %v1573_v53, %v1573_v53  ;;  %v742_v62 = vadd.f32 %v741_v47, %v605_v56 }
 0x171   : > { %v1434_v58 = vadd.f32 %v1388_v50, %v1204_v55 }
 0x172   : > { %1642 = vst.msk [vmem:[%s2177_s17 + $0x64] sm:$0xf] %vm1616_vm5, %v1607_v57 }
 0x173   : > { %v1472_v60 = vadd.f32 %v2165_v33, %v1434_v58  ;;  %v1390_v61 = vpop.f32.mrf.mxu3 }
 0x175   : > { %vm1506_vm0 = vcmp.gt.f32.partialorder %v1472_v60, 0.0  ;;  %v1540_v54 = vmul.f32 0.2, %v1472_v60 }
 0x176   : > { %v1160_v0 = vpop.f32.mrf.mxu2 }
 0x177   : > { %v1574_v1 = vsel %vm1506_vm0, %v1472_v60, %v1540_v54  ;;  %v1205_v2 = vadd.f32 %v1160_v0, %v742_v62  ;;  %v608_v63 = vpop.f32.mrf.mxu0  ;;  %v746_v9 = vpop.f32.mrf.mxu1 }
 0x178   : > { %v1608_v3 = vpack.c.bf16 %v1574_v1, %v1574_v1  ;;  %v745_v6 = vadd.f32 %v744_v59, %v608_v63 }
 0x179   : > { %v1435_v4 = vadd.f32 %v1390_v61, %v1205_v2 }
 0x17a   : > { %1643 = vst.msk [vmem:[%s2177_s17 + $0x68] sm:$0xf] %vm1616_vm5, %v1608_v3 }
 0x17b   : > { %v1473_v5 = vadd.f32 %v2165_v33, %v1435_v4  ;;  %v1393_v7 = vpop.f32.mrf.mxu3 }
 0x17d   : > { %vm1507_vm4 = vcmp.gt.f32.partialorder %v1473_v5, 0.0  ;;  %v1541_v10 = vmul.f32 0.2, %v1473_v5 }
 0x17e   : > { %v1163_v11 = vpop.f32.mrf.mxu2 }
 0x17f   : > { %v1575_v8 = vsel %vm1507_vm4, %v1473_v5, %v1541_v10  ;;  %v1206_v12 = vadd.f32 %v1163_v11, %v745_v6  ;;  %v610_v13 = vpop.f32.mrf.mxu0  ;;  %v749_v21 = vpop.f32.mrf.mxu1 }
 0x180   : > { %v1609_v14 = vpack.c.bf16 %v1575_v8, %v1575_v8  ;;  %v747_v20 = vadd.f32 %v746_v9, %v610_v13 }
 0x181   : > { %v1436_v15 = vadd.f32 %v1393_v7, %v1206_v12 }
 0x182   : > { %1644 = vst.msk [vmem:[%s2177_s17 + $0x6c] sm:$0xf] %vm1616_vm5, %v1609_v14 }
 0x183   : > { %v1474_v33 = vadd.f32 %v2396_v16, %v1436_v15  ;;  %v1395_v18 = vpop.f32.mrf.mxu3 }
 0x185   : > { %vm1508_vm6 = vcmp.gt.f32.partialorder %v1474_v33, 0.0  ;;  %v1542_v19 = vmul.f32 0.2, %v1474_v33 }
 0x186   : > { %v1165_v22 = vpop.f32.mrf.mxu2 }
 0x187   : > { %v1576_v17 = vsel %vm1508_vm6, %v1474_v33, %v1542_v19  ;;  %v1207_v23 = vadd.f32 %v1165_v22, %v747_v20  ;;  %v613_v24 = vpop.f32.mrf.mxu0  ;;  %v751_v38 = vpop.f32.mrf.mxu1 }
 0x188   : > { %v1610_v25 = vpack.c.bf16 %v1576_v17, %v1576_v17  ;;  %v750_v28 = vadd.f32 %v749_v21, %v613_v24 }
 0x189   : > { %v1437_v26 = vadd.f32 %v1395_v18, %v1207_v23 }
 0x18a   : > { %1645 = vst.msk [vmem:[%s2177_s17 + $0x70] sm:$0xf] %vm1616_vm5, %v1610_v25 }
 0x18b   : > { %v1475_v27 = vadd.f32 %v2396_v16, %v1437_v26  ;;  %v1398_v29 = vpop.f32.mrf.mxu3 }
 0x18d   : > { %vm1509_vm7 = vcmp.gt.f32.partialorder %v1475_v27, 0.0  ;;  %v1543_v30 = vmul.f32 0.2, %v1475_v27 }
 0x18e   : > { %v1168_v31 = vpop.f32.mrf.mxu2 }
 0x18f   : > { %v1577_v32 = vsel %vm1509_vm7, %v1475_v27, %v1543_v30  ;;  %v1208_v34 = vadd.f32 %v1168_v31, %v750_v28  ;;  %v615_v35 = vpop.f32.mrf.mxu0  ;;  %v754_v49 = vpop.f32.mrf.mxu1 }
 0x190   : > { %v1611_v37 = vpack.c.bf16 %v1577_v32, %v1577_v32  ;;  %v752_v42 = vadd.f32 %v751_v38, %v615_v35 }
 0x191   : > { %v1438_v39 = vadd.f32 %v1398_v29, %v1208_v34 }
 0x192   : > { %1646 = vst.msk [vmem:[%s2177_s17 + $0x74] sm:$0xf] %vm1616_vm5, %v1611_v37 }
 0x193   : > { %v1476_v36 = vadd.f32 %v2396_v16, %v1438_v39  ;;  %v1400_v40 = vpop.f32.mrf.mxu3 }
 0x195   : > { %vm1510_vm2 = vcmp.gt.f32.partialorder %v1476_v36, 0.0  ;;  %v1544_v41 = vmul.f32 0.2, %v1476_v36 }
 0x196   : > { %v1170_v43 = vpop.f32.mrf.mxu2 }
 0x197   : > { %v1578_v44 = vsel %vm1510_vm2, %v1476_v36, %v1544_v41  ;;  %v1209_v46 = vadd.f32 %v1170_v43, %v752_v42  ;;  %v618_v48 = vpop.f32.mrf.mxu0  ;;  %v756_v54 = vpop.f32.mrf.mxu1 }
 0x198   : > { %v1612_v47 = vpack.c.bf16 %v1578_v44, %v1578_v44  ;;  %v755_v51 = vadd.f32 %v754_v49, %v618_v48 }
 0x199   : > { %v1439_v45 = vadd.f32 %v1400_v40, %v1209_v46 }
 0x19a   : > { %1647 = vst.msk [vmem:[%s2177_s17 + $0x78] sm:$0xf] %vm1616_vm5, %v1612_v47 }
 0x19b   : > { %v1477_v50 = vadd.f32 %v2396_v16, %v1439_v45  ;;  %v1403_v53 = vpop.f32.mrf.mxu3 }
 0x19d   : > { %vm1511_vm3 = vcmp.gt.f32.partialorder %v1477_v50, 0.0  ;;  %v1545_v52 = vmul.f32 0.2, %v1477_v50 }
 0x19e   : > { %v1173_v55 = vpop.f32.mrf.mxu2 }
 0x19f   : > { %v1579_v56 = vsel %vm1511_vm3, %v1477_v50, %v1545_v52  ;;  %v1210_v57 = vadd.f32 %v1173_v55, %v755_v51  ;;  %v620_v60 = vpop.f32.mrf.mxu0 }
 0x1a0   : > { %v1613_v58 = vpack.c.bf16 %v1579_v56, %v1579_v56  ;;  %v757_v0 = vadd.f32 %v756_v54, %v620_v60 }
 0x1a1   : > { %v1440_v59 = vadd.f32 %v1403_v53, %v1210_v57 }
 0x1a2   : > { %1648 = vst.msk [vmem:[%s2177_s17 + $0x7c] sm:$0xf] %vm1616_vm5, %v1613_v58 }
 0x1a3   : > { %v1478_v61 = vadd.f32 %v2396_v16, %v1440_v59  ;;  %v1405_v4 = vpop.f32.mrf.mxu3 }
 0x1a5   : > { %vm1512_vm1 = vcmp.gt.f32.partialorder %v1478_v61, 0.0  ;;  %v1546_v62 = vmul.f32 0.2, %v1478_v61 }
 0x1a6   : > { %v1175_v1 = vpop.f32.mrf.mxu2 }
 0x1a7   : > { %v1580_v2 = vsel %vm1512_vm1, %v1478_v61, %v1546_v62  ;;  %v1211_v63 = vadd.f32 %v1175_v1, %v757_v0 }
 0x1a8   : > { %v1614_v3 = vpack.c.bf16 %v1580_v2, %v1580_v2 }
 0x1a9   : > { %v1441_v5 = vadd.f32 %v1405_v4, %v1211_v63 }
 0x1aa   : > { %1649 = vst.msk [vmem:[%s2177_s17 + $0x80] sm:$0xf] %vm1616_vm5, %v1614_v3 }
 0x1ab   : > { %v1479_v6 = vadd.f32 %v2396_v16, %v1441_v5 }
 0x1ad   : > { %vm1513_vm8 = vcmp.gt.f32.partialorder %v1479_v6, 0.0  ;;  %v1547_v7 = vmul.f32 0.2, %v1479_v6 }
 0x1af   : > { %v1581_v9 = vsel %vm1513_vm8, %v1479_v6, %v1547_v7 }
 0x1b0   : > { %v1615_v10 = vpack.c.bf16 %v1581_v9, %v1581_v9 }
 0x1b2   : > { %1650 = vst.msk [vmem:[%s2177_s17 + $0x84] sm:$0xf] %vm1616_vm5, %v1615_v10 }
 0x1b3 PF: > { %s14_s15 = sadd.s32 1, %s2000_s15  }
 0x1b4   : > { %p11_p4 = scmp.ge.s32.totalorder %s14_s15, 4  }
 0x1b6   :  { %13 = sbr.rel (!%p11_p4) target bundleno = 1 (0x1), region = 69 }

// kernel: discriminator_forward.5
= control target key start
LH: loop header
LB: loop body
LE: loop exit
PB: predicated region body
PF: predicated region fallthrough
CT: control target
= control target key end

     0   :  { %s2144_s15 = smov 0   ;;  %s2574_s0 = inlined_call_operand.vmem [shape: bf16[2,90,256], index: 0, kind: input, shape index: {}]   ;;  %s2575_s1 = inlined_call_operand.vmem [shape: bf16[4,256,128], index: 1, kind: input, shape index: {}]   ;;  %s2576_s2 = inlined_call_operand.vmem [shape: f32[1,128], index: 2, kind: input, shape index: {}]   ;;  %s2577_s3 = inlined_call_operand.vmem [shape: f32[72,1], index: 3, kind: input, shape index: {}]   ;;  %s2578_s4 = inlined_call_operand.vmem [shape: bf16[2,72,128], index: 4, kind: output, shape index: {}]  }
   0x1 LB: > { %s1565_s16 = sadd.s32 4294967295, %s2116_s15   ;;  %p1569_p0 = scmp.ge.s32.totalorder %s2116_s15, 1  ;;  %s2116_s15 = sphi %s2144_s15, %s14_s15  }
   0x2   : > { %p162_p1 = scmp.lt.s32.totalorder %s2116_s15, 3 }
   0x4   : > { %p163_p2 = pnand %p1569_p0, %p162_p1 }
   0x5   : > { %p188_p3 = scmp.lt.s32.totalorder (!%p163_p2), %s1565_s16, 1 }
   0x6   : > { %166 = sbr.rel (%p163_p2) target bundleno = 386 (0x182), region = 36 }
   0xb   : > { %v2021_v0 = vld [vmem:[%s2575_s1 + $0xb8] sm:$0xff]  ;;  %v2020_v4 = vld [vmem:[%s2575_s1 + $0xb0] sm:$0xff]  ;;  %s2580_s16 = smov (!%p188_p3, %s1565_s16), 1  ;;  %v2019_v8 = vld [vmem:[%s2575_s1 + $0xa8] sm:$0xff]  ;;  %vm313_vm0 = vsmask.f32 7424 }
   0xc   : > { %v2029_v1 = vld [vmem:[%s2575_s1 + $0xf8] sm:$0xff]  ;;  %498 = vmatpush.bf16.msra.mxu0 %v2021_v0  ;;  %v2028_v5 = vld [vmem:[%s2575_s1 + $0xf0] sm:$0xff]  ;;  %s2093_s7 = smul.u32 96, %s2580_s16  ;;  %v2027_v9 = vld [vmem:[%s2575_s1 + $0xe8] sm:$0xff]  ;;  %vm1119_vm1 = vcmask 1046528  }
   0xd   : > { %v2005_v2 = vld [vmem:[%s2575_s1 + $0x38] sm:$0xff]  ;;  %531 = vmatpush.bf16.msra.mxu1 %v2029_v1  ;;  %v2004_v6 = vld [vmem:[%s2575_s1 + $0x30] sm:$0xff]  ;;  %v2003_v10 = vld [vmem:[%s2575_s1 + $0x28] sm:$0xff]  ;;  %s2094_s29 = smul.u32 36, %s2580_s16 }
   0xe   : > { %v2013_v3 = vld [vmem:[%s2575_s1 + $0x78] sm:$0xff]  ;;  %672 = vmatpush.bf16.msra.mxu2 %v2005_v2  ;;  %v2012_v7 = vld [vmem:[%s2575_s1 + $0x70] sm:$0xff]  ;;  %v2011_v11 = vld [vmem:[%s2575_s1 + $0x68] sm:$0xff]  ;;  %s2194_s20 = scalar_lea.vmem %s2574_s0, %s2093_s7 }
   0xf   : > { %705 = vmatpush.bf16.msra.mxu3 %v2013_v3  ;;  %v2018_v12 = vld [vmem:[%s2575_s1 + $0xa0] sm:$0xff]  ;;  %v1991_v17 = vld [vmem:[%s2194_s20 + $0x4] sm:$0xf0]  ;;  %v1608_v19 = vld [vmem:[%s2194_s20 + $0x8] sm:$0xf0]  ;;  %s197_s5 = scalar_lea.vmem %s2578_s4, %s2094_s29 }
  0x10   : > { %499 = vmatpush.bf16.msra.mxu0 %v2020_v4  ;;  %v2026_v13 = vld [vmem:[%s2575_s1 + $0xe0] sm:$0xff]  ;;  %v2017_v20 = vld [vmem:[%s2575_s1 + $0x98] sm:$0xff]  ;;  %v1614_v23 = vld [vmem:[%s2194_s20 + $0x10] sm:$0xf] }
  0x11   : > { %532 = vmatpush.bf16.msra.mxu1 %v2028_v5  ;;  %v2002_v14 = vld [vmem:[%s2575_s1 + $0x20] sm:$0xff]  ;;  %v2025_v21 = vld [vmem:[%s2575_s1 + $0xd8] sm:$0xff]  ;;  %v1992_v28 = vld [vmem:[%s2194_s20 + $0x14] sm:$0xf] }
  0x12   : > { %673 = vmatpush.bf16.msra.mxu2 %v2004_v6  ;;  %v2010_v15 = vld [vmem:[%s2575_s1 + $0x60] sm:$0xff]  ;;  %v2001_v22 = vld [vmem:[%s2575_s1 + $0x18] sm:$0xff]  ;;  %v2016_v31 = vld [vmem:[%s2575_s1 + $0x90] sm:$0xff] }
  0x13   : > { %706 = vmatpush.bf16.msra.mxu3 %v2012_v7  ;;  %v1606_v16 = vld [vmem:[%s2194_s20] sm:$0xf]  ;;  %v1990_v18 = vld [vmem:[%s2194_s20 + $0x4] sm:$0xf]  ;;  %v1993_v24 = vld [vmem:[%s2194_s20 + $0x14] sm:$0xf0] }
  0x14   : > { %500 = vmatpush.bf16.msra.mxu0 %v2019_v8  ;;  %v2223_v25 = vor.u32 %v1991_v17, %v1606_v16  ;;  %v2225_v26 = vor.u32 %v1990_v18, %v1608_v19  ;;  %v2009_v27 = vld [vmem:[%s2575_s1 + $0x58] sm:$0xff]  ;;  %v2232_v30 = vor.u32 %v1993_v24, %v1614_v23  ;;  %v2024_v32 = vld [vmem:[%s2575_s1 + $0xd0] sm:$0xff]  ;;  %v2015_v40 = vld [vmem:[%s2575_s1 + $0x88] sm:$0xff] }
  0x15   : > { %533 = vmatpush.bf16.msra.mxu1 %v2027_v9  ;;  %v1616_v29 = vld [vmem:[%s2194_s20 + $0x18] sm:$0xf0]  ;;  %v2000_v36 = vld [vmem:[%s2575_s1 + $0x10] sm:$0xff]  ;;  %v2023_v41 = vld [vmem:[%s2575_s1 + $0xc8] sm:$0xff] }
  0x16   : > { %674 = vmatpush.bf16.msra.mxu2 %v2003_v10  ;;  %v317_v33 = vshll.u32 %v2223_v25, 16  ;;  %v2241_v34 = vor.u32 %v1992_v28, %v1616_v29  ;;  %v329_v35 = vshll.u32 %v2225_v26, 16  ;;  %v2008_v37 = vld [vmem:[%s2575_s1 + $0x50] sm:$0xff]  ;;  %v315_v38 = vshrl.u32 %v2223_v25, 16  ;;  %v1999_v46 = vld [vmem:[%s2575_s1 + $0x8] sm:$0xff]  ;;  %v2014_v48 = vld [vmem:[%s2575_s1 + $0x80] sm:$0xff] }
  0x17   : > { %707 = vmatpush.bf16.msra.mxu3 %v2011_v11  ;;  %v322_v39 = vshll.u32 %v2232_v30, 16  ;;  %v327_v43 = vshrl.u32 %v2225_v26, 16  ;;  %v2007_v47 = vld [vmem:[%s2575_s1 + $0x48] sm:$0xff]  ;;  %v2022_v49 = vld [vmem:[%s2575_s1 + $0xc0] sm:$0xff]  ;;  %v2061_v56 = vld [vmem:[%s2575_s1 + $0x1b8] sm:$0xff]  ;;  %v338_v10 = vshrl.u32 %v2232_v30, 16 }
  0x18   : > { %501 = vmatpush.bf16.msra.mxu0 %v2018_v12  ;;  %v319_v42 = vrot.slane %v317_v33, 1  ;;  %v331_v44 = vrot.slane %v329_v35, 1  ;;  %v334_v45 = vshll.u32 %v2241_v34, 16  ;;  %v1998_v54 = vld [vmem:[%s2575_s1] sm:$0xff]  ;;  %v2069_v57 = vld [vmem:[%s2575_s1 + $0x1f8] sm:$0xff]  ;;  %v2060_v2 = vld [vmem:[%s2575_s1 + $0x1b0] sm:$0xff] }
  0x19   : > { %534 = vmatpush.bf16.msra.mxu1 %v2026_v13  ;;  %v324_v51 = vrot.slane %v322_v39, 1  ;;  %v2006_v55 = vld [vmem:[%s2575_s1 + $0x40] sm:$0xff]  ;;  %v2045_v60 = vld [vmem:[%s2575_s1 + $0x138] sm:$0xff]  ;;  %v1995_v63 = vld [vmem:[%s2194_s20 + $0x24] sm:$0xf0]  ;;  %v346_v12 = vshrl.u32 %v2241_v34, 16 }
  0x1a   : > { %675 = vmatpush.bf16.msra.mxu2 %v2002_v14  ;;  %v320_v50 = vor.u32 %v319_v42, %v315_v38  ;;  %v332_v52 = vor.u32 %v331_v44, %v327_v43  ;;  %v336_v53 = vrot.slane %v334_v45, 1  ;;  %v2053_v61 = vld [vmem:[%s2575_s1 + $0x178] sm:$0xff]  ;;  %v1622_v62 = vld [vmem:[%s2194_s20 + $0x20] sm:$0xf]  ;;  %v1994_v0 = vld [vmem:[%s2194_s20 + $0x24] sm:$0xf] }
  0x1b   : > { %708 = vmatpush.bf16.msra.mxu3 %v2010_v15  ;;  %v1624_v1 = vld [vmem:[%s2194_s20 + $0x28] sm:$0xf0]  ;;  %v2068_v3 = vld [vmem:[%s2575_s1 + $0x1f0] sm:$0xff]  ;;  %v2304_v4 = vor.u32 %v1995_v63, %v1622_v62  ;;  %v2058_v16 = vld [vmem:[%s2575_s1 + $0x1a0] sm:$0xff]  ;;  %v340_v18 = vor.u32 %v338_v10, %v324_v51 }
  0x1c   : > { %502 = vmatpush.bf16.msra.mxu0 %v2017_v20  ;;  %v325_v58 = vsel %vm313_vm0, %v320_v50, %v324_v51  ;;  %v337_v59 = vsel %vm313_vm0, %v332_v52, %v336_v53  ;;  %v2306_v5 = vor.u32 %v1994_v0, %v1624_v1  ;;  %v2044_v6 = vld [vmem:[%s2575_s1 + $0x130] sm:$0xff]  ;;  %v2059_v8 = vld [vmem:[%s2575_s1 + $0x1a8] sm:$0xff]  ;;  %v2066_v17 = vld [vmem:[%s2575_s1 + $0x1e0] sm:$0xff]  ;;  %v348_v20 = vor.u32 %v346_v12, %v336_v53 }
  0x1d   : > { %535 = vmatpush.bf16.msra.mxu1 %v2025_v21  ;;  %v2052_v7 = vld [vmem:[%s2575_s1 + $0x170] sm:$0xff]  ;;  %v2067_v9 = vld [vmem:[%s2575_s1 + $0x1e8] sm:$0xff]  ;;  %v342_v11 = vshll.u32 %v2304_v4, 16  ;;  %v2050_v23 = vld [vmem:[%s2575_s1 + $0x160] sm:$0xff]  ;;  %v354_v42 = vshrl.u32 %v2304_v4, 16 }
  0x1e   : > { %676 = vmatpush.bf16.msra.mxu2 %v2001_v22  ;;  %v350_v13 = vshll.u32 %v2306_v5, 16  ;;  %v2043_v14 = vld [vmem:[%s2575_s1 + $0x128] sm:$0xff]  ;;  %v2042_v22 = vld [vmem:[%s2575_s1 + $0x120] sm:$0xff]  ;;  %v2057_v24 = vld [vmem:[%s2575_s1 + $0x198] sm:$0xff]  ;;  %v362_v44 = vshrl.u32 %v2306_v5, 16 }
  0x1f   : > { %709 = vmatpush.bf16.msra.mxu3 %v2009_v27  ;;  %v2051_v15 = vld [vmem:[%s2575_s1 + $0x168] sm:$0xff]  ;;  %v344_v19 = vrot.slane %v342_v11, 1  ;;  %v1997_v29 = vld [vmem:[%s2194_s20 + $0x34] sm:$0xf0]  ;;  %v2056_v38 = vld [vmem:[%s2575_s1 + $0x190] sm:$0xff] }
  0x20   : > { %503 = vmatpush.bf16.msra.mxu0 %v2016_v31  ;;  %v352_v21 = vrot.slane %v350_v13, 1  ;;  %v1996_v31 = vld [vmem:[%s2194_s20 + $0x34] sm:$0xf]  ;;  %v2041_v33 = vld [vmem:[%s2575_s1 + $0x118] sm:$0xff]  ;;  %v206_v50 = vld [vmem:[%s2194_s20 + $0x40] sm:$0xff] }
  0x21   : > { %536 = vmatpush.bf16.msra.mxu1 %v2024_v32  ;;  %v345_v27 = vsel %vm313_vm0, %v340_v18, %v344_v19  ;;  %v1632_v32 = vld [vmem:[%s2194_s20 + $0x38] sm:$0xf0]  ;;  %v2064_v39 = vld [vmem:[%s2575_s1 + $0x1d0] sm:$0xff]  ;;  %v239_v51 = vld [vmem:[%s2194_s20 + $0x48] sm:$0x11] }
  0x22   : > { %677 = vmatpush.bf16.msra.mxu2 %v2000_v36  ;;  %v353_v28 = vsel %vm313_vm0, %v348_v20, %v352_v21  ;;  %v2049_v35 = vld [vmem:[%s2575_s1 + $0x158] sm:$0xff]  ;;  %v2054_v62 = vld [vmem:[%s2575_s1 + $0x180] sm:$0xff]  ;;  %v738_v12 = vld [vmem:[%s2194_s20 + $0x8] sm:$0xff] }
  0x23   : > { %710 = vmatpush.bf16.msra.mxu3 %v2008_v37  ;;  %v2362_v37 = vor.u32 %v1996_v31, %v1632_v32  ;;  %v2062_v63 = vld [vmem:[%s2575_s1 + $0x1c0] sm:$0xff]  ;;  %v739_v13 = vld [vmem:[%s2194_s20 + $0x10] sm:$0xff]  ;;  %v792_v18 = vunpack.c.h.b16 %v738_v12  ;;  %v1080_v31 = vld [vmem:[%s2194_s20 + $0x8] sm:$0xee] }
  0x24   : > { %504 = vmatpush.bf16.msra.mxu0 %v2015_v40  ;;  %v2040_v40 = vld [vmem:[%s2575_s1 + $0x110] sm:$0xff]  ;;  %v2038_v0 = vld [vmem:[%s2575_s1 + $0x100] sm:$0xff] }
  0x25   : > { %537 = vmatpush.bf16.msra.mxu1 %v2023_v41  ;;  %v2063_v41 = vld [vmem:[%s2575_s1 + $0x1c8] sm:$0xff]  ;;  %v366_v45 = vshll.u32 %v2362_v37, 16  ;;  %v2046_v1 = vld [vmem:[%s2575_s1 + $0x140] sm:$0xff] }
  0x26   : > { %678 = vmatpush.bf16.msra.mxu2 %v1999_v46  ;;  %v356_v46 = vor.u32 %v354_v42, %v344_v19  ;;  %v794_v19 = vunpack.c.h.b16 %v739_v13 }
  0x27   : > { %711 = vmatpush.bf16.msra.mxu3 %v2007_v47 }
  0x28   : > { %505 = vmatpush.bf16.msra.mxu0 %v2014_v48  ;;  %v364_v48 = vor.u32 %v362_v44, %v352_v21 }
  0x29   : > { %538 = vmatpush.bf16.msra.mxu1 %v2022_v49  ;;  %v368_v49 = vrot.slane %v366_v45, 1 }
  0x2a   : > { %679 = vmatpush.bf16.msra.mxu2 %v1998_v54  ;;  %v299_v54 = vunpack.c.l.b16 %v206_v50 }
  0x2b   : > { %712 = vmatpush.bf16.msra.mxu3 %v2006_v55  ;;  %506 = vmatmul.bf16.vlgmr.msra.gmra.mxu0 %v325_v58  ;;  %v369_v53 = vsel %vm313_vm0, %v364_v48, %v368_v49  ;;  %v301_v55 = vunpack.c.l.b16 %v239_v51 }
  0x2c   : > { %539 = vmatmul.bf16.vlgmr.msra.gmra.mxu1 %v337_v59  ;;  %1005 = vmatpush.bf16.msrb.mxu0 %v2045_v60  ;;  %v2039_v60 = vld [vmem:[%s2575_s1 + $0x108] sm:$0xff] }
  0x2d   : > { %680 = vmatmul.bf16.vlgmr.msra.gmra.mxu2 %v2223_v25  ;;  %1038 = vmatpush.bf16.msrb.mxu1 %v2053_v61  ;;  %v2065_v25 = vld [vmem:[%s2575_s1 + $0x1d8] sm:$0xff]  ;;  %v311_v58 = vpack.c.b16 %v301_v55, %v299_v54  ;;  %v2047_v61 = vld [vmem:[%s2575_s1 + $0x148] sm:$0xff] }
  0x2e   : > { %1244 = vmatpush.bf16.msrb.mxu2 %v2061_v56  ;;  %713 = vmatmul.bf16.vlgmr.msra.gmra.mxu3 %v2225_v26  ;;  %v1630_v26 = vld [vmem:[%s2194_s20 + $0x30] sm:$0xf]  ;;  %v300_v56 = vunpack.c.h.b16 %v206_v50 }
  0x2f   : > { %1277 = vmatpush.bf16.msrb.mxu3 %v2069_v57  ;;  %v2360_v36 = vor.u32 %v1997_v29, %v1630_v26  ;;  %v302_v57 = vunpack.c.h.b16 %v239_v51  ;;  %v1800_v29 = vld [vmem:[%s2194_s20 + $0x20] sm:$0xf0] }
  0x30   : > { %1006 = vmatpush.bf16.msrb.mxu0 %v2044_v6 }
  0x31   : > { %1039 = vmatpush.bf16.msrb.mxu1 %v2052_v7  ;;  %v358_v43 = vshll.u32 %v2360_v36, 16  ;;  %v312_v59 = vpack.c.b16 %v302_v57, %v300_v56 }
  0x32   : > { %1245 = vmatpush.bf16.msrb.mxu2 %v2060_v2  ;;  %v370_v2 = vshrl.u32 %v2360_v36, 16 }
  0x33   : > { %1278 = vmatpush.bf16.msrb.mxu3 %v2068_v3  ;;  %v360_v47 = vrot.slane %v358_v43, 1  ;;  %v374_v3 = vshll.u32 %v311_v58, 16 }
  0x34   : > { %1007 = vmatpush.bf16.msrb.mxu0 %v2043_v14  ;;  %v386_v14 = vshrl.u32 %v311_v58, 16  ;;  %v1806_v58 = vld [vmem:[%s2194_s20 + $0x28] sm:$0xf] }
  0x35   : > { %1040 = vmatpush.bf16.msrb.mxu1 %v2051_v15  ;;  %v361_v52 = vsel %vm313_vm0, %v356_v46, %v360_v47  ;;  %v372_v6 = vor.u32 %v370_v2, %v360_v47  ;;  %v376_v7 = vrot.slane %v374_v3, 1  ;;  %v389_v15 = vshrl.u32 %v312_v59, 16  ;;  %v1333_v47 = vld [vmem:[%s2577_s3 + $0x8] sm:$0xff]  ;;  %v1334_v2 = vld [vmem:[%s2577_s3 + $0x10] sm:$0xff] }
  0x36   : > { %1246 = vmatpush.bf16.msrb.mxu2 %v2059_v8 }
  0x37   : > { %1279 = vmatpush.bf16.msrb.mxu3 %v2067_v9  ;;  %v377_v10 = vsel %vm313_vm0, %v372_v6, %v376_v7  ;;  %v388_v20 = vor.u32 %v386_v14, %v376_v7 }
  0x38   : > { %1008 = vmatpush.bf16.msrb.mxu0 %v2042_v22  ;;  %v564_v22 = vpack.c.b16 %v299_v54, %v299_v54 }
  0x39   : > { %1041 = vmatpush.bf16.msrb.mxu1 %v2050_v23  ;;  %v565_v23 = vpack.c.b16 %v300_v56, %v300_v56 }
  0x3a   : > { %1247 = vmatpush.bf16.msrb.mxu2 %v2058_v16  ;;  %v791_v16 = vunpack.c.l.b16 %v738_v12 }
  0x3b   : > { %1280 = vmatpush.bf16.msrb.mxu3 %v2066_v17  ;;  %511 = vmatmul.bf16.gmra.mxu0 %v345_v27  ;;  %v793_v17 = vunpack.c.l.b16 %v739_v13  ;;  %v812_v27 = vpack.c.b16 %v794_v19, %v792_v18 }
  0x3c   : > { %544 = vmatmul.bf16.gmra.mxu1 %v353_v28  ;;  %1009 = vmatpush.bf16.msrb.mxu0 %v2041_v33  ;;  %v2030_v28 = vld [vmem:[%s2194_s20 + $0x1c] sm:$0xf] }
  0x3d   : > { %685 = vmatmul.bf16.gmra.mxu2 %v2232_v30  ;;  %1042 = vmatpush.bf16.msrb.mxu1 %v2049_v35  ;;  %v2048_v30 = vld [vmem:[%s2575_s1 + $0x150] sm:$0xff]  ;;  %v811_v26 = vpack.c.b16 %v793_v17, %v791_v16  ;;  %v1803_v35 = vor.u32 %v2030_v28, %v1800_v29  ;;  %v834_v42 = vshrl.u32 %v812_v27, 16  ;;  %v2035_v16 = vld [vmem:[%s2194_s20 + $0x3c] sm:$0xf0] }
  0x3e   : > { %1248 = vmatpush.bf16.msrb.mxu2 %v2057_v24  ;;  %718 = vmatmul.bf16.gmra.mxu3 %v2241_v34  ;;  %v2055_v34 = vld [vmem:[%s2575_s1 + $0x188] sm:$0xff]  ;;  %v1798_v24 = vld [vmem:[%s2194_s20 + $0x18] sm:$0xf] }
  0x3f   : > { %1281 = vmatpush.bf16.msrb.mxu3 %v2065_v25  ;;  %v2031_v25 = vld [vmem:[%s2194_s20 + $0x1c] sm:$0xf0]  ;;  %v824_v33 = vshll.u32 %v811_v26, 16  ;;  %v841_v44 = vshll.u32 %v1803_v35, 16  ;;  %v1124_v55 = vrot.slane %v1803_v35, 1 }
  0x40   : > { %1010 = vmatpush.bf16.msrb.mxu0 %v2040_v40  ;;  %v2425_v32 = vor.u32 %v2031_v25, %v1798_v24  ;;  %v2118_v40 = vmov 0  }
  0x41   : > { %1043 = vmatpush.bf16.msrb.mxu1 %v2048_v30  ;;  %2104 = vset.pattern.permute.xlu0 %v2118_v40  ;;  %v822_v30 = vshrl.u32 %v811_v26, 16  ;;  %v843_v51 = vrot.slane %v841_v44, 1  ;;  %v1338_v44 = vld [vmem:[%s2577_s3 + $0x30] sm:$0xff] }
  0x42   : > { %1249 = vmatpush.bf16.msrb.mxu2 %v2056_v38  ;;  %v1115_v38 = vunpack.c.l.b16 %v1080_v31  ;;  %2105 = vset.pattern.permute.xlu1 %v2118_v40  ;;  %v845_v3 = vshrl.u32 %v2425_v32, 16 }
  0x43   : > { %1282 = vmatpush.bf16.msrb.mxu3 %v2064_v39  ;;  %v1116_v39 = vunpack.c.h.b16 %v1080_v31  ;;  %2106 = vset.pattern.permute.xlu2 %v2118_v40 }
  0x44   : > { %1011 = vmatpush.bf16.msrb.mxu0 %v2039_v60  ;;  %v1117_v45 = vpack.c.b16 %v793_v17, %v1115_v38  ;;  %1353 = vperm.xlu1 %2105, %v1334_v2   ;;  %v1822_v38 = vld [vmem:[%s2194_s20 + $0x48] sm:$0xf] }
  0x45   : > { %1044 = vmatpush.bf16.msrb.mxu1 %v2047_v61  ;;  %v1118_v46 = vpack.c.b16 %v794_v19, %v1116_v39  ;;  %v2033_v61 = vld [vmem:[%s2194_s20 + $0x2c] sm:$0xf0]  ;;  %v2034_v19 = vld [vmem:[%s2194_s20 + $0x3c] sm:$0xf] }
  0x46   : > { %1250 = vmatpush.bf16.msrb.mxu2 %v2055_v34  ;;  %v829_v34 = vshll.u32 %v2425_v32, 16 }
  0x47   : > { %1283 = vmatpush.bf16.msrb.mxu3 %v2063_v41  ;;  %v826_v41 = vrot.slane %v824_v33, 1  ;;  %v1123_v54 = vrot.slane %v1118_v46, 1 }
  0x48   : > { %1012 = vmatpush.bf16.msrb.mxu0 %v2038_v0  ;;  %v1807_v0 = vor.u32 %v2033_v61, %v1806_v58 }
  0x49   : > { %1045 = vmatpush.bf16.msrb.mxu1 %v2046_v1  ;;  %v827_v48 = vor.u32 %v826_v41, %v822_v30  ;;  %v1125_v60 = vsel %vm1119_vm1, %v1123_v54, %v1124_v55  ;;  %v2037_v30 = vld [vmem:[%s2194_s20 + $0x4c] sm:$0x10]  ;;  %v1824_v41 = vld [vmem:[%s2194_s20 + $0x50] sm:$0x10] }
  0x4a   : > { %1251 = vmatpush.bf16.msrb.mxu2 %v2054_v62  ;;  %v2032_v62 = vld [vmem:[%s2194_s20 + $0x2c] sm:$0xf]  ;;  %v861_v24 = vshrl.u32 %v1807_v0, 16 }
  0x4b   : > { %516 = vmatmul.bf16.gmra.mxu0 %v361_v52  ;;  %1284 = vmatpush.bf16.msrb.mxu3 %v2062_v63  ;;  %v1120_v52 = vrot.slane %v1117_v45, 1  ;;  %v1808_v63 = vld [vmem:[%s2194_s20 + $0x30] sm:$0xf0] }
  0x4c   : > { %549 = vmatmul.bf16.gmra.mxu1 %v369_v53  ;;  %v1121_v53 = vrot.slane %v2425_v32, 1  ;;  %v1811_v1 = vor.u32 %v2032_v62, %v1808_v63  ;;  %v1336_v63 = vld [vmem:[%s2577_s3 + $0x20] sm:$0xff] }
  0x4d   : > { %690 = vmatmul.bf16.gmra.mxu2 %v2304_v4  ;;  %v378_v4 = vshrl.u32 %v2362_v37, 16  ;;  %1363 = vperm.xlu2 %2106, %v1336_v63  }
  0x4e   : > { %723 = vmatmul.bf16.gmra.mxu3 %v2306_v5  ;;  %v382_v5 = vshll.u32 %v312_v59, 16  ;;  %v1122_v59 = vsel %vm1119_vm1, %v1120_v52, %v1121_v53  ;;  %v857_v6 = vshll.u32 %v1811_v1, 16  ;;  %v1128_v12 = vrot.slane %v1811_v1, 1 }
  0x4f   : > { %v380_v8 = vor.u32 %v378_v4, %v368_v49  ;;  %v831_v49 = vrot.slane %v829_v34, 1  ;;  %v849_v4 = vshll.u32 %v1807_v0, 16  ;;  %v869_v26 = vshrl.u32 %v1811_v1, 16  ;;  %v2036_v34 = vld [vmem:[%s2194_s20 + $0x4c] sm:$0xf] }
  0x50   : > { %v384_v9 = vrot.slane %v382_v5, 1  ;;  %v853_v5 = vshrl.u32 %v1803_v35, 16  ;;  %v1129_v18 = vsel %vm1119_vm1, %v1124_v55, %v1128_v12 }
  0x51   : > { %v832_v56 = vsel %vm313_vm0, %v827_v48, %v831_v49  ;;  %v847_v7 = vor.u32 %v845_v3, %v831_v49  ;;  %v1339_v49 = vld [vmem:[%s2577_s3 + $0x38] sm:$0xff] }
  0x52   : > { %v385_v11 = vsel %vm313_vm0, %v380_v8, %v384_v9  ;;  %v391_v21 = vor.u32 %v389_v15, %v384_v9  ;;  %v851_v8 = vrot.slane %v849_v4, 1  ;;  %v855_v9 = vor.u32 %v853_v5, %v843_v51  ;;  %v1814_v15 = vld [vmem:[%s2194_s20 + $0x38] sm:$0xf] }
  0x54   : > { %v852_v13 = vsel %vm313_vm0, %v847_v7, %v851_v8  ;;  %v863_v28 = vor.u32 %v861_v24, %v851_v8  ;;  %v1337_v7 = vld [vmem:[%s2577_s3 + $0x28] sm:$0xff] }
  0x55   : > { %1368 = vperm.xlu2 %2106, %v1337_v7  }
  0x5b   : > { %521 = vmatmul.bf16.gmra.mxu0 %v377_v10  ;;  %v859_v10 = vrot.slane %v857_v6, 1 }
  0x5c   : > { %554 = vmatmul.bf16.gmra.mxu1 %v385_v11  ;;  %v1126_v11 = vrot.slane %v1807_v0, 1 }
  0x5d   : > { %695 = vmatmul.bf16.gmra.mxu2 %v2360_v36  ;;  %v836_v36 = vshll.u32 %v812_v27, 16  ;;  %v860_v14 = vsel %vm313_vm0, %v855_v9, %v859_v10  ;;  %v871_v31 = vor.u32 %v869_v26, %v859_v10 }
  0x5e   : > { %728 = vmatmul.bf16.gmra.mxu3 %v2362_v37  ;;  %v1332_v37 = vld [vmem:[%s2577_s3] sm:$0xff]  ;;  %v1127_v17 = vsel %vm1119_vm1, %v1121_v53, %v1126_v11 }
  0x5f   : > { %1343 = vperm.xlu0 %2104, %v1332_v37   ;;  %v838_v43 = vrot.slane %v836_v36, 1 }
  0x61   : > { %v839_v50 = vor.u32 %v838_v43, %v834_v42  ;;  %v1823_v42 = vor.u32 %v2037_v30, %v1822_v38  ;;  %v1827_v43 = vor.u32 %v2036_v34, %v1824_v41 }
  0x63   : > { %v844_v57 = vsel %vm313_vm0, %v839_v50, %v843_v51  ;;  %v881_v46 = vshll.u32 %v1823_v42, 16  ;;  %v889_v48 = vshll.u32 %v1827_v43, 16  ;;  %v1134_v54 = vrot.slane %v1823_v42, 1 }
  0x64   : > { %v1136_v55 = vrot.slane %v1827_v43, 1  ;;  %v893_v8 = vshrl.u32 %v1823_v42, 16  ;;  %v896_v9 = vshrl.u32 %v1827_v43, 16 }
  0x65   : > { %v883_v51 = vrot.slane %v881_v46, 1  ;;  %v891_v53 = vrot.slane %v889_v48, 1 }
  0x67   : > { %1348 = vperm.xlu0 %2104, %v1333_v47  }
  0x6b   : > { %526 = vmatmul.bf16.gmra.mxu0 %v388_v20  ;;  %v1816_v20 = vld [vmem:[%s2194_s20 + $0x40] sm:$0xf0] }
  0x6c   : > { %559 = vmatmul.bf16.gmra.mxu1 %v391_v21  ;;  %v1335_v21 = vld [vmem:[%s2577_s3 + $0x18] sm:$0xff] }
  0x6d   : > { %700 = vmatmul.bf16.gmra.mxu2 %v564_v22  ;;  %1358 = vperm.xlu1 %2105, %v1335_v21   ;;  %v1815_v22 = vor.u32 %v2035_v16, %v1814_v15 }
  0x6e   : > { %733 = vmatmul.bf16.gmra.mxu3 %v565_v23  ;;  %v1819_v23 = vor.u32 %v2034_v19, %v1816_v20  ;;  %v1340_v19 = vld [vmem:[%s2577_s3 + $0x40] sm:$0xff] }
  0x6f   : > { %v865_v25 = vshll.u32 %v1815_v22, 16  ;;  %v1130_v33 = vrot.slane %v1815_v22, 1  ;;  %1373 = vperm.xlu0 %2104, %v1338_v44   ;;  %v877_v45 = vshrl.u32 %v1815_v22, 16  ;;  %1383 = vperm.xlu2 %2106, %v1340_v19   ;;  %v2507_v19 = vld [vmem:[%s2576_s2] ss:$0 sm:$0xff] }
  0x70   : > { %v873_v27 = vshll.u32 %v1819_v23, 16  ;;  %v1132_v35 = vrot.slane %v1819_v23, 1  ;;  %v885_v47 = vshrl.u32 %v1819_v23, 16 }
  0x71   : > { %v867_v29 = vrot.slane %v865_v25, 1  ;;  %v1131_v39 = vsel %vm1119_vm1, %v1126_v11, %v1130_v33  ;;  %v1135_v61 = vsel %vm1119_vm1, %v1130_v33, %v1134_v54 }
  0x72   : > { %v875_v32 = vrot.slane %v873_v27, 1  ;;  %v1133_v40 = vsel %vm1119_vm1, %v1128_v12, %v1132_v35  ;;  %v1137_v62 = vsel %vm1119_vm1, %v1132_v35, %v1136_v55  ;;  %v895_v12 = vor.u32 %v893_v8, %v883_v51 }
  0x73   : > { %v868_v36 = vsel %vm313_vm0, %v863_v28, %v867_v29  ;;  %v879_v50 = vor.u32 %v877_v45, %v867_v29 }
  0x74   : > { %v876_v37 = vsel %vm313_vm0, %v871_v31, %v875_v32  ;;  %v887_v52 = vor.u32 %v885_v47, %v875_v32 }
  0x75   : > { %1378 = vperm.xlu1 %2105, %v1339_v49   ;;  %v884_v58 = vsel %vm313_vm0, %v879_v50, %v883_v51 }
  0x7b   : > { %1013 = vmatmul.bf16.vlgmr.msrb.gmra.mxu0 %v832_v56 }
  0x7c   : > { %1046 = vmatmul.bf16.vlgmr.msrb.gmra.mxu1 %v844_v57 }
  0x7d   : > { %1252 = vmatmul.bf16.vlgmr.msrb.gmra.mxu2 %v1122_v59  ;;  %v892_v59 = vsel %vm313_vm0, %v887_v52, %v891_v53 }
  0x7e   : > { %1285 = vmatmul.bf16.vlgmr.msrb.gmra.mxu3 %v1125_v60 }
  0x8b   : > { %1018 = vmatmul.bf16.gmra.mxu0 %v852_v13  ;;  %v898_v13 = vor.u32 %v896_v9, %v891_v53 }
  0x8c   : > { %1051 = vmatmul.bf16.gmra.mxu1 %v860_v14 }
  0x8d   : > { %1257 = vmatmul.bf16.gmra.mxu2 %v1127_v17 }
  0x8e   : > { %1290 = vmatmul.bf16.gmra.mxu3 %v1129_v18 }
  0x9b   : > { %1023 = vmatmul.bf16.gmra.mxu0 %v868_v36 }
  0x9c   : > { %1056 = vmatmul.bf16.gmra.mxu1 %v876_v37 }
  0x9d   : > { %1262 = vmatmul.bf16.gmra.mxu2 %v1131_v39 }
  0x9e   : > { %1295 = vmatmul.bf16.gmra.mxu3 %v1133_v40 }
  0xa8   : > { %v507_v56 = vpop.f32.mrf.mxu0 }
  0xa9   : > { %v540_v57 = vpop.f32.mrf.mxu1 }
  0xaa   : > { %v541_v60 = vadd.f32 %v540_v57, %v507_v56 }
  0xab   : > { %1028 = vmatmul.bf16.gmra.mxu0 %v884_v58 }
  0xac   : > { %1061 = vmatmul.bf16.gmra.mxu1 %v892_v59 }
  0xad   : > { %1267 = vmatmul.bf16.gmra.mxu2 %v1135_v61 }
  0xae   : > { %1300 = vmatmul.bf16.gmra.mxu3 %v1137_v62 }
  0xb0   : > { %v681_v0 = vpop.f32.mrf.mxu2  ;;  %v509_v3 = vpop.f32.mrf.mxu0 }
  0xb1   : > { %v714_v1 = vpop.f32.mrf.mxu3  ;;  %v682_v2 = vadd.f32 %v681_v0, %v541_v60  ;;  %v542_v4 = vpop.f32.mrf.mxu1 }
  0xb2   : > { %v543_v5 = vadd.f32 %v542_v4, %v509_v3 }
  0xb3   : > { %v2479_v6 = vadd.f32 %v714_v1, %v682_v2 }
  0xb8   : > { %v683_v10 = vpop.f32.mrf.mxu2  ;;  %v512_v15 = vpop.f32.mrf.mxu0 }
  0xb9   : > { %v716_v11 = vpop.f32.mrf.mxu3  ;;  %v684_v14 = vadd.f32 %v683_v10, %v543_v5  ;;  %v545_v16 = vpop.f32.mrf.mxu1 }
  0xba   : > { %v546_v17 = vadd.f32 %v545_v16, %v512_v15 }
  0xbb   : > { %v2484_v18 = vadd.f32 %v716_v11, %v684_v14  ;;  %1033 = vmatmul.bf16.gmra.mxu0 %v895_v12 }
  0xbc   : > { %1066 = vmatmul.bf16.gmra.mxu1 %v898_v13 }
  0xbd   : > { %1272 = vmatmul.bf16.gmra.mxu2 %v1134_v54 }
  0xbe   : > { %1305 = vmatmul.bf16.gmra.mxu3 %v1136_v55 }
  0xc0   : > { %v686_v20 = vpop.f32.mrf.mxu2  ;;  %v514_v23 = vpop.f32.mrf.mxu0 }
  0xc1   : > { %v719_v21 = vpop.f32.mrf.mxu3  ;;  %v687_v22 = vadd.f32 %v686_v20, %v546_v17  ;;  %v547_v24 = vpop.f32.mrf.mxu1 }
  0xc2   : > { %v548_v25 = vadd.f32 %v547_v24, %v514_v23 }
  0xc3   : > { %v2489_v26 = vadd.f32 %v719_v21, %v687_v22 }
  0xc8   : > { %v688_v27 = vpop.f32.mrf.mxu2  ;;  %v517_v31 = vpop.f32.mrf.mxu0 }
  0xc9   : > { %v721_v28 = vpop.f32.mrf.mxu3  ;;  %v689_v29 = vadd.f32 %v688_v27, %v548_v25  ;;  %v550_v32 = vpop.f32.mrf.mxu1 }
  0xca   : > { %v551_v33 = vadd.f32 %v550_v32, %v517_v31 }
  0xcb   : > { %v2491_v35 = vadd.f32 %v721_v28, %v689_v29 }
  0xd0   : > { %v691_v36 = vpop.f32.mrf.mxu2  ;;  %v519_v39 = vpop.f32.mrf.mxu0 }
  0xd1   : > { %v724_v37 = vpop.f32.mrf.mxu3  ;;  %v692_v38 = vadd.f32 %v691_v36, %v551_v33  ;;  %v552_v40 = vpop.f32.mrf.mxu1 }
  0xd2   : > { %v553_v30 = vadd.f32 %v552_v40, %v519_v39  ;;  %v1344_v16 = vpop.permute.xlu0 %1343 }
  0xd3   : > { %v2493_v34 = vadd.f32 %v724_v37, %v692_v38 }
  0xd8   : > { %v693_v41 = vpop.f32.mrf.mxu2  ;;  %v522_v44 = vpop.f32.mrf.mxu0 }
  0xd9   : > { %v726_v42 = vpop.f32.mrf.mxu3  ;;  %v694_v43 = vadd.f32 %v693_v41, %v553_v30  ;;  %v555_v45 = vpop.f32.mrf.mxu1 }
  0xda   : > { %v556_v46 = vadd.f32 %v555_v45, %v522_v44  ;;  %v1349_v31 = vpop.permute.xlu0 %1348  ;;  %v1354_v44 = vpop.permute.xlu1 %1353 }
  0xdb   : > { %v2495_v47 = vadd.f32 %v726_v42, %v694_v43 }
  0xe0   : > { %v696_v48 = vpop.f32.mrf.mxu2  ;;  %v524_v51 = vpop.f32.mrf.mxu0 }
  0xe1   : > { %v729_v49 = vpop.f32.mrf.mxu3  ;;  %v697_v50 = vadd.f32 %v696_v48, %v556_v46  ;;  %v557_v52 = vpop.f32.mrf.mxu1 }
  0xe2   : > { %v558_v53 = vadd.f32 %v557_v52, %v524_v51 }
  0xe3   : > { %v2497_v54 = vadd.f32 %v729_v49, %v697_v50 }
  0xe8   : > { %v698_v55 = vpop.f32.mrf.mxu2  ;;  %v527_v58 = vpop.f32.mrf.mxu0 }
  0xe9   : > { %v731_v56 = vpop.f32.mrf.mxu3  ;;  %v699_v57 = vadd.f32 %v698_v55, %v558_v53  ;;  %v560_v59 = vpop.f32.mrf.mxu1 }
  0xea   : > { %v561_v60 = vadd.f32 %v560_v59, %v527_v58 }
  0xeb   : > { %v2499_v61 = vadd.f32 %v731_v56, %v699_v57 }
  0xf0   : > { %v701_v62 = vpop.f32.mrf.mxu2  ;;  %v529_v1 = vpop.f32.mrf.mxu0 }
  0xf1   : > { %v734_v63 = vpop.f32.mrf.mxu3  ;;  %v702_v0 = vadd.f32 %v701_v62, %v561_v60  ;;  %v562_v2 = vpop.f32.mrf.mxu1 }
  0xf2   : > { %v1359_v62 = vpop.permute.xlu1 %1358 }
  0xf3   : > { %v2501_v3 = vadd.f32 %v734_v63, %v702_v0 }
  0xf8   : > { %v703_v4 = vpop.f32.mrf.mxu2  ;;  %v1014_v7 = vpop.f32.mrf.mxu0 }
  0xf9   : > { %v736_v5 = vpop.f32.mrf.mxu3  ;;  %v1047_v8 = vpop.f32.mrf.mxu1 }
  0xfa   : > { %v1048_v9 = vadd.f32 %v1047_v8, %v1014_v7 }
  0xfc   : > { %v1071_v15 = vadd.f32 %v1048_v9, %v2479_v6 }
 0x100   : > { %v1253_v10 = vpop.f32.mrf.mxu2  ;;  %v1016_v13 = vpop.f32.mrf.mxu0 }
 0x101   : > { %v1286_v11 = vpop.f32.mrf.mxu3  ;;  %v1049_v14 = vpop.f32.mrf.mxu1 }
 0x102   : > { %v1287_v12 = vadd.f32 %v1286_v11, %v1253_v10  ;;  %v1050_v20 = vadd.f32 %v1049_v14, %v1016_v13  ;;  %v1364_v11 = vpop.permute.xlu2 %1363 }
 0x104   : > { %v1310_v17 = vadd.f32 %v1287_v12, %v1071_v15  ;;  %v1072_v24 = vadd.f32 %v1050_v20, %v2484_v18 }
 0x106   : > { %v2510_v21 = vadd.f32 %v2507_v19, %v1310_v17 }
 0x108   : > { %v1255_v22 = vpop.f32.mrf.mxu2  ;;  %v1019_v27 = vpop.f32.mrf.mxu0  ;;  %v1386_v6 = vmul.f32 %v1344_v16, %v2510_v21 }
 0x109   : > { %v1288_v23 = vpop.f32.mrf.mxu3  ;;  %v1052_v28 = vpop.f32.mrf.mxu1 }
 0x10a   : > { %v1289_v25 = vadd.f32 %v1288_v23, %v1255_v22  ;;  %v1053_v32 = vadd.f32 %v1052_v28, %v1019_v27  ;;  %v1410_v37 = vmul.f32 %v1386_v6, %v1386_v6 }
 0x10c   : > { %v1311_v29 = vadd.f32 %v1289_v25, %v1072_v24  ;;  %v1073_v40 = vadd.f32 %v1053_v32, %v2489_v26 }
 0x10e   : > { %v2515_v33 = vadd.f32 %v2507_v19, %v1311_v29 }
 0x110   : > { %v1387_v36 = vmul.f32 %v1349_v31, %v2515_v33  ;;  %v1258_v38 = vpop.f32.mrf.mxu2  ;;  %v1021_v42 = vpop.f32.mrf.mxu0 }
 0x111   : > { %v1291_v39 = vpop.f32.mrf.mxu3  ;;  %v1054_v43 = vpop.f32.mrf.mxu1 }
 0x112   : > { %v1395_v30 = vadd.f32 %v1387_v36, %v1386_v6  ;;  %v1411_v18 = vmul.f32 %v1387_v36, %v1387_v36  ;;  %v1292_v41 = vadd.f32 %v1291_v39, %v1258_v38  ;;  %v1055_v48 = vadd.f32 %v1054_v43, %v1021_v42  ;;  %v1369_v6 = vpop.permute.xlu2 %1368 }
 0x114   : > { %v1419_v45 = vadd.f32 %v1411_v18, %v1410_v37  ;;  %v1312_v46 = vadd.f32 %v1292_v41, %v1073_v40  ;;  %v1074_v53 = vadd.f32 %v1055_v48, %v2491_v35 }
 0x116   : > { %v2520_v49 = vadd.f32 %v2507_v19, %v1312_v46  ;;  %v1374_v46 = vpop.permute.xlu0 %1373 }
 0x118   : > { %v1388_v50 = vmul.f32 %v1354_v44, %v2520_v49  ;;  %v1260_v51 = vpop.f32.mrf.mxu2  ;;  %v1024_v57 = vpop.f32.mrf.mxu0 }
 0x119   : > { %v1293_v52 = vpop.f32.mrf.mxu3  ;;  %v1057_v58 = vpop.f32.mrf.mxu1 }
 0x11a   : > { %v1396_v55 = vadd.f32 %v1395_v30, %v1388_v50  ;;  %v1412_v26 = vmul.f32 %v1388_v50, %v1388_v50  ;;  %v1294_v56 = vadd.f32 %v1293_v52, %v1260_v51  ;;  %v1058_v63 = vadd.f32 %v1057_v58, %v1024_v57 }
 0x11c   : > { %v1420_v59 = vadd.f32 %v1419_v45, %v1412_v26  ;;  %v1313_v60 = vadd.f32 %v1294_v56, %v1074_v53  ;;  %v1075_v5 = vadd.f32 %v1058_v63, %v2493_v34 }
 0x11e   : > { %v2525_v0 = vadd.f32 %v2507_v19, %v1313_v60 }
 0x120   : > { %v1389_v1 = vmul.f32 %v1359_v62, %v2525_v0  ;;  %v1263_v2 = vpop.f32.mrf.mxu2  ;;  %v1026_v9 = vpop.f32.mrf.mxu0 }
 0x121   : > { %v1296_v4 = vpop.f32.mrf.mxu3  ;;  %v1059_v10 = vpop.f32.mrf.mxu1 }
 0x122   : > { %v1397_v7 = vadd.f32 %v1396_v55, %v1389_v1  ;;  %v1413_v35 = vmul.f32 %v1389_v1, %v1389_v1  ;;  %v1297_v8 = vadd.f32 %v1296_v4, %v1263_v2  ;;  %v1060_v14 = vadd.f32 %v1059_v10, %v1026_v9  ;;  %v1379_v62 = vpop.permute.xlu1 %1378 }
 0x124   : > { %v1421_v12 = vadd.f32 %v1420_v59, %v1413_v35  ;;  %v1314_v13 = vadd.f32 %v1297_v8, %v1075_v5  ;;  %v1076_v22 = vadd.f32 %v1060_v14, %v2495_v47 }
 0x126   : > { %v2530_v15 = vadd.f32 %v2507_v19, %v1314_v13 }
 0x128   : > { %v1390_v16 = vmul.f32 %v1364_v11, %v2530_v15  ;;  %v1265_v17 = vpop.f32.mrf.mxu2  ;;  %v1029_v25 = vpop.f32.mrf.mxu0 }
 0x129   : > { %v1298_v20 = vpop.f32.mrf.mxu3  ;;  %v1062_v27 = vpop.f32.mrf.mxu1 }
 0x12a   : > { %v1398_v23 = vadd.f32 %v1397_v7, %v1390_v16  ;;  %v1414_v34 = vmul.f32 %v1390_v16, %v1390_v16  ;;  %v1299_v24 = vadd.f32 %v1298_v20, %v1265_v17  ;;  %v1063_v31 = vadd.f32 %v1062_v27, %v1029_v25 }
 0x12c   : > { %v1422_v28 = vadd.f32 %v1421_v12, %v1414_v34  ;;  %v1315_v29 = vadd.f32 %v1299_v24, %v1076_v22  ;;  %v1077_v39 = vadd.f32 %v1063_v31, %v2497_v54  ;;  %v1384_v12 = vpop.permute.xlu2 %1383 }
 0x12e   : > { %v2535_v32 = vadd.f32 %v2507_v19, %v1315_v29 }
 0x130   : > { %v1391_v36 = vmul.f32 %v1369_v6, %v2535_v32  ;;  %v1268_v37 = vpop.f32.mrf.mxu2  ;;  %v1031_v18 = vpop.f32.mrf.mxu0 }
 0x131   : > { %v1301_v38 = vpop.f32.mrf.mxu3  ;;  %v1064_v41 = vpop.f32.mrf.mxu1 }
 0x132   : > { %v1399_v40 = vadd.f32 %v1398_v23, %v1391_v36  ;;  %v1415_v47 = vmul.f32 %v1391_v36, %v1391_v36  ;;  %v1302_v30 = vadd.f32 %v1301_v38, %v1268_v37  ;;  %v1065_v45 = vadd.f32 %v1064_v41, %v1031_v18 }
 0x134   : > { %v1423_v42 = vadd.f32 %v1422_v28, %v1415_v47  ;;  %v1316_v43 = vadd.f32 %v1302_v30, %v1077_v39  ;;  %v1078_v54 = vadd.f32 %v1065_v45, %v2499_v61 }
 0x136   : > { %v2540_v44 = vadd.f32 %v2507_v19, %v1316_v43 }
 0x138   : > { %v1392_v48 = vmul.f32 %v1374_v46, %v2540_v44  ;;  %v1270_v50 = vpop.f32.mrf.mxu2  ;;  %v1034_v26 = vpop.f32.mrf.mxu0 }
 0x139   : > { %v1303_v51 = vpop.f32.mrf.mxu3  ;;  %v1067_v56 = vpop.f32.mrf.mxu1 }
 0x13a   : > { %v1400_v52 = vadd.f32 %v1399_v40, %v1392_v48  ;;  %v1416_v53 = vmul.f32 %v1392_v48, %v1392_v48  ;;  %v1304_v55 = vadd.f32 %v1303_v51, %v1270_v50  ;;  %v1068_v60 = vadd.f32 %v1067_v56, %v1034_v26 }
 0x13c   : > { %v1424_v57 = vadd.f32 %v1423_v42, %v1416_v53  ;;  %v1317_v58 = vadd.f32 %v1304_v55, %v1078_v54  ;;  %v1079_v7 = vadd.f32 %v1068_v60, %v2501_v3 }
 0x13e   : > { %v2545_v59 = vadd.f32 %v2507_v19, %v1317_v58 }
 0x140   : > { %v1393_v63 = vmul.f32 %v1379_v62, %v2545_v59  ;;  %v1273_v1 = vpop.f32.mrf.mxu2  ;;  %v1036_v61 = vpop.f32.mrf.mxu0 }
 0x141   : > { %v1306_v2 = vpop.f32.mrf.mxu3  ;;  %v1069_v8 = vpop.f32.mrf.mxu1 }
 0x142   : > { %v1401_v4 = vadd.f32 %v1400_v52, %v1393_v63  ;;  %v1417_v5 = vmul.f32 %v1393_v63, %v1393_v63  ;;  %v1307_v35 = vadd.f32 %v1306_v2, %v1273_v1 }
 0x144   : > { %v1425_v9 = vadd.f32 %v1424_v57, %v1417_v5  ;;  %v1318_v10 = vadd.f32 %v1307_v35, %v1079_v7 }
 0x146   : > { %v1331_v11 = vadd.f32 %v2507_v19, %v1318_v10 }
 0x148   : > { %v1394_v13 = vmul.f32 %v1384_v12, %v1331_v11  ;;  %v1275_v14 = vpop.f32.mrf.mxu2 }
 0x149   : > { %v1308_v16 = vpop.f32.mrf.mxu3 }
 0x14a   : > { %v1402_v17 = vadd.f32 %v1401_v4, %v1394_v13  ;;  %v1418_v20 = vmul.f32 %v1394_v13, %v1394_v13 }
 0x14c   : > { %v1403_v22 = vrot.slane %v1402_v17, 4  ;;  %v1426_v23 = vadd.f32 %v1425_v9, %v1418_v20 }
 0x14e   : > { %v1404_v34 = vadd.f32 %v1403_v22, %v1402_v17  ;;  %v1427_v24 = vrot.slane %v1426_v23, 4 }
 0x150   : > { %v1405_v25 = vrot.slane %v1404_v34, 2  ;;  %v1428_v27 = vadd.f32 %v1427_v24, %v1426_v23 }
 0x152   : > { %v1406_v3 = vadd.f32 %v1405_v25, %v1404_v34  ;;  %v1429_v28 = vrot.slane %v1428_v27, 2 }
 0x154   : > { %v1407_v29 = vrot.slane %v1406_v3, 1  ;;  %v1430_v6 = vadd.f32 %v1429_v28, %v1428_v27 }
 0x156   : > { %v1408_v31 = vadd.f32 %v1407_v29, %v1406_v3  ;;  %v1431_v36 = vrot.slane %v1430_v6, 1 }
 0x158   : > { %v1409_v37 = vmul.f32 0.015625, %v1408_v31  ;;  %v1432_v19 = vadd.f32 %v1431_v36, %v1430_v6 }
 0x15a   : > { %v1433_v38 = vmul.f32 0.015625, %v1432_v19  ;;  %v1434_v39 = vmul.f32 %v1409_v37, %v1409_v37  ;;  %v1436_v40 = vsub.f32 %v2510_v21, %v1409_v37  ;;  %v1437_v47 = vsub.f32 %v2515_v33, %v1409_v37 }
 0x15b   : > { %v1438_v30 = vsub.f32 %v2520_v49, %v1409_v37  ;;  %v1439_v18 = vsub.f32 %v2525_v0, %v1409_v37  ;;  %v1440_v41 = vsub.f32 %v2530_v15, %v1409_v37  ;;  %v1441_v42 = vsub.f32 %v2535_v32, %v1409_v37 }
 0x15c   : > { %v1435_v43 = vsub.f32 %v1433_v38, %v1434_v39  ;;  %v1442_v45 = vsub.f32 %v2540_v44, %v1409_v37  ;;  %v1443_v46 = vsub.f32 %v2545_v59, %v1409_v37  ;;  %v1444_v48 = vsub.f32 %v1331_v11, %v1409_v37 }
 0x15e   : > { %v1445_v50 = vadd.f32 1e-05, %v1435_v43 }
 0x160   : > { %2108 = vrsqrt.f32 %v1445_v50  ;;  %vm1452_vm3 = vweird.f32 %v1445_v50 }
 0x166   : > { %v2109_v51 = vpop.eup %2108 }
 0x167   : > { %v1447_v21 = vmul.f32 %v2109_v51, %v1445_v50  ;;  %vm1453_vm2 = vweird.f32 %v2109_v51 }
 0x168   : > { %vm1454_vm4 = vmor %vm1452_vm3, %vm1453_vm2 }
 0x169   : > { %v1448_v52 = vmul.f32 %v2109_v51, %v1447_v21 }
 0x16b   : > { %v1449_v33 = vmul.f32 0.5, %v1448_v52 }
 0x16d   : > { %v1450_v53 = vsub.f32 1.5, %v1449_v33 }
 0x16f   : > { %v1451_v49 = vmul.f32 %v2109_v51, %v1450_v53 }
 0x171   : > { %v1455_v0 = vsel %vm1454_vm4, %v2109_v51, %v1451_v49 }
 0x172   : > { %v1456_v15 = vmul.f32 %v1455_v0, %v1436_v40  ;;  %v1457_v32 = vmul.f32 %v1455_v0, %v1437_v47  ;;  %v1458_v54 = vmul.f32 %v1455_v0, %v1438_v30  ;;  %v1459_v44 = vmul.f32 %v1455_v0, %v1439_v18 }
 0x173   : > { %v1460_v55 = vmul.f32 %v1455_v0, %v1440_v41  ;;  %v1461_v26 = vmul.f32 %v1455_v0, %v1441_v42  ;;  %v1462_v56 = vmul.f32 %v1455_v0, %v1442_v45  ;;  %v1463_v57 = vmul.f32 %v1455_v0, %v1443_v46 }
 0x174   : > { %v1464_v58 = vmul.f32 %v1455_v0, %v1444_v48  ;;  %vm1465_vm5 = vcmp.gt.f32.partialorder %v1456_v15, 0.0  ;;  %vm1466_vm6 = vcmp.gt.f32.partialorder %v1457_v32, 0.0  ;;  %vm1467_vm7 = vcmp.gt.f32.partialorder %v1458_v54, 0.0 }
 0x175   : > { %vm1468_vm8 = vcmp.gt.f32.partialorder %v1459_v44, 0.0  ;;  %vm1469_vm9 = vcmp.gt.f32.partialorder %v1460_v55, 0.0  ;;  %vm1470_vm10 = vcmp.gt.f32.partialorder %v1461_v26, 0.0  ;;  %vm1471_vm11 = vcmp.gt.f32.partialorder %v1462_v56, 0.0 }
 0x176   : > { %vm1472_vm12 = vcmp.gt.f32.partialorder %v1463_v57, 0.0  ;;  %vm1473_vm13 = vcmp.gt.f32.partialorder %v1464_v58, 0.0  ;;  %v1474_v59 = vmul.f32 0.2, %v1456_v15  ;;  %v1475_v60 = vmul.f32 0.2, %v1457_v32 }
 0x177   : > { %v1476_v62 = vmul.f32 0.2, %v1458_v54  ;;  %v1477_v63 = vmul.f32 0.2, %v1459_v44  ;;  %v1478_v1 = vmul.f32 0.2, %v1460_v55 }
 0x178   : > { %v1479_v2 = vmul.f32 0.2, %v1461_v26  ;;  %v1480_v4 = vmul.f32 0.2, %v1462_v56  ;;  %v1481_v5 = vmul.f32 0.2, %v1463_v57  ;;  %v1483_v7 = vsel %vm1465_vm5, %v1456_v15, %v1474_v59 }
 0x179   : > { %v1482_v35 = vmul.f32 0.2, %v1464_v58  ;;  %v1484_v61 = vsel %vm1466_vm6, %v1457_v32, %v1475_v60  ;;  %v1485_v8 = vsel %vm1467_vm7, %v1458_v54, %v1476_v62  ;;  %v1486_v9 = vsel %vm1468_vm8, %v1459_v44, %v1477_v63 }
 0x17a   : > { %v1487_v10 = vsel %vm1469_vm9, %v1460_v55, %v1478_v1  ;;  %v1488_v11 = vsel %vm1470_vm10, %v1461_v26, %v1479_v2  ;;  %v1489_v12 = vsel %vm1471_vm11, %v1462_v56, %v1480_v4  ;;  %v1490_v13 = vsel %vm1472_vm12, %v1463_v57, %v1481_v5 }
 0x17b   : > { %v1491_v14 = vsel %vm1473_vm13, %v1464_v58, %v1482_v35  ;;  %v2073_v16 = vpack.c.bf16 %v1484_v61, %v1483_v7  ;;  %v2078_v17 = vpack.c.bf16 %v1486_v9, %v1485_v8  ;;  %v2083_v20 = vpack.c.bf16 %v1488_v11, %v1487_v10 }
 0x17c   : > { %v2088_v22 = vpack.c.bf16 %v1490_v13, %v1489_v12  ;;  %v1500_v23 = vpack.c.bf16 %v1491_v14, %v1491_v14 }
 0x17d   : > { %2074 = vst [vmem:[%s197_s5] sm:$0xff] %v2073_v16  }
 0x17e   : > { %2090 = vst [vmem:[%s197_s5 + $0x8] sm:$0xff] %v2078_v17  }
 0x17f   : > { %2091 = vst [vmem:[%s197_s5 + $0x10] sm:$0xff] %v2083_v20  }
 0x180   : > { %2092 = vst [vmem:[%s197_s5 + $0x18] sm:$0xff] %v2088_v22  }
 0x181   : > { %1509 = vst [vmem:[%s197_s5 + $0x20] sm:$0xf] %v1500_v23 }
 0x182 PF: > { %s14_s15 = sadd.s32 1, %s2116_s15  }
 0x183   : > { %p11_p4 = scmp.ge.s32.totalorder %s14_s15, 4  }
 0x185   :  { %13 = sbr.rel (!%p11_p4) target bundleno = 1 (0x1), region = 69 }

// kernel: discriminator_forward.6
= control target key start
LH: loop header
LB: loop body
LE: loop exit
PB: predicated region body
PF: predicated region fallthrough
CT: control target
= control target key end

     0   :  { %s4369_s15 = smov 0   ;;  %s6378_s0 = inlined_call_operand.vmem [shape: bf16[2,30,512], index: 0, kind: input, shape index: {}]   ;;  %s6379_s1 = inlined_call_operand.vmem [shape: bf16[4,512,256], index: 1, kind: input, shape index: {}]   ;;  %s6380_s2 = inlined_call_operand.vmem [shape: f32[1,256], index: 2, kind: input, shape index: {}]   ;;  %s6381_s3 = inlined_call_operand.vmem [shape: f32[20,1], index: 3, kind: input, shape index: {}]   ;;  %s6382_s4 = inlined_call_operand.vmem [shape: bf16[2,20,256], index: 4, kind: output, shape index: {}]  }
   0x1 LB: > { %s2796_s16 = sadd.s32 4294967295, %s4341_s15   ;;  %p2800_p0 = scmp.ge.s32.totalorder %s4341_s15, 1  ;;  %s4341_s15 = sphi %s4369_s15, %s14_s15  }
   0x2   : > { %p162_p1 = scmp.lt.s32.totalorder %s4341_s15, 3 }
   0x4   : > { %p163_p2 = pnand %p2800_p0, %p162_p1 }
   0x5   : > { %p188_p3 = scmp.lt.s32.totalorder (!%p163_p2), %s2796_s16, 1 }
   0x6   : > { %166 = sbr.rel (%p163_p2) target bundleno = 493 (0x1ed), region = 36 }
   0xb   : > { %v2942_v0 = vld [vmem:[%s6379_s1 + $0x270] sm:$0xf]  ;;  %v4138_v1 = vld [vmem:[%s6379_s1 + $0x274] sm:$0xf0]  ;;  %v2934_v11 = vld [vmem:[%s6379_s1 + $0x260] sm:$0xf] }
   0xc   : > { %v3006_v2 = vld [vmem:[%s6379_s1 + $0x2f0] sm:$0xf]  ;;  %v2943_v3 = vor.u32 %v4138_v1, %v2942_v0  ;;  %v4154_v4 = vld [vmem:[%s6379_s1 + $0x2f4] sm:$0xf0]  ;;  %v4136_v13 = vld [vmem:[%s6379_s1 + $0x264] sm:$0xf0] }
   0xd   : > { %v3070_v5 = vld [vmem:[%s6379_s1 + $0x370] sm:$0xf]  ;;  %v4170_v6 = vld [vmem:[%s6379_s1 + $0x374] sm:$0xf0]  ;;  %v3007_v7 = vor.u32 %v4154_v4, %v3006_v2  ;;  %v2998_v14 = vld [vmem:[%s6379_s1 + $0x2e0] sm:$0xf]  ;;  %v2935_v16 = vor.u32 %v4136_v13, %v2934_v11 }
   0xe   : > { %v3071_v8 = vor.u32 %v4170_v6, %v3070_v5  ;;  %v3134_v9 = vld [vmem:[%s6379_s1 + $0x3f0] sm:$0xf]  ;;  %v4186_v10 = vld [vmem:[%s6379_s1 + $0x3f4] sm:$0xf0]  ;;  %750 = vmatpush.bf16.msra.mxu0 %v2943_v3  ;;  %v4152_v15 = vld [vmem:[%s6379_s1 + $0x2e4] sm:$0xf0] }
   0xf   : > { %v3135_v12 = vor.u32 %v4186_v10, %v3134_v9  ;;  %768 = vmatpush.bf16.msra.mxu1 %v3007_v7  ;;  %v2999_v17 = vor.u32 %v4152_v15, %v2998_v14  ;;  %v3062_v18 = vld [vmem:[%s6379_s1 + $0x360] sm:$0xf]  ;;  %v4168_v19 = vld [vmem:[%s6379_s1 + $0x364] sm:$0xf0]  ;;  %v2926_v23 = vld [vmem:[%s6379_s1 + $0x250] sm:$0xf] }
  0x10   : > { %786 = vmatpush.bf16.msra.mxu2 %v3071_v8  ;;  %v3126_v20 = vld [vmem:[%s6379_s1 + $0x3e0] sm:$0xf]  ;;  %v3063_v21 = vor.u32 %v4168_v19, %v3062_v18  ;;  %v4184_v22 = vld [vmem:[%s6379_s1 + $0x3e4] sm:$0xf0]  ;;  %v4134_v24 = vld [vmem:[%s6379_s1 + $0x254] sm:$0xf0] }
  0x11   : > { %804 = vmatpush.bf16.msra.mxu3 %v3135_v12  ;;  %v3127_v25 = vor.u32 %v4184_v22, %v3126_v20  ;;  %v2990_v26 = vld [vmem:[%s6379_s1 + $0x2d0] sm:$0xf]  ;;  %v4150_v27 = vld [vmem:[%s6379_s1 + $0x2d4] sm:$0xf0]  ;;  %v2927_v29 = vor.u32 %v4134_v24, %v2926_v23  ;;  %v2918_v35 = vld [vmem:[%s6379_s1 + $0x240] sm:$0xf] }
  0x12   : > { %v3054_v28 = vld [vmem:[%s6379_s1 + $0x350] sm:$0xf]  ;;  %751 = vmatpush.bf16.msra.mxu0 %v2935_v16  ;;  %v4166_v30 = vld [vmem:[%s6379_s1 + $0x354] sm:$0xf0]  ;;  %v2991_v33 = vor.u32 %v4150_v27, %v2990_v26  ;;  %v4132_v36 = vld [vmem:[%s6379_s1 + $0x244] sm:$0xf0] }
  0x13   : > { %v3118_v31 = vld [vmem:[%s6379_s1 + $0x3d0] sm:$0xf]  ;;  %v4182_v32 = vld [vmem:[%s6379_s1 + $0x3d4] sm:$0xf0]  ;;  %769 = vmatpush.bf16.msra.mxu1 %v2999_v17  ;;  %v3055_v34 = vor.u32 %v4166_v30, %v3054_v28  ;;  %v2982_v37 = vld [vmem:[%s6379_s1 + $0x2c0] sm:$0xf]  ;;  %v2919_v44 = vor.u32 %v4132_v36, %v2918_v35 }
  0x14   : > { %787 = vmatpush.bf16.msra.mxu2 %v3063_v21  ;;  %v3119_v38 = vor.u32 %v4182_v32, %v3118_v31  ;;  %v4148_v39 = vld [vmem:[%s6379_s1 + $0x2c4] sm:$0xf0]  ;;  %v3046_v40 = vld [vmem:[%s6379_s1 + $0x340] sm:$0xf]  ;;  %v2910_v47 = vld [vmem:[%s6379_s1 + $0x230] sm:$0xf] }
  0x15   : > { %805 = vmatpush.bf16.msra.mxu3 %v3127_v25  ;;  %v4164_v41 = vld [vmem:[%s6379_s1 + $0x344] sm:$0xf0]  ;;  %v3110_v42 = vld [vmem:[%s6379_s1 + $0x3c0] sm:$0xf]  ;;  %v2983_v45 = vor.u32 %v4148_v39, %v2982_v37  ;;  %v4130_v48 = vld [vmem:[%s6379_s1 + $0x234] sm:$0xf0] }
  0x16   : > { %v4180_v43 = vld [vmem:[%s6379_s1 + $0x3c4] sm:$0xf0]  ;;  %752 = vmatpush.bf16.msra.mxu0 %v2927_v29  ;;  %v3047_v46 = vor.u32 %v4164_v41, %v3046_v40  ;;  %v2974_v49 = vld [vmem:[%s6379_s1 + $0x2b0] sm:$0xf]  ;;  %v4146_v51 = vld [vmem:[%s6379_s1 + $0x2b4] sm:$0xf0]  ;;  %v2911_v56 = vor.u32 %v4130_v48, %v2910_v47 }
  0x17   : > { %770 = vmatpush.bf16.msra.mxu1 %v2991_v33  ;;  %v3111_v50 = vor.u32 %v4180_v43, %v3110_v42  ;;  %v3038_v52 = vld [vmem:[%s6379_s1 + $0x330] sm:$0xf]  ;;  %v4162_v53 = vld [vmem:[%s6379_s1 + $0x334] sm:$0xf0]  ;;  %v2902_v57 = vld [vmem:[%s6379_s1 + $0x220] sm:$0xf]  ;;  %v2975_v58 = vor.u32 %v4146_v51, %v2974_v49 }
  0x18   : > { %788 = vmatpush.bf16.msra.mxu2 %v3055_v34  ;;  %v3102_v54 = vld [vmem:[%s6379_s1 + $0x3b0] sm:$0xf]  ;;  %v4178_v55 = vld [vmem:[%s6379_s1 + $0x3b4] sm:$0xf0]  ;;  %v3039_v59 = vor.u32 %v4162_v53, %v3038_v52  ;;  %v4128_v60 = vld [vmem:[%s6379_s1 + $0x224] sm:$0xf0] }
  0x19   : > { %806 = vmatpush.bf16.msra.mxu3 %v3119_v38  ;;  %v2966_v61 = vld [vmem:[%s6379_s1 + $0x2a0] sm:$0xf]  ;;  %v4144_v62 = vld [vmem:[%s6379_s1 + $0x2a4] sm:$0xf0]  ;;  %v3103_v63 = vor.u32 %v4178_v55, %v3102_v54  ;;  %v2894_v4 = vld [vmem:[%s6379_s1 + $0x210] sm:$0xf]  ;;  %v2903_v6 = vor.u32 %v4128_v60, %v2902_v57 }
  0x1a   : > { %753 = vmatpush.bf16.msra.mxu0 %v2919_v44  ;;  %v3030_v0 = vld [vmem:[%s6379_s1 + $0x320] sm:$0xf]  ;;  %v4160_v1 = vld [vmem:[%s6379_s1 + $0x324] sm:$0xf0]  ;;  %v4126_v5 = vld [vmem:[%s6379_s1 + $0x214] sm:$0xf0]  ;;  %v2967_v10 = vor.u32 %v4144_v62, %v2966_v61 }
  0x1b   : > { %771 = vmatpush.bf16.msra.mxu1 %v2983_v45  ;;  %v3094_v2 = vld [vmem:[%s6379_s1 + $0x3a0] sm:$0xf]  ;;  %v4176_v3 = vld [vmem:[%s6379_s1 + $0x3a4] sm:$0xf0]  ;;  %v2958_v7 = vld [vmem:[%s6379_s1 + $0x290] sm:$0xf]  ;;  %v3031_v11 = vor.u32 %v4160_v1, %v3030_v0  ;;  %v2895_v26 = vor.u32 %v4126_v5, %v2894_v4 }
  0x1c   : > { %789 = vmatpush.bf16.msra.mxu2 %v3047_v46  ;;  %v4142_v8 = vld [vmem:[%s6379_s1 + $0x294] sm:$0xf0]  ;;  %v3022_v9 = vld [vmem:[%s6379_s1 + $0x310] sm:$0xf]  ;;  %v3095_v15 = vor.u32 %v4176_v3, %v3094_v2  ;;  %v4548_v16 = vld [vmem:[%s6379_s1 + $0x200] sm:$0xf] }
  0x1d   : > { %807 = vmatpush.bf16.msra.mxu3 %v3111_v50  ;;  %v4158_v12 = vld [vmem:[%s6379_s1 + $0x314] sm:$0xf0]  ;;  %v3086_v13 = vld [vmem:[%s6379_s1 + $0x390] sm:$0xf]  ;;  %v4124_v17 = vld [vmem:[%s6379_s1 + $0x204] sm:$0xf0]  ;;  %v2959_v29 = vor.u32 %v4142_v8, %v2958_v7 }
  0x1e   : > { %754 = vmatpush.bf16.msra.mxu0 %v2911_v56  ;;  %v4174_v14 = vld [vmem:[%s6379_s1 + $0x394] sm:$0xf0]  ;;  %v4556_v18 = vld [vmem:[%s6379_s1 + $0x280] sm:$0xf]  ;;  %v4561_v19 = vld [vmem:[%s6379_s1 + $0x284] sm:$0xf0]  ;;  %v3023_v30 = vor.u32 %v4158_v12, %v3022_v9  ;;  %v2887_v37 = vor.u32 %v4124_v17, %v4548_v16 }
  0x1f   : > { %772 = vmatpush.bf16.msra.mxu1 %v2975_v58  ;;  %v4568_v20 = vld [vmem:[%s6379_s1 + $0x300] sm:$0xf]  ;;  %v4573_v21 = vld [vmem:[%s6379_s1 + $0x304] sm:$0xf0]  ;;  %v4588_v24 = vld [vmem:[%s6379_s1 + $0x374] sm:$0xf]  ;;  %v3087_v34 = vor.u32 %v4174_v14, %v3086_v13  ;;  %v2951_v38 = vor.u32 %v4561_v19, %v4556_v18 }
  0x20   : > { %790 = vmatpush.bf16.msra.mxu2 %v3039_v59  ;;  %v4578_v22 = vld [vmem:[%s6379_s1 + $0x380] sm:$0xf]  ;;  %v4583_v23 = vld [vmem:[%s6379_s1 + $0x384] sm:$0xf0]  ;;  %v4593_v25 = vld [vmem:[%s6379_s1 + $0x378] sm:$0xf0]  ;;  %v3015_v42 = vor.u32 %v4573_v21, %v4568_v20 }
  0x21   : > { %808 = vmatpush.bf16.msra.mxu3 %v3103_v63  ;;  %s6384_s16 = smov (!%p188_p3, %s2796_s16), 1  ;;  %v4602_v27 = vld [vmem:[%s6379_s1 + $0x274] sm:$0xf]  ;;  %v4607_v28 = vld [vmem:[%s6379_s1 + $0x278] sm:$0xf0]  ;;  %v3079_v43 = vor.u32 %v4583_v23, %v4578_v22  ;;  %v3075_v47 = vor.u32 %v4588_v24, %v4593_v25  ;;  %vm2105_vm2 = vcmask 1044480  }
  0x22   : > { %755 = vmatpush.bf16.msra.mxu0 %v2903_v6  ;;  %v4612_v31 = vld [vmem:[%s6379_s1 + $0x2f4] sm:$0xf]  ;;  %v4617_v32 = vld [vmem:[%s6379_s1 + $0x2f8] sm:$0xf0]  ;;  %s4054_s13 = sshll.u32 %s6384_s16, 6  ;;  %v2947_v48 = vor.u32 %v4602_v27, %v4607_v28  ;;  %vm2633_vm3 = vcmask 1043456  }
  0x23   : > { %773 = vmatpush.bf16.msra.mxu1 %v2967_v10  ;;  %v4622_v33 = vld [vmem:[%s6379_s1 + $0x3f4] sm:$0xf]  ;;  %vm361_vm0 = vsmask.f32 7424  ;;  %v4628_v35 = vld [vmem:[%s6379_s1 + $0x3f8] sm:$0xf0]  ;;  %s4641_s22 = scalar_lea.vmem %s6378_s0, %s4054_s13  ;;  %v3011_v55 = vor.u32 %v4612_v31, %v4617_v32 }
  0x24   : > { %791 = vmatpush.bf16.msra.mxu2 %v3031_v11  ;;  %v4633_v36 = vld [vmem:[%s6379_s1 + $0x364] sm:$0xf]  ;;  %v4646_v39 = vld [vmem:[%s6379_s1 + $0x368] sm:$0xf0]  ;;  %v2870_v44 = vld [vmem:[%s4641_s22] sm:$0xf]  ;;  %v3139_v59 = vor.u32 %v4622_v33, %v4628_v35 }
  0x25   : > { %809 = vmatpush.bf16.msra.mxu3 %v3095_v15  ;;  %v4651_v40 = vld [vmem:[%s6379_s1 + $0x264] sm:$0xf]  ;;  %v4656_v41 = vld [vmem:[%s6379_s1 + $0x268] sm:$0xf0]  ;;  %v4057_v45 = vld [vmem:[%s4641_s22 + $0xc] sm:$0xf0]  ;;  %v3067_v60 = vor.u32 %v4633_v36, %v4646_v39 }
  0x26   : > { %756 = vmatpush.bf16.msra.mxu0 %v2895_v26  ;;  %v268_v46 = vld [vmem:[%s4641_s22 + $0x20] sm:$0x77]  ;;  %v4669_v50 = vor.u32 %v4057_v45, %v2870_v44  ;;  %v2872_v52 = vld [vmem:[%s4641_s22 + $0x10] sm:$0xf0]  ;;  %v2878_v54 = vld [vmem:[%s4641_s22 + $0x8] sm:$0xf]  ;;  %v2939_v61 = vor.u32 %v4651_v40, %v4656_v41 }
  0x27   : > { %774 = vmatpush.bf16.msra.mxu1 %v2959_v29  ;;  %v349_v49 = vunpack.c.l.b16 %v268_v46  ;;  %v4055_v51 = vld [vmem:[%s4641_s22 + $0x4] sm:$0xf]  ;;  %v350_v53 = vunpack.c.h.b16 %v268_v46  ;;  %v4058_v57 = vld [vmem:[%s4641_s22 + $0x14] sm:$0xf0]  ;;  %v269_v58 = vld [vmem:[%s4641_s22 + $0x28] sm:$0x77] }
  0x28   : > { %792 = vmatpush.bf16.msra.mxu2 %v3023_v30  ;;  %v4676_v56 = vor.u32 %v4055_v51, %v2872_v52  ;;  %v363_v63 = vshrl.u32 %v4669_v50, 16  ;;  %v365_v0 = vshll.u32 %v4669_v50, 16  ;;  %v351_v4 = vunpack.c.l.b16 %v269_v58  ;;  %v4056_v6 = vld [vmem:[%s4641_s22 + $0xc] sm:$0xf]  ;;  %v2880_v7 = vld [vmem:[%s4641_s22 + $0x18] sm:$0xf0] }
  0x29   : > { %810 = vmatpush.bf16.msra.mxu3 %v3087_v34  ;;  %v4686_v62 = vpack.c.b16 %v349_v49, %v349_v49  ;;  %v4690_v1 = vpack.c.b16 %v350_v53, %v350_v53  ;;  %v4694_v5 = vor.u32 %v4058_v57, %v2878_v54  ;;  %v4151_v8 = vld [vmem:[%s6379_s1 + $0x2e4] sm:$0xf]  ;;  %v352_v12 = vunpack.c.h.b16 %v269_v58  ;;  %v3000_v13 = vld [vmem:[%s6379_s1 + $0x2e8] sm:$0xf0]  ;;  %v4165_v24 = vld [vmem:[%s6379_s1 + $0x354] sm:$0xf] }
  0x2a   : > { %757 = vmatpush.bf16.msra.mxu0 %v2887_v37  ;;  %v375_v2 = vshrl.u32 %v4676_v56, 16  ;;  %v377_v3 = vshll.u32 %v4676_v56, 16  ;;  %v367_v9 = vrot.slane %v365_v0, 1  ;;  %v4706_v15 = vpack.c.b16 %v351_v4, %v351_v4  ;;  %v4183_v18 = vld [vmem:[%s6379_s1 + $0x3e4] sm:$0xf]  ;;  %s4319_s29 = smul.u32 24, %s6384_s16 }
  0x2b   : > { %775 = vmatpush.bf16.msra.mxu1 %v2951_v38  ;;  %v370_v10 = vshll.u32 %v4686_v62, 16  ;;  %v382_v11 = vshll.u32 %v4690_v1, 16  ;;  %v387_v16 = vshrl.u32 %v4694_v5, 16  ;;  %v389_v17 = vshll.u32 %v4694_v5, 16  ;;  %v3128_v19 = vld [vmem:[%s6379_s1 + $0x3e8] sm:$0xf0] }
  0x2c   : > { %793 = vmatpush.bf16.msra.mxu2 %v3015_v42  ;;  %v379_v14 = vrot.slane %v377_v3, 1  ;;  %v368_v20 = vor.u32 %v367_v9, %v363_v63  ;;  %v4720_v23 = vor.u32 %v4056_v6, %v2880_v7  ;;  %v3056_v25 = vld [vmem:[%s6379_s1 + $0x358] sm:$0xf0]  ;;  %v394_v28 = vshll.u32 %v4706_v15, 16  ;;  %v4133_v30 = vld [vmem:[%s6379_s1 + $0x254] sm:$0xf]  ;;  %s197_s6 = scalar_lea.vmem %s6382_s4, %s4319_s29 }
  0x2d   : > { %811 = vmatpush.bf16.msra.mxu3 %v3079_v43  ;;  %v4716_v21 = vrot.slane %v370_v10, 1  ;;  %v4718_v22 = vrot.slane %v382_v11, 1  ;;  %v391_v27 = vrot.slane %v389_v17, 1  ;;  %v4729_v29 = vpack.c.b16 %v352_v12, %v352_v12  ;;  %v2928_v31 = vld [vmem:[%s6379_s1 + $0x258] sm:$0xf0] }
  0x2e   : > { %822 = vmatpush.bf16.msrb.mxu0 %v2947_v48  ;;  %v380_v26 = vor.u32 %v379_v14, %v375_v2  ;;  %v399_v33 = vshrl.u32 %v4720_v23, 16  ;;  %v401_v34 = vshll.u32 %v4720_v23, 16  ;;  %v3003_v35 = vor.u32 %v4151_v8, %v3000_v13  ;;  %v4149_v36 = vld [vmem:[%s6379_s1 + $0x2d4] sm:$0xf]  ;;  %v2992_v37 = vld [vmem:[%s6379_s1 + $0x2d8] sm:$0xf0] }
  0x2f   : > { %840 = vmatpush.bf16.msrb.mxu1 %v3011_v55  ;;  %v4739_v32 = vsel %vm361_vm0, %v368_v20, %v4716_v21  ;;  %v392_v39 = vor.u32 %v391_v27, %v387_v16  ;;  %v4754_v40 = vrot.slane %v394_v28, 1  ;;  %v406_v41 = vshll.u32 %v4729_v29, 16  ;;  %v4181_v42 = vld [vmem:[%s6379_s1 + $0x3d4] sm:$0xf]  ;;  %v3120_v43 = vld [vmem:[%s6379_s1 + $0x3d8] sm:$0xf0] }
  0x30   : > { %858 = vmatpush.bf16.msrb.mxu2 %v3075_v47  ;;  %758 = vmatmul.bf16.vlgmr.msra.gmra.mxu0 %v4739_v32  ;;  %v4752_v38 = vsel %vm361_vm0, %v380_v26, %v4718_v22  ;;  %v403_v44 = vrot.slane %v401_v34, 1  ;;  %v3131_v45 = vor.u32 %v4183_v18, %v3128_v19  ;;  %v3059_v46 = vor.u32 %v4165_v24, %v3056_v25  ;;  %v4163_v48 = vld [vmem:[%s6379_s1 + $0x344] sm:$0xf]  ;;  %v3048_v49 = vld [vmem:[%s6379_s1 + $0x348] sm:$0xf0] }
  0x31   : > { %876 = vmatpush.bf16.msrb.mxu3 %v3139_v59  ;;  %776 = vmatmul.bf16.vlgmr.msra.gmra.mxu1 %v4752_v38  ;;  %v2931_v47 = vor.u32 %v4133_v30, %v2928_v31  ;;  %v4772_v51 = vsel %vm361_vm0, %v392_v39, %v4754_v40  ;;  %v4774_v52 = vrot.slane %v406_v41, 1  ;;  %v2995_v53 = vor.u32 %v4149_v36, %v2992_v37  ;;  %v4131_v54 = vld [vmem:[%s6379_s1 + $0x244] sm:$0xf]  ;;  %v2920_v55 = vld [vmem:[%s6379_s1 + $0x248] sm:$0xf0] }
  0x32   : > { %823 = vmatpush.bf16.msrb.mxu0 %v2939_v61  ;;  %794 = vmatmul.bf16.vlgmr.msra.gmra.mxu2 %v4772_v51  ;;  %v404_v57 = vor.u32 %v403_v44, %v399_v33  ;;  %v3123_v58 = vor.u32 %v4181_v42, %v3120_v43  ;;  %v4147_v59 = vld [vmem:[%s6379_s1 + $0x2c4] sm:$0xf]  ;;  %v3051_v61 = vor.u32 %v4163_v48, %v3048_v49  ;;  %v3112_v0 = vld [vmem:[%s6379_s1 + $0x3c8] sm:$0xf0]  ;;  %v4161_v4 = vld [vmem:[%s6379_s1 + $0x334] sm:$0xf] }
  0x33   : > { %841 = vmatpush.bf16.msrb.mxu1 %v3003_v35  ;;  %v4179_v63 = vld [vmem:[%s6379_s1 + $0x3c4] sm:$0xf]  ;;  %v2923_v3 = vor.u32 %v4131_v54, %v2920_v55  ;;  %v3040_v6 = vld [vmem:[%s6379_s1 + $0x338] sm:$0xf0]  ;;  %v4129_v8 = vld [vmem:[%s6379_s1 + $0x234] sm:$0xf] }
  0x34   : > { %859 = vmatpush.bf16.msrb.mxu2 %v3067_v60  ;;  %v2984_v60 = vld [vmem:[%s6379_s1 + $0x2c8] sm:$0xf0]  ;;  %v4797_v2 = vsel %vm361_vm0, %v404_v57, %v4774_v52  ;;  %v2912_v9 = vld [vmem:[%s6379_s1 + $0x238] sm:$0xf0]  ;;  %v3115_v10 = vor.u32 %v4179_v63, %v3112_v0  ;;  %v4145_v11 = vld [vmem:[%s6379_s1 + $0x2b4] sm:$0xf]  ;;  %v3043_v14 = vor.u32 %v4161_v4, %v3040_v6 }
  0x35   : > { %877 = vmatpush.bf16.msrb.mxu3 %v3131_v45  ;;  %v2987_v7 = vor.u32 %v4147_v59, %v2984_v60  ;;  %v2976_v12 = vld [vmem:[%s6379_s1 + $0x2b8] sm:$0xf0]  ;;  %v410_v13 = vshrl.u32 %v4686_v62, 16  ;;  %v4177_v16 = vld [vmem:[%s6379_s1 + $0x3b4] sm:$0xf]  ;;  %v413_v18 = vshrl.u32 %v4690_v1, 16  ;;  %v2915_v19 = vor.u32 %v4129_v8, %v2912_v9 }
  0x36   : > { %824 = vmatpush.bf16.msrb.mxu0 %v2931_v47  ;;  %812 = vmatmul.bf16.vlgmr.msra.gmra.mxu3 %v4797_v2  ;;  %v3104_v17 = vld [vmem:[%s6379_s1 + $0x3b8] sm:$0xf0]  ;;  %v4159_v20 = vld [vmem:[%s6379_s1 + $0x324] sm:$0xf]  ;;  %v3032_v62 = vld [vmem:[%s6379_s1 + $0x328] sm:$0xf0]  ;;  %v2979_v24 = vor.u32 %v4145_v11, %v2976_v12 }
  0x37   : > { %842 = vmatpush.bf16.msrb.mxu1 %v2995_v53  ;;  %v4127_v25 = vld [vmem:[%s6379_s1 + $0x224] sm:$0xf]  ;;  %v2904_v26 = vld [vmem:[%s6379_s1 + $0x228] sm:$0xf0]  ;;  %v416_v1 = vshrl.u32 %v4706_v15, 16  ;;  %v3107_v27 = vor.u32 %v4177_v16, %v3104_v17  ;;  %v4846_v31 = vor.u32 %v410_v13, %v4716_v21  ;;  %v3035_v33 = vor.u32 %v4159_v20, %v3032_v62 }
  0x38   : > { %860 = vmatpush.bf16.msrb.mxu2 %v3059_v46  ;;  %v4143_v28 = vld [vmem:[%s6379_s1 + $0x2a4] sm:$0xf]  ;;  %v2968_v30 = vld [vmem:[%s6379_s1 + $0x2a8] sm:$0xf0]  ;;  %v4855_v35 = vor.u32 %v413_v18, %v4718_v22  ;;  %v2907_v36 = vor.u32 %v4127_v25, %v2904_v26  ;;  %v4157_v21 = vld [vmem:[%s6379_s1 + $0x314] sm:$0xf] }
  0x39   : > { %878 = vmatpush.bf16.msrb.mxu3 %v3123_v58  ;;  %v4175_v34 = vld [vmem:[%s6379_s1 + $0x3a4] sm:$0xf]  ;;  %v3096_v15 = vld [vmem:[%s6379_s1 + $0x3a8] sm:$0xf0]  ;;  %v3024_v37 = vld [vmem:[%s6379_s1 + $0x318] sm:$0xf0]  ;;  %v2971_v41 = vor.u32 %v4143_v28, %v2968_v30  ;;  %v4871_v43 = vor.u32 %v416_v1, %v4754_v40 }
  0x3a   : > { %825 = vmatpush.bf16.msrb.mxu0 %v2923_v3  ;;  %v419_v39 = vshrl.u32 %v4729_v29, 16  ;;  %v4125_v42 = vld [vmem:[%s6379_s1 + $0x214] sm:$0xf]  ;;  %v2896_v22 = vld [vmem:[%s6379_s1 + $0x218] sm:$0xf0]  ;;  %v3099_v44 = vor.u32 %v4175_v34, %v3096_v15  ;;  %v3027_v47 = vor.u32 %v4157_v21, %v3024_v37 }
  0x3b   : > { %843 = vmatpush.bf16.msrb.mxu1 %v2987_v7  ;;  %v4141_v45 = vld [vmem:[%s6379_s1 + $0x294] sm:$0xf]  ;;  %v2960_v29 = vld [vmem:[%s6379_s1 + $0x298] sm:$0xf0]  ;;  %v4155_v48 = vld [vmem:[%s6379_s1 + $0x304] sm:$0xf]  ;;  %v2899_v53 = vor.u32 %v4125_v42, %v2896_v22 }
  0x3c   : > { %861 = vmatpush.bf16.msrb.mxu2 %v3051_v61  ;;  %v4173_v46 = vld [vmem:[%s6379_s1 + $0x394] sm:$0xf]  ;;  %v3088_v40 = vld [vmem:[%s6379_s1 + $0x398] sm:$0xf0]  ;;  %v3016_v49 = vld [vmem:[%s6379_s1 + $0x308] sm:$0xf0]  ;;  %v4903_v58 = vor.u32 %v419_v39, %v4774_v52  ;;  %v2963_v59 = vor.u32 %v4141_v45, %v2960_v29 }
  0x3d   : > { %879 = vmatpush.bf16.msrb.mxu3 %v3115_v10  ;;  %v4123_v54 = vld [vmem:[%s6379_s1 + $0x204] sm:$0xf]  ;;  %v2888_v55 = vld [vmem:[%s6379_s1 + $0x208] sm:$0xf0]  ;;  %v3326_v61 = vld [vmem:[%s6379_s1 + $0x170] sm:$0xf]  ;;  %v3091_v0 = vor.u32 %v4173_v46, %v3088_v40  ;;  %v3019_v6 = vor.u32 %v4155_v48, %v3016_v49 }
  0x3e   : > { %826 = vmatpush.bf16.msrb.mxu0 %v2915_v19  ;;  %v4139_v57 = vld [vmem:[%s6379_s1 + $0x284] sm:$0xf]  ;;  %v2952_v60 = vld [vmem:[%s6379_s1 + $0x288] sm:$0xf0]  ;;  %v4106_v63 = vld [vmem:[%s6379_s1 + $0x174] sm:$0xf0]  ;;  %v2891_v10 = vor.u32 %v4123_v54, %v2888_v55 }
  0x3f   : > { %844 = vmatpush.bf16.msrb.mxu1 %v2979_v24  ;;  %v4171_v52 = vld [vmem:[%s6379_s1 + $0x384] sm:$0xf]  ;;  %v3198_v3 = vld [vmem:[%s6379_s1 + $0x70] sm:$0xf]  ;;  %v4074_v4 = vld [vmem:[%s6379_s1 + $0x74] sm:$0xf0]  ;;  %v3327_v11 = vor.u32 %v4106_v63, %v3326_v61 }
  0x40   : > { %862 = vmatpush.bf16.msrb.mxu2 %v3043_v14  ;;  %763 = vmatmul.bf16.gmra.mxu0 %v4846_v31  ;;  %v3080_v7 = vld [vmem:[%s6379_s1 + $0x388] sm:$0xf0]  ;;  %v3262_v8 = vld [vmem:[%s6379_s1 + $0xf0] sm:$0xf]  ;;  %v4090_v9 = vld [vmem:[%s6379_s1 + $0xf4] sm:$0xf0]  ;;  %v2955_v14 = vor.u32 %v4139_v57, %v2952_v60  ;;  %v3199_v16 = vor.u32 %v4074_v4, %v3198_v3 }
  0x41   : > { %880 = vmatpush.bf16.msrb.mxu3 %v3107_v27  ;;  %781 = vmatmul.bf16.gmra.mxu1 %v4855_v35  ;;  %v3390_v12 = vld [vmem:[%s6379_s1 + $0x1f0] sm:$0xf]  ;;  %v4122_v13 = vld [vmem:[%s6379_s1 + $0x1f4] sm:$0xf0]  ;;  %v3318_v17 = vld [vmem:[%s6379_s1 + $0x160] sm:$0xf]  ;;  %v3083_v19 = vor.u32 %v4171_v52, %v3080_v7  ;;  %v3263_v20 = vor.u32 %v4090_v9, %v3262_v8 }
  0x42   : > { %827 = vmatpush.bf16.msrb.mxu0 %v2907_v36  ;;  %799 = vmatmul.bf16.gmra.mxu2 %v4871_v43  ;;  %v4104_v18 = vld [vmem:[%s6379_s1 + $0x164] sm:$0xf0]  ;;  %v3190_v62 = vld [vmem:[%s6379_s1 + $0x60] sm:$0xf]  ;;  %v3391_v25 = vor.u32 %v4122_v13, %v3390_v12  ;;  %v3310_v34 = vld [vmem:[%s6379_s1 + $0x150] sm:$0xf] }
  0x43   : > { %845 = vmatpush.bf16.msrb.mxu1 %v2971_v41  ;;  %v4072_v24 = vld [vmem:[%s6379_s1 + $0x64] sm:$0xf0]  ;;  %v3254_v26 = vld [vmem:[%s6379_s1 + $0xe0] sm:$0xf]  ;;  %v3319_v27 = vor.u32 %v4104_v18, %v3318_v17  ;;  %v4102_v15 = vld [vmem:[%s6379_s1 + $0x154] sm:$0xf0] }
  0x44   : > { %863 = vmatpush.bf16.msrb.mxu2 %v3035_v33  ;;  %v4088_v1 = vld [vmem:[%s6379_s1 + $0xe4] sm:$0xf0]  ;;  %v3382_v28 = vld [vmem:[%s6379_s1 + $0x1e0] sm:$0xf]  ;;  %v3191_v33 = vor.u32 %v4072_v24, %v3190_v62  ;;  %v3182_v21 = vld [vmem:[%s6379_s1 + $0x50] sm:$0xf]  ;;  %v3311_v22 = vor.u32 %v4102_v15, %v3310_v34 }
  0x45   : > { %881 = vmatpush.bf16.msrb.mxu3 %v3099_v44  ;;  %v4120_v30 = vld [vmem:[%s6379_s1 + $0x1e4] sm:$0xf0]  ;;  %v3255_v36 = vor.u32 %v4088_v1, %v3254_v26  ;;  %v4070_v37 = vld [vmem:[%s6379_s1 + $0x54] sm:$0xf0]  ;;  %v3246_v41 = vld [vmem:[%s6379_s1 + $0xd0] sm:$0xf] }
  0x46   : > { %828 = vmatpush.bf16.msrb.mxu0 %v2899_v53  ;;  %817 = vmatmul.bf16.gmra.mxu3 %v4903_v58  ;;  %v3383_v39 = vor.u32 %v4120_v30, %v3382_v28  ;;  %v4086_v42 = vld [vmem:[%s6379_s1 + $0xd4] sm:$0xf0]  ;;  %v3374_v44 = vld [vmem:[%s6379_s1 + $0x1d0] sm:$0xf]  ;;  %v3183_v29 = vor.u32 %v4070_v37, %v3182_v21  ;;  %v3302_v46 = vld [vmem:[%s6379_s1 + $0x140] sm:$0xf] }
  0x47   : > { %846 = vmatpush.bf16.msrb.mxu1 %v2963_v59  ;;  %v4118_v45 = vld [vmem:[%s6379_s1 + $0x1d4] sm:$0xf0]  ;;  %v3247_v40 = vor.u32 %v4086_v42, %v3246_v41  ;;  %v3174_v48 = vld [vmem:[%s6379_s1 + $0x40] sm:$0xf]  ;;  %v4068_v49 = vld [vmem:[%s6379_s1 + $0x44] sm:$0xf0] }
  0x48   : > { %864 = vmatpush.bf16.msrb.mxu2 %v3027_v47  ;;  %v4100_v47 = vld [vmem:[%s6379_s1 + $0x144] sm:$0xf0]  ;;  %v3375_v53 = vor.u32 %v4118_v45, %v3374_v44  ;;  %v3238_v54 = vld [vmem:[%s6379_s1 + $0xc0] sm:$0xf]  ;;  %v3175_v60 = vor.u32 %v4068_v49, %v3174_v48  ;;  %v3294_v61 = vld [vmem:[%s6379_s1 + $0x130] sm:$0xf] }
  0x49   : > { %882 = vmatpush.bf16.msrb.mxu3 %v3091_v0  ;;  %v4084_v55 = vld [vmem:[%s6379_s1 + $0xc4] sm:$0xf0]  ;;  %v3303_v57 = vor.u32 %v4100_v47, %v3302_v46  ;;  %v3366_v59 = vld [vmem:[%s6379_s1 + $0x1c0] sm:$0xf]  ;;  %v3166_v0 = vld [vmem:[%s6379_s1 + $0x30] sm:$0xf] }
  0x4a   : > { %829 = vmatpush.bf16.msrb.mxu0 %v2891_v10  ;;  %v3239_v63 = vor.u32 %v4084_v55, %v3238_v54  ;;  %v4066_v52 = vld [vmem:[%s6379_s1 + $0x34] sm:$0xf0]  ;;  %v3230_v4 = vld [vmem:[%s6379_s1 + $0xb0] sm:$0xf]  ;;  %v3286_v10 = vld [vmem:[%s6379_s1 + $0x120] sm:$0xf] }
  0x4b   : > { %847 = vmatpush.bf16.msrb.mxu1 %v2955_v14  ;;  %v3358_v7 = vld [vmem:[%s6379_s1 + $0x1b0] sm:$0xf]  ;;  %v4114_v8 = vld [vmem:[%s6379_s1 + $0x1b4] sm:$0xf0]  ;;  %v3167_v9 = vor.u32 %v4066_v52, %v3166_v0  ;;  %v3158_v13 = vld [vmem:[%s6379_s1 + $0x20] sm:$0xf] }
  0x4c   : > { %865 = vmatpush.bf16.msrb.mxu2 %v3019_v6  ;;  %v3359_v14 = vor.u32 %v4114_v8, %v3358_v7  ;;  %v4080_v17 = vld [vmem:[%s6379_s1 + $0xa4] sm:$0xf0]  ;;  %v3278_v24 = vld [vmem:[%s6379_s1 + $0x110] sm:$0xf]  ;;  %v3270_v21 = vld [vmem:[%s6379_s1 + $0x100] sm:$0xf] }
  0x4d   : > { %883 = vmatpush.bf16.msrb.mxu3 %v3083_v19  ;;  %v3350_v19 = vld [vmem:[%s6379_s1 + $0x1a0] sm:$0xf]  ;;  %v3150_v1 = vld [vmem:[%s6379_s1 + $0x10] sm:$0xf]  ;;  %v4060_v42 = vld [vmem:[%s6379_s1 + $0x4] sm:$0xf0] }
  0x4e   : > { %1232 = vmatpush.bf16.msra.mxu0 %v3199_v16  ;;  %v3222_v16 = vld [vmem:[%s6379_s1 + $0xa0] sm:$0xf]  ;;  %v3214_v30 = vld [vmem:[%s6379_s1 + $0x90] sm:$0xf]  ;;  %v4076_v45 = vld [vmem:[%s6379_s1 + $0x84] sm:$0xf0] }
  0x4f   : > { %1250 = vmatpush.bf16.msra.mxu1 %v3263_v20  ;;  %v4112_v20 = vld [vmem:[%s6379_s1 + $0x1a4] sm:$0xf0]  ;;  %v3223_v26 = vor.u32 %v4080_v17, %v3222_v16  ;;  %v3342_v15 = vld [vmem:[%s6379_s1 + $0x190] sm:$0xf]  ;;  %v3142_v41 = vld [vmem:[%s6379_s1] sm:$0xf] }
  0x50   : > { %1268 = vmatpush.bf16.msra.mxu2 %v3327_v11  ;;  %830 = vmatmul.bf16.vlgmr.msrb.gmra.mxu0 %v4739_v32  ;;  %v4116_v32 = vld [vmem:[%s6379_s1 + $0x1c4] sm:$0xf0]  ;;  %v3351_v28 = vor.u32 %v4112_v20, %v3350_v19  ;;  %v3206_v44 = vld [vmem:[%s6379_s1 + $0x80] sm:$0xf]  ;;  %v3328_v48 = vld [vmem:[%s6379_s1 + $0x178] sm:$0xf0]  ;;  %v3143_v55 = vor.u32 %v4060_v42, %v3142_v41 }
  0x51   : > { %1286 = vmatpush.bf16.msra.mxu3 %v3391_v25  ;;  %848 = vmatmul.bf16.vlgmr.msrb.gmra.mxu1 %v4752_v38  ;;  %v4098_v38 = vld [vmem:[%s6379_s1 + $0x134] sm:$0xf0]  ;;  %v3367_v3 = vor.u32 %v4116_v32, %v3366_v59  ;;  %v4096_v11 = vld [vmem:[%s6379_s1 + $0x124] sm:$0xf0]  ;;  %v4089_v54 = vld [vmem:[%s6379_s1 + $0xf4] sm:$0xf]  ;;  %v3207_v32 = vor.u32 %v4076_v45, %v3206_v44 }
  0x52   : > { %1233 = vmatpush.bf16.msra.mxu0 %v3191_v33  ;;  %866 = vmatmul.bf16.vlgmr.msrb.gmra.mxu2 %v4772_v51  ;;  %v4082_v51 = vld [vmem:[%s6379_s1 + $0xb4] sm:$0xf0]  ;;  %v3295_v6 = vor.u32 %v4098_v38, %v3294_v61  ;;  %v3287_v18 = vor.u32 %v4096_v11, %v3286_v10  ;;  %v4108_v47 = vld [vmem:[%s6379_s1 + $0x184] sm:$0xf0]  ;;  %v3392_v59 = vld [vmem:[%s6379_s1 + $0x1f8] sm:$0xf0] }
  0x53   : > { %1251 = vmatpush.bf16.msra.mxu1 %v3255_v36  ;;  %v3231_v12 = vor.u32 %v4082_v51, %v3230_v4  ;;  %v4094_v25 = vld [vmem:[%s6379_s1 + $0x114] sm:$0xf0]  ;;  %v3320_v0 = vld [vmem:[%s6379_s1 + $0x168] sm:$0xf0]  ;;  %v4087_v51 = vld [vmem:[%s6379_s1 + $0xe4] sm:$0xf] }
  0x54   : > { %1269 = vmatpush.bf16.msra.mxu2 %v3319_v27  ;;  %v4062_v27 = vld [vmem:[%s6379_s1 + $0x14] sm:$0xf0]  ;;  %v3279_v34 = vor.u32 %v4094_v25, %v3278_v24  ;;  %v3192_v4 = vld [vmem:[%s6379_s1 + $0x68] sm:$0xf0]  ;;  %v4119_v7 = vld [vmem:[%s6379_s1 + $0x1e4] sm:$0xf] }
  0x55   : > { %1287 = vmatpush.bf16.msra.mxu3 %v3383_v39  ;;  %v4078_v33 = vld [vmem:[%s6379_s1 + $0x94] sm:$0xf0]  ;;  %v3151_v37 = vor.u32 %v4062_v27, %v3150_v1  ;;  %v4092_v39 = vld [vmem:[%s6379_s1 + $0x104] sm:$0xf0]  ;;  %v3384_v8 = vld [vmem:[%s6379_s1 + $0x1e8] sm:$0xf0] }
  0x56   : > { %1234 = vmatpush.bf16.msra.mxu0 %v3183_v29  ;;  %884 = vmatmul.bf16.vlgmr.msrb.gmra.mxu3 %v4797_v2  ;;  %v4064_v2 = vld [vmem:[%s6379_s1 + $0x24] sm:$0xf0]  ;;  %v4110_v36 = vld [vmem:[%s6379_s1 + $0x194] sm:$0xf0]  ;;  %v3334_v29 = vld [vmem:[%s6379_s1 + $0x180] sm:$0xf]  ;;  %v3271_v49 = vor.u32 %v4092_v39, %v3270_v21 }
  0x57   : > { %1252 = vmatpush.bf16.msra.mxu1 %v3247_v40  ;;  %v3159_v62 = vor.u32 %v4064_v2, %v3158_v13  ;;  %v3343_v46 = vor.u32 %v4110_v36, %v3342_v15  ;;  %v4105_v40 = vld [vmem:[%s6379_s1 + $0x174] sm:$0xf]  ;;  %v3335_v61 = vor.u32 %v4108_v47, %v3334_v29  ;;  %v3312_v11 = vld [vmem:[%s6379_s1 + $0x158] sm:$0xf0]  ;;  %v3387_v13 = vor.u32 %v4119_v7, %v3384_v8  ;;  %v4099_v24 = vld [vmem:[%s6379_s1 + $0x144] sm:$0xf] }
  0x58   : > { %1270 = vmatpush.bf16.msra.mxu2 %v3311_v22  ;;  %v3215_v22 = vor.u32 %v4078_v33, %v3214_v30  ;;  %v4069_v2 = vld [vmem:[%s6379_s1 + $0x54] sm:$0xf]  ;;  %v3376_v20 = vld [vmem:[%s6379_s1 + $0x1d8] sm:$0xf0]  ;;  %v3304_v25 = vld [vmem:[%s6379_s1 + $0x148] sm:$0xf0] }
  0x59   : > { %1288 = vmatpush.bf16.msra.mxu3 %v3375_v53  ;;  %v3200_v53 = vld [vmem:[%s6379_s1 + $0x78] sm:$0xf0]  ;;  %v4085_v16 = vld [vmem:[%s6379_s1 + $0xd4] sm:$0xf]  ;;  %v4067_v27 = vld [vmem:[%s6379_s1 + $0x44] sm:$0xf] }
  0x5a   : > { %1235 = vmatpush.bf16.msra.mxu0 %v3175_v60  ;;  %v3331_v60 = vor.u32 %v4105_v40, %v3328_v48  ;;  %v4117_v19 = vld [vmem:[%s6379_s1 + $0x1d4] sm:$0xf]  ;;  %v4083_v30 = vld [vmem:[%s6379_s1 + $0xc4] sm:$0xf]  ;;  %v3240_v33 = vld [vmem:[%s6379_s1 + $0xc8] sm:$0xf0] }
  0x5b   : > { %1253 = vmatpush.bf16.msra.mxu1 %v3239_v63  ;;  %v4103_v63 = vld [vmem:[%s6379_s1 + $0x164] sm:$0xf]  ;;  %v3379_v1 = vor.u32 %v4117_v19, %v3376_v20  ;;  %v3368_v36 = vld [vmem:[%s6379_s1 + $0x1c8] sm:$0xf0]  ;;  %v3296_v39 = vld [vmem:[%s6379_s1 + $0x138] sm:$0xf0]  ;;  %v3243_v41 = vor.u32 %v4083_v30, %v3240_v33 }
  0x5c   : > { %1271 = vmatpush.bf16.msra.mxu2 %v3303_v57  ;;  %v4121_v57 = vld [vmem:[%s6379_s1 + $0x1f4] sm:$0xf]  ;;  %v4115_v15 = vld [vmem:[%s6379_s1 + $0x1c4] sm:$0xf]  ;;  %v3232_v29 = vld [vmem:[%s6379_s1 + $0xb8] sm:$0xf0] }
  0x5d   : > { %1289 = vmatpush.bf16.msra.mxu3 %v3367_v3  ;;  %v3395_v3 = vor.u32 %v4121_v57, %v3392_v59  ;;  %v4065_v42 = vld [vmem:[%s6379_s1 + $0x34] sm:$0xf]  ;;  %v3371_v44 = vor.u32 %v4115_v15, %v3368_v36  ;;  %v3360_v40 = vld [vmem:[%s6379_s1 + $0x1b8] sm:$0xf0]  ;;  %v202_v48 = vld [vmem:[%s4641_s22 + $0x20] sm:$0x33] }
  0x5e   : > { %1236 = vmatpush.bf16.msra.mxu0 %v3167_v9  ;;  %v3323_v9 = vor.u32 %v4103_v63, %v3320_v0  ;;  %v4081_v45 = vld [vmem:[%s6379_s1 + $0xb4] sm:$0xf]  ;;  %v4079_v59 = vld [vmem:[%s6379_s1 + $0xa4] sm:$0xf]  ;;  %v3352_v0 = vld [vmem:[%s6379_s1 + $0x1a8] sm:$0xf0] }
  0x5f   : > { %1254 = vmatpush.bf16.msra.mxu1 %v3231_v12  ;;  %v4113_v47 = vld [vmem:[%s6379_s1 + $0x1b4] sm:$0xf]  ;;  %v4111_v63 = vld [vmem:[%s6379_s1 + $0x1a4] sm:$0xf]  ;;  %v3152_v7 = vld [vmem:[%s6379_s1 + $0x18] sm:$0xf0] }
  0x60   : > { %1272 = vmatpush.bf16.msra.mxu2 %v3295_v6  ;;  %835 = vmatmul.bf16.gmra.mxu0 %v4846_v31  ;;  %v4073_v31 = vld [vmem:[%s6379_s1 + $0x74] sm:$0xf]  ;;  %v3256_v6 = vld [vmem:[%s6379_s1 + $0xe8] sm:$0xf0]  ;;  %v3363_v57 = vor.u32 %v4113_v47, %v3360_v40  ;;  %v4059_v19 = vld [vmem:[%s6379_s1 + $0x4] sm:$0xf] }
  0x61   : > { %1290 = vmatpush.bf16.msra.mxu3 %v3359_v14  ;;  %853 = vmatmul.bf16.gmra.mxu1 %v4855_v35  ;;  %v3264_v35 = vld [vmem:[%s6379_s1 + $0xf8] sm:$0xf0]  ;;  %v3203_v38 = vor.u32 %v4073_v31, %v3200_v53  ;;  %v3259_v12 = vor.u32 %v4087_v51, %v3256_v6  ;;  %v4095_v31 = vld [vmem:[%s6379_s1 + $0x124] sm:$0xf]  ;;  %v3288_v53 = vld [vmem:[%s6379_s1 + $0x128] sm:$0xf0] }
  0x62   : > { %1237 = vmatpush.bf16.msra.mxu0 %v3159_v62  ;;  %871 = vmatmul.bf16.gmra.mxu2 %v4871_v43  ;;  %v3267_v52 = vor.u32 %v4089_v54, %v3264_v35  ;;  %v4071_v43 = vld [vmem:[%s6379_s1 + $0x64] sm:$0xf]  ;;  %v3184_v14 = vld [vmem:[%s6379_s1 + $0x58] sm:$0xf0]  ;;  %v3235_v54 = vor.u32 %v4081_v45, %v3232_v29  ;;  %v3160_v35 = vld [vmem:[%s6379_s1 + $0x28] sm:$0xf0] }
  0x63   : > { %1255 = vmatpush.bf16.msra.mxu1 %v3223_v26  ;;  %v3195_v10 = vor.u32 %v4071_v43, %v3192_v4  ;;  %v3187_v62 = vor.u32 %v4069_v2, %v3184_v14  ;;  %v4093_v43 = vld [vmem:[%s6379_s1 + $0x114] sm:$0xf]  ;;  %v3280_v4 = vld [vmem:[%s6379_s1 + $0x118] sm:$0xf0]  ;;  %v4091_v14 = vld [vmem:[%s6379_s1 + $0x104] sm:$0xf] }
  0x64   : > { %1273 = vmatpush.bf16.msra.mxu2 %v3287_v18  ;;  %v3248_v18 = vld [vmem:[%s6379_s1 + $0xd8] sm:$0xf0]  ;;  %v4061_v6 = vld [vmem:[%s6379_s1 + $0x14] sm:$0xf]  ;;  %v3144_v20 = vld [vmem:[%s6379_s1 + $0x8] sm:$0xf0] }
  0x65   : > { %1291 = vmatpush.bf16.msra.mxu3 %v3351_v28  ;;  %v3251_v26 = vor.u32 %v4085_v16, %v3248_v18  ;;  %v3176_v28 = vld [vmem:[%s6379_s1 + $0x48] sm:$0xf0]  ;;  %v3344_v2 = vld [vmem:[%s6379_s1 + $0x198] sm:$0xf0]  ;;  %v4107_v33 = vld [vmem:[%s6379_s1 + $0x184] sm:$0xf] }
  0x66   : > { %1238 = vmatpush.bf16.msra.mxu0 %v3151_v37  ;;  %889 = vmatmul.bf16.gmra.mxu3 %v4903_v58  ;;  %v4101_v58 = vld [vmem:[%s6379_s1 + $0x154] sm:$0xf]  ;;  %v3179_v21 = vor.u32 %v4067_v27, %v3176_v28  ;;  %v3272_v18 = vld [vmem:[%s6379_s1 + $0x108] sm:$0xf0]  ;;  %v3534_v36 = vld [vmem:[%s6379_s1 + $0x470] sm:$0xf] }
  0x67   : > { %1256 = vmatpush.bf16.msra.mxu1 %v3215_v22  ;;  %v3315_v17 = vor.u32 %v4101_v58, %v3312_v11  ;;  %v4097_v37 = vld [vmem:[%s6379_s1 + $0x134] sm:$0xf]  ;;  %v3168_v22 = vld [vmem:[%s6379_s1 + $0x38] sm:$0xf0]  ;;  %v3208_v30 = vld [vmem:[%s6379_s1 + $0x88] sm:$0xf0]  ;;  %v3275_v15 = vor.u32 %v4091_v14, %v3272_v18 }
  0x68   : > { %1274 = vmatpush.bf16.msra.mxu2 %v3279_v34  ;;  %v3307_v34 = vor.u32 %v4099_v24, %v3304_v25  ;;  %v3216_v58 = vld [vmem:[%s6379_s1 + $0x98] sm:$0xf0]  ;;  %v4075_v25 = vld [vmem:[%s6379_s1 + $0x84] sm:$0xf]  ;;  %v4236_v47 = vld [vmem:[%s6379_s1 + $0x564] sm:$0xf0] }
  0x69   : > { %1292 = vmatpush.bf16.msra.mxu3 %v3343_v46  ;;  %v3299_v46 = vor.u32 %v4097_v37, %v3296_v39  ;;  %v3598_v37 = vld [vmem:[%s6379_s1 + $0x4f0] sm:$0xf]  ;;  %v3147_v39 = vor.u32 %v4059_v19, %v3144_v20  ;;  %v3211_v29 = vor.u32 %v4075_v25, %v3208_v30  ;;  %v3574_v14 = vld [vmem:[%s6379_s1 + $0x4c0] sm:$0xf]  ;;  %v4248_v20 = vld [vmem:[%s6379_s1 + $0x5c4] sm:$0xf0] }
  0x6a   : > { %1239 = vmatpush.bf16.msra.mxu0 %v3143_v55  ;;  %v4063_v55 = vld [vmem:[%s6379_s1 + $0x24] sm:$0xf]  ;;  %v3702_v18 = vld [vmem:[%s6379_s1 + $0x5c0] sm:$0xf]  ;;  %vm1481_vm1 = vsmask.f32 5376 }
  0x6b   : > { %1257 = vmatpush.bf16.msra.mxu1 %v3207_v32  ;;  %v3224_v32 = vld [vmem:[%s6379_s1 + $0xa8] sm:$0xf0] }
  0x6c   : > { %1275 = vmatpush.bf16.msra.mxu2 %v3271_v49  ;;  %v3171_v49 = vor.u32 %v4065_v42, %v3168_v22  ;;  %v3227_v51 = vor.u32 %v4079_v59, %v3224_v32  ;;  %v4222_v42 = vld [vmem:[%s6379_s1 + $0x4f4] sm:$0xf0]  ;;  %v3726_v22 = vld [vmem:[%s6379_s1 + $0x5f0] sm:$0xf]  ;;  %v3718_v59 = vld [vmem:[%s6379_s1 + $0x5e0] sm:$0xf] }
  0x6d   : > { %1293 = vmatpush.bf16.msra.mxu3 %v3335_v61  ;;  %v203_v61 = vld [vmem:[%s4641_s22 + $0x28] sm:$0x33] }
  0x6e   : > { %1304 = vmatpush.bf16.msrb.mxu0 %v3203_v38  ;;  %v3291_v38 = vor.u32 %v4095_v31, %v3288_v53  ;;  %v898_v8 = vunpack.c.l.b16 %v203_v61  ;;  %v3526_v53 = vld [vmem:[%s6379_s1 + $0x460] sm:$0xf]  ;;  %v4252_v32 = vld [vmem:[%s6379_s1 + $0x5e4] sm:$0xf0] }
  0x6f   : > { %1322 = vmatpush.bf16.msrb.mxu1 %v3267_v52  ;;  %v897_v52 = vunpack.c.h.b16 %v202_v48 }
  0x70   : > { %1340 = vmatpush.bf16.msrb.mxu2 %v3331_v60  ;;  %1240 = vmatmul.bf16.vlgmr.msra.gmra.mxu0 %v4669_v50  ;;  %v896_v60 = vunpack.c.l.b16 %v202_v48  ;;  %v5315_v27 = vpack.c.b16 %v898_v8, %v898_v8 }
  0x71   : > { %1358 = vmatpush.bf16.msrb.mxu3 %v3395_v3  ;;  %1258 = vmatmul.bf16.vlgmr.msra.gmra.mxu1 %v4676_v56  ;;  %v3163_v3 = vor.u32 %v4063_v55, %v3160_v35  ;;  %v5295_v16 = vpack.c.b16 %v897_v52, %v897_v52  ;;  %v3590_v55 = vld [vmem:[%s6379_s1 + $0x4e0] sm:$0xf]  ;;  %v3518_v52 = vld [vmem:[%s6379_s1 + $0x450] sm:$0xf] }
  0x72   : > { %1305 = vmatpush.bf16.msrb.mxu0 %v3195_v10  ;;  %1276 = vmatmul.bf16.vlgmr.msra.gmra.mxu2 %v4694_v5  ;;  %v4077_v10 = vld [vmem:[%s6379_s1 + $0x94] sm:$0xf]  ;;  %v5284_v11 = vpack.c.b16 %v896_v60, %v896_v60  ;;  %v3646_v60 = vld [vmem:[%s6379_s1 + $0x550] sm:$0xf] }
  0x73   : > { %1323 = vmatpush.bf16.msrb.mxu1 %v3259_v12  ;;  %v3283_v12 = vor.u32 %v4093_v43, %v3280_v4  ;;  %v3219_v24 = vor.u32 %v4077_v10, %v3216_v58  ;;  %v3582_v4 = vld [vmem:[%s6379_s1 + $0x4d0] sm:$0xf]  ;;  %v4232_v10 = vld [vmem:[%s6379_s1 + $0x544] sm:$0xf0] }
  0x74   : > { %1341 = vmatpush.bf16.msrb.mxu2 %v3323_v9  ;;  %v3355_v9 = vor.u32 %v4111_v63, %v3352_v0  ;;  %v3719_v0 = vor.u32 %v4252_v32, %v3718_v59  ;;  %v4187_v59 = vld [vmem:[%s4641_s22 + $0x24] sm:$0xf]  ;;  %v3464_v32 = vld [vmem:[%s4641_s22 + $0x30] sm:$0x10] }
  0x75   : > { %1359 = vmatpush.bf16.msrb.mxu3 %v3387_v13  ;;  %v4109_v13 = vld [vmem:[%s6379_s1 + $0x194] sm:$0xf] }
  0x76   : > { %1306 = vmatpush.bf16.msrb.mxu0 %v3187_v62  ;;  %1294 = vmatmul.bf16.vlgmr.msra.gmra.mxu3 %v4720_v23  ;;  %v899_v62 = vunpack.c.h.b16 %v203_v61  ;;  %v3347_v28 = vor.u32 %v4109_v13, %v3344_v2  ;;  %v4234_v61 = vld [vmem:[%s6379_s1 + $0x554] sm:$0xf0]  ;;  %v4200_v13 = vld [vmem:[%s6379_s1 + $0x444] sm:$0xf0] }
  0x77   : > { %1324 = vmatpush.bf16.msrb.mxu1 %v3251_v26  ;;  %v3662_v26 = vld [vmem:[%s6379_s1 + $0x570] sm:$0xf]  ;;  %v3647_v43 = vor.u32 %v4234_v61, %v3646_v60  ;;  %v4226_v61 = vld [vmem:[%s6379_s1 + $0x514] sm:$0xf0] }
  0x78   : > { %1342 = vmatpush.bf16.msrb.mxu2 %v3315_v17  ;;  %v3155_v17 = vor.u32 %v4061_v6, %v3152_v7  ;;  %v5346_v45 = vpack.c.b16 %v899_v62, %v899_v62  ;;  %v3710_v6 = vld [vmem:[%s6379_s1 + $0x5d0] sm:$0xf]  ;;  %v4250_v7 = vld [vmem:[%s6379_s1 + $0x5d4] sm:$0xf0] }
  0x79   : > { %1360 = vmatpush.bf16.msrb.mxu3 %v3379_v1  ;;  %v4238_v1 = vld [vmem:[%s6379_s1 + $0x574] sm:$0xf0]  ;;  %v3711_v2 = vor.u32 %v4250_v7, %v3710_v6  ;;  %v3630_v62 = vld [vmem:[%s6379_s1 + $0x530] sm:$0xf] }
  0x7a   : > { %1307 = vmatpush.bf16.msrb.mxu0 %v3179_v21  ;;  %v4206_v21 = vld [vmem:[%s6379_s1 + $0x474] sm:$0xf0]  ;;  %v3678_v6 = vld [vmem:[%s6379_s1 + $0x590] sm:$0xf] }
  0x7b   : > { %1325 = vmatpush.bf16.msrb.mxu1 %v3243_v41  ;;  %v3663_v41 = vor.u32 %v4238_v1, %v3662_v26  ;;  %v3535_v48 = vor.u32 %v4206_v21, %v3534_v36  ;;  %v3502_v26 = vld [vmem:[%s6379_s1 + $0x430] sm:$0xf]  ;;  %v4198_v1 = vld [vmem:[%s6379_s1 + $0x434] sm:$0xf0]  ;;  %v3703_v36 = vor.u32 %v4248_v20, %v3702_v18  ;;  %v5546_v20 = vld [vmem:[%s6379_s1 + $0x480] sm:$0xf] }
  0x7c   : > { %1343 = vmatpush.bf16.msrb.mxu2 %v3307_v34  ;;  %v3336_v34 = vld [vmem:[%s6379_s1 + $0x188] sm:$0xf0]  ;;  %v3694_v21 = vld [vmem:[%s6379_s1 + $0x5b0] sm:$0xf]  ;;  %v4242_v7 = vld [vmem:[%s6379_s1 + $0x594] sm:$0xf0] }
  0x7d   : > { %1361 = vmatpush.bf16.msrb.mxu3 %v3371_v44  ;;  %v4254_v44 = vld [vmem:[%s6379_s1 + $0x5f4] sm:$0xf0]  ;;  %v3339_v40 = vor.u32 %v4107_v33, %v3336_v34  ;;  %v1376_v34 = vld [vmem:[%s4641_s22] sm:$0xcc] }
  0x7e   : > { %1308 = vmatpush.bf16.msrb.mxu0 %v3171_v49  ;;  %v3599_v49 = vor.u32 %v4222_v42, %v3598_v37  ;;  %v3727_v31 = vor.u32 %v4254_v44, %v3726_v22  ;;  %v4214_v33 = vld [vmem:[%s6379_s1 + $0x4b4] sm:$0xf0]  ;;  %v3462_v37 = vld [vmem:[%s4641_s22 + $0x20] sm:$0xf] }
  0x7f   : > { %1326 = vmatpush.bf16.msrb.mxu1 %v3235_v54  ;;  %v4204_v54 = vld [vmem:[%s6379_s1 + $0x464] sm:$0xf0]  ;;  %v4246_v42 = vld [vmem:[%s6379_s1 + $0x5b4] sm:$0xf0]  ;;  %v3622_v22 = vld [vmem:[%s6379_s1 + $0x520] sm:$0xf] }
  0x80   : > { %1344 = vmatpush.bf16.msrb.mxu2 %v3299_v46  ;;  %1245 = vmatmul.bf16.gmra.mxu0 %v5284_v11  ;;  %v3654_v46 = vld [vmem:[%s6379_s1 + $0x560] sm:$0xf] }
  0x81   : > { %1362 = vmatpush.bf16.msrb.mxu3 %v3363_v57  ;;  %1263 = vmatmul.bf16.gmra.mxu1 %v5295_v16  ;;  %v3655_v35 = vor.u32 %v4236_v47, %v3654_v46  ;;  %v4220_v57 = vld [vmem:[%s6379_s1 + $0x4e4] sm:$0xf0]  ;;  %v3494_v44 = vld [vmem:[%s6379_s1 + $0x420] sm:$0xf]  ;;  %v1457_v47 = vunpack.c.l.b16 %v1376_v34 }
  0x82   : > { %1309 = vmatpush.bf16.msrb.mxu0 %v3163_v3  ;;  %1281 = vmatmul.bf16.gmra.mxu2 %v5315_v27  ;;  %v3591_v63 = vor.u32 %v4220_v57, %v3590_v55  ;;  %v4202_v3 = vld [vmem:[%s6379_s1 + $0x454] sm:$0xf0]  ;;  %v3558_v46 = vld [vmem:[%s6379_s1 + $0x4a0] sm:$0xf]  ;;  %v3614_v57 = vld [vmem:[%s6379_s1 + $0x510] sm:$0xf] }
  0x83   : > { %1327 = vmatpush.bf16.msrb.mxu1 %v3227_v51  ;;  %v4218_v51 = vld [vmem:[%s6379_s1 + $0x4d4] sm:$0xf0]  ;;  %v3519_v8 = vor.u32 %v4202_v3, %v3518_v52 }
  0x84   : > { %1345 = vmatpush.bf16.msrb.mxu2 %v3291_v38  ;;  %v3527_v38 = vor.u32 %v4204_v54, %v3526_v53  ;;  %v3583_v58 = vor.u32 %v4218_v51, %v3582_v4  ;;  %v3686_v53 = vld [vmem:[%s6379_s1 + $0x5a0] sm:$0xf]  ;;  %v4244_v54 = vld [vmem:[%s6379_s1 + $0x5a4] sm:$0xf0]  ;;  %v4210_v52 = vld [vmem:[%s6379_s1 + $0x494] sm:$0xf0] }
  0x85   : > { %1363 = vmatpush.bf16.msrb.mxu3 %v3355_v9  ;;  %v3638_v9 = vld [vmem:[%s6379_s1 + $0x540] sm:$0xf]  ;;  %v5511_v4 = vld [vmem:[%s4641_s22 + $0x8] sm:$0xcc] }
  0x86   : > { %1310 = vmatpush.bf16.msrb.mxu0 %v3155_v17  ;;  %1299 = vmatmul.bf16.gmra.mxu3 %v5346_v45  ;;  %v4216_v17 = vld [vmem:[%s6379_s1 + $0x4c4] sm:$0xf0]  ;;  %v3639_v19 = vor.u32 %v4232_v10, %v3638_v9  ;;  %v5520_v9 = vor.u32 %v4187_v59, %v3464_v32  ;;  %v3687_v10 = vor.u32 %v4244_v54, %v3686_v53  ;;  %v3536_v53 = vld [vmem:[%s6379_s1 + $0x478] sm:$0xf0]  ;;  %v4221_v32 = vld [vmem:[%s6379_s1 + $0x4f4] sm:$0xf] }
  0x87   : > { %1328 = vmatpush.bf16.msrb.mxu1 %v3219_v24  ;;  %v4230_v24 = vld [vmem:[%s6379_s1 + $0x534] sm:$0xf0]  ;;  %v3575_v30 = vor.u32 %v4216_v17, %v3574_v14  ;;  %v3615_v17 = vor.u32 %v4226_v61, %v3614_v57 }
  0x88   : > { %1346 = vmatpush.bf16.msrb.mxu2 %v3283_v12  ;;  %v3510_v12 = vld [vmem:[%s6379_s1 + $0x440] sm:$0xf]  ;;  %v5541_v14 = vld [vmem:[%s4641_s22 + $0x18] sm:$0xff]  ;;  %v1511_v59 = vshll.u32 %v5520_v9, 16 }
  0x89   : > { %1364 = vmatpush.bf16.msrb.mxu3 %v3347_v28  ;;  %v3511_v25 = vor.u32 %v4200_v13, %v3510_v12  ;;  %v3566_v28 = vld [vmem:[%s6379_s1 + $0x4b0] sm:$0xf]  ;;  %v4224_v12 = vld [vmem:[%s6379_s1 + $0x504] sm:$0xf0]  ;;  %v5533_v13 = vld [vmem:[%s6379_s1 + $0x400] sm:$0xf] }
  0x8a   : > { %1311 = vmatpush.bf16.msrb.mxu0 %v3147_v39  ;;  %v4189_v39 = vld [vmem:[%s4641_s22 + $0x2c] sm:$0x10] }
  0x8b   : > { %1329 = vmatpush.bf16.msrb.mxu1 %v3211_v29  ;;  %v4196_v29 = vld [vmem:[%s6379_s1 + $0x424] sm:$0xf0]  ;;  %v5481_v55 = vor.u32 %v4189_v39, %v3462_v37  ;;  %v1508_v39 = vshrl.u32 %v5520_v9, 16 }
  0x8c   : > { %1347 = vmatpush.bf16.msrb.mxu2 %v3275_v15  ;;  %v5443_v15 = vld [vmem:[%s4641_s22 + $0x10] sm:$0xff] }
  0x8d   : > { %1365 = vmatpush.bf16.msrb.mxu3 %v3339_v40  ;;  %v1461_v40 = vunpack.c.l.b16 %v5443_v15 }
  0x8e   : > { %1878 = vmatpush.bf16.msra.mxu0 %v3535_v48  ;;  %v1458_v48 = vunpack.c.h.b16 %v1376_v34 }
  0x8f   : > { %1896 = vmatpush.bf16.msra.mxu1 %v3599_v49  ;;  %v3567_v49 = vor.u32 %v4214_v33, %v3566_v28  ;;  %v1473_v3 = vpack.c.b16 %v1461_v40, %v1457_v47  ;;  %v1494_v33 = vshll.u32 %v5481_v55, 16  ;;  %v3472_v47 = vld [vmem:[%s4641_s22 + $0x38] sm:$0x10] }
  0x90   : > { %1914 = vmatpush.bf16.msra.mxu2 %v3663_v41  ;;  %1312 = vmatmul.bf16.vlgmr.msrb.gmra.mxu0 %v4669_v50  ;;  %v3631_v50 = vor.u32 %v4230_v24, %v3630_v62  ;;  %v3503_v41 = vor.u32 %v4198_v1, %v3502_v26  ;;  %v5551_v62 = vld [vmem:[%s6379_s1 + $0x484] sm:$0xf0]  ;;  %v1459_v26 = vunpack.c.l.b16 %v5511_v4  ;;  %v5559_v1 = vld [vmem:[%s6379_s1 + $0x580] sm:$0xf] }
  0x91   : > { %1932 = vmatpush.bf16.msra.mxu3 %v3727_v31  ;;  %1330 = vmatmul.bf16.vlgmr.msrb.gmra.mxu1 %v4676_v56  ;;  %v4228_v56 = vld [vmem:[%s6379_s1 + $0x524] sm:$0xf0]  ;;  %v1483_v28 = vshrl.u32 %v1473_v3, 16  ;;  %v3543_v54 = vor.u32 %v5551_v62, %v5546_v20 }
  0x92   : > { %1879 = vmatpush.bf16.msra.mxu0 %v3527_v38  ;;  %1348 = vmatmul.bf16.vlgmr.msrb.gmra.mxu2 %v4694_v5  ;;  %v1462_v5 = vunpack.c.h.b16 %v5443_v15  ;;  %v4212_v31 = vld [vmem:[%s6379_s1 + $0x4a4] sm:$0xf0]  ;;  %v3623_v60 = vor.u32 %v4228_v56, %v3622_v22  ;;  %v3486_v38 = vld [vmem:[%s6379_s1 + $0x410] sm:$0xf]  ;;  %v4188_v22 = vld [vmem:[%s4641_s22 + $0x2c] sm:$0xf] }
  0x93   : > { %1897 = vmatpush.bf16.msra.mxu1 %v3591_v63  ;;  %v4194_v63 = vld [vmem:[%s6379_s1 + $0x414] sm:$0xf0]  ;;  %v3559_v51 = vor.u32 %v4212_v31, %v3558_v46  ;;  %v3470_v24 = vld [vmem:[%s4641_s22 + $0x28] sm:$0xf]  ;;  %v4237_v56 = vld [vmem:[%s6379_s1 + $0x574] sm:$0xf] }
  0x94   : > { %1915 = vmatpush.bf16.msra.mxu2 %v3655_v35  ;;  %v3695_v35 = vor.u32 %v4246_v42, %v3694_v21  ;;  %v3487_v18 = vor.u32 %v4194_v63, %v3486_v38  ;;  %v4205_v31 = vld [vmem:[%s6379_s1 + $0x474] sm:$0xf]  ;;  %v5598_v57 = vrot.slane %v1483_v28, 2  ;;  %v1496_v38 = vrot.slane %v1494_v33, 3  ;;  %v3648_v33 = vld [vmem:[%s6379_s1 + $0x558] sm:$0xf0] }
  0x95   : > { %1933 = vmatpush.bf16.msra.mxu3 %v3719_v0  ;;  %v3495_v0 = vor.u32 %v4196_v29, %v3494_v44  ;;  %v3664_v44 = vld [vmem:[%s6379_s1 + $0x578] sm:$0xf0] }
  0x96   : > { %1880 = vmatpush.bf16.msra.mxu0 %v3519_v8  ;;  %1366 = vmatmul.bf16.vlgmr.msrb.gmra.mxu3 %v4720_v23  ;;  %v3550_v23 = vld [vmem:[%s6379_s1 + $0x490] sm:$0xf]  ;;  %v1491_v8 = vshrl.u32 %v5481_v55, 16 }
  0x97   : > { %1898 = vmatpush.bf16.msra.mxu1 %v3583_v58  ;;  %v5525_v58 = vld [vmem:[%s6379_s1 + $0x500] sm:$0xf] }
  0x98   : > { %1916 = vmatpush.bf16.msra.mxu2 %v3647_v43  ;;  %v5508_v43 = vpack.c.b16 %v1462_v5, %v1458_v48  ;;  %v5568_v21 = vrot.slane %v1491_v8, 2  ;;  %v3607_v29 = vor.u32 %v4224_v12, %v5525_v58  ;;  %v1460_v48 = vunpack.c.h.b16 %v5511_v4  ;;  %v4203_v58 = vld [vmem:[%s6379_s1 + $0x464] sm:$0xf]  ;;  %v3528_v12 = vld [vmem:[%s6379_s1 + $0x468] sm:$0xf0] }
  0x99   : > { %1934 = vmatpush.bf16.msra.mxu3 %v3711_v2  ;;  %v5538_v2 = vld [vmem:[%s6379_s1 + $0x404] sm:$0xf0]  ;;  %v3539_v4 = vor.u32 %v4205_v31, %v3536_v53  ;;  %v3531_v28 = vor.u32 %v4203_v58, %v3528_v12  ;;  %v4249_v31 = vld [vmem:[%s6379_s1 + $0x5d4] sm:$0xf]  ;;  %v3712_v53 = vld [vmem:[%s6379_s1 + $0x5d8] sm:$0xf0] }
  0x9a   : > { %1881 = vmatpush.bf16.msra.mxu0 %v3511_v25  ;;  %v4190_v25 = vld [vmem:[%s4641_s22 + $0x34] sm:$0x10]  ;;  %v1500_v34 = vshrl.u32 %v5508_v43, 16  ;;  %v1503_v37 = vshll.u32 %v5508_v43, 16  ;;  %v3479_v46 = vor.u32 %v5538_v2, %v5533_v13  ;;  %v5622_v43 = vor.u32 %v4188_v22, %v3472_v47 }
  0x9b   : > { %1899 = vmatpush.bf16.msra.mxu1 %v3575_v30  ;;  %v1486_v30 = vshll.u32 %v1473_v3, 16  ;;  %v5573_v42 = vor.u32 %v4190_v25, %v3470_v24  ;;  %v1510_v13 = vrot.slane %v1508_v39, 2  ;;  %v1513_v2 = vrot.slane %v1511_v59, 3  ;;  %v3720_v25 = vld [vmem:[%s6379_s1 + $0x5e8] sm:$0xf0] }
  0x9c   : > { %1917 = vmatpush.bf16.msra.mxu2 %v3639_v19  ;;  %v3551_v19 = vor.u32 %v4210_v52, %v3550_v23  ;;  %v4253_v23 = vld [vmem:[%s6379_s1 + $0x5f4] sm:$0xf]  ;;  %v3728_v52 = vld [vmem:[%s6379_s1 + $0x5f8] sm:$0xf0] }
  0x9d   : > { %1935 = vmatpush.bf16.msra.mxu3 %v3703_v36  ;;  %v5566_v36 = vld [vmem:[%s6379_s1 + $0x584] sm:$0xf0]  ;;  %v5608_v61 = vrot.slane %v1486_v30, 3  ;;  %v1525_v3 = vshrl.u32 %v5573_v42, 16  ;;  %v4233_v30 = vld [vmem:[%s6379_s1 + $0x554] sm:$0xf] }
  0x9e   : > { %1882 = vmatpush.bf16.msra.mxu0 %v3503_v41  ;;  %v3679_v41 = vor.u32 %v4242_v7, %v3678_v6  ;;  %v3656_v6 = vld [vmem:[%s6379_s1 + $0x568] sm:$0xf0]  ;;  %v5630_v7 = vrot.slane %v1503_v37, 3  ;;  %v4201_v39 = vld [vmem:[%s6379_s1 + $0x454] sm:$0xf] }
  0x9f   : > { %1900 = vmatpush.bf16.msra.mxu1 %v3567_v49  ;;  %v1464_v49 = vunpack.c.h.b16 %v5541_v14 }
  0xa0   : > { %1918 = vmatpush.bf16.msra.mxu2 %v3631_v50  ;;  %v1463_v50 = vunpack.c.l.b16 %v5541_v14  ;;  %1317 = vmatmul.bf16.gmra.mxu0 %v5284_v11  ;;  %v5619_v11 = vrot.slane %v1500_v34, 2 }
  0xa1   : > { %1936 = vmatpush.bf16.msra.mxu3 %v3695_v35  ;;  %v3671_v35 = vor.u32 %v5566_v36, %v5559_v1  ;;  %1335 = vmatmul.bf16.gmra.mxu1 %v5295_v16  ;;  %v1528_v16 = vshll.u32 %v5573_v42, 16  ;;  %v1476_v8 = vpack.c.b16 %v1464_v49, %v1460_v48  ;;  %v1542_v1 = vshrl.u32 %v5622_v43, 16 }
  0xa2   : > { %1883 = vmatpush.bf16.msra.mxu0 %v3495_v0  ;;  %v1475_v63 = vpack.c.b16 %v1463_v50, %v1459_v26  ;;  %v3667_v0 = vor.u32 %v4237_v56, %v3664_v44  ;;  %1353 = vmatmul.bf16.gmra.mxu2 %v5315_v27  ;;  %v4251_v27 = vld [vmem:[%s6379_s1 + $0x5e4] sm:$0xf]  ;;  %v1527_v26 = vrot.slane %v1525_v3, 2  ;;  %v1545_v56 = vshll.u32 %v5622_v43, 16 }
  0xa3   : > { %1901 = vmatpush.bf16.msra.mxu1 %v3559_v51  ;;  %v4235_v51 = vld [vmem:[%s6379_s1 + $0x564] sm:$0xf]  ;;  %v1530_v34 = vrot.slane %v1528_v16, 3  ;;  %v1534_v36 = vshrl.u32 %v1476_v8, 16  ;;  %v1537_v22 = vshll.u32 %v1476_v8, 16  ;;  %v3723_v44 = vor.u32 %v4251_v27, %v3720_v25 }
  0xa4   : > { %1919 = vmatpush.bf16.msra.mxu2 %v3623_v60  ;;  %v3600_v60 = vld [vmem:[%s6379_s1 + $0x4f8] sm:$0xf0]  ;;  %v1517_v20 = vshrl.u32 %v1475_v63, 16  ;;  %v1520_v62 = vshll.u32 %v1475_v63, 16  ;;  %v3659_v24 = vor.u32 %v4235_v51, %v3656_v6  ;;  %v3651_v48 = vor.u32 %v4233_v30, %v3648_v33  ;;  %v3640_v63 = vld [vmem:[%s6379_s1 + $0x548] sm:$0xf0] }
  0xa5   : > { %1937 = vmatpush.bf16.msra.mxu3 %v3687_v10  ;;  %v3603_v10 = vor.u32 %v4221_v32, %v3600_v60  ;;  %v1506_v59 = vor.u32 %v5630_v7, %v5619_v11  ;;  %v4231_v60 = vld [vmem:[%s6379_s1 + $0x544] sm:$0xf]  ;;  %v1547_v11 = vrot.slane %v1545_v56, 3  ;;  %v3715_v3 = vor.u32 %v4249_v31, %v3712_v53  ;;  %v3576_v51 = vld [vmem:[%s6379_s1 + $0x4c8] sm:$0xf0] }
  0xa6   : > { %1884 = vmatpush.bf16.msra.mxu0 %v3487_v18  ;;  %v4219_v18 = vld [vmem:[%s6379_s1 + $0x4e4] sm:$0xf]  ;;  %1371 = vmatmul.bf16.gmra.mxu3 %v5346_v45  ;;  %v4217_v45 = vld [vmem:[%s6379_s1 + $0x4d4] sm:$0xf]  ;;  %v1522_v47 = vrot.slane %v1520_v62, 3  ;;  %v5708_v7 = vor.u32 %v1530_v34, %v1527_v26  ;;  %v3643_v16 = vor.u32 %v4231_v60, %v3640_v63 }
  0xa7   : > { %1902 = vmatpush.bf16.msra.mxu1 %v3551_v19  ;;  %v3592_v19 = vld [vmem:[%s6379_s1 + $0x4e8] sm:$0xf0]  ;;  %v4247_v8 = vld [vmem:[%s6379_s1 + $0x5c4] sm:$0xf]  ;;  %v4197_v62 = vld [vmem:[%s6379_s1 + $0x434] sm:$0xf] }
  0xa8   : > { %1920 = vmatpush.bf16.msra.mxu2 %v3615_v17  ;;  %v3731_v17 = vor.u32 %v4253_v23, %v3728_v52  ;;  %v3595_v37 = vor.u32 %v4219_v18, %v3592_v19  ;;  %v1536_v23 = vrot.slane %v1534_v36, 2  ;;  %v1539_v52 = vrot.slane %v1537_v22, 3  ;;  %v3568_v30 = vld [vmem:[%s6379_s1 + $0x4b8] sm:$0xf0]  ;;  %v4245_v36 = vld [vmem:[%s6379_s1 + $0x5b4] sm:$0xf] }
  0xa9   : > { %1938 = vmatpush.bf16.msra.mxu3 %v3679_v41  ;;  %v3520_v41 = vld [vmem:[%s6379_s1 + $0x458] sm:$0xf0]  ;;  %v3624_v22 = vld [vmem:[%s6379_s1 + $0x528] sm:$0xf0]  ;;  %v4243_v53 = vld [vmem:[%s6379_s1 + $0x5a4] sm:$0xf] }
  0xaa   : > { %1885 = vmatpush.bf16.msra.mxu0 %v3479_v46  ;;  %v1519_v46 = vrot.slane %v1517_v20, 2  ;;  %v3523_v32 = vor.u32 %v4201_v39, %v3520_v41  ;;  %v1540_v25 = vor.u32 %v1539_v52, %v1536_v23  ;;  %v4227_v41 = vld [vmem:[%s6379_s1 + $0x524] sm:$0xf]  ;;  %v4225_v60 = vld [vmem:[%s6379_s1 + $0x514] sm:$0xf] }
  0xab   : > { %1903 = vmatpush.bf16.msra.mxu1 %v3543_v54  ;;  %v1489_v54 = vor.u32 %v5608_v61, %v5598_v57  ;;  %v1544_v57 = vrot.slane %v1542_v1, 2  ;;  %v4199_v61 = vld [vmem:[%s6379_s1 + $0x444] sm:$0xf]  ;;  %v3627_v31 = vor.u32 %v4227_v41, %v3624_v22  ;;  %v3616_v63 = vld [vmem:[%s6379_s1 + $0x518] sm:$0xf0] }
  0xac   : > { %1921 = vmatpush.bf16.msra.mxu2 %v3607_v29  ;;  %v3584_v29 = vld [vmem:[%s6379_s1 + $0x4d8] sm:$0xf0]  ;;  %v1523_v6 = vor.u32 %v1522_v47, %v1519_v46  ;;  %v4211_v47 = vld [vmem:[%s6379_s1 + $0x4a4] sm:$0xf]  ;;  %v4270_v22 = vld [vmem:[%s6379_s1 + $0x674] sm:$0xf0] }
  0xad   : > { %1939 = vmatpush.bf16.msra.mxu3 %v3671_v35  ;;  %v5684_v35 = vor.u32 %v1496_v38, %v5568_v21  ;;  %v3587_v21 = vor.u32 %v4217_v45, %v3584_v29  ;;  %v3512_v38 = vld [vmem:[%s6379_s1 + $0x448] sm:$0xf0]  ;;  %v759_v58 = vpop.f32.mrf.mxu0  ;;  %v5736_v26 = vor.u32 %v1547_v11, %v1544_v57 }
  0xae   : > { %1950 = vmatpush.bf16.msrb.mxu0 %v3539_v4  ;;  %v4215_v4 = vld [vmem:[%s6379_s1 + $0x4c4] sm:$0xf]  ;;  %v777_v18 = vpop.f32.mrf.mxu1  ;;  %v5747_v33 = vsel %vm1481_vm1, %v1523_v6, %v5708_v7  ;;  %v3496_v45 = vld [vmem:[%s6379_s1 + $0x428] sm:$0xf0]  ;;  %v3619_v6 = vor.u32 %v4225_v60, %v3616_v63  ;;  %v3974_v60 = vld [vmem:[%s6379_s1 + $0x760] sm:$0xf] }
  0xaf   : > { %1968 = vmatpush.bf16.msrb.mxu1 %v3603_v10  ;;  %v3704_v10 = vld [vmem:[%s6379_s1 + $0x5c8] sm:$0xf0]  ;;  %v5718_v12 = vsel %vm1481_vm1, %v1489_v54, %v5684_v35  ;;  %v3579_v20 = vor.u32 %v4215_v4, %v3576_v51  ;;  %v778_v27 = vadd.f32 %v777_v18, %v759_v58  ;;  %v5771_v29 = vsel %vm1481_vm1, %v1540_v25, %v5736_v26  ;;  %v4209_v4 = vld [vmem:[%s6379_s1 + $0x494] sm:$0xf]  ;;  %v3552_v51 = vld [vmem:[%s6379_s1 + $0x498] sm:$0xf0] }
  0xb0   : > { %1986 = vmatpush.bf16.msrb.mxu2 %v3667_v0  ;;  %v5694_v0 = vor.u32 %v1513_v2, %v1510_v13  ;;  %v3515_v13 = vor.u32 %v4199_v61, %v3512_v38  ;;  %v4229_v2 = vld [vmem:[%s6379_s1 + $0x534] sm:$0xf]  ;;  %v3707_v1 = vor.u32 %v4247_v8, %v3704_v10  ;;  %1886 = vmatmul.bf16.vlgmr.msra.gmra.mxu0 %v5718_v12  ;;  %v3688_v54 = vld [vmem:[%s6379_s1 + $0x5a8] sm:$0xf0]  ;;  %v3488_v38 = vld [vmem:[%s6379_s1 + $0x418] sm:$0xf0] }
  0xb1   : > { %2004 = vmatpush.bf16.msrb.mxu3 %v3731_v17  ;;  %v3632_v17 = vld [vmem:[%s6379_s1 + $0x538] sm:$0xf0]  ;;  %v4193_v61 = vld [vmem:[%s6379_s1 + $0x414] sm:$0xf]  ;;  %v3555_v18 = vor.u32 %v4209_v4, %v3552_v51  ;;  %v3544_v25 = vld [vmem:[%s6379_s1 + $0x488] sm:$0xf0] }
  0xb2   : > { %1951 = vmatpush.bf16.msrb.mxu0 %v3531_v28  ;;  %v5728_v19 = vsel %vm1481_vm1, %v1506_v59, %v5694_v0  ;;  %v4213_v28 = vld [vmem:[%s6379_s1 + $0x4b4] sm:$0xf]  ;;  %v3635_v34 = vor.u32 %v4229_v2, %v3632_v17  ;;  %1922 = vmatmul.bf16.vlgmr.msra.gmra.mxu2 %v5747_v33  ;;  %v3680_v8 = vld [vmem:[%s6379_s1 + $0x598] sm:$0xf0]  ;;  %v3491_v58 = vor.u32 %v4193_v61, %v3488_v38  ;;  %v3608_v2 = vld [vmem:[%s6379_s1 + $0x508] sm:$0xf0] }
  0xb3   : > { %1969 = vmatpush.bf16.msrb.mxu1 %v3595_v37  ;;  %v3696_v37 = vld [vmem:[%s6379_s1 + $0x5b8] sm:$0xf0]  ;;  %v3571_v56 = vor.u32 %v4213_v28, %v3568_v30  ;;  %v4302_v28 = vld [vmem:[%s6379_s1 + $0x774] sm:$0xf0]  ;;  %v4300_v63 = vld [vmem:[%s6379_s1 + $0x764] sm:$0xf0] }
  0xb4   : > { %1987 = vmatpush.bf16.msrb.mxu2 %v3659_v24  ;;  %v3504_v24 = vld [vmem:[%s6379_s1 + $0x438] sm:$0xf0]  ;;  %1904 = vmatmul.bf16.vlgmr.msra.gmra.mxu1 %v5728_v19  ;;  %v3699_v46 = vor.u32 %v4245_v36, %v3696_v37  ;;  %v3672_v36 = vld [vmem:[%s6379_s1 + $0x588] sm:$0xf0]  ;;  %v3854_v37 = vld [vmem:[%s6379_s1 + $0x670] sm:$0xf]  ;;  %v3975_v51 = vor.u32 %v4300_v63, %v3974_v60 }
  0xb5   : > { %2005 = vmatpush.bf16.msrb.mxu3 %v3723_v44  ;;  %v3507_v39 = vor.u32 %v4197_v62, %v3504_v24  ;;  %v4195_v44 = vld [vmem:[%s6379_s1 + $0x424] sm:$0xf]  ;;  %v761_v59 = vpop.f32.mrf.mxu0  ;;  %v795_v23 = vpop.f32.mrf.mxu2  ;;  %v3480_v62 = vld [vmem:[%s6379_s1 + $0x408] sm:$0xf0]  ;;  %v4294_v60 = vld [vmem:[%s6379_s1 + $0x734] sm:$0xf0] }
  0xb6   : > { %1952 = vmatpush.bf16.msrb.mxu0 %v3523_v32  ;;  %v3499_v32 = vor.u32 %v4195_v44, %v3496_v45  ;;  %1940 = vmatmul.bf16.vlgmr.msra.gmra.mxu3 %v5771_v29  ;;  %v779_v57 = vpop.f32.mrf.mxu1  ;;  %v796_v52 = vadd.f32 %v795_v23, %v778_v27  ;;  %v4207_v24 = vld [vmem:[%s6379_s1 + $0x484] sm:$0xf]  ;;  %v4286_v44 = vld [vmem:[%s6379_s1 + $0x6f4] sm:$0xf0]  ;;  %v3855_v23 = vor.u32 %v4270_v22, %v3854_v37  ;;  %v3958_v37 = vld [vmem:[%s6379_s1 + $0x740] sm:$0xf] }
  0xb7   : > { %1970 = vmatpush.bf16.msrb.mxu1 %v3587_v21  ;;  %v780_v11 = vadd.f32 %v779_v57, %v761_v59 }
  0xb8   : > { %1988 = vmatpush.bf16.msrb.mxu2 %v3651_v48  ;;  %v3560_v48 = vld [vmem:[%s6379_s1 + $0x4a8] sm:$0xf0] }
  0xb9   : > { %2006 = vmatpush.bf16.msrb.mxu3 %v3715_v3  ;;  %v3563_v21 = vor.u32 %v4211_v47, %v3560_v48  ;;  %v3691_v3 = vor.u32 %v4243_v53, %v3688_v54  ;;  %v813_v10 = vpop.f32.mrf.mxu3  ;;  %v3547_v47 = vor.u32 %v4207_v24, %v3544_v25  ;;  %v4318_v53 = vld [vmem:[%s6379_s1 + $0x7f4] sm:$0xf0]  ;;  %v3902_v24 = vld [vmem:[%s6379_s1 + $0x6d0] sm:$0xf] }
  0xba   : > { %1953 = vmatpush.bf16.msrb.mxu0 %v3515_v13  ;;  %v4223_v13 = vld [vmem:[%s6379_s1 + $0x504] sm:$0xf]  ;;  %v5816_v17 = vadd.f32 %v813_v10, %v796_v52  ;;  %v4268_v52 = vld [vmem:[%s6379_s1 + $0x664] sm:$0xf0]  ;;  %v4298_v10 = vld [vmem:[%s6379_s1 + $0x754] sm:$0xf0] }
  0xbb   : > { %1971 = vmatpush.bf16.msrb.mxu1 %v3579_v20  ;;  %v4191_v20 = vld [vmem:[%s6379_s1 + $0x404] sm:$0xf]  ;;  %v3611_v30 = vor.u32 %v4223_v13, %v3608_v2  ;;  %v3838_v2 = vld [vmem:[%s6379_s1 + $0x650] sm:$0xf] }
  0xbc   : > { %1989 = vmatpush.bf16.msrb.mxu2 %v3643_v16  ;;  %v4241_v16 = vld [vmem:[%s6379_s1 + $0x594] sm:$0xf]  ;;  %v3483_v41 = vor.u32 %v4191_v20, %v3480_v62  ;;  %v4266_v62 = vld [vmem:[%s6379_s1 + $0x654] sm:$0xf0] }
  0xbd   : > { %2007 = vmatpush.bf16.msrb.mxu3 %v3707_v1  ;;  %v3683_v27 = vor.u32 %v4241_v16, %v3680_v8  ;;  %v3982_v1 = vld [vmem:[%s6379_s1 + $0x770] sm:$0xf]  ;;  %v797_v45 = vpop.f32.mrf.mxu2  ;;  %v4316_v16 = vld [vmem:[%s6379_s1 + $0x7e4] sm:$0xf0] }
  0xbe   : > { %1954 = vmatpush.bf16.msrb.mxu0 %v3507_v39  ;;  %v764_v39 = vpop.f32.mrf.mxu0  ;;  %v3983_v48 = vor.u32 %v4302_v28, %v3982_v1  ;;  %v798_v54 = vadd.f32 %v797_v45, %v780_v11  ;;  %v3910_v11 = vld [vmem:[%s6379_s1 + $0x6e0] sm:$0xf]  ;;  %v3966_v8 = vld [vmem:[%s6379_s1 + $0x750] sm:$0xf] }
  0xbf   : > { %1972 = vmatpush.bf16.msrb.mxu1 %v3571_v56  ;;  %v3918_v56 = vld [vmem:[%s6379_s1 + $0x6f0] sm:$0xf]  ;;  %v3967_v28 = vor.u32 %v4298_v10, %v3966_v8  ;;  %v3894_v45 = vld [vmem:[%s6379_s1 + $0x6c0] sm:$0xf] }
  0xc0   : > { %1990 = vmatpush.bf16.msrb.mxu2 %v3635_v34  ;;  %v4239_v34 = vld [vmem:[%s6379_s1 + $0x584] sm:$0xf]  ;;  %1891 = vmatmul.bf16.gmra.mxu0 %v5684_v35  ;;  %v3919_v57 = vor.u32 %v4286_v44, %v3918_v56  ;;  %v4014_v10 = vld [vmem:[%s6379_s1 + $0x7b0] sm:$0xf] }
  0xc1   : > { %2008 = vmatpush.bf16.msrb.mxu3 %v3699_v46  ;;  %v782_v46 = vpop.f32.mrf.mxu1  ;;  %v815_v61 = vpop.f32.mrf.mxu3 }
  0xc2   : > { %1955 = vmatpush.bf16.msrb.mxu0 %v3499_v32  ;;  %v783_v59 = vadd.f32 %v782_v46, %v764_v39  ;;  %v3675_v32 = vor.u32 %v4239_v34, %v3672_v36  ;;  %v5880_v4 = vadd.f32 %v815_v61, %v798_v54  ;;  %1927 = vmatmul.bf16.gmra.mxu2 %v5708_v7  ;;  %v4314_v34 = vld [vmem:[%s6379_s1 + $0x7d4] sm:$0xf0]  ;;  %v4296_v39 = vld [vmem:[%s6379_s1 + $0x744] sm:$0xf0]  ;;  %v4022_v54 = vld [vmem:[%s6379_s1 + $0x7c0] sm:$0xf] }
  0xc3   : > { %1973 = vmatpush.bf16.msrb.mxu1 %v3563_v21  ;;  %v3846_v21 = vld [vmem:[%s6379_s1 + $0x660] sm:$0xf]  ;;  %v4280_v46 = vld [vmem:[%s6379_s1 + $0x6c4] sm:$0xf0]  ;;  %v4278_v61 = vld [vmem:[%s6379_s1 + $0x6b4] sm:$0xf0] }
  0xc4   : > { %1991 = vmatpush.bf16.msrb.mxu2 %v3627_v31  ;;  %v4046_v31 = vld [vmem:[%s6379_s1 + $0x7f0] sm:$0xf]  ;;  %1909 = vmatmul.bf16.gmra.mxu1 %v5694_v0  ;;  %v3895_v63 = vor.u32 %v4280_v46, %v3894_v45 }
  0xc5   : > { %2009 = vmatpush.bf16.msrb.mxu3 %v3691_v3  ;;  %v4047_v38 = vor.u32 %v4318_v53, %v4046_v31  ;;  %v4284_v3 = vld [vmem:[%s6379_s1 + $0x6e4] sm:$0xf0]  ;;  %v800_v25 = vpop.f32.mrf.mxu2  ;;  %v3830_v31 = vld [vmem:[%s6379_s1 + $0x640] sm:$0xf] }
  0xc6   : > { %1956 = vmatpush.bf16.msrb.mxu0 %v3491_v58  ;;  %v3847_v58 = vor.u32 %v4268_v52, %v3846_v21  ;;  %v3911_v13 = vor.u32 %v4284_v3, %v3910_v11  ;;  %1945 = vmatmul.bf16.gmra.mxu3 %v5736_v26  ;;  %v801_v36 = vadd.f32 %v800_v25, %v783_v59  ;;  %v4264_v53 = vld [vmem:[%s6379_s1 + $0x644] sm:$0xf0]  ;;  %v3886_v21 = vld [vmem:[%s6379_s1 + $0x6b0] sm:$0xf] }
  0xc7   : > { %1974 = vmatpush.bf16.msrb.mxu1 %v3555_v18  ;;  %v766_v18 = vpop.f32.mrf.mxu0  ;;  %v4312_v59 = vld [vmem:[%s6379_s1 + $0x7c4] sm:$0xf0] }
  0xc8   : > { %1992 = vmatpush.bf16.msrb.mxu2 %v3619_v6  ;;  %v4038_v6 = vld [vmem:[%s6379_s1 + $0x7e0] sm:$0xf]  ;;  %v4023_v11 = vor.u32 %v4312_v59, %v4022_v54  ;;  %v4310_v18 = vld [vmem:[%s6379_s1 + $0x7b4] sm:$0xf0] }
  0xc9   : > { %2010 = vmatpush.bf16.msrb.mxu3 %v3683_v27  ;;  %v4039_v20 = vor.u32 %v4316_v16, %v4038_v6  ;;  %v4282_v27 = vld [vmem:[%s6379_s1 + $0x6d4] sm:$0xf0]  ;;  %v784_v1 = vpop.f32.mrf.mxu1  ;;  %v818_v56 = vpop.f32.mrf.mxu3  ;;  %v2029_v16 = vld [vmem:[%s4641_s22 + $0x8] sm:$0x88] }
  0xca   : > { %1957 = vmatpush.bf16.msrb.mxu0 %v3483_v41  ;;  %v3839_v41 = vor.u32 %v4266_v62, %v3838_v2  ;;  %v3903_v22 = vor.u32 %v4282_v27, %v3902_v24  ;;  %v4262_v6 = vld [vmem:[%s6379_s1 + $0x634] sm:$0xf0]  ;;  %v3887_v2 = vor.u32 %v4278_v61, %v3886_v21  ;;  %v4276_v62 = vld [vmem:[%s6379_s1 + $0x6a4] sm:$0xf0]  ;;  %v2099_v24 = vunpack.c.l.b16 %v2029_v16 }
  0xcb   : > { %1975 = vmatpush.bf16.msrb.mxu1 %v3547_v47  ;;  %v5926_v47 = vadd.f32 %v818_v56, %v801_v36  ;;  %v2100_v27 = vunpack.c.h.b16 %v2029_v16  ;;  %v4306_v21 = vld [vmem:[%s6379_s1 + $0x794] sm:$0xf0]  ;;  %v4272_v16 = vld [vmem:[%s6379_s1 + $0x684] sm:$0xf0] }
  0xcc   : > { %1993 = vmatpush.bf16.msrb.mxu2 %v3611_v30  ;;  %v4030_v30 = vld [vmem:[%s6379_s1 + $0x7d0] sm:$0xf] }
  0xcd   : > { %2011 = vmatpush.bf16.msrb.mxu3 %v3675_v32  ;;  %v4031_v44 = vor.u32 %v4314_v34, %v4030_v30  ;;  %v3950_v32 = vld [vmem:[%s6379_s1 + $0x730] sm:$0xf]  ;;  %v4260_v30 = vld [vmem:[%s6379_s1 + $0x624] sm:$0xf0]  ;;  %v4015_v34 = vor.u32 %v4310_v18, %v4014_v10  ;;  %v2104_v56 = vpack.c.b16 %v1464_v49, %v2100_v27  ;;  %v4285_v27 = vld [vmem:[%s6379_s1 + $0x6f4] sm:$0xf] }
  0xce   : > { %2446 = vmatpush.bf16.msra.mxu0 %v3855_v23  ;;  %v3951_v3 = vor.u32 %v4294_v60, %v3950_v32 }
  0xcf   : > { %2464 = vmatpush.bf16.msra.mxu1 %v3919_v57  ;;  %v831_v23 = vpop.f32.mrf.mxu0  ;;  %v3831_v57 = vor.u32 %v4264_v53, %v3830_v31  ;;  %v4258_v31 = vld [vmem:[%s6379_s1 + $0x614] sm:$0xf0]  ;;  %v2115_v54 = vrot.slane %v2104_v56, 3 }
  0xd0   : > { %2482 = vmatpush.bf16.msra.mxu2 %v3983_v48  ;;  %v3959_v48 = vor.u32 %v4296_v39, %v3958_v37  ;;  %1958 = vmatmul.bf16.vlgmr.msrb.gmra.mxu0 %v5718_v12  ;;  %v4290_v37 = vld [vmem:[%s6379_s1 + $0x714] sm:$0xf0]  ;;  %v4006_v39 = vld [vmem:[%s6379_s1 + $0x7a0] sm:$0xf] }
  0xd1   : > { %2500 = vmatpush.bf16.msra.mxu3 %v4047_v38  ;;  %v802_v38 = vpop.f32.mrf.mxu2  ;;  %v849_v52 = vpop.f32.mrf.mxu1 }
  0xd2   : > { %2447 = vmatpush.bf16.msra.mxu0 %v3847_v58  ;;  %v850_v8 = vadd.f32 %v849_v52, %v831_v23  ;;  %v3942_v58 = vld [vmem:[%s6379_s1 + $0x720] sm:$0xf]  ;;  %v820_v25 = vpop.f32.mrf.mxu3  ;;  %1994 = vmatmul.bf16.vlgmr.msrb.gmra.mxu2 %v5747_v33  ;;  %v2103_v33 = vpack.c.b16 %v1463_v50, %v2099_v24  ;;  %v4274_v50 = vld [vmem:[%s6379_s1 + $0x694] sm:$0xf0]  ;;  %v4288_v23 = vld [vmem:[%s6379_s1 + $0x704] sm:$0xf0] }
  0xd3   : > { %2465 = vmatpush.bf16.msra.mxu1 %v3911_v13  ;;  %v4292_v13 = vld [vmem:[%s6379_s1 + $0x724] sm:$0xf0]  ;;  %v4301_v52 = vld [vmem:[%s6379_s1 + $0x774] sm:$0xf]  ;;  %v3856_v24 = vld [vmem:[%s6379_s1 + $0x678] sm:$0xf0] }
  0xd4   : > { %2483 = vmatpush.bf16.msra.mxu2 %v3975_v51  ;;  %v3822_v51 = vld [vmem:[%s6379_s1 + $0x630] sm:$0xf]  ;;  %1976 = vmatmul.bf16.vlgmr.msrb.gmra.mxu1 %v5728_v19  ;;  %v3943_v1 = vor.u32 %v4292_v13, %v3942_v58  ;;  %v2112_v53 = vrot.slane %v2103_v33, 3  ;;  %v3798_v58 = vld [vmem:[%s6379_s1 + $0x600] sm:$0xf] }
  0xd5   : > { %2501 = vmatpush.bf16.msra.mxu3 %v4039_v20  ;;  %v3878_v20 = vld [vmem:[%s6379_s1 + $0x6a0] sm:$0xf]  ;;  %v3823_v12 = vor.u32 %v4262_v6, %v3822_v51  ;;  %v3934_v19 = vld [vmem:[%s6379_s1 + $0x710] sm:$0xf]  ;;  %v4256_v13 = vld [vmem:[%s6379_s1 + $0x604] sm:$0xf0] }
  0xd6   : > { %2448 = vmatpush.bf16.msra.mxu0 %v3839_v41  ;;  %v3879_v36 = vor.u32 %v4276_v62, %v3878_v20  ;;  %v4308_v41 = vld [vmem:[%s6379_s1 + $0x7a4] sm:$0xf0]  ;;  %2012 = vmatmul.bf16.vlgmr.msrb.gmra.mxu3 %v5771_v29  ;;  %v3935_v49 = vor.u32 %v4290_v37, %v3934_v19  ;;  %v3998_v29 = vld [vmem:[%s6379_s1 + $0x790] sm:$0xf]  ;;  %v3862_v6 = vld [vmem:[%s6379_s1 + $0x680] sm:$0xf] }
  0xd7   : > { %2466 = vmatpush.bf16.msra.mxu1 %v3903_v22  ;;  %v6001_v22 = vrot.slane %v5573_v42, 3  ;;  %v833_v45 = vpop.f32.mrf.mxu0  ;;  %v4007_v60 = vor.u32 %v4308_v41, %v4006_v39  ;;  %v3999_v18 = vor.u32 %v4306_v21, %v3998_v29  ;;  %v2028_v20 = vld [vmem:[%s4641_s22] sm:$0x88]  ;;  %v3920_v25 = vld [vmem:[%s6379_s1 + $0x6f8] sm:$0xf0] }
  0xd8   : > { %2484 = vmatpush.bf16.msra.mxu2 %v3967_v28  ;;  %v3814_v28 = vld [vmem:[%s6379_s1 + $0x620] sm:$0xf]  ;;  %v4048_v19 = vld [vmem:[%s6379_s1 + $0x7f8] sm:$0xf0]  ;;  %v4299_v37 = vld [vmem:[%s6379_s1 + $0x764] sm:$0xf] }
  0xd9   : > { %2502 = vmatpush.bf16.msra.mxu3 %v4031_v44  ;;  %v6006_v44 = vrot.slane %v5622_v43, 3  ;;  %v3815_v46 = vor.u32 %v4260_v30, %v3814_v28  ;;  %v867_v42 = vpop.f32.mrf.mxu2  ;;  %v851_v14 = vpop.f32.mrf.mxu1  ;;  %v3806_v43 = vld [vmem:[%s6379_s1 + $0x610] sm:$0xf]  ;;  %v6035_v61 = vsel %vm2105_vm2, %v2112_v53, %v6001_v22  ;;  %v4304_v28 = vld [vmem:[%s6379_s1 + $0x784] sm:$0xf0] }
  0xda   : > { %2449 = vmatpush.bf16.msra.mxu0 %v3831_v57  ;;  %v868_v59 = vadd.f32 %v867_v42, %v850_v8  ;;  %v852_v32 = vadd.f32 %v851_v14, %v833_v45  ;;  %v3807_v51 = vor.u32 %v4258_v31, %v3806_v43  ;;  %v4317_v30 = vld [vmem:[%s6379_s1 + $0x7f4] sm:$0xf]  ;;  %v3976_v39 = vld [vmem:[%s6379_s1 + $0x768] sm:$0xf0]  ;;  %v3923_v45 = vor.u32 %v4285_v27, %v3920_v25  ;;  %v4267_v42 = vld [vmem:[%s6379_s1 + $0x664] sm:$0xf] }
  0xdb   : > { %2467 = vmatpush.bf16.msra.mxu1 %v3895_v63  ;;  %v3926_v63 = vld [vmem:[%s6379_s1 + $0x700] sm:$0xf]  ;;  %v6039_v38 = vsel %vm2105_vm2, %v2115_v54, %v6006_v44  ;;  %v3848_v14 = vld [vmem:[%s6379_s1 + $0x668] sm:$0xf0]  ;;  %v4051_v43 = vor.u32 %v4317_v30, %v4048_v19  ;;  %v3979_v31 = vor.u32 %v4299_v37, %v3976_v39  ;;  %v4283_v53 = vld [vmem:[%s6379_s1 + $0x6e4] sm:$0xf] }
  0xdc   : > { %2485 = vmatpush.bf16.msra.mxu2 %v3959_v48  ;;  %v3870_v48 = vld [vmem:[%s6379_s1 + $0x690] sm:$0xf]  ;;  %v3927_v10 = vor.u32 %v4288_v23, %v3926_v63  ;;  %v3912_v54 = vld [vmem:[%s6379_s1 + $0x6e8] sm:$0xf0]  ;;  %v4297_v29 = vld [vmem:[%s6379_s1 + $0x754] sm:$0xf] }
  0xdd   : > { %2503 = vmatpush.bf16.msra.mxu3 %v4023_v11  ;;  %v3871_v57 = vor.u32 %v4274_v50, %v3870_v48  ;;  %v3984_v11 = vld [vmem:[%s6379_s1 + $0x778] sm:$0xf0]  ;;  %v4265_v21 = vld [vmem:[%s6379_s1 + $0x654] sm:$0xf]  ;;  %v3832_v27 = vld [vmem:[%s6379_s1 + $0x648] sm:$0xf0] }
  0xde   : > { %2450 = vmatpush.bf16.msra.mxu0 %v3823_v12  ;;  %v3987_v62 = vor.u32 %v4301_v52, %v3984_v11  ;;  %v3863_v12 = vor.u32 %v4272_v16, %v3862_v6  ;;  %v3968_v63 = vld [vmem:[%s6379_s1 + $0x758] sm:$0xf0]  ;;  %v4313_v16 = vld [vmem:[%s6379_s1 + $0x7d4] sm:$0xf]  ;;  %v3896_v30 = vld [vmem:[%s6379_s1 + $0x6c8] sm:$0xf0] }
  0xdf   : > { %2468 = vmatpush.bf16.msra.mxu1 %v3887_v2  ;;  %v4269_v2 = vld [vmem:[%s6379_s1 + $0x674] sm:$0xf]  ;;  %v3840_v52 = vld [vmem:[%s6379_s1 + $0x658] sm:$0xf0]  ;;  %v6166_v19 = vrot.slane %v5520_v9, 3 }
  0xe0   : > { %2486 = vmatpush.bf16.msra.mxu2 %v3951_v3  ;;  %v885_v3 = vpop.f32.mrf.mxu3  ;;  %v3859_v56 = vor.u32 %v4269_v2, %v3856_v24  ;;  %1963 = vmatmul.bf16.gmra.mxu0 %v5684_v35  ;;  %v2098_v35 = vunpack.c.h.b16 %v2028_v20  ;;  %v3904_v6 = vld [vmem:[%s6379_s1 + $0x6d8] sm:$0xf0]  ;;  %v3960_v2 = vld [vmem:[%s6379_s1 + $0x748] sm:$0xf0]  ;;  %v4263_v24 = vld [vmem:[%s6379_s1 + $0x644] sm:$0xf] }
  0xe1   : > { %2504 = vmatpush.bf16.msra.mxu3 %v4015_v34  ;;  %v6053_v8 = vadd.f32 %v885_v3, %v868_v59  ;;  %v836_v34 = vpop.f32.mrf.mxu0  ;;  %v869_v41 = vpop.f32.mrf.mxu2  ;;  %v4315_v59 = vld [vmem:[%s6379_s1 + $0x7e4] sm:$0xf]  ;;  %v4024_v37 = vld [vmem:[%s6379_s1 + $0x7c8] sm:$0xf0]  ;;  %v3952_v9 = vld [vmem:[%s6379_s1 + $0x738] sm:$0xf0] }
  0xe2   : > { %2451 = vmatpush.bf16.msra.mxu0 %v3815_v46  ;;  %v854_v33 = vpop.f32.mrf.mxu1  ;;  %v870_v46 = vadd.f32 %v869_v41, %v852_v32  ;;  %1999 = vmatmul.bf16.gmra.mxu2 %v5708_v7  ;;  %v4281_v7 = vld [vmem:[%s6379_s1 + $0x6d4] sm:$0xf]  ;;  %v3835_v41 = vor.u32 %v4263_v24, %v3832_v27  ;;  %v3872_v24 = vld [vmem:[%s6379_s1 + $0x698] sm:$0xf0] }
  0xe3   : > { %2469 = vmatpush.bf16.msra.mxu1 %v3879_v36  ;;  %v3799_v36 = vor.u32 %v4256_v13, %v3798_v58  ;;  %v855_v48 = vadd.f32 %v854_v33, %v836_v34  ;;  %v4032_v58 = vld [vmem:[%s6379_s1 + $0x7d8] sm:$0xf0]  ;;  %v4295_v13 = vld [vmem:[%s6379_s1 + $0x744] sm:$0xf]  ;;  %v4293_v33 = vld [vmem:[%s6379_s1 + $0x734] sm:$0xf] }
  0xe4   : > { %2487 = vmatpush.bf16.msra.mxu2 %v3943_v1  ;;  %v3990_v1 = vld [vmem:[%s6379_s1 + $0x780] sm:$0xf]  ;;  %1981 = vmatmul.bf16.gmra.mxu1 %v5694_v0  ;;  %v3915_v0 = vor.u32 %v4283_v53, %v3912_v54  ;;  %v3955_v53 = vor.u32 %v4293_v33, %v3952_v9  ;;  %v4309_v54 = vld [vmem:[%s6379_s1 + $0x7b4] sm:$0xf] }
  0xe5   : > { %2505 = vmatpush.bf16.msra.mxu3 %v4007_v60  ;;  %v3991_v50 = vor.u32 %v4304_v28, %v3990_v1  ;;  %v4040_v60 = vld [vmem:[%s6379_s1 + $0x7e8] sm:$0xf0]  ;;  %v3963_v1 = vor.u32 %v4295_v13, %v3960_v2  ;;  %v4279_v28 = vld [vmem:[%s6379_s1 + $0x6c4] sm:$0xf]  ;;  %v4289_v13 = vld [vmem:[%s6379_s1 + $0x714] sm:$0xf] }
  0xe6   : > { %2452 = vmatpush.bf16.msra.mxu0 %v3807_v51  ;;  %v4043_v3 = vor.u32 %v4315_v59, %v4040_v60  ;;  %v3971_v51 = vor.u32 %v4297_v29, %v3968_v63  ;;  %2017 = vmatmul.bf16.gmra.mxu3 %v5736_v26  ;;  %v4035_v26 = vor.u32 %v4313_v16, %v4032_v58  ;;  %v4016_v59 = vld [vmem:[%s6379_s1 + $0x7b8] sm:$0xf0] }
  0xe7   : > { %2470 = vmatpush.bf16.msra.mxu1 %v3871_v57  ;;  %v3851_v57 = vor.u32 %v4267_v42, %v3848_v14  ;;  %v4277_v14 = vld [vmem:[%s6379_s1 + $0x6b4] sm:$0xf]  ;;  %v3936_v2 = vld [vmem:[%s6379_s1 + $0x718] sm:$0xf0] }
  0xe8   : > { %2488 = vmatpush.bf16.msra.mxu2 %v3935_v49  ;;  %v2097_v49 = vunpack.c.l.b16 %v2028_v20  ;;  %v887_v32 = vpop.f32.mrf.mxu3 }
  0xe9   : > { %2506 = vmatpush.bf16.msra.mxu3 %v3999_v18  ;;  %v6118_v23 = vadd.f32 %v887_v32, %v870_v46  ;;  %v872_v18 = vpop.f32.mrf.mxu2  ;;  %v4261_v46 = vld [vmem:[%s6379_s1 + $0x634] sm:$0xf] }
  0xea   : > { %2453 = vmatpush.bf16.msra.mxu0 %v3799_v36  ;;  %v2101_v11 = vpack.c.b16 %v1461_v40, %v2097_v49  ;;  %v2102_v40 = vpack.c.b16 %v1462_v5, %v2098_v35  ;;  %v856_v20 = vpop.f32.mrf.mxu1  ;;  %v873_v15 = vadd.f32 %v872_v18, %v855_v48  ;;  %v3907_v5 = vor.u32 %v4281_v7, %v3904_v6  ;;  %v3824_v48 = vld [vmem:[%s6379_s1 + $0x638] sm:$0xf0]  ;;  %v3880_v7 = vld [vmem:[%s6379_s1 + $0x6a8] sm:$0xf0] }
  0xeb   : > { %2471 = vmatpush.bf16.msra.mxu1 %v3863_v12  ;;  %v6157_v12 = vrot.slane %v5481_v55, 3  ;;  %v4311_v55 = vld [vmem:[%s6379_s1 + $0x7c4] sm:$0xf]  ;;  %v3888_v49 = vld [vmem:[%s6379_s1 + $0x6b8] sm:$0xf0]  ;;  %v3827_v63 = vor.u32 %v4261_v46, %v3824_v48 }
  0xec   : > { %2489 = vmatpush.bf16.msra.mxu2 %v3927_v10  ;;  %v838_v10 = vpop.f32.mrf.mxu0  ;;  %v2106_v25 = vrot.slane %v2101_v11, 3  ;;  %v2109_v36 = vrot.slane %v2102_v40, 3  ;;  %v4027_v42 = vor.u32 %v4311_v55, %v4024_v37  ;;  %v4008_v40 = vld [vmem:[%s6379_s1 + $0x7a8] sm:$0xf0]  ;;  %v4257_v20 = vld [vmem:[%s6379_s1 + $0x614] sm:$0xf] }
  0xed   : > { %2507 = vmatpush.bf16.msra.mxu3 %v3991_v50  ;;  %v4343_v50 = vmov 0   ;;  %v4307_v10 = vld [vmem:[%s6379_s1 + $0x7a4] sm:$0xf]  ;;  %v3928_v37 = vld [vmem:[%s6379_s1 + $0x708] sm:$0xf0] }
  0xee   : > { %2518 = vmatpush.bf16.msrb.mxu0 %v3859_v56  ;;  %v2608_v56 = vld [vmem:[%s6381_s3] sm:$0xff]  ;;  %4329 = vset.pattern.permute.xlu0 %v4343_v50  ;;  %v6210_v29 = vsel %vm2105_vm2, %v2109_v36, %v6166_v19 }
  0xef   : > { %2536 = vmatpush.bf16.msrb.mxu1 %v3923_v45  ;;  %v3899_v45 = vor.u32 %v4279_v28, %v3896_v30  ;;  %2613 = vperm.xlu0 %4329, %v2608_v56   ;;  %v4287_v55 = vld [vmem:[%s6379_s1 + $0x704] sm:$0xf]  ;;  %v3800_v56 = vld [vmem:[%s6379_s1 + $0x608] sm:$0xf0] }
  0xf0   : > { %2554 = vmatpush.bf16.msrb.mxu2 %v3987_v62  ;;  %v3843_v62 = vor.u32 %v4265_v21, %v3840_v52  ;;  %v890_v34 = vpop.f32.mrf.mxu3  ;;  %4330 = vset.pattern.permute.xlu1 %v4343_v50  ;;  %v3891_v21 = vor.u32 %v4277_v14, %v3888_v49  ;;  %v3816_v52 = vld [vmem:[%s6379_s1 + $0x628] sm:$0xf0]  ;;  %v4271_v48 = vld [vmem:[%s6379_s1 + $0x684] sm:$0xf]  ;;  %v3931_v14 = vor.u32 %v4287_v55, %v3928_v37 }
  0xf1   : > { %2572 = vmatpush.bf16.msrb.mxu3 %v4051_v43  ;;  %v6174_v39 = vadd.f32 %v890_v34, %v873_v15  ;;  %v874_v32 = vpop.f32.mrf.mxu2  ;;  %v4011_v15 = vor.u32 %v4307_v10, %v4008_v40  ;;  %v3864_v50 = vld [vmem:[%s6379_s1 + $0x688] sm:$0xf0]  ;;  %v4303_v49 = vld [vmem:[%s6379_s1 + $0x784] sm:$0xf] }
  0xf2   : > { %2519 = vmatpush.bf16.msrb.mxu0 %v3851_v57  ;;  %v1259_v60 = vpop.f32.mrf.mxu1  ;;  %v4291_v57 = vld [vmem:[%s6379_s1 + $0x724] sm:$0xf]  ;;  %2490 = vmatmul.bf16.vlgmr.msra.gmra.mxu2 %v6035_v61  ;;  %v3867_v32 = vor.u32 %v4271_v48, %v3864_v50 }
  0xf3   : > { %2537 = vmatpush.bf16.msrb.mxu1 %v3915_v0  ;;  %v3944_v0 = vld [vmem:[%s6379_s1 + $0x728] sm:$0xf0] }
  0xf4   : > { %2555 = vmatpush.bf16.msrb.mxu2 %v3979_v31  ;;  %v1241_v43 = vpop.f32.mrf.mxu0  ;;  %v6199_v31 = vsel %vm2105_vm2, %v2106_v25, %v6157_v12  ;;  %2472 = vmatmul.bf16.vlgmr.msra.gmra.mxu1 %v6210_v29  ;;  %v3947_v16 = vor.u32 %v4291_v57, %v3944_v0  ;;  %v3939_v25 = vor.u32 %v4289_v13, %v3936_v2 }
  0xf5   : > { %2573 = vmatpush.bf16.msrb.mxu3 %v4043_v3  ;;  %v1242_v35 = vadd.f32 %v1241_v43, %v5816_v17  ;;  %v4259_v17 = vld [vmem:[%s6379_s1 + $0x624] sm:$0xf]  ;;  %2454 = vmatmul.bf16.vlgmr.msra.gmra.mxu0 %v6199_v31  ;;  %v4019_v3 = vor.u32 %v4309_v54, %v4016_v59  ;;  %v3992_v43 = vld [vmem:[%s6379_s1 + $0x788] sm:$0xf0]  ;;  %v2610_v59 = vld [vmem:[%s6381_s3 + $0x10] sm:$0xf] }
  0xf6   : > { %2520 = vmatpush.bf16.msrb.mxu0 %v3843_v62  ;;  %v3819_v58 = vor.u32 %v4259_v17, %v3816_v52  ;;  %v3808_v62 = vld [vmem:[%s6379_s1 + $0x618] sm:$0xf0]  ;;  %2508 = vmatmul.bf16.vlgmr.msra.gmra.mxu3 %v6039_v38 }
  0xf7   : > { %2538 = vmatpush.bf16.msrb.mxu1 %v3907_v5  ;;  %v1260_v11 = vadd.f32 %v1259_v60, %v1242_v35  ;;  %v4273_v5 = vld [vmem:[%s6379_s1 + $0x694] sm:$0xf]  ;;  %v3811_v36 = vor.u32 %v4257_v20, %v3808_v62  ;;  %2623 = vperm.xlu1 %4330, %v2610_v59   ;;  %v3995_v35 = vor.u32 %v4303_v49, %v3992_v43 }
  0xf8   : > { %2556 = vmatpush.bf16.msrb.mxu2 %v3971_v51  ;;  %v4275_v51 = vld [vmem:[%s6379_s1 + $0x6a4] sm:$0xf]  ;;  %v892_v6 = vpop.f32.mrf.mxu3  ;;  %v3875_v9 = vor.u32 %v4273_v5, %v3872_v24 }
  0xf9   : > { %2574 = vmatpush.bf16.msrb.mxu3 %v4035_v26  ;;  %v3883_v18 = vor.u32 %v4275_v51, %v3880_v7  ;;  %v4305_v26 = vld [vmem:[%s6379_s1 + $0x794] sm:$0xf]  ;;  %v1277_v28 = vpop.f32.mrf.mxu2 }
  0xfa   : > { %2521 = vmatpush.bf16.msrb.mxu0 %v3835_v41  ;;  %v1261_v34 = vpop.f32.mrf.mxu1  ;;  %v2609_v41 = vld [vmem:[%s6381_s3 + $0x8] sm:$0xff]  ;;  %v1278_v33 = vadd.f32 %v1277_v28, %v1260_v11 }
  0xfb   : > { %2539 = vmatpush.bf16.msrb.mxu1 %v3899_v45  ;;  %2618 = vperm.xlu0 %4329, %v2609_v41  }
  0xfc   : > { %2557 = vmatpush.bf16.msrb.mxu2 %v3963_v1  ;;  %v1243_v27 = vpop.f32.mrf.mxu0  ;;  %v4000_v1 = vld [vmem:[%s6379_s1 + $0x798] sm:$0xf0] }
  0xfd   : > { %2575 = vmatpush.bf16.msrb.mxu3 %v4027_v42  ;;  %v1244_v30 = vadd.f32 %v1243_v27, %v5880_v4  ;;  %v4255_v4 = vld [vmem:[%s6379_s1 + $0x604] sm:$0xf]  ;;  %v4003_v46 = vor.u32 %v4305_v26, %v4000_v1 }
  0xfe   : > { %2522 = vmatpush.bf16.msrb.mxu0 %v3827_v63  ;;  %v3803_v54 = vor.u32 %v4255_v4, %v3800_v56 }
  0xff   : > { %2540 = vmatpush.bf16.msrb.mxu1 %v3891_v21  ;;  %v1262_v45 = vadd.f32 %v1261_v34, %v1244_v30 }
 0x100   : > { %2558 = vmatpush.bf16.msrb.mxu2 %v3955_v53  ;;  %v1295_v42 = vpop.f32.mrf.mxu3 }
 0x101   : > { %2576 = vmatpush.bf16.msrb.mxu3 %v4019_v3  ;;  %v6292_v53 = vadd.f32 %v1295_v42, %v1278_v33  ;;  %v1279_v63 = vpop.f32.mrf.mxu2 }
 0x102   : > { %2523 = vmatpush.bf16.msrb.mxu0 %v3819_v58  ;;  %v1264_v0 = vpop.f32.mrf.mxu1  ;;  %v1280_v21 = vadd.f32 %v1279_v63, %v1262_v45  ;;  %2495 = vmatmul.bf16.gmra.mxu2 %v6001_v22 }
 0x103   : > { %2541 = vmatpush.bf16.msrb.mxu1 %v3883_v18 }
 0x104   : > { %2559 = vmatpush.bf16.msrb.mxu2 %v3947_v16  ;;  %v1246_v60 = vpop.f32.mrf.mxu0  ;;  %2477 = vmatmul.bf16.gmra.mxu1 %v6166_v19 }
 0x105   : > { %2577 = vmatpush.bf16.msrb.mxu3 %v4011_v15  ;;  %v1247_v57 = vadd.f32 %v1246_v60, %v5926_v47  ;;  %2459 = vmatmul.bf16.gmra.mxu0 %v6157_v12 }
 0x106   : > { %2524 = vmatpush.bf16.msrb.mxu0 %v3811_v36  ;;  %2513 = vmatmul.bf16.gmra.mxu3 %v6006_v44 }
 0x107   : > { %2542 = vmatpush.bf16.msrb.mxu1 %v3875_v9  ;;  %v1265_v17 = vadd.f32 %v1264_v0, %v1247_v57 }
 0x108   : > { %2560 = vmatpush.bf16.msrb.mxu2 %v3939_v25  ;;  %v1297_v52 = vpop.f32.mrf.mxu3 }
 0x109   : > { %2578 = vmatpush.bf16.msrb.mxu3 %v4003_v46  ;;  %v6300_v11 = vadd.f32 %v1297_v52, %v1280_v21  ;;  %v1282_v51 = vpop.f32.mrf.mxu2 }
 0x10a   : > { %2525 = vmatpush.bf16.msrb.mxu0 %v3803_v54  ;;  %v1266_v47 = vpop.f32.mrf.mxu1  ;;  %v1283_v7 = vadd.f32 %v1282_v51, %v1265_v17 }
 0x10b   : > { %2543 = vmatpush.bf16.msrb.mxu1 %v3867_v32 }
 0x10c   : > { %2561 = vmatpush.bf16.msrb.mxu2 %v3931_v14  ;;  %v1248_v3 = vpop.f32.mrf.mxu0 }
 0x10d   : > { %2579 = vmatpush.bf16.msrb.mxu3 %v3995_v35 }
 0x110   : > { %v1300_v6 = vpop.f32.mrf.mxu3 }
 0x111   : > { %v6304_v16 = vadd.f32 %v1300_v6, %v1283_v7  ;;  %v1284_v40 = vpop.f32.mrf.mxu2 }
 0x112   : > { %v1331_v13 = vpop.f32.mrf.mxu1  ;;  %2562 = vmatmul.bf16.vlgmr.msrb.gmra.mxu2 %v6035_v61 }
 0x114   : > { %v1313_v10 = vpop.f32.mrf.mxu0  ;;  %2544 = vmatmul.bf16.vlgmr.msrb.gmra.mxu1 %v6210_v29 }
 0x115   : > { %v1314_v58 = vadd.f32 %v1313_v10, %v6053_v8  ;;  %2526 = vmatmul.bf16.vlgmr.msrb.gmra.mxu0 %v6199_v31 }
 0x116   : > { %2580 = vmatmul.bf16.vlgmr.msrb.gmra.mxu3 %v6039_v38 }
 0x117   : > { %v1332_v2 = vadd.f32 %v1331_v13, %v1314_v58 }
 0x118   : > { %v1302_v18 = vpop.f32.mrf.mxu3 }
 0x119   : > { %v1349_v62 = vpop.f32.mrf.mxu2 }
 0x11a   : > { %v1333_v5 = vpop.f32.mrf.mxu1  ;;  %v1350_v24 = vadd.f32 %v1349_v62, %v1332_v2 }
 0x11c   : > { %v1315_v20 = vpop.f32.mrf.mxu0 }
 0x11d   : > { %v1316_v15 = vadd.f32 %v1315_v20, %v6118_v23 }
 0x11f   : > { %v1334_v27 = vadd.f32 %v1333_v5, %v1316_v15 }
 0x120   : > { %v1367_v25 = vpop.f32.mrf.mxu3 }
 0x121   : > { %v1368_v8 = vadd.f32 %v1367_v25, %v1350_v24  ;;  %v1351_v1 = vpop.f32.mrf.mxu2 }
 0x122   : > { %v1336_v28 = vpop.f32.mrf.mxu1  ;;  %v1352_v30 = vadd.f32 %v1351_v1, %v1334_v27  ;;  %2567 = vmatmul.bf16.gmra.mxu2 %v6001_v22 }
 0x124   : > { %v1318_v26 = vpop.f32.mrf.mxu0  ;;  %2549 = vmatmul.bf16.gmra.mxu1 %v6166_v19 }
 0x125   : > { %v1319_v31 = vadd.f32 %v1318_v26, %v6174_v39  ;;  %2531 = vmatmul.bf16.gmra.mxu0 %v6157_v12 }
 0x126   : > { %2585 = vmatmul.bf16.gmra.mxu3 %v6006_v44 }
 0x127   : > { %v1337_v29 = vadd.f32 %v1336_v28, %v1319_v31 }
 0x128   : > { %v1369_v61 = vpop.f32.mrf.mxu3 }
 0x129   : > { %v1370_v38 = vadd.f32 %v1369_v61, %v1352_v30  ;;  %v1354_v34 = vpop.f32.mrf.mxu2 }
 0x12a   : > { %v1338_v36 = vpop.f32.mrf.mxu1  ;;  %v1355_v55 = vadd.f32 %v1354_v34, %v1337_v29 }
 0x12c   : > { %v1320_v23 = vpop.f32.mrf.mxu0 }
 0x130   : > { %v1372_v37 = vpop.f32.mrf.mxu3 }
 0x131   : > { %v1373_v41 = vadd.f32 %v1372_v37, %v1355_v55  ;;  %v1356_v33 = vpop.f32.mrf.mxu2 }
 0x132   : > { %v1905_v9 = vpop.f32.mrf.mxu1 }
 0x134   : > { %v1887_v39 = vpop.f32.mrf.mxu0 }
 0x135   : > { %v1906_v4 = vadd.f32 %v1905_v9, %v1887_v39 }
 0x138   : > { %v1374_v56 = vpop.f32.mrf.mxu3 }
 0x139   : > { %v1923_v45 = vpop.f32.mrf.mxu2 }
 0x13a   : > { %v1907_v46 = vpop.f32.mrf.mxu1  ;;  %v1924_v19 = vadd.f32 %v1923_v45, %v1906_v4 }
 0x13c   : > { %v1889_v12 = vpop.f32.mrf.mxu0 }
 0x13d   : > { %v1908_v48 = vadd.f32 %v1907_v46, %v1889_v12  ;;  %v2596_v12 = vld [vmem:[%s6380_s2] sm:$0x3] }
 0x140   : > { %v1941_v50 = vpop.f32.mrf.mxu3 }
 0x141   : > { %v1942_v22 = vadd.f32 %v1941_v50, %v1924_v19  ;;  %v1925_v14 = vpop.f32.mrf.mxu2  ;;  %v2598_v19 = vperm.slane %v2596_v12, 0 }
 0x142   : > { %v1910_v49 = vpop.f32.mrf.mxu1  ;;  %v1926_v43 = vadd.f32 %v1925_v14, %v1908_v48 }
 0x143   : > { %v2022_v42 = vadd.f32 %v1942_v22, %v6292_v53 }
 0x144   : > { %v1892_v44 = vpop.f32.mrf.mxu0 }
 0x145   : > { %v1911_v54 = vadd.f32 %v1910_v49, %v1892_v44 }
 0x148   : > { %v1943_v59 = vpop.f32.mrf.mxu3 }
 0x149   : > { %v1944_v32 = vadd.f32 %v1943_v59, %v1926_v43  ;;  %v1928_v63 = vpop.f32.mrf.mxu2 }
 0x14a   : > { %v1912_v57 = vpop.f32.mrf.mxu1  ;;  %v1929_v0 = vadd.f32 %v1928_v63, %v1911_v54 }
 0x14b   : > { %v2024_v35 = vadd.f32 %v1944_v32, %v6300_v11 }
 0x14c   : > { %v1894_v60 = vpop.f32.mrf.mxu0 }
 0x150   : > { %v1946_v21 = vpop.f32.mrf.mxu3 }
 0x151   : > { %v1947_v17 = vadd.f32 %v1946_v21, %v1929_v0  ;;  %v1930_v53 = vpop.f32.mrf.mxu2 }
 0x152   : > { %v1977_v51 = vpop.f32.mrf.mxu1 }
 0x153   : > { %v6320_v52 = vadd.f32 %v1947_v17, %v6304_v16 }
 0x154   : > { %v1959_v3 = vpop.f32.mrf.mxu0 }
 0x155   : > { %v1978_v47 = vadd.f32 %v1977_v51, %v1959_v3 }
 0x158   : > { %v1948_v7 = vpop.f32.mrf.mxu3 }
 0x159   : > { %v1995_v10 = vpop.f32.mrf.mxu2 }
 0x15a   : > { %v1979_v40 = vpop.f32.mrf.mxu1  ;;  %v1996_v58 = vadd.f32 %v1995_v10, %v1978_v47 }
 0x15c   : > { %v1961_v6 = vpop.f32.mrf.mxu0 }
 0x15d   : > { %v1980_v13 = vadd.f32 %v1979_v40, %v1961_v6 }
 0x160   : > { %v2013_v11 = vpop.f32.mrf.mxu3 }
 0x161   : > { %v2014_v2 = vadd.f32 %v2013_v11, %v1996_v58  ;;  %v1997_v62 = vpop.f32.mrf.mxu2  ;;  %v6328_v56 = vpop.permute.xlu0 %2613 }
 0x162   : > { %v1982_v15 = vpop.f32.mrf.mxu1  ;;  %v1998_v5 = vadd.f32 %v1997_v62, %v1980_v13 }
 0x163   : > { %v6322_v18 = vadd.f32 %v2014_v2, %v1368_v8 }
 0x164   : > { %v1964_v20 = vpop.f32.mrf.mxu0 }
 0x165   : > { %v1983_v16 = vadd.f32 %v1982_v15, %v1964_v20 }
 0x168   : > { %v2015_v24 = vpop.f32.mrf.mxu3 }
 0x169   : > { %v2016_v27 = vadd.f32 %v2015_v24, %v1998_v5  ;;  %v2000_v1 = vpop.f32.mrf.mxu2  ;;  %v6344_v6 = vpop.permute.xlu1 %2623 }
 0x16a   : > { %v1984_v31 = vpop.f32.mrf.mxu1  ;;  %v2001_v28 = vadd.f32 %v2000_v1, %v1983_v16 }
 0x16b   : > { %v6324_v25 = vadd.f32 %v2016_v27, %v1370_v38 }
 0x16c   : > { %v1966_v26 = vpop.f32.mrf.mxu0 }
 0x16d   : > { %v6335_v59 = vpop.permute.xlu0 %2618 }
 0x170   : > { %v2018_v30 = vpop.f32.mrf.mxu3 }
 0x171   : > { %v2019_v29 = vadd.f32 %v2018_v30, %v2001_v28  ;;  %v2002_v8 = vpop.f32.mrf.mxu2 }
 0x172   : > { %v2473_v34 = vpop.f32.mrf.mxu1 }
 0x173   : > { %v6326_v61 = vadd.f32 %v2019_v29, %v1373_v41 }
 0x174   : > { %v2455_v23 = vpop.f32.mrf.mxu0 }
 0x175   : > { %v2474_v55 = vadd.f32 %v2473_v34, %v2455_v23 }
 0x178   : > { %v2020_v36 = vpop.f32.mrf.mxu3 }
 0x179   : > { %v2491_v39 = vpop.f32.mrf.mxu2 }
 0x17a   : > { %v2475_v33 = vpop.f32.mrf.mxu1  ;;  %v2492_v9 = vadd.f32 %v2491_v39, %v2474_v55 }
 0x17c   : > { %v2457_v37 = vpop.f32.mrf.mxu0 }
 0x17d   : > { %v2476_v45 = vadd.f32 %v2475_v33, %v2457_v37 }
 0x180   : > { %v2509_v4 = vpop.f32.mrf.mxu3 }
 0x181   : > { %v2510_v38 = vadd.f32 %v2509_v4, %v2492_v9  ;;  %v2493_v48 = vpop.f32.mrf.mxu2 }
 0x182   : > { %v2478_v50 = vpop.f32.mrf.mxu1  ;;  %v2494_v22 = vadd.f32 %v2493_v48, %v2476_v45 }
 0x183   : > { %v2590_v46 = vadd.f32 %v2510_v38, %v2022_v42  ;;  %v2599_v38 = vperm.slane %v2596_v12, 1 }
 0x184   : > { %v2460_v41 = vpop.f32.mrf.mxu0 }
 0x185   : > { %v6333_v14 = vadd.f32 %v2598_v19, %v2590_v46  ;;  %v2479_v43 = vadd.f32 %v2478_v50, %v2460_v41 }
 0x187   : > { %v2626_v60 = vmul.f32 %v6328_v56, %v6333_v14 }
 0x188   : > { %v2511_v44 = vpop.f32.mrf.mxu3 }
 0x189   : > { %v2512_v49 = vadd.f32 %v2511_v44, %v2494_v22  ;;  %v2496_v57 = vpop.f32.mrf.mxu2  ;;  %v2653_v3 = vmul.f32 %v2626_v60, %v2626_v60 }
 0x18a   : > { %v2480_v42 = vpop.f32.mrf.mxu1  ;;  %v2497_v0 = vadd.f32 %v2496_v57, %v2479_v43 }
 0x18b   : > { %v2592_v54 = vadd.f32 %v2512_v49, %v2024_v35 }
 0x18c   : > { %v2462_v32 = vpop.f32.mrf.mxu0 }
 0x18d   : > { %v6339_v63 = vadd.f32 %v2598_v19, %v2592_v54 }
 0x18f   : > { %v2628_v21 = vmul.f32 %v6335_v59, %v6339_v63 }
 0x190   : > { %v2514_v17 = vpop.f32.mrf.mxu3 }
 0x191   : > { %v2632_v53 = vadd.f32 %v2628_v21, %v2626_v60  ;;  %v2655_v51 = vmul.f32 %v2628_v21, %v2628_v21  ;;  %v2515_v47 = vadd.f32 %v2514_v17, %v2497_v0  ;;  %v2498_v58 = vpop.f32.mrf.mxu2 }
 0x192   : > { %v2545_v13 = vpop.f32.mrf.mxu1 }
 0x193   : > { %v2659_v35 = vadd.f32 %v2655_v51, %v2653_v3  ;;  %v2594_v7 = vadd.f32 %v2515_v47, %v6320_v52 }
 0x194   : > { %v2527_v10 = vpop.f32.mrf.mxu0 }
 0x195   : > { %v6346_v40 = vadd.f32 %v2598_v19, %v2594_v7  ;;  %v2546_v5 = vadd.f32 %v2545_v13, %v2527_v10 }
 0x197   : > { %v2630_v11 = vmul.f32 %v6344_v6, %v6346_v40 }
 0x198   : > { %v2516_v2 = vpop.f32.mrf.mxu3 }
 0x199   : > { %v2634_v20 = vsel %vm2633_vm3, %v2630_v11, 0.0  ;;  %v2657_v62 = vmul.f32 %v2630_v11, %v2630_v11  ;;  %v2563_v26 = vpop.f32.mrf.mxu2 }
 0x19a   : > { %v2635_v15 = vadd.f32 %v2634_v20, %v2632_v53  ;;  %v2547_v1 = vpop.f32.mrf.mxu1  ;;  %v2564_v30 = vadd.f32 %v2563_v26, %v2546_v5 }
 0x19b   : > { %v2660_v16 = vsel %vm2633_vm3, %v2657_v62, 0.0 }
 0x19c   : > { %v2636_v52 = vrot.slane %v2635_v15, 4  ;;  %v2661_v24 = vadd.f32 %v2660_v16, %v2659_v35  ;;  %v2529_v27 = vpop.f32.mrf.mxu0 }
 0x19d   : > { %v2548_v33 = vadd.f32 %v2547_v1, %v2529_v27 }
 0x19e   : > { %v2637_v31 = vadd.f32 %v2636_v52, %v2635_v15  ;;  %v2662_v28 = vrot.slane %v2661_v24, 4 }
 0x1a0   : > { %v2638_v29 = vrot.slane %v2637_v31, 2  ;;  %v2663_v23 = vadd.f32 %v2662_v28, %v2661_v24  ;;  %v2581_v8 = vpop.f32.mrf.mxu3 }
 0x1a1   : > { %v2582_v34 = vadd.f32 %v2581_v8, %v2564_v30  ;;  %v2565_v45 = vpop.f32.mrf.mxu2 }
 0x1a2   : > { %v2639_v36 = vadd.f32 %v2638_v29, %v2637_v31  ;;  %v2664_v55 = vrot.slane %v2663_v23, 2  ;;  %v2550_v41 = vpop.f32.mrf.mxu1  ;;  %v2566_v48 = vadd.f32 %v2565_v45, %v2548_v33 }
 0x1a3   : > { %v2591_v4 = vadd.f32 %v2582_v34, %v6322_v18 }
 0x1a4   : > { %v2640_v37 = vrot.slane %v2639_v36, 1  ;;  %v2665_v39 = vadd.f32 %v2664_v55, %v2663_v23  ;;  %v2532_v9 = vpop.f32.mrf.mxu0 }
 0x1a5   : > { %v6353_v49 = vadd.f32 %v2599_v38, %v2591_v4  ;;  %v2551_v54 = vadd.f32 %v2550_v41, %v2532_v9 }
 0x1a6   : > { %v2641_v46 = vadd.f32 %v2640_v37, %v2639_v36  ;;  %v2666_v19 = vrot.slane %v2665_v39, 1 }
 0x1a7   : > { %v2627_v17 = vmul.f32 %v6328_v56, %v6353_v49 }
 0x1a8   : > { %v2651_v50 = vmul.f32 0.0625, %v2641_v46  ;;  %v2667_v22 = vadd.f32 %v2666_v19, %v2665_v39  ;;  %v2583_v44 = vpop.f32.mrf.mxu3 }
 0x1a9   : > { %v2584_v43 = vadd.f32 %v2583_v44, %v2566_v48  ;;  %v2568_v53 = vpop.f32.mrf.mxu2  ;;  %v2654_v7 = vmul.f32 %v2627_v17, %v2627_v17 }
 0x1aa   : > { %v2677_v32 = vmul.f32 0.0625, %v2667_v22  ;;  %v2679_v60 = vmul.f32 %v2651_v50, %v2651_v50  ;;  %v2683_v57 = vsub.f32 %v6333_v14, %v2651_v50  ;;  %v2685_v42 = vsub.f32 %v6339_v63, %v2651_v50  ;;  %v2552_v51 = vpop.f32.mrf.mxu1 }
 0x1ab   : > { %v2687_v18 = vsub.f32 %v6346_v40, %v2651_v50  ;;  %v2593_v12 = vadd.f32 %v2584_v43, %v6324_v25  ;;  %v2569_v35 = vadd.f32 %v2568_v53, %v2551_v54 }
 0x1ac   : > { %v2681_v0 = vsub.f32 %v2677_v32, %v2679_v60  ;;  %v2534_v21 = vpop.f32.mrf.mxu0 }
 0x1ad   : > { %v6361_v3 = vadd.f32 %v2599_v38, %v2593_v12 }
 0x1ae   : > { %v2689_v47 = vadd.f32 1e-05, %v2681_v0 }
 0x1af   : > { %v2629_v14 = vmul.f32 %v6335_v59, %v6361_v3 }
 0x1b0   : > { %4331 = vrsqrt.f32 %v2689_v47  ;;  %v2586_v63 = vpop.f32.mrf.mxu3  ;;  %vm2697_vm5 = vweird.f32 %v2689_v47 }
 0x1b1   : > { %v2642_v10 = vadd.f32 %v2629_v14, %v2627_v17  ;;  %v2656_v40 = vmul.f32 %v2629_v14, %v2629_v14  ;;  %v2587_v25 = vadd.f32 %v2586_v63, %v2569_v35  ;;  %v2570_v56 = vpop.f32.mrf.mxu2 }
 0x1b3   : > { %v2668_v58 = vadd.f32 %v2656_v40, %v2654_v7  ;;  %v2595_v13 = vadd.f32 %v2587_v25, %v6326_v61 }
 0x1b5   : > { %v2607_v11 = vadd.f32 %v2599_v38, %v2595_v13 }
 0x1b6   : > { %v4332_v2 = vpop.eup %4331 }
 0x1b7   : > { %v2692_v20 = vmul.f32 %v4332_v2, %v2689_v47  ;;  %v2631_v62 = vmul.f32 %v6344_v6, %v2607_v11  ;;  %vm2698_vm4 = vweird.f32 %v4332_v2 }
 0x1b8   : > { %v2588_v15 = vpop.f32.mrf.mxu3  ;;  %vm2699_vm6 = vmor %vm2697_vm5, %vm2698_vm4 }
 0x1b9   : > { %v2693_v5 = vmul.f32 %v4332_v2, %v2692_v20  ;;  %v2643_v16 = vsel %vm2633_vm3, %v2631_v62, 0.0  ;;  %v2658_v59 = vmul.f32 %v2631_v62, %v2631_v62 }
 0x1ba   : > { %v2644_v52 = vadd.f32 %v2643_v16, %v2642_v10 }
 0x1bb   : > { %v2694_v24 = vmul.f32 0.5, %v2693_v5  ;;  %v2669_v27 = vsel %vm2633_vm3, %v2658_v59, 0.0 }
 0x1bc   : > { %v2645_v26 = vrot.slane %v2644_v52, 4  ;;  %v2670_v1 = vadd.f32 %v2669_v27, %v2668_v58 }
 0x1bd   : > { %v2695_v31 = vsub.f32 1.5, %v2694_v24 }
 0x1be   : > { %v2646_v61 = vadd.f32 %v2645_v26, %v2644_v52  ;;  %v2671_v28 = vrot.slane %v2670_v1, 4 }
 0x1bf   : > { %v2696_v30 = vmul.f32 %v4332_v2, %v2695_v31 }
 0x1c0   : > { %v2647_v29 = vrot.slane %v2646_v61, 2  ;;  %v2672_v6 = vadd.f32 %v2671_v28, %v2670_v1 }
 0x1c1   : > { %v2700_v23 = vsel %vm2699_vm6, %v4332_v2, %v2696_v30 }
 0x1c2   : > { %v2711_v8 = vmul.f32 %v2700_v23, %v2683_v57  ;;  %v2713_v34 = vmul.f32 %v2700_v23, %v2685_v42  ;;  %v2715_v36 = vmul.f32 %v2700_v23, %v2687_v18  ;;  %v2648_v55 = vadd.f32 %v2647_v29, %v2646_v61 }
 0x1c3   : > { %v2673_v37 = vrot.slane %v2672_v6, 2 }
 0x1c4   : > { %v2649_v39 = vrot.slane %v2648_v55, 1  ;;  %v2723_v18 = vmul.f32 0.2, %v2711_v8  ;;  %v2725_v0 = vmul.f32 0.2, %v2713_v34  ;;  %vm2717_vm10 = vcmp.gt.f32.partialorder %v2711_v8, 0.0 }
 0x1c5   : > { %v2674_v33 = vadd.f32 %v2673_v37, %v2672_v6  ;;  %vm2719_vm11 = vcmp.gt.f32.partialorder %v2713_v34, 0.0  ;;  %vm2721_vm12 = vcmp.gt.f32.partialorder %v2715_v36, 0.0 }
 0x1c6   : > { %v2650_v9 = vadd.f32 %v2649_v39, %v2648_v55  ;;  %v2729_v35 = vsel %vm2717_vm10, %v2711_v8, %v2723_v18  ;;  %v2731_v14 = vsel %vm2719_vm11, %v2713_v34, %v2725_v0 }
 0x1c7   : > { %v2675_v4 = vrot.slane %v2674_v33, 1 }
 0x1c8   : > { %v2652_v38 = vmul.f32 0.0625, %v2650_v9 }
 0x1c9   : > { %v2676_v45 = vadd.f32 %v2675_v4, %v2674_v33 }
 0x1ca   : > { %v2680_v46 = vmul.f32 %v2652_v38, %v2652_v38  ;;  %v2684_v19 = vsub.f32 %v6353_v49, %v2652_v38  ;;  %v2686_v48 = vsub.f32 %v6361_v3, %v2652_v38  ;;  %v2688_v50 = vsub.f32 %v2607_v11, %v2652_v38 }
 0x1cb   : > { %v2678_v41 = vmul.f32 0.0625, %v2676_v45  ;;  %v2727_v3 = vmul.f32 0.2, %v2715_v36 }
 0x1cd   : > { %v2682_v22 = vsub.f32 %v2678_v41, %v2680_v46  ;;  %v2733_v7 = vsel %vm2721_vm12, %v2715_v36, %v2727_v3 }
 0x1cf   : > { %v2690_v44 = vadd.f32 1e-05, %v2682_v22 }
 0x1d1   : > { %4333 = vrsqrt.f32 %v2690_v44  ;;  %vm2707_vm8 = vweird.f32 %v2690_v44 }
 0x1d7   : > { %v4334_v43 = vpop.eup %4333 }
 0x1d8   : > { %v2702_v54 = vmul.f32 %v4334_v43, %v2690_v44  ;;  %vm2708_vm7 = vweird.f32 %v4334_v43 }
 0x1d9   : > { %vm2709_vm9 = vmor %vm2707_vm8, %vm2708_vm7 }
 0x1da   : > { %v2703_v32 = vmul.f32 %v4334_v43, %v2702_v54 }
 0x1dc   : > { %v2704_v60 = vmul.f32 0.5, %v2703_v32 }
 0x1de   : > { %v2705_v57 = vsub.f32 1.5, %v2704_v60 }
 0x1e0   : > { %v2706_v42 = vmul.f32 %v4334_v43, %v2705_v57 }
 0x1e2   : > { %v2710_v12 = vsel %vm2709_vm9, %v4334_v43, %v2706_v42 }
 0x1e3   : > { %v2712_v49 = vmul.f32 %v2710_v12, %v2684_v19  ;;  %v2714_v21 = vmul.f32 %v2710_v12, %v2686_v48  ;;  %v2716_v17 = vmul.f32 %v2710_v12, %v2688_v50 }
 0x1e5   : > { %vm2718_vm13 = vcmp.gt.f32.partialorder %v2712_v49, 0.0  ;;  %vm2720_vm14 = vcmp.gt.f32.partialorder %v2714_v21, 0.0  ;;  %vm2722_vm15 = vcmp.gt.f32.partialorder %v2716_v17, 0.0  ;;  %v2724_v53 = vmul.f32 0.2, %v2712_v49 }
 0x1e6   : > { %v2726_v51 = vmul.f32 0.2, %v2714_v21  ;;  %v2728_v47 = vmul.f32 0.2, %v2716_v17 }
 0x1e7   : > { %v2730_v63 = vsel %vm2718_vm13, %v2712_v49, %v2724_v53 }
 0x1e8   : > { %v2732_v10 = vsel %vm2720_vm14, %v2714_v21, %v2726_v51  ;;  %v2734_v40 = vsel %vm2722_vm15, %v2716_v17, %v2728_v47  ;;  %v2735_v25 = vpack.c.bf16 %v2730_v63, %v2729_v35 }
 0x1e9   : > { %v2736_v58 = vpack.c.bf16 %v2732_v10, %v2731_v14  ;;  %v2737_v13 = vpack.c.bf16 %v2734_v40, %v2733_v7 }
 0x1ea   : > { %2738 = vst [vmem:[%s197_s6] sm:$0xff] %v2735_v25 }
 0x1eb   : > { %2739 = vst [vmem:[%s197_s6 + $0x8] sm:$0xff] %v2736_v58 }
 0x1ec   : > { %2740 = vst [vmem:[%s197_s6 + $0x10] sm:$0x33] %v2737_v13 }
 0x1ed PF: > { %s14_s15 = sadd.s32 1, %s4341_s15  }
 0x1ee   : > { %p11_p4 = scmp.ge.s32.totalorder %s14_s15, 4  }
 0x1f0   :  { %13 = sbr.rel (!%p11_p4) target bundleno = 1 (0x1), region = 69 }

// kernel: discriminator_forward.7
= control target key start
LH: loop header
LB: loop body
LE: loop exit
PB: predicated region body
PF: predicated region fallthrough
CT: control target
= control target key end

     0   :  { %s1011_s14 = smov 0   ;;  %s1770_s0 = inlined_call_operand.vmem [shape: bf16[2,42,256], index: 0, kind: input, shape index: {}]   ;;  %s1771_s1 = inlined_call_operand.vmem [shape: f32[16,256], index: 1, kind: input, shape index: {}]   ;;  %s1772_s2 = inlined_call_operand.<no memory space> [shape: f32[1,1], index: 2, kind: input, shape index: {}]   ;;  %s1773_s3 = inlined_call_operand.vmem [shape: f32[2,18,1], index: 3, kind: output, shape index: {}]  }
   0x1   :  { %v8_v0 = vstv %s1772_s2 }
   0x2   :  { %9 = vst [vmem:[#allocation2] sm:$0x1] %v8_v0 }
   0x3 LB: > { %s945_s15 = sadd.s32 4294967295, %s986_s14   ;;  %p949_p0 = scmp.ge.s32.totalorder %s986_s14, 1  ;;  %s986_s14 = sphi %s1011_s14, %s15_s14  }
   0x4   : > { %p139_p1 = scmp.lt.s32.totalorder %s986_s14, 3 }
   0x6   : > { %p140_p2 = pnand %p949_p0, %p139_p1 }
   0x8   : > { %143 = sbr.rel (%p140_p2) target bundleno = 260 (0x104), region = 32 }
   0xd   : > { %p163_p3 = scmp.lt.s32.totalorder %s945_s15, 1  ;;  %v182_v1 = vld [vmem:[%s1771_s1] ss:$8 sm:$0x3]  ;;  %vm222_vm0 = vcmask 1046528   ;;  %vm267_vm1 = vcmask 1045504  }
   0xe   : > { %v952_v2 = vld [vmem:[%s1771_s1 + $0x1] ss:$8 sm:$0x3]  ;;  %v1027_v3 = vperm.slane %v182_v1, 0  ;;  %v1032_v5 = vperm.slane %v182_v1, 1  ;;  %vm312_vm2 = vcmask 1044480  }
   0xf   : > { %s1937_s15 = smov (!%p163_p3, %s945_s15), 1  ;;  %v953_v4 = vld [vmem:[%s1771_s1 + $0x2] ss:$8 sm:$0x3]  ;;  %v1034_v6 = vperm.slane %v952_v2, 0  ;;  %v1036_v7 = vperm.slane %v952_v2, 1 }
  0x10   : > { %v954_v8 = vld [vmem:[%s1771_s1 + $0x3] ss:$8 sm:$0x3]  ;;  %s969_s23 = smul.u32 48, %s1937_s15  ;;  %v1042_v9 = vperm.slane %v953_v4, 0  ;;  %v1044_v10 = vperm.slane %v953_v4, 1 }
  0x11   : > { %v955_v11 = vld [vmem:[%s1771_s1 + $0x4] ss:$8 sm:$0x3]  ;;  %v1049_v12 = vperm.slane %v954_v8, 0  ;;  %v1051_v13 = vperm.slane %v954_v8, 1  ;;  %vm360_vm3 = vcmask 1041408  }
  0x12   : > { %v1053_v14 = vperm.slane %v955_v11, 0  ;;  %v956_v15 = vld [vmem:[%s1771_s1 + $0x5] ss:$8 sm:$0x3]  ;;  %s1061_s30 = scalar_lea.vmem %s1770_s0, %s969_s23  ;;  %v1063_v16 = vperm.slane %v955_v11, 1  ;;  %vm409_vm4 = vcmask 1040384  }
  0x13   : > { %v1065_v17 = vperm.slane %v956_v15, 0  ;;  %v1067_v18 = vperm.slane %v956_v15, 1  ;;  %v957_v19 = vld [vmem:[%s1771_s1 + $0x6] ss:$8 sm:$0x3]  ;;  %v336_v58 = vld [vmem:[%s1061_s30 + $0x10] sm:$0xff] }
  0x14   : > { %v173_v20 = vld [vmem:[%s1061_s30] sm:$0xff]  ;;  %v174_v21 = vld [vmem:[%s1061_s30 + $0x8] sm:$0xff]  ;;  %v1075_v23 = vperm.slane %v957_v19, 0  ;;  %v1077_v24 = vperm.slane %v957_v19, 1  ;;  %v1135_v11 = vunpack.c.l.bf16 %v336_v58  ;;  %v1137_v15 = vunpack.c.h.bf16 %v336_v58  ;;  %s970_s25 = smul.u32 24, %s1937_s15 }
  0x15   : > { %v245_v22 = vld [vmem:[%s1061_s30] sm:$0xee]  ;;  %v176_v25 = vunpack.c.l.bf16 %v173_v20  ;;  %v177_v26 = vunpack.c.h.bf16 %v173_v20  ;;  %v1079_v27 = vunpack.c.l.bf16 %v174_v21  ;;  %v1081_v28 = vunpack.c.h.bf16 %v174_v21 }
  0x16   : > { %v335_v29 = vld [vmem:[%s1061_s30] sm:$0x88]  ;;  %v246_v30 = vunpack.c.l.bf16 %v245_v22  ;;  %v247_v31 = vunpack.c.h.bf16 %v245_v22  ;;  %vm524_vm5 = vcmask 1043456   ;;  %vm569_vm6 = vcmask 1042432   ;;  %s172_s28 = scalar_lea.vmem %s1773_s3, %s970_s25 }
  0x17   : > { %v337_v32 = vunpack.c.l.bf16 %v335_v29  ;;  %v338_v33 = vunpack.c.h.bf16 %v335_v29  ;;  %v188_v34 = vmul.f32 %v1027_v3, %v176_v25  ;;  %v189_v35 = vmul.f32 %v1032_v5, %v177_v26 }
  0x18   : > { %v210_v36 = vmul.f32 %v1034_v6, %v176_v25  ;;  %v211_v37 = vmul.f32 %v1036_v7, %v177_v26  ;;  %v1090_v38 = vmul.f32 %v1034_v6, %v1079_v27  ;;  %v1094_v39 = vmul.f32 %v1036_v7, %v1081_v28 }
  0x19   : > { %v255_v40 = vmul.f32 %v1042_v9, %v246_v30  ;;  %v256_v41 = vmul.f32 %v1044_v10, %v247_v31  ;;  %v1100_v44 = vmul.f32 %v1042_v9, %v1079_v27  ;;  %v1104_v45 = vmul.f32 %v1044_v10, %v1081_v28 }
  0x1a   : > { %1842 = vst [vmem:[#allocation3_spill] sm:$0xff] %v1090_v38  ;;  %v223_v42 = vrot.slane %v210_v36, 1  ;;  %v226_v43 = vrot.slane %v211_v37, 1  ;;  %v1787_v46 = vrot.slane %v1090_v38, 1  ;;  %v1786_v47 = vrot.slane %v1094_v39, 1 }
  0x1b   : > { %1843 = vst [vmem:[#allocation4_spill] sm:$0xff] %v1094_v39  ;;  %v268_v48 = vrot.slane %v255_v40, 2  ;;  %v271_v49 = vrot.slane %v256_v41, 2  ;;  %v1785_v50 = vrot.slane %v1100_v44, 2  ;;  %v1780_v51 = vrot.slane %v1104_v45, 2 }
  0x1c   : > { %1844 = vst [vmem:[#allocation5_spill] sm:$0xff] %v1100_v44  ;;  %v300_v52 = vmul.f32 %v1049_v12, %v246_v30  ;;  %v301_v53 = vmul.f32 %v1051_v13, %v247_v31  ;;  %v225_v54 = vsel %vm222_vm0, %v223_v42, %v1787_v46  ;;  %v228_v55 = vsel %vm222_vm0, %v226_v43, %v1786_v47  ;;  %v958_v43 = vld [vmem:[%s1771_s1 + $0x7] ss:$8 sm:$0x3]  ;;  %v290_v38 = vld [vmem:[%s1061_s30 + $0x10] sm:$0x77] }
  0x1d   : > { %1845 = vst [vmem:[#allocation6_spill] sm:$0xff] %v1104_v45  ;;  %v1120_v56 = vmul.f32 %v1049_v12, %v1079_v27  ;;  %v1124_v57 = vmul.f32 %v1051_v13, %v1081_v28  ;;  %v239_v59 = vadd.f32 %v225_v54, %v188_v34  ;;  %v240_v60 = vadd.f32 %v228_v55, %v189_v35 }
  0x1e   : > { %v270_v61 = vsel %vm267_vm1, %v268_v48, %v1785_v50  ;;  %v273_v62 = vsel %vm267_vm1, %v271_v49, %v1780_v51  ;;  %v313_v63 = vrot.slane %v300_v52, 3  ;;  %v316_v1 = vrot.slane %v301_v53, 3  ;;  %v499_v52 = vld [vmem:[%s1061_s30 + $0x8] sm:$0xcc] }
  0x1f   : > { %1846 = vst [vmem:[#allocation7_spill] sm:$0xff] %v1120_v56  ;;  %v1779_v0 = vrot.slane %v1120_v56, 3  ;;  %v1778_v2 = vrot.slane %v1124_v57, 3  ;;  %v284_v4 = vadd.f32 %v270_v61, %v239_v59  ;;  %v285_v8 = vadd.f32 %v273_v62, %v240_v60 }
  0x20   : > { %1847 = vst [vmem:[#allocation8_spill] sm:$0xff] %v1124_v57  ;;  %v348_v21 = vmul.f32 %v1053_v14, %v337_v32  ;;  %v349_v22 = vmul.f32 %v1063_v16, %v338_v33  ;;  %v1149_v29 = vmul.f32 %v1053_v14, %v1079_v27  ;;  %v1153_v30 = vmul.f32 %v1063_v16, %v1081_v28 }
  0x21   : > { %v315_v19 = vsel %vm312_vm2, %v313_v63, %v1779_v0  ;;  %v318_v20 = vsel %vm312_vm2, %v316_v1, %v1778_v2  ;;  %v393_v35 = vmul.f32 %v1065_v17, %v337_v32  ;;  %v394_v36 = vmul.f32 %v1067_v18, %v338_v33  ;;  %v959_v63 = vld [vmem:[%s1771_s1 + $0x10] ss:$8 sm:$0x3] }
  0x22   : > { %v329_v25 = vadd.f32 %v315_v19, %v284_v4  ;;  %v330_v26 = vadd.f32 %v318_v20, %v285_v8  ;;  %1848 = vst [vmem:[#allocation9_spill] sm:$0xff] %v1149_v29  ;;  %v361_v31 = vrot.slane %v348_v21, 6  ;;  %v364_v34 = vrot.slane %v349_v22, 6 }
  0x23   : > { %1849 = vst [vmem:[#allocation10_spill] sm:$0xff] %v1153_v30  ;;  %v1777_v37 = vrot.slane %v1149_v29, 6  ;;  %v1776_v40 = vrot.slane %v1153_v30, 6  ;;  %v1161_v41 = vmul.f32 %v1065_v17, %v1079_v27  ;;  %v1165_v42 = vmul.f32 %v1067_v18, %v1081_v28 }
  0x24   : > { %v410_v48 = vrot.slane %v393_v35, 7  ;;  %v413_v32 = vrot.slane %v394_v36, 7  ;;  %v443_v33 = vmul.f32 %v1075_v23, %v1079_v27  ;;  %v444_v49 = vmul.f32 %v1077_v24, %v1081_v28  ;;  %v547_v36 = vld [vmem:[%s1061_s30 + $0x18] sm:$0xff] }
  0x25   : > { %1850 = vst [vmem:[#allocation11_spill] sm:$0xff] %v1161_v41  ;;  %v363_v53 = vsel %vm360_vm3, %v361_v31, %v1777_v37  ;;  %v366_v54 = vsel %vm360_vm3, %v364_v34, %v1776_v40  ;;  %v1775_v55 = vrot.slane %v1161_v41, 7  ;;  %v1774_v58 = vrot.slane %v1165_v42, 7 }
  0x26   : > { %1851 = vst [vmem:[#allocation12_spill] sm:$0xff] %v1165_v42  ;;  %v377_v59 = vadd.f32 %v363_v53, %v329_v25  ;;  %v378_v60 = vadd.f32 %v366_v54, %v330_v26  ;;  %v1183_v61 = vperm.slane %v958_v43, 0  ;;  %v1185_v62 = vperm.slane %v958_v43, 1 }
  0x27   : > { %v412_v1 = vsel %vm409_vm4, %v410_v48, %v1775_v55  ;;  %v415_v4 = vsel %vm409_vm4, %v413_v32, %v1774_v58  ;;  %v501_v8 = vunpack.c.l.bf16 %v499_v52  ;;  %v502_v19 = vunpack.c.h.bf16 %v499_v52 }
  0x28   : > { %v430_v20 = vadd.f32 %v412_v1, %v377_v59  ;;  %v431_v21 = vadd.f32 %v415_v4, %v378_v60  ;;  %v465_v22 = vmul.f32 %v1183_v61, %v1079_v27  ;;  %v466_v25 = vmul.f32 %v1185_v62, %v1081_v28  ;;  %v960_v4 = vld [vmem:[%s1771_s1 + $0x11] ss:$8 sm:$0x3] }
  0x29   : > { %v1202_v26 = vmul.f32 %v1183_v61, %v1135_v11  ;;  %v1206_v31 = vmul.f32 %v1185_v62, %v1137_v15  ;;  %v1208_v34 = vperm.slane %v959_v63, 0  ;;  %v1210_v35 = vperm.slane %v959_v63, 1 }
  0x2a   : > { %v449_v43 = vadd.f32 %v443_v33, %v430_v20  ;;  %v450_v48 = vadd.f32 %v444_v49, %v431_v21  ;;  %v477_v32 = vrot.slane %v465_v22, 1  ;;  %v480_v52 = vrot.slane %v466_v25, 1  ;;  %v592_v20 = vld [vmem:[%s1061_s30 + $0x8] sm:$0x88] }
  0x2b   : > { %1852 = vst [vmem:[#allocation13_spill] sm:$0xff] %v1202_v26  ;;  %v1784_v53 = vrot.slane %v1202_v26, 1  ;;  %v1781_v54 = vrot.slane %v1206_v31, 1  ;;  %v512_v59 = vmul.f32 %v1208_v34, %v501_v8  ;;  %v513_v60 = vmul.f32 %v1210_v35, %v502_v19 }
  0x2c   : > { %1853 = vst [vmem:[#allocation14_spill] sm:$0xff] %v1206_v31  ;;  %v1219_v1 = vmul.f32 %v1208_v34, %v1135_v11  ;;  %v1223_v63 = vmul.f32 %v1210_v35, %v1137_v15  ;;  %v1225_v33 = vunpack.c.l.bf16 %v547_v36  ;;  %v1227_v49 = vunpack.c.h.bf16 %v547_v36  ;;  %v961_v36 = vld [vmem:[%s1771_s1 + $0x12] ss:$8 sm:$0x3] }
  0x2d   : > { %v479_v21 = vsel %vm222_vm0, %v477_v32, %v1784_v53  ;;  %v482_v22 = vsel %vm222_vm0, %v480_v52, %v1781_v54  ;;  %v525_v25 = vrot.slane %v512_v59, 4  ;;  %v528_v58 = vrot.slane %v513_v60, 4  ;;  %v962_v60 = vld [vmem:[%s1771_s1 + $0x13] ss:$8 sm:$0x3] }
  0x2e   : > { %1854 = vst [vmem:[#allocation15_spill] sm:$0xff] %v1219_v1  ;;  %v493_v55 = vadd.f32 %v479_v21, %v449_v43  ;;  %v494_v40 = vadd.f32 %v482_v22, %v450_v48  ;;  %v1783_v37 = vrot.slane %v1219_v1, 4  ;;  %v1782_v2 = vrot.slane %v1223_v63, 4  ;;  %v688_v31 = vld [vmem:[%s1061_s30 + $0x10] sm:$0xee] }
  0x2f   : > { %1855 = vst [vmem:[#allocation16_spill] sm:$0xff] %v1223_v63  ;;  %v1244_v0 = vperm.slane %v960_v4, 0  ;;  %v1246_v51 = vperm.slane %v960_v4, 1  ;;  %v593_v32 = vunpack.c.l.bf16 %v592_v20  ;;  %v594_v43 = vunpack.c.h.bf16 %v592_v20 }
  0x30   : > { %v527_v52 = vsel %vm524_vm5, %v525_v25, %v1783_v37  ;;  %v530_v59 = vsel %vm524_vm5, %v528_v58, %v1782_v2  ;;  %v1254_v48 = vperm.slane %v961_v36, 0  ;;  %v1269_v20 = vperm.slane %v961_v36, 1 }
  0x31   : > { %v541_v21 = vadd.f32 %v527_v52, %v493_v55  ;;  %v542_v4 = vadd.f32 %v530_v59, %v494_v40  ;;  %v557_v22 = vmul.f32 %v1244_v0, %v501_v8  ;;  %v558_v54 = vmul.f32 %v1246_v51, %v502_v19 }
  0x32   : > { %v1263_v25 = vmul.f32 %v1244_v0, %v1135_v11  ;;  %v1267_v58 = vmul.f32 %v1246_v51, %v1137_v15  ;;  %v602_v2 = vmul.f32 %v1254_v48, %v593_v32  ;;  %v1274_v40 = vmul.f32 %v1254_v48, %v1135_v11 }
  0x33   : > { %v570_v37 = vrot.slane %v557_v22, 5  ;;  %v573_v55 = vrot.slane %v558_v54, 5  ;;  %v1276_v8 = vperm.slane %v962_v60, 0  ;;  %v603_v59 = vmul.f32 %v1269_v20, %v594_v43 }
  0x34   : > { %1856 = vst [vmem:[#allocation17_spill] sm:$0xff] %v1263_v25  ;;  %v1795_v19 = vrot.slane %v1263_v25, 5  ;;  %v1793_v52 = vrot.slane %v1267_v58, 5  ;;  %v1283_v36 = vmul.f32 %v1269_v20, %v1137_v15  ;;  %v614_v53 = vrot.slane %v602_v2, 6 }
  0x35   : > { %1857 = vst [vmem:[#allocation18_spill] sm:$0xff] %v1267_v58  ;;  %v1792_v22 = vrot.slane %v1274_v40, 6  ;;  %v1286_v54 = vperm.slane %v962_v60, 1  ;;  %v646_v50 = vmul.f32 %v1276_v8, %v593_v32  ;;  %v617_v63 = vrot.slane %v603_v59, 6 }
  0x36   : > { %1858 = vst [vmem:[#allocation19_spill] sm:$0xff] %v1274_v40  ;;  %v572_v47 = vsel %vm569_vm6, %v570_v37, %v1795_v19  ;;  %v575_v46 = vsel %vm569_vm6, %v573_v55, %v1793_v52  ;;  %v1794_v1 = vrot.slane %v1283_v36, 6  ;;  %v963_v37 = vld [vmem:[%s1771_s1 + $0x14] ss:$8 sm:$0x3]  ;;  %v1309_v59 = vmul.f32 %v1276_v8, %v1135_v11 }
  0x37   : > { %1859 = vst [vmem:[#allocation20_spill] sm:$0xff] %v1283_v36  ;;  %v586_v2 = vadd.f32 %v572_v47, %v541_v21  ;;  %v587_v26 = vadd.f32 %v575_v46, %v542_v4  ;;  %v616_v60 = vsel %vm360_vm3, %v614_v53, %v1792_v22  ;;  %v647_v32 = vmul.f32 %v1286_v54, %v594_v43  ;;  %v964_v53 = vld [vmem:[%s1771_s1 + $0x15] ss:$8 sm:$0x3]  ;;  %v779_v43 = vld [vmem:[%s1061_s30 + $0x10] sm:$0xcc] }
  0x38   : > { %v619_v55 = vsel %vm360_vm3, %v617_v63, %v1794_v1  ;;  %1860 = vst [vmem:[#allocation21_spill] sm:$0xff] %v1309_v59  ;;  %v1313_v46 = vmul.f32 %v1286_v54, %v1137_v15  ;;  %v662_v47 = vrot.slane %v646_v50, 7  ;;  %v690_v52 = vunpack.c.l.bf16 %v688_v31 }
  0x39   : > { %v630_v21 = vadd.f32 %v616_v60, %v586_v2  ;;  %v631_v4 = vadd.f32 %v619_v55, %v587_v26  ;;  %v665_v22 = vrot.slane %v647_v32, 7  ;;  %v1800_v63 = vrot.slane %v1309_v59, 7 }
  0x3a   : > { %1861 = vst [vmem:[#allocation22_spill] sm:$0xff] %v1313_v46  ;;  %v1801_v1 = vrot.slane %v1313_v46, 7  ;;  %v691_v19 = vunpack.c.h.bf16 %v688_v31  ;;  %v1321_v36 = vperm.slane %v963_v37, 0  ;;  %v1323_v40 = vperm.slane %v963_v37, 1 }
  0x3b   : > { %v1325_v58 = vperm.slane %v964_v53, 0  ;;  %v1327_v50 = vperm.slane %v964_v53, 1  ;;  %v780_v25 = vunpack.c.l.bf16 %v779_v43  ;;  %v664_v26 = vsel %vm409_vm4, %v662_v47, %v1800_v63  ;;  %v965_v46 = vld [vmem:[%s1771_s1 + $0x16] ss:$8 sm:$0x3] }
  0x3c   : > { %v667_v2 = vsel %vm409_vm4, %v665_v22, %v1801_v1  ;;  %v701_v60 = vmul.f32 %v1321_v36, %v690_v52  ;;  %v1338_v31 = vmul.f32 %v1321_v36, %v1225_v33  ;;  %v682_v32 = vadd.f32 %v664_v26, %v630_v21 }
  0x3d   : > { %v683_v37 = vadd.f32 %v667_v2, %v631_v4  ;;  %v702_v55 = vmul.f32 %v1323_v40, %v691_v19  ;;  %v1343_v53 = vmul.f32 %v1323_v40, %v1227_v49  ;;  %v745_v22 = vmul.f32 %v1325_v58, %v690_v52  ;;  %v966_v52 = vld [vmem:[%s1771_s1 + $0x17] ss:$8 sm:$0x3]  ;;  %v175_v4 = vld [vmem:[%s1061_s30 + $0x10] sm:$0x11] }
  0x3e   : > { %1862 = vst [vmem:[#allocation23_spill] sm:$0xff] %v1338_v31  ;;  %v713_v47 = vrot.slane %v701_v60, 2  ;;  %v1815_v63 = vrot.slane %v1338_v31, 2  ;;  %v746_v1 = vmul.f32 %v1327_v50, %v691_v19  ;;  %v1354_v26 = vmul.f32 %v1325_v58, %v1225_v33 }
  0x3f   : > { %1863 = vst [vmem:[#allocation24_spill] sm:$0xff] %v1343_v53  ;;  %v716_v21 = vrot.slane %v702_v55, 2  ;;  %v1358_v2 = vmul.f32 %v1327_v50, %v1227_v49  ;;  %v757_v60 = vrot.slane %v745_v22, 3  ;;  %v781_v59 = vunpack.c.h.bf16 %v779_v43 }
  0x40   : > { %1864 = vst [vmem:[#allocation25_spill] sm:$0xff] %v1354_v26  ;;  %v715_v19 = vsel %vm267_vm1, %v713_v47, %v1815_v63  ;;  %v760_v55 = vrot.slane %v746_v1, 3  ;;  %v1866_v42 = vrot.slane %v1343_v53, 2  ;;  %v1814_v29 = vrot.slane %v1354_v26, 3 }
  0x41   : > { %1865 = vst [vmem:[#allocation26_spill] sm:$0xff] %v1358_v2  ;;  %v729_v30 = vadd.f32 %v715_v19, %v682_v32  ;;  %v1813_v57 = vrot.slane %v1358_v2, 3  ;;  %v1372_v45 = vperm.slane %v965_v46, 0  ;;  %v1374_v44 = vperm.slane %v965_v46, 1 }
  0x42   : > { %v718_v41 = vsel %vm267_vm1, %v716_v21, %v1866_v42  ;;  %v1376_v31 = vperm.slane %v966_v52, 0  ;;  %v759_v1 = vsel %vm312_vm2, %v757_v60, %v1814_v29  ;;  %v1384_v43 = vperm.slane %v966_v52, 1 }
  0x43   : > { %v730_v56 = vadd.f32 %v718_v41, %v683_v37  ;;  %v762_v42 = vsel %vm312_vm2, %v760_v55, %v1813_v57  ;;  %v180_v32 = vunpack.c.l.bf16 %v175_v4  ;;  %v773_v47 = vadd.f32 %v759_v1, %v729_v30  ;;  %v200_v1 = vld [vmem:[%s1061_s30 + $0x10] sm:$0x33] }
  0x44   : > { %v789_v37 = vmul.f32 %v1372_v45, %v780_v25  ;;  %v790_v46 = vmul.f32 %v1374_v44, %v781_v59  ;;  %v1390_v22 = vmul.f32 %v1372_v45, %v1225_v33  ;;  %v1394_v21 = vmul.f32 %v1374_v44, %v1227_v49 }
  0x45   : > { %v774_v41 = vadd.f32 %v762_v42, %v730_v56  ;;  %v833_v19 = vmul.f32 %v1376_v31, %v780_v25  ;;  %v834_v52 = vmul.f32 %v1384_v43, %v781_v59  ;;  %v1400_v56 = vmul.f32 %v1376_v31, %v1225_v33 }
  0x46   : > { %v801_v60 = vrot.slane %v789_v37, 4  ;;  %v804_v55 = vrot.slane %v790_v46, 4  ;;  %v1404_v30 = vmul.f32 %v1384_v43, %v1227_v49  ;;  %v1821_v42 = vrot.slane %v1390_v22, 4 }
  0x47   : > { %v1824_v57 = vrot.slane %v1394_v21, 4  ;;  %v845_v29 = vrot.slane %v833_v19, 5  ;;  %v848_v25 = vrot.slane %v834_v52, 5  ;;  %v1823_v59 = vrot.slane %v1400_v56, 5 }
  0x48   : > { %v1822_v37 = vrot.slane %v1404_v30, 5  ;;  %v181_v46 = vunpack.c.h.bf16 %v175_v4  ;;  %v192_v63 = vmul.f32 %v1027_v3, %v180_v32  ;;  %v803_v2 = vsel %vm524_vm5, %v801_v60, %v1821_v42 }
  0x49   : > { %v806_v26 = vsel %vm524_vm5, %v804_v55, %v1824_v57  ;;  %v201_v53 = vunpack.c.l.bf16 %v200_v1  ;;  %v202_v39 = vunpack.c.h.bf16 %v200_v1  ;;  %v817_v19 = vadd.f32 %v803_v2, %v773_v47  ;;  %v500_v57 = vld [vmem:[%s1061_s30 + $0x18] sm:$0x77] }
  0x4a   : > { %v818_v52 = vadd.f32 %v806_v26, %v774_v41  ;;  %v847_v4 = vsel %vm569_vm6, %v845_v29, %v1823_v59  ;;  %v850_v32 = vsel %vm569_vm6, %v848_v25, %v1822_v37  ;;  %v193_v60 = vmul.f32 %v1032_v5, %v181_v46  ;;  %v383_v37 = vld [vmem:[%s1061_s30 + $0x18] sm:$0x11] }
  0x4b   : > { %v1427_v42 = vmul.f32 %v1034_v6, %v201_v53  ;;  %v1430_v55 = vmul.f32 %v1036_v7, %v202_v39  ;;  %v1433_v2 = vmul.f32 %v1042_v9, %v201_v53  ;;  %v861_v26 = vadd.f32 %v847_v4, %v817_v19 }
  0x4c   : > { %v862_v47 = vadd.f32 %v850_v32, %v818_v52  ;;  %v1436_v41 = vmul.f32 %v1044_v10, %v202_v39  ;;  %v291_v29 = vunpack.c.l.bf16 %v290_v38  ;;  %v292_v6 = vunpack.c.h.bf16 %v290_v38 }
  0x4d   : > { %v1829_v1 = vrot.slane %v1427_v42, 1  ;;  %v1827_v25 = vrot.slane %v1430_v55, 1  ;;  %v1826_v46 = vrot.slane %v1433_v2, 2  ;;  %v1448_v53 = vmul.f32 %v1053_v14, %v1135_v11 }
  0x4e   : > { %v867_v59 = vadd.f32 %v862_v47, %v861_v26  ;;  %v1825_v7 = vrot.slane %v1436_v41, 2  ;;  %v1444_v9 = vmul.f32 %v1049_v12, %v291_v29  ;;  %v1455_v38 = vmul.f32 %v1051_v13, %v292_v6  ;;  %v455_v47 = vld [vmem:[%s1061_s30 + $0x18] sm:$0x33] }
  0x4f   : > { %v243_v10 = vadd.f32 %v1829_v1, %v192_v63  ;;  %v244_v39 = vadd.f32 %v1827_v25, %v193_v60  ;;  %v1459_v19 = vmul.f32 %v1063_v16, %v1137_v15  ;;  %v1838_v14 = vrot.slane %v1448_v53, 6 }
  0x50   : > { %868 = vadd.xlane.f32.xlu0 %v867_v59  ;;  %v1828_v12 = vrot.slane %v1444_v9, 3  ;;  %v384_v52 = vunpack.c.l.bf16 %v383_v37  ;;  %v385_v4 = vunpack.c.h.bf16 %v383_v37  ;;  %v1830_v13 = vrot.slane %v1455_v38, 3 }
  0x51   : > { %v288_v63 = vadd.f32 %v1826_v46, %v243_v10  ;;  %v289_v32 = vadd.f32 %v1825_v7, %v244_v39  ;;  %v1837_v60 = vrot.slane %v1459_v19, 6  ;;  %v1471_v16 = vmul.f32 %v1065_v17, %v1135_v11 }
  0x52   : > { %v1475_v59 = vmul.f32 %v1067_v18, %v1137_v15  ;;  %v399_v37 = vmul.f32 %v1065_v17, %v384_v52  ;;  %v400_v26 = vmul.f32 %v1067_v18, %v385_v4  ;;  %v447_v10 = vmul.f32 %v1075_v23, %v384_v52 }
  0x53   : > { %v333_v29 = vadd.f32 %v1828_v12, %v288_v63  ;;  %v334_v6 = vadd.f32 %v1830_v13, %v289_v32  ;;  %v448_v39 = vmul.f32 %v1077_v24, %v385_v4  ;;  %v1831_v7 = vrot.slane %v1471_v16, 7 }
  0x54   : > { %v1836_v46 = vrot.slane %v1475_v59, 7  ;;  %v420_v25 = vrot.slane %v399_v37, 7  ;;  %v422_v17 = vrot.slane %v400_v26, 7  ;;  %v456_v12 = vunpack.c.l.bf16 %v455_v47 }
  0x55   : > { %v381_v18 = vadd.f32 %v1838_v14, %v333_v29  ;;  %v382_v63 = vadd.f32 %v1837_v60, %v334_v6  ;;  %v457_v1 = vunpack.c.h.bf16 %v455_v47  ;;  %v503_v32 = vunpack.c.l.bf16 %v500_v57 }
  0x56   : > { %v421_v52 = vsel %vm409_vm4, %v1831_v7, %v420_v25  ;;  %v423_v4 = vsel %vm409_vm4, %v1836_v46, %v422_v17  ;;  %v504_v37 = vunpack.c.h.bf16 %v500_v57  ;;  %v1500_v29 = vmul.f32 %v1183_v61, %v456_v12 }
  0x57   : > { %v434_v26 = vadd.f32 %v421_v52, %v381_v18  ;;  %v435_v13 = vadd.f32 %v423_v4, %v382_v63  ;;  %v1503_v6 = vmul.f32 %v1185_v62, %v457_v1  ;;  %v1506_v47 = vmul.f32 %v1208_v34, %v503_v32  ;;  %v636_v34 = vld [vmem:[%s1061_s30 + $0x20] sm:$0x11] }
  0x58   : > { %v1509_v25 = vmul.f32 %v1210_v35, %v504_v37  ;;  %v1513_v7 = vmul.f32 %v1244_v0, %v1225_v33  ;;  %v1517_v57 = vmul.f32 %v1246_v51, %v1227_v49  ;;  %v1833_v62 = vrot.slane %v1500_v29, 1  ;;  %v689_v37 = vld [vmem:[%s1061_s30 + $0x20] sm:$0x33] }
  0x59   : > { %v453_v17 = vadd.f32 %v447_v10, %v434_v26  ;;  %v454_v61 = vadd.f32 %v448_v39, %v435_v13  ;;  %v1832_v1 = vrot.slane %v1503_v6, 1  ;;  %v1835_v12 = vrot.slane %v1506_v47, 4 }
  0x5a   : > { %v1834_v35 = vrot.slane %v1509_v25, 4  ;;  %v576_v0 = vrot.slane %v1513_v7, 5  ;;  %v578_v18 = vrot.slane %v1517_v57, 5  ;;  %v1532_v10 = vmul.f32 %v1254_v48, %v1225_v33  ;;  %v1915_v7 = vld [vmem:[#allocation20_spill] sm:$0xff] }
  0x5b   : > { %v497_v51 = vadd.f32 %v1833_v62, %v453_v17  ;;  %v498_v13 = vadd.f32 %v1832_v1, %v454_v61  ;;  %v1536_v39 = vmul.f32 %v1269_v20, %v1227_v49  ;;  %v637_v63 = vunpack.c.l.bf16 %v636_v34  ;;  %v735_v61 = vld [vmem:[%s1061_s30 + $0x20] sm:$0x77] }
  0x5c   : > { %v638_v52 = vunpack.c.h.bf16 %v636_v34  ;;  %v1540_v4 = vmul.f32 %v1276_v8, %v1225_v33  ;;  %v1544_v32 = vmul.f32 %v1286_v54, %v1227_v49  ;;  %v620_v20 = vrot.slane %v1532_v10, 6  ;;  %v1919_v10 = vld [vmem:[#allocation22_spill] sm:$0xff] }
  0x5d   : > { %v545_v26 = vadd.f32 %v1835_v12, %v497_v51  ;;  %v546_v48 = vadd.f32 %v1834_v35, %v498_v13  ;;  %v622_v17 = vrot.slane %v1536_v39, 6  ;;  %v652_v34 = vmul.f32 %v1276_v8, %v637_v63 }
  0x5e   : > { %v653_v33 = vmul.f32 %v1286_v54, %v638_v52  ;;  %v668_v1 = vrot.slane %v1540_v4, 7  ;;  %v670_v49 = vrot.slane %v1544_v32, 7  ;;  %v692_v13 = vunpack.c.l.bf16 %v689_v37 }
  0x5f   : > { %v590_v62 = vadd.f32 %v576_v0, %v545_v26  ;;  %v591_v51 = vadd.f32 %v578_v18, %v546_v48  ;;  %v693_v35 = vunpack.c.h.bf16 %v689_v37  ;;  %v672_v12 = vrot.slane %v652_v34, 7 }
  0x60   : > { %v674_v46 = vrot.slane %v653_v33, 7  ;;  %v736_v60 = vunpack.c.l.bf16 %v735_v61  ;;  %v737_v14 = vunpack.c.h.bf16 %v735_v61  ;;  %v1567_v63 = vmul.f32 %v1321_v36, %v692_v13  ;;  %v823_v61 = vld [vmem:[%s1061_s30 + $0x20] sm:$0xff] }
  0x61   : > { %v634_v8 = vadd.f32 %v620_v20, %v590_v62  ;;  %v635_v54 = vadd.f32 %v622_v17, %v591_v51  ;;  %v1570_v52 = vmul.f32 %v1323_v40, %v693_v35  ;;  %v673_v37 = vsel %vm409_vm4, %v668_v1, %v672_v12 }
  0x62   : > { %v675_v26 = vsel %vm409_vm4, %v670_v49, %v674_v46  ;;  %v1579_v48 = vmul.f32 %v1325_v58, %v736_v60  ;;  %v1582_v62 = vmul.f32 %v1327_v50, %v737_v14  ;;  %v719_v40 = vrot.slane %v1567_v63, 2 }
  0x63   : > { %v686_v36 = vadd.f32 %v673_v37, %v634_v8  ;;  %v687_v34 = vadd.f32 %v675_v26, %v635_v54  ;;  %v1839_v35 = vrot.slane %v1570_v52, 2  ;;  %v1590_v51 = vmul.f32 %v1372_v45, %v736_v60 }
  0x64   : > { %v763_v33 = vrot.slane %v1579_v48, 3  ;;  %v1840_v12 = vrot.slane %v1582_v62, 3  ;;  %v1593_v58 = vmul.f32 %v1374_v44, %v737_v14  ;;  %v824_v13 = vunpack.c.l.bf16 %v823_v61 }
  0x65   : > { %v733_v50 = vadd.f32 %v719_v40, %v686_v36  ;;  %v734_v46 = vadd.f32 %v1839_v35, %v687_v34  ;;  %v825_v8 = vunpack.c.h.bf16 %v823_v61  ;;  %v807_v54 = vrot.slane %v1590_v51, 4  ;;  %v1868_v34 = vld [vmem:[#allocation3_spill] sm:$0xff] }
  0x66   : > { %v1841_v37 = vrot.slane %v1593_v58, 4  ;;  %v190_v26 = vmul.f32 %v1027_v3, %v1079_v27  ;;  %v191_v45 = vmul.f32 %v1032_v5, %v1081_v28  ;;  %v1610_v60 = vmul.f32 %v1376_v31, %v824_v13  ;;  %v1871_v27 = vld [vmem:[#allocation4_spill] sm:$0xff] }
  0x67   : > { %v777_v44 = vadd.f32 %v763_v33, %v733_v50  ;;  %v778_v14 = vadd.f32 %v1840_v12, %v734_v46  ;;  %v1613_v61 = vmul.f32 %v1384_v43, %v825_v8  ;;  %v1867_v36 = vrot.slane %v1427_v42, 1  ;;  %v1874_v12 = vld [vmem:[#allocation5_spill] sm:$0xff]  ;;  %v1877_v8 = vld [vmem:[#allocation6_spill] sm:$0xff] }
  0x68   : > { %v1869_v35 = vrot.slane %v1868_v34, 1  ;;  %v1870_v5 = vrot.slane %v1430_v55, 1  ;;  %v1872_v28 = vrot.slane %v1871_v27, 1  ;;  %v1873_v46 = vrot.slane %v1433_v2, 2 }
  0x69   : > { %v1875_v31 = vrot.slane %v1874_v12, 2  ;;  %v1876_v43 = vrot.slane %v1436_v41, 2  ;;  %v1878_v42 = vrot.slane %v1877_v8, 2  ;;  %v822_v55 = vadd.f32 %v1841_v37, %v778_v14 }
  0x6a   : > { %v230_v3 = vsel %vm222_vm0, %v1869_v35, %v1867_v36  ;;  %v232_v50 = vsel %vm222_vm0, %v1872_v28, %v1870_v5  ;;  %v821_v35 = vadd.f32 %v807_v54, %v777_v44  ;;  %v851_v36 = vrot.slane %v1610_v60, 5  ;;  %v1883_v44 = vld [vmem:[#allocation8_spill] sm:$0xff] }
  0x6b   : > { %v275_v13 = vsel %vm267_vm1, %v1875_v31, %v1873_v46  ;;  %v277_v34 = vsel %vm267_vm1, %v1878_v42, %v1876_v43  ;;  %v853_v2 = vrot.slane %v1613_v61, 5  ;;  %v241_v5 = vadd.f32 %v230_v3, %v190_v26  ;;  %v1880_v46 = vld [vmem:[#allocation7_spill] sm:$0xff]  ;;  %v1886_v3 = vld [vmem:[#allocation9_spill] sm:$0xff] }
  0x6c   : > { %v242_v12 = vadd.f32 %v232_v50, %v191_v45  ;;  %v865_v27 = vadd.f32 %v851_v36, %v821_v35  ;;  %v1879_v41 = vrot.slane %v1444_v9, 3  ;;  %v1881_v31 = vrot.slane %v1880_v46, 3 }
  0x6d   : > { %v866_v28 = vadd.f32 %v853_v2, %v822_v55  ;;  %v1882_v8 = vrot.slane %v1455_v38, 3  ;;  %v1884_v42 = vrot.slane %v1883_v44, 3  ;;  %v286_v37 = vadd.f32 %v275_v13, %v241_v5  ;;  %v1889_v55 = vld [vmem:[#allocation10_spill] sm:$0xff]  ;;  %v1892_v5 = vld [vmem:[#allocation11_spill] sm:$0xff] }
  0x6e   : > { %v320_v43 = vsel %vm312_vm2, %v1881_v31, %v1879_v41  ;;  %v287_v60 = vadd.f32 %v277_v34, %v242_v12  ;;  %v873_v61 = vsel %vm360_vm3, %v865_v27, 0.0  ;;  %v1885_v45 = vrot.slane %v1448_v53, 6 }
  0x6f   : > { %v322_v14 = vsel %vm312_vm2, %v1884_v42, %v1882_v8  ;;  %v874_v26 = vsel %vm360_vm3, %v866_v28, 0.0  ;;  %v1887_v9 = vrot.slane %v1886_v3, 6  ;;  %v1888_v35 = vrot.slane %v1459_v19, 6  ;;  %v1895_v28 = vld [vmem:[#allocation12_spill] sm:$0xff]  ;;  %v1901_v3 = vld [vmem:[#allocation14_spill] sm:$0xff] }
  0x70   : > { %v1890_v38 = vrot.slane %v1889_v55, 6  ;;  %v875_v46 = vadd.f32 %v874_v26, %v873_v61  ;;  %v331_v31 = vadd.f32 %v320_v43, %v286_v37  ;;  %v332_v13 = vadd.f32 %v322_v14, %v287_v60  ;;  %v1898_v60 = vld [vmem:[#allocation13_spill] sm:$0xff] }
  0x71   : > { %v368_v50 = vsel %vm360_vm3, %v1887_v9, %v1885_v45  ;;  %v1891_v34 = vrot.slane %v1471_v16, 7  ;;  %v1893_v12 = vrot.slane %v1892_v5, 7  ;;  %v1894_v53 = vrot.slane %v1475_v59, 7 }
  0x72   : > { %v370_v41 = vsel %vm360_vm3, %v1890_v38, %v1888_v35  ;;  %v1896_v8 = vrot.slane %v1895_v28, 7  ;;  %876 = vadd.xlane.f32.xlu1 %v875_v46  ;;  %v379_v19 = vadd.f32 %v368_v50, %v331_v31  ;;  %v445_v61 = vmul.f32 %v1075_v23, %v1135_v11  ;;  %v1904_v11 = vld [vmem:[#allocation15_spill] sm:$0xff]  ;;  %v1907_v38 = vld [vmem:[#allocation16_spill] sm:$0xff] }
  0x73   : > { %v417_v27 = vsel %vm409_vm4, %v1893_v12, %v1891_v34  ;;  %v380_v42 = vadd.f32 %v370_v41, %v332_v13  ;;  %v446_v37 = vmul.f32 %v1077_v24, %v1137_v15  ;;  %v1897_v14 = vrot.slane %v1500_v29, 1  ;;  %v1909_v13 = vld [vmem:[#allocation17_spill] sm:$0xff]  ;;  %v1913_v28 = vld [vmem:[#allocation19_spill] sm:$0xff] }
  0x74   : > { %v419_v44 = vsel %vm409_vm4, %v1896_v8, %v1894_v53  ;;  %v432_v16 = vadd.f32 %v417_v27, %v379_v19  ;;  %v1899_v26 = vrot.slane %v1898_v60, 1  ;;  %v1900_v45 = vrot.slane %v1503_v6, 1 }
  0x75   : > { %v433_v43 = vadd.f32 %v419_v44, %v380_v42  ;;  %v1902_v9 = vrot.slane %v1901_v3, 1  ;;  %v1903_v23 = vrot.slane %v1506_v47, 4  ;;  %v1905_v24 = vrot.slane %v1904_v11, 4  ;;  %v1911_v47 = vld [vmem:[#allocation18_spill] sm:$0xff]  ;;  %v1926_v3 = vld [vmem:[#allocation25_spill] sm:$0xff] }
  0x76   : > { %v484_v59 = vsel %vm222_vm0, %v1899_v26, %v1897_v14  ;;  %v451_v35 = vadd.f32 %v445_v61, %v432_v16  ;;  %v1906_v29 = vrot.slane %v1509_v25, 4  ;;  %v1908_v41 = vrot.slane %v1907_v38, 4  ;;  %v1917_v61 = vld [vmem:[#allocation21_spill] sm:$0xff]  ;;  %v1921_v14 = vld [vmem:[#allocation23_spill] sm:$0xff]  ;;  %v1924_v26 = vld [vmem:[#allocation24_spill] sm:$0xff] }
  0x77   : > { %v486_v50 = vsel %vm222_vm0, %v1902_v9, %v1900_v45  ;;  %v452_v55 = vadd.f32 %v446_v37, %v433_v43  ;;  %v532_v15 = vsel %vm524_vm5, %v1905_v24, %v1903_v23  ;;  %v1910_v34 = vrot.slane %v1909_v13, 5 }
  0x78   : > { %v534_v46 = vsel %vm524_vm5, %v1908_v41, %v1906_v29  ;;  %v495_v31 = vadd.f32 %v484_v59, %v451_v35  ;;  %v1912_v12 = vrot.slane %v1911_v47, 5  ;;  %v1914_v8 = vrot.slane %v1913_v28, 6 }
  0x79   : > { %v496_v6 = vadd.f32 %v486_v50, %v452_v55  ;;  %v577_v5 = vsel %vm569_vm6, %v1910_v34, %v576_v0  ;;  %v1916_v19 = vrot.slane %v1915_v7, 6  ;;  %v1920_v16 = vrot.slane %v1919_v10, 7  ;;  %v1929_v50 = vld [vmem:[#allocation26_spill] sm:$0xff] }
  0x7a   : > { %v579_v27 = vsel %vm569_vm6, %v1912_v12, %v578_v18  ;;  %v543_v53 = vadd.f32 %v532_v15, %v495_v31  ;;  %v621_v44 = vsel %vm360_vm3, %v1914_v8, %v620_v20  ;;  %v1918_v18 = vrot.slane %v1917_v61, 7 }
  0x7b   : > { %v544_v25 = vadd.f32 %v534_v46, %v496_v6  ;;  %v623_v0 = vsel %vm360_vm3, %v1916_v19, %v622_v17  ;;  %v671_v20 = vsel %vm409_vm4, %v1920_v16, %v670_v49  ;;  %v1922_v17 = vrot.slane %v1921_v14, 2 }
  0x7c   : > { %v588_v42 = vadd.f32 %v577_v5, %v543_v53  ;;  %v669_v37 = vsel %vm409_vm4, %v1918_v18, %v668_v1  ;;  %v1923_v4 = vrot.slane %v1570_v52, 2  ;;  %v1925_v59 = vrot.slane %v1924_v26, 2 }
  0x7d   : > { %v589_v57 = vadd.f32 %v579_v27, %v544_v25  ;;  %v720_v60 = vsel %vm267_vm1, %v1922_v17, %v719_v40  ;;  %v1927_v49 = vrot.slane %v1926_v3, 3  ;;  %v1928_v63 = vrot.slane %v1582_v62, 3 }
  0x7e   : > { %v632_v43 = vadd.f32 %v621_v44, %v588_v42  ;;  %v722_v1 = vsel %vm267_vm1, %v1925_v59, %v1923_v4  ;;  %v1930_v35 = vrot.slane %v1929_v50, 3  ;;  %v1931_v23 = vrot.slane %v1390_v22, 4 }
  0x7f   : > { %v633_v39 = vadd.f32 %v623_v0, %v589_v57  ;;  %v764_v9 = vsel %vm312_vm2, %v1927_v49, %v763_v33  ;;  %v1932_v48 = vrot.slane %v1593_v58, 4  ;;  %v1933_v24 = vrot.slane %v1394_v21, 4  ;;  %v979_v58 = vld [vmem:[#allocation2] ss:$0 sm:$0xff] }
  0x80   : > { %v684_v45 = vadd.f32 %v669_v37, %v632_v43  ;;  %v766_v40 = vsel %vm312_vm2, %v1930_v35, %v1928_v63  ;;  %v808_v11 = vsel %vm524_vm5, %v1931_v23, %v807_v54  ;;  %v1934_v29 = vrot.slane %v1400_v56, 5 }
  0x81   : > { %v685_v32 = vadd.f32 %v671_v20, %v633_v39  ;;  %v810_v33 = vsel %vm524_vm5, %v1933_v24, %v1932_v48  ;;  %v1935_v41 = vrot.slane %v1404_v30, 5  ;;  %vm885_vm7 = vcmask 7168  }
  0x82   : > { %v731_v52 = vadd.f32 %v720_v60, %v684_v45  ;;  %v852_v38 = vsel %vm569_vm6, %v1934_v29, %v851_v36  ;;  %vm888_vm8 = vcmask 1024  }
  0x83   : > { %v732_v55 = vadd.f32 %v722_v1, %v685_v32  ;;  %v854_v51 = vsel %vm569_vm6, %v1935_v41, %v853_v2 }
  0x84   : > { %v775_v62 = vadd.f32 %v764_v9, %v731_v52 }
  0x85   : > { %v776_v15 = vadd.f32 %v766_v40, %v732_v55 }
  0x86   : > { %v819_v46 = vadd.f32 %v808_v11, %v775_v62 }
  0x87   : > { %v820_v22 = vadd.f32 %v810_v33, %v776_v15 }
  0x88   : > { %v863_v31 = vadd.f32 %v852_v38, %v819_v46 }
  0x89   : > { %v864_v54 = vadd.f32 %v854_v51, %v820_v22 }
  0x8b   : > { %v870_v6 = vadd.f32 %v864_v54, %v863_v31 }
  0x8d   : > { %871 = vadd.xlane.f32.xlu0 %v870_v6 }
  0xc3   : > { %v869_v21 = vpop.xlane.xlu0 %868 }
  0xc4   : > { %v882_v56 = vadd.f32 %v979_v58, %v869_v21 }
  0xc6   : > { %886 = vst.msk [vmem:[%s172_s28] sm:$0xff] %vm885_vm7, %v882_v56 }
  0xe5   : > { %v877_v36 = vpop.xlane.xlu1 %876 }
  0xe6   : > { %v884_v30 = vadd.f32 %v979_v58, %v877_v36 }
  0xe8   : > { %889 = vst.msk [vmem:[%s172_s28 + $0x10] sm:$0x3] %vm888_vm8, %v884_v30 }
 0x100   : > { %v872_v2 = vpop.xlane.xlu0 %871 }
 0x101   : > { %v883_v13 = vadd.f32 %v979_v58, %v872_v2 }
 0x103   : > { %887 = vst.msk [vmem:[%s172_s28 + $0x8] sm:$0xff] %vm885_vm7, %v883_v13 }
 0x104 PF: > { %s15_s14 = sadd.s32 1, %s986_s14  }
 0x105   : > { %p12_p4 = scmp.ge.s32.totalorder %s15_s14, 4  }
 0x107   :  { %14 = sbr.rel (!%p12_p4) target bundleno = 3 (0x3), region = 77 }

</bundles_post_ra>
